<compile_context>
chip_gen: v7x
topology: tpu7x:2x2x1
jax: 0.10.0
libtpu: 0.0.40
codegen_flags: <defaults>
</compile_context>

<pallas_src>
import functools
import math

import jax
import jax.numpy as jnp
from jax import lax
from jax.experimental import pallas as pl
from jax.experimental.pallas import tpu as pltpu


def _round_up(n, m):
    return ((n + m - 1) // m) * m


# ---------------------------------------------------------------------------
# Fused encoder DWS-CNN block (depthwise + pointwise + BN + ReLU + pool [+ FNN])
# ---------------------------------------------------------------------------

def _enc_block_kernel(x_ref, dwt_ref, dwbt_ref, pwp_ref, pwbt_ref, *rest,
                      kh, kw, pad_h, pad_w, T, F, Cin, pool, has_fnn):
    """Channels-last interleaved layout: lane index = f*Cin + c.
    x_ref:    (1, T, F*Cin)
    dwt_ref:  (kh*kw, F*Cin)         depthwise weights tiled over F
    dwbt_ref: (1, F*Cin)             depthwise bias tiled over F
    pwp_ref:  (pool, F*Cin, Fp*Cout) block-diag pointwise(+BN) weights per pool offset
    pwbt_ref: (1, Fp*Cout)           pointwise(+BN) bias tiled over Fp
    [fw_ref:  (Fp*Cout, Np)          fused encoder FNN weight (lane-padded)]
    [fb_ref:  (1, Np)                fused encoder FNN bias]
    o_ref:    (1, T, Fp*Cout) or (1, T, Np)
    xp_ref:   (T+kh-1, (F+kw-1)*Cin) VMEM scratch for zero-padded input
    """
    if has_fnn:
        fw_ref, fb_ref, o_ref, xp_ref = rest
    else:
        fw_ref = fb_ref = None
        o_ref, xp_ref = rest

    # Zero-pad the input inside VMEM (no jnp.pad HBM round trip).
    xp_ref[...] = jnp.zeros_like(xp_ref)
    xp_ref[pad_h:pad_h + T, pad_w * Cin:(pad_w + F) * Cin] = x_ref[0]

    # Depthwise 5x5 conv: kh*kw shifted-window multiply-accumulates on one tile.
    acc = jnp.zeros((T, F * Cin), jnp.float32) + dwbt_ref[...]
    for i in range(kh):
        for j in range(kw):
            k = i * kw + j
            acc = acc + xp_ref[i:i + T, j * Cin:(j + F) * Cin] * dwt_ref[k:k + 1]

    # Pointwise 1x1 conv on the MXU, with MaxPool2d((1, pool)) fused as a max
    # over per-pool-offset matmuls (bias + ReLU commute with the max).
    z = jnp.dot(acc, pwp_ref[0], preferred_element_type=jnp.float32)
    for p in range(1, pool):
        z = jnp.maximum(z, jnp.dot(acc, pwp_ref[p],
                                   preferred_element_type=jnp.float32))
    y = jnp.maximum(z + pwbt_ref[...], 0.0)

    if has_fnn:   # encoder FNN fused into the last conv block
        y = jnp.dot(y, fw_ref[...], preferred_element_type=jnp.float32) + fb_ref[...]
    o_ref[0] = y


def enc_block(x_cl, dwt, dwbt, pwp, pwbt, *, kh, kw, T, F, Cin, Cout, pool,
              fnn=None):
    """x_cl: (B, T, F*Cin) channels-last interleaved -> (B, T, out_dim)."""
    B = x_cl.shape[0]
    Fp = F // pool
    has_fnn = fnn is not None
    out_dim = fnn[0].shape[1] if has_fnn else Fp * Cout

    kernel = functools.partial(_enc_block_kernel, kh=kh, kw=kw,
                               pad_h=(kh - 1) // 2, pad_w=(kw - 1) // 2,
                               T=T, F=F, Cin=Cin, pool=pool, has_fnn=has_fnn)

    in_specs = [
        pl.BlockSpec((1, T, F * Cin), lambda b: (b, 0, 0)),
        pl.BlockSpec((kh * kw, F * Cin), lambda b: (0, 0)),
        pl.BlockSpec((1, F * Cin), lambda b: (0, 0)),
        pl.BlockSpec((pool, F * Cin, Fp * Cout), lambda b: (0, 0, 0)),
        pl.BlockSpec((1, Fp * Cout), lambda b: (0, 0)),
    ]
    args = [x_cl, dwt, dwbt, pwp, pwbt]
    if has_fnn:
        fw, fb = fnn
        in_specs += [pl.BlockSpec(fw.shape, lambda b: (0, 0)),
                     pl.BlockSpec(fb.shape, lambda b: (0, 0))]
        args += [fw, fb]

    return pl.pallas_call(
        kernel,
        grid=(B,),
        in_specs=in_specs,
        out_specs=pl.BlockSpec((1, T, out_dim), lambda b: (b, 0, 0)),
        out_shape=jax.ShapeDtypeStruct((B, T, out_dim), jnp.float32),
        scratch_shapes=[pltpu.VMEM((T + kh - 1, (F + kw - 1) * Cin), jnp.float32)],
        compiler_params=pltpu.CompilerParams(dimension_semantics=("parallel",)),
    )(*args)


# ---------------------------------------------------------------------------
# Fused decoder transformer block (optionally with classifier fused in)
# ---------------------------------------------------------------------------

def _decoder_block_kernel(x_ref, mem_ref,
                          wqkv_ref, bqkv_ref, wos_ref, bos_ref,
                          wqc_ref, bqc_ref, wkvc_ref, bkvc_ref, woc_ref, boc_ref,
                          ln1g_ref, ln1b_ref, ln2g_ref, ln2b_ref, ln3g_ref, ln3b_ref,
                          ffw1_ref, ffb1_ref, ffw2_ref, ffb2_ref,
                          *rest, num_heads, has_cls, eps=1e-5):
    if has_cls:
        clsw_ref, clsb_ref, o_ref = rest
    else:
        clsw_ref = clsb_ref = None
        (o_ref,) = rest

    x = x_ref[0]        # (L, E)
    mem = mem_ref[0]    # (T, E)
    E = x.shape[-1]
    Dh = E // num_heads
    scale = 1.0 / math.sqrt(Dh)

    def ln(v, g_ref, b_ref):
        mu = jnp.mean(v, axis=-1, keepdims=True)
        var = jnp.mean((v - mu) ** 2, axis=-1, keepdims=True)
        return (v - mu) * lax.rsqrt(var + eps) * g_ref[...] + b_ref[...]

    def mha(q, k, v, wo_ref, bo_ref):
        # Per-head attention; output projection folded in per head (no concat).
        out = jnp.zeros_like(q) + bo_ref[...]
        for h in range(num_heads):
            sl = slice(h * Dh, (h + 1) * Dh)
            qh, kh, vh = q[:, sl], k[:, sl], v[:, sl]
            s = lax.dot_general(qh, kh, (((1,), (1,)), ((), ())),
                                preferred_element_type=jnp.float32) * scale
            m = jnp.max(s, axis=-1, keepdims=True)
            p = jnp.exp(s - m)
            p = p * pl.reciprocal(jnp.sum(p, axis=-1, keepdims=True), approx=True)
            oh = jnp.dot(p, vh, preferred_element_type=jnp.float32)
            out = out + jnp.dot(oh, wo_ref[sl, :],
                                preferred_element_type=jnp.float32)
        return out

    # --- self-attention (fused QKV projection); attention_mask=None in reference.
    qkv = jnp.dot(x, wqkv_ref[...], preferred_element_type=jnp.float32) + bqkv_ref[...]
    a = mha(qkv[:, :E], qkv[:, E:2 * E], qkv[:, 2 * E:], wos_ref, bos_ref)
    x = ln(x + a, ln1g_ref, ln1b_ref)

    # --- cross-attention (fused KV projection over the encoder memory).
    qc = jnp.dot(x, wqc_ref[...], preferred_element_type=jnp.float32) + bqc_ref[...]
    kv = jnp.dot(mem, wkvc_ref[...], preferred_element_type=jnp.float32) + bkvc_ref[...]
    a = mha(qc, kv[:, :E], kv[:, E:], woc_ref, boc_ref)
    x = ln(x + a, ln2g_ref, ln2b_ref)

    # --- feed-forward.
    h = jnp.maximum(jnp.dot(x, ffw1_ref[...], preferred_element_type=jnp.float32)
                    + ffb1_ref[...], 0.0)
    h = jnp.dot(h, ffw2_ref[...], preferred_element_type=jnp.float32) + ffb2_ref[...]
    x = ln(x + h, ln3g_ref, ln3b_ref)

    if has_cls:   # classifier fused into the last decoder block (lane-dense out)
        o_ref[0] = (jnp.dot(x, clsw_ref[...], preferred_element_type=jnp.float32)
                    + clsb_ref[...])
    else:
        o_ref[0] = x


def transformer_block_fused(x, mem, p, num_heads, cls_w=None, cls_b=None):
    """x: (B, L, E) batch-major decoder activations, mem: (B, T, E) memory."""
    B, L, E = x.shape
    T = mem.shape[1]
    sa, ca = p["self_attn"], p["cross_attn"]
    row = lambda v: v.reshape(1, -1)
    wqkv = jnp.concatenate([sa["wq"], sa["wk"], sa["wv"]], axis=1)       # (E, 3E)
    bqkv = jnp.concatenate([sa["bq"], sa["bk"], sa["bv"]]).reshape(1, 3 * E)
    wkvc = jnp.concatenate([ca["wk"], ca["wv"]], axis=1)                 # (E, 2E)
    bkvc = jnp.concatenate([ca["bk"], ca["bv"]]).reshape(1, 2 * E)

    args = [x, mem, wqkv, bqkv, sa["wo"], row(sa["bo"]),
            ca["wq"], row(ca["bq"]), wkvc, bkvc, ca["wo"], row(ca["bo"]),
            row(p["ln1_g"]), row(p["ln1_b"]), row(p["ln2_g"]), row(p["ln2_b"]),
            row(p["ln3_g"]), row(p["ln3_b"]),
            p["ff_w1"], row(p["ff_b1"]), p["ff_w2"], row(p["ff_b2"])]

    has_cls = cls_w is not None
    if has_cls:
        N = cls_w.shape[1]
        Np = _round_up(N, 128)          # lane-dense final store
        if Np != N:
            cls_w = jnp.pad(cls_w, ((0, 0), (0, Np - N)))
            cls_b = jnp.pad(cls_b, ((0, Np - N),))
        args += [cls_w, cls_b.reshape(1, Np)]
        out_dim = Np
    else:
        out_dim = E

    def full_spec(arr):
        nd = arr.ndim
        return pl.BlockSpec(arr.shape, lambda b, _nd=nd: (0,) * _nd)

    in_specs = ([pl.BlockSpec((1, L, E), lambda b: (b, 0, 0)),
                 pl.BlockSpec((1, T, E), lambda b: (b, 0, 0))]
                + [full_spec(a) for a in args[2:]])

    return pl.pallas_call(
        functools.partial(_decoder_block_kernel, num_heads=num_heads,
                          has_cls=has_cls),
        grid=(B,),
        in_specs=in_specs,
        out_specs=pl.BlockSpec((1, L, out_dim), lambda b: (b, 0, 0)),
        out_shape=jax.ShapeDtypeStruct((B, L, out_dim), jnp.float32),
        compiler_params=pltpu.CompilerParams(dimension_semantics=("parallel",)),
    )(*args)


# ---------------------------------------------------------------------------
# Model glue (reshapes / weight prep / orchestration only)
# ---------------------------------------------------------------------------

def _prep_enc_block(blk, F, pool, bn_scale):
    """Build channels-last tiled depthwise weights and the block-diagonal
    pointwise(+BN) weights split per pool offset (all tiny, done in XLA glue)."""
    Cin, kh, kw = blk["dw_w"].shape
    Cout = blk["pw_w"].shape[0]
    Fp = F // pool
    dwt = jnp.tile(blk["dw_w"].reshape(Cin, kh * kw).T, (1, F))      # (kh*kw, F*Cin)
    dwbt = jnp.tile(blk["dw_b"], F).reshape(1, F * Cin)
    pw = (blk["pw_w"] * bn_scale).T                                  # (Cin, Cout), BN folded
    wblk = jnp.kron(jnp.eye(F, dtype=jnp.float32), pw)               # (F*Cin, F*Cout)
    wblk = wblk.reshape(F * Cin, Fp, pool, Cout)
    pwp = jnp.transpose(wblk, (2, 0, 1, 3)).reshape(pool, F * Cin, Fp * Cout)
    pwbt = jnp.tile(blk["pw_b"] * bn_scale, Fp).reshape(1, Fp * Cout)
    return dwt, dwbt, pwp, pwbt, kh, kw, Cin, Cout


def dessed_dnn_encoder(x, params, pools=(5, 4, 2)):
    """x: (B, T, F_mel) -> (B, T, last_dim).  The final Linear (FNN) is fused
    into the last conv-block kernel; its output lanes are padded to 128 and
    sliced back here."""
    B, T, F = x.shape
    bn_scale = 1.0 / math.sqrt(1.0 + 1e-5)   # eval-mode BatchNorm2d, default stats
    last_dim = params["fnn_b"].shape[0]
    n_blocks = len(pools)
    h = x                                    # channels-last interleaved, Cin=1
    for li, pool in enumerate(pools):
        assert F % pool == 0, "MaxPool2d((1,pool)) requires F divisible by pool"
        blk = params[f"block{li}"]
        dwt, dwbt, pwp, pwbt, kh, kw, Cin, Cout = _prep_enc_block(blk, F, pool, bn_scale)
        fnn = None
        if li == n_blocks - 1:
            Fp = F // pool
            # Kernel features are f-major (lane = f*C + c); permute the (c-major)
            # FNN weight rows instead of transposing the activations, then pad
            # the output lane dim to a multiple of 128 for lane-dense stores.
            w_fm = (params["fnn_w"].reshape(Cout, Fp, last_dim)
                    .transpose(1, 0, 2).reshape(Fp * Cout, last_dim))
            Np = _round_up(last_dim, 128)
            fb = params["fnn_b"]
            if Np != last_dim:
                w_fm = jnp.pad(w_fm, ((0, 0), (0, Np - last_dim)))
                fb = jnp.pad(fb, ((0, Np - last_dim),))
            fnn = (w_fm, fb.reshape(1, Np))
        h = enc_block(h, dwt, dwbt, pwp, pwbt, kh=kh, kw=kw,
                      T=T, F=F, Cin=Cin, Cout=Cout, pool=pool, fnn=fnn)
        F = F // pool
    return h[:, :, :last_dim]


def wave_transformer8_forward(params, x, y, *, num_heads, num_layers):
    """Training-pass forward (y is not None).
    x: (B, T, F_mel) f32, y: (B, L) int32 token ids -> (L-1, B, nb_classes)."""
    assert num_layers >= 1
    enc = dessed_dnn_encoder(x, params["encoder"])       # (B, T, n_features)
    emb = params["embeddings"][y[:, :-1]]                # (B, L-1, E)  embedding gather (glue)
    nb_classes = params["cls_b"].shape[0]
    h = emb
    for l in range(num_layers - 1):
        h = transformer_block_fused(h, enc, params["decoder"][l], num_heads)
    logits = transformer_block_fused(h, enc, params["decoder"][num_layers - 1],
                                     num_heads,
                                     cls_w=params["cls_w"], cls_b=params["cls_b"])
    logits = logits[:, :, :nb_classes]                   # drop lane padding
    return jnp.transpose(logits, (1, 0, 2))              # seq-first (L-1, B, nb_classes)


# ---------------------------------------------------------------------------
# Deterministic parameter init
# ---------------------------------------------------------------------------

def init_params(key, *, in_channels, cnn_channels, inner_kernel_size, last_dim,
                num_layers, n_features, n_hidden, nb_classes, n_mel,
                pools=(5, 4, 2), k=5):
    # TODO(synk): pointwise "inner" conv implemented for 1x1 only.
    assert inner_kernel_size == 1
    keys = iter(jax.random.split(key, 256))

    def nrm(shape, s=0.02):
        return s * jax.random.normal(next(keys), shape, jnp.float32)

    enc = {}
    cin = in_channels
    for li in range(len(pools)):
        enc[f"block{li}"] = dict(
            dw_w=nrm((cin, k, k)),
            dw_b=jnp.zeros((cin,), jnp.float32),
            pw_w=nrm((cnn_channels, cin)),
            pw_b=jnp.zeros((cnn_channels,), jnp.float32),
        )
        cin = cnn_channels
    f_out = n_mel
    for pool in pools:
        f_out //= pool
    enc["fnn_w"] = nrm((cnn_channels * f_out, last_dim))
    enc["fnn_b"] = jnp.zeros((last_dim,), jnp.float32)

    def mha_params():
        return dict(
            wq=nrm((n_features, n_features)), bq=jnp.zeros((n_features,), jnp.float32),
            wk=nrm((n_features, n_features)), bk=jnp.zeros((n_features,), jnp.float32),
            wv=nrm((n_features, n_features)), bv=jnp.zeros((n_features,), jnp.float32),
            wo=nrm((n_features, n_features)), bo=jnp.zeros((n_features,), jnp.float32),
        )

    dec = []
    for _ in range(num_layers):
        dec.append(dict(
            self_attn=mha_params(),
            cross_attn=mha_params(),
            ln1_g=jnp.ones((n_features,), jnp.float32), ln1_b=jnp.zeros((n_features,), jnp.float32),
            ln2_g=jnp.ones((n_features,), jnp.float32), ln2_b=jnp.zeros((n_features,), jnp.float32),
            ln3_g=jnp.ones((n_features,), jnp.float32), ln3_b=jnp.zeros((n_features,), jnp.float32),
            ff_w1=nrm((n_features, n_hidden)), ff_b1=jnp.zeros((n_hidden,), jnp.float32),
            ff_w2=nrm((n_hidden, n_features)), ff_b2=jnp.zeros((n_features,), jnp.float32),
        ))

    return dict(
        encoder=enc,
        decoder=dec,
        embeddings=nrm((nb_classes, n_features)),
        cls_w=nrm((n_features, nb_classes)),
        cls_b=jnp.zeros((nb_classes,), jnp.float32),
    )


# ---------------------------------------------------------------------------

if __name__ == "__main__":
    # Small, shape-consistent config.
    in_channels_encoder = 1
    cnn_channels_encoder = 8
    inner_kernel_size_encoder = 1
    inner_padding_encoder = 0
    last_dim_encoder = 32
    num_layers_decoder = 2
    num_heads_decoder = 4
    n_features_decoder = 32
    n_hidden_decoder = 64
    nb_classes = 50

    B, T, F_mel = 2, 16, 40      # mel spectrogram input
    L_cap = 9                    # caption length; decoder consumes L_cap - 1 tokens

    key = jax.random.PRNGKey(0)
    k_params, k_x, k_y = jax.random.split(key, 3)

    params = init_params(
        k_params,
        in_channels=in_channels_encoder,
        cnn_channels=cnn_channels_encoder,
        inner_kernel_size=inner_kernel_size_encoder,
        last_dim=last_dim_encoder,
        num_layers=num_layers_decoder,
        n_features=n_features_decoder,
        n_hidden=n_hidden_decoder,
        nb_classes=nb_classes,
        n_mel=F_mel,
    )

    x = jax.random.normal(k_x, (B, T, F_mel), jnp.float32)
    y = jax.random.randint(k_y, (B, L_cap), 0, nb_classes, dtype=jnp.int32)

    fwd = jax.jit(functools.partial(wave_transformer8_forward,
                                    num_heads=num_heads_decoder,
                                    num_layers=num_layers_decoder))
    out = fwd(params, x, y)
    out = jax.block_until_ready(out)
    assert out.shape == (L_cap - 1, B, nb_classes), out.shape
    assert bool(jnp.all(jnp.isfinite(out)))
    print("KERNEL_OK")
</pallas_src>

<mosaic_0001>
module attributes {stable_mosaic.version = 11 : i64} {
  func.func @_enc_block_kernel(%arg0: i32, %arg1: memref<1x16x40xf32, #tpu.memory_space<vmem>>, %arg2: memref<25x40xf32, #tpu.memory_space<vmem>>, %arg3: memref<1x40xf32, #tpu.memory_space<vmem>>, %arg4: memref<5x40x64xf32, #tpu.memory_space<vmem>>, %arg5: memref<1x64xf32, #tpu.memory_space<vmem>>, %arg6: memref<1x16x64xf32, #tpu.memory_space<vmem>>, %arg7: memref<20x44xf32, #tpu.memory_space<vmem>>) attributes {dimension_semantics = [#tpu.dimension_semantics<parallel>], iteration_bounds = array<i64: 2>, scalar_prefetch = 0 : i64, scratch_operands = 1 : i64, tpu.core_type = #tpu.core_type<tc>, window_params = [{transform_indices = @transform_0, window_bounds = array<i64: 1, 16, 40>}, {pipeline_mode = #tpu.pipeline_mode<synchronous>, transform_indices = @transform_1, window_bounds = array<i64: 25, 40>}, {pipeline_mode = #tpu.pipeline_mode<synchronous>, transform_indices = @transform_2, window_bounds = array<i64: 1, 40>}, {pipeline_mode = #tpu.pipeline_mode<synchronous>, transform_indices = @transform_3, window_bounds = array<i64: 5, 40, 64>}, {pipeline_mode = #tpu.pipeline_mode<synchronous>, transform_indices = @transform_4, window_bounds = array<i64: 1, 64>}, {transform_indices = @transform_5, window_bounds = array<i64: 1, 16, 64>}]} {
    %cst = arith.constant 0.000000e+00 : f32
    %0 = vector.broadcast %cst : f32 to vector<20x44xf32>
    %c0 = arith.constant 0 : index
    %c0_0 = arith.constant 0 : index
    %1 = vector.load %arg7[%c0, %c0_0] : memref<20x44xf32, #tpu.memory_space<vmem>>, vector<20x44xf32>
    tpu.vector_store %arg7[%c0, %c0_0], %0 {strides = array<i32>} : memref<20x44xf32, #tpu.memory_space<vmem>>, vector<20x44xf32>,
    %c0_1 = arith.constant 0 : index
    %c0_2 = arith.constant 0 : index
    %c0_3 = arith.constant 0 : index
    %2 = vector.load %arg1[%c0_1, %c0_2, %c0_3] : memref<1x16x40xf32, #tpu.memory_space<vmem>>, vector<1x16x40xf32>
    %3 = vector.shape_cast %2 : vector<1x16x40xf32> to vector<16x40xf32>
    %c2 = arith.constant 2 : index
    %c2_4 = arith.constant 2 : index
    %4 = vector.load %arg7[%c2, %c2_4] : memref<20x44xf32, #tpu.memory_space<vmem>>, vector<16x40xf32>
    tpu.vector_store %arg7[%c2, %c2_4], %3 {strides = array<i32>} : memref<20x44xf32, #tpu.memory_space<vmem>>, vector<16x40xf32>,
    %cst_5 = arith.constant 0.000000e+00 : f32
    %5 = vector.broadcast %cst_5 : f32 to vector<16x40xf32>
    %c0_6 = arith.constant 0 : index
    %c0_7 = arith.constant 0 : index
    %6 = vector.load %arg3[%c0_6, %c0_7] : memref<1x40xf32, #tpu.memory_space<vmem>>, vector<1x40xf32>
    %7 = vector.broadcast %6 : vector<1x40xf32> to vector<16x40xf32>
    %8 = arith.addf %5, %7 : vector<16x40xf32>
    %c0_8 = arith.constant 0 : index
    %c0_9 = arith.constant 0 : index
    %9 = vector.load %arg7[%c0_8, %c0_9] : memref<20x44xf32, #tpu.memory_space<vmem>>, vector<16x40xf32>
    %c0_10 = arith.constant 0 : index
    %c0_11 = arith.constant 0 : index
    %10 = vector.load %arg2[%c0_10, %c0_11] : memref<25x40xf32, #tpu.memory_space<vmem>>, vector<1x40xf32>
    %11 = vector.broadcast %10 : vector<1x40xf32> to vector<16x40xf32>
    %12 = arith.mulf %9, %11 : vector<16x40xf32>
    %13 = arith.addf %8, %12 : vector<16x40xf32>
    %c0_12 = arith.constant 0 : index
    %c1 = arith.constant 1 : index
    %14 = vector.load %arg7[%c0_12, %c1] : memref<20x44xf32, #tpu.memory_space<vmem>>, vector<16x40xf32>
    %c1_13 = arith.constant 1 : index
    %c0_14 = arith.constant 0 : index
    %15 = vector.load %arg2[%c1_13, %c0_14] : memref<25x40xf32, #tpu.memory_space<vmem>>, vector<1x40xf32>
    %16 = vector.broadcast %15 : vector<1x40xf32> to vector<16x40xf32>
    %17 = arith.mulf %14, %16 : vector<16x40xf32>
    %18 = arith.addf %13, %17 : vector<16x40xf32>
    %c0_15 = arith.constant 0 : index
    %c2_16 = arith.constant 2 : index
    %19 = vector.load %arg7[%c0_15, %c2_16] : memref<20x44xf32, #tpu.memory_space<vmem>>, vector<16x40xf32>
    %c2_17 = arith.constant 2 : index
    %c0_18 = arith.constant 0 : index
    %20 = vector.load %arg2[%c2_17, %c0_18] : memref<25x40xf32, #tpu.memory_space<vmem>>, vector<1x40xf32>
    %21 = vector.broadcast %20 : vector<1x40xf32> to vector<16x40xf32>
    %22 = arith.mulf %19, %21 : vector<16x40xf32>
    %23 = arith.addf %18, %22 : vector<16x40xf32>
    %c0_19 = arith.constant 0 : index
    %c3 = arith.constant 3 : index
    %24 = vector.load %arg7[%c0_19, %c3] : memref<20x44xf32, #tpu.memory_space<vmem>>, vector<16x40xf32>
    %c3_20 = arith.constant 3 : index
    %c0_21 = arith.constant 0 : index
    %25 = vector.load %arg2[%c3_20, %c0_21] : memref<25x40xf32, #tpu.memory_space<vmem>>, vector<1x40xf32>
    %26 = vector.broadcast %25 : vector<1x40xf32> to vector<16x40xf32>
    %27 = arith.mulf %24, %26 : vector<16x40xf32>
    %28 = arith.addf %23, %27 : vector<16x40xf32>
    %c0_22 = arith.constant 0 : index
    %c4 = arith.constant 4 : index
    %29 = vector.load %arg7[%c0_22, %c4] : memref<20x44xf32, #tpu.memory_space<vmem>>, vector<16x40xf32>
    %c4_23 = arith.constant 4 : index
    %c0_24 = arith.constant 0 : index
    %30 = vector.load %arg2[%c4_23, %c0_24] : memref<25x40xf32, #tpu.memory_space<vmem>>, vector<1x40xf32>
    %31 = vector.broadcast %30 : vector<1x40xf32> to vector<16x40xf32>
    %32 = arith.mulf %29, %31 : vector<16x40xf32>
    %33 = arith.addf %28, %32 : vector<16x40xf32>
    %c1_25 = arith.constant 1 : index
    %c0_26 = arith.constant 0 : index
    %34 = vector.load %arg7[%c1_25, %c0_26] : memref<20x44xf32, #tpu.memory_space<vmem>>, vector<16x40xf32>
    %c5 = arith.constant 5 : index
    %c0_27 = arith.constant 0 : index
    %35 = vector.load %arg2[%c5, %c0_27] : memref<25x40xf32, #tpu.memory_space<vmem>>, vector<1x40xf32>
    %36 = vector.broadcast %35 : vector<1x40xf32> to vector<16x40xf32>
    %37 = arith.mulf %34, %36 : vector<16x40xf32>
    %38 = arith.addf %33, %37 : vector<16x40xf32>
    %c1_28 = arith.constant 1 : index
    %c1_29 = arith.constant 1 : index
    %39 = vector.load %arg7[%c1_28, %c1_29] : memref<20x44xf32, #tpu.memory_space<vmem>>, vector<16x40xf32>
    %c6 = arith.constant 6 : index
    %c0_30 = arith.constant 0 : index
    %40 = vector.load %arg2[%c6, %c0_30] : memref<25x40xf32, #tpu.memory_space<vmem>>, vector<1x40xf32>
    %41 = vector.broadcast %40 : vector<1x40xf32> to vector<16x40xf32>
    %42 = arith.mulf %39, %41 : vector<16x40xf32>
    %43 = arith.addf %38, %42 : vector<16x40xf32>
    %c1_31 = arith.constant 1 : index
    %c2_32 = arith.constant 2 : index
    %44 = vector.load %arg7[%c1_31, %c2_32] : memref<20x44xf32, #tpu.memory_space<vmem>>, vector<16x40xf32>
    %c7 = arith.constant 7 : index
    %c0_33 = arith.constant 0 : index
    %45 = vector.load %arg2[%c7, %c0_33] : memref<25x40xf32, #tpu.memory_space<vmem>>, vector<1x40xf32>
    %46 = vector.broadcast %45 : vector<1x40xf32> to vector<16x40xf32>
    %47 = arith.mulf %44, %46 : vector<16x40xf32>
    %48 = arith.addf %43, %47 : vector<16x40xf32>
    %c1_34 = arith.constant 1 : index
    %c3_35 = arith.constant 3 : index
    %49 = vector.load %arg7[%c1_34, %c3_35] : memref<20x44xf32, #tpu.memory_space<vmem>>, vector<16x40xf32>
    %c8 = arith.constant 8 : index
    %c0_36 = arith.constant 0 : index
    %50 = vector.load %arg2[%c8, %c0_36] : memref<25x40xf32, #tpu.memory_space<vmem>>, vector<1x40xf32>
    %51 = vector.broadcast %50 : vector<1x40xf32> to vector<16x40xf32>
    %52 = arith.mulf %49, %51 : vector<16x40xf32>
    %53 = arith.addf %48, %52 : vector<16x40xf32>
    %c1_37 = arith.constant 1 : index
    %c4_38 = arith.constant 4 : index
    %54 = vector.load %arg7[%c1_37, %c4_38] : memref<20x44xf32, #tpu.memory_space<vmem>>, vector<16x40xf32>
    %c9 = arith.constant 9 : index
    %c0_39 = arith.constant 0 : index
    %55 = vector.load %arg2[%c9, %c0_39] : memref<25x40xf32, #tpu.memory_space<vmem>>, vector<1x40xf32>
    %56 = vector.broadcast %55 : vector<1x40xf32> to vector<16x40xf32>
    %57 = arith.mulf %54, %56 : vector<16x40xf32>
    %58 = arith.addf %53, %57 : vector<16x40xf32>
    %c2_40 = arith.constant 2 : index
    %c0_41 = arith.constant 0 : index
    %59 = vector.load %arg7[%c2_40, %c0_41] : memref<20x44xf32, #tpu.memory_space<vmem>>, vector<16x40xf32>
    %c10 = arith.constant 10 : index
    %c0_42 = arith.constant 0 : index
    %60 = vector.load %arg2[%c10, %c0_42] : memref<25x40xf32, #tpu.memory_space<vmem>>, vector<1x40xf32>
    %61 = vector.broadcast %60 : vector<1x40xf32> to vector<16x40xf32>
    %62 = arith.mulf %59, %61 : vector<16x40xf32>
    %63 = arith.addf %58, %62 : vector<16x40xf32>
    %c2_43 = arith.constant 2 : index
    %c1_44 = arith.constant 1 : index
    %64 = vector.load %arg7[%c2_43, %c1_44] : memref<20x44xf32, #tpu.memory_space<vmem>>, vector<16x40xf32>
    %c11 = arith.constant 11 : index
    %c0_45 = arith.constant 0 : index
    %65 = vector.load %arg2[%c11, %c0_45] : memref<25x40xf32, #tpu.memory_space<vmem>>, vector<1x40xf32>
    %66 = vector.broadcast %65 : vector<1x40xf32> to vector<16x40xf32>
    %67 = arith.mulf %64, %66 : vector<16x40xf32>
    %68 = arith.addf %63, %67 : vector<16x40xf32>
    %c2_46 = arith.constant 2 : index
    %c2_47 = arith.constant 2 : index
    %69 = vector.load %arg7[%c2_46, %c2_47] : memref<20x44xf32, #tpu.memory_space<vmem>>, vector<16x40xf32>
    %c12 = arith.constant 12 : index
    %c0_48 = arith.constant 0 : index
    %70 = vector.load %arg2[%c12, %c0_48] : memref<25x40xf32, #tpu.memory_space<vmem>>, vector<1x40xf32>
    %71 = vector.broadcast %70 : vector<1x40xf32> to vector<16x40xf32>
    %72 = arith.mulf %69, %71 : vector<16x40xf32>
    %73 = arith.addf %68, %72 : vector<16x40xf32>
    %c2_49 = arith.constant 2 : index
    %c3_50 = arith.constant 3 : index
    %74 = vector.load %arg7[%c2_49, %c3_50] : memref<20x44xf32, #tpu.memory_space<vmem>>, vector<16x40xf32>
    %c13 = arith.constant 13 : index
    %c0_51 = arith.constant 0 : index
    %75 = vector.load %arg2[%c13, %c0_51] : memref<25x40xf32, #tpu.memory_space<vmem>>, vector<1x40xf32>
    %76 = vector.broadcast %75 : vector<1x40xf32> to vector<16x40xf32>
    %77 = arith.mulf %74, %76 : vector<16x40xf32>
    %78 = arith.addf %73, %77 : vector<16x40xf32>
    %c2_52 = arith.constant 2 : index
    %c4_53 = arith.constant 4 : index
    %79 = vector.load %arg7[%c2_52, %c4_53] : memref<20x44xf32, #tpu.memory_space<vmem>>, vector<16x40xf32>
    %c14 = arith.constant 14 : index
    %c0_54 = arith.constant 0 : index
    %80 = vector.load %arg2[%c14, %c0_54] : memref<25x40xf32, #tpu.memory_space<vmem>>, vector<1x40xf32>
    %81 = vector.broadcast %80 : vector<1x40xf32> to vector<16x40xf32>
    %82 = arith.mulf %79, %81 : vector<16x40xf32>
    %83 = arith.addf %78, %82 : vector<16x40xf32>
    %c3_55 = arith.constant 3 : index
    %c0_56 = arith.constant 0 : index
    %84 = vector.load %arg7[%c3_55, %c0_56] : memref<20x44xf32, #tpu.memory_space<vmem>>, vector<16x40xf32>
    %c15 = arith.constant 15 : index
    %c0_57 = arith.constant 0 : index
    %85 = vector.load %arg2[%c15, %c0_57] : memref<25x40xf32, #tpu.memory_space<vmem>>, vector<1x40xf32>
    %86 = vector.broadcast %85 : vector<1x40xf32> to vector<16x40xf32>
    %87 = arith.mulf %84, %86 : vector<16x40xf32>
    %88 = arith.addf %83, %87 : vector<16x40xf32>
    %c3_58 = arith.constant 3 : index
    %c1_59 = arith.constant 1 : index
    %89 = vector.load %arg7[%c3_58, %c1_59] : memref<20x44xf32, #tpu.memory_space<vmem>>, vector<16x40xf32>
    %c16 = arith.constant 16 : index
    %c0_60 = arith.constant 0 : index
    %90 = vector.load %arg2[%c16, %c0_60] : memref<25x40xf32, #tpu.memory_space<vmem>>, vector<1x40xf32>
    %91 = vector.broadcast %90 : vector<1x40xf32> to vector<16x40xf32>
    %92 = arith.mulf %89, %91 : vector<16x40xf32>
    %93 = arith.addf %88, %92 : vector<16x40xf32>
    %c3_61 = arith.constant 3 : index
    %c2_62 = arith.constant 2 : index
    %94 = vector.load %arg7[%c3_61, %c2_62] : memref<20x44xf32, #tpu.memory_space<vmem>>, vector<16x40xf32>
    %c17 = arith.constant 17 : index
    %c0_63 = arith.constant 0 : index
    %95 = vector.load %arg2[%c17, %c0_63] : memref<25x40xf32, #tpu.memory_space<vmem>>, vector<1x40xf32>
    %96 = vector.broadcast %95 : vector<1x40xf32> to vector<16x40xf32>
    %97 = arith.mulf %94, %96 : vector<16x40xf32>
    %98 = arith.addf %93, %97 : vector<16x40xf32>
    %c3_64 = arith.constant 3 : index
    %c3_65 = arith.constant 3 : index
    %99 = vector.load %arg7[%c3_64, %c3_65] : memref<20x44xf32, #tpu.memory_space<vmem>>, vector<16x40xf32>
    %c18 = arith.constant 18 : index
    %c0_66 = arith.constant 0 : index
    %100 = vector.load %arg2[%c18, %c0_66] : memref<25x40xf32, #tpu.memory_space<vmem>>, vector<1x40xf32>
    %101 = vector.broadcast %100 : vector<1x40xf32> to vector<16x40xf32>
    %102 = arith.mulf %99, %101 : vector<16x40xf32>
    %103 = arith.addf %98, %102 : vector<16x40xf32>
    %c3_67 = arith.constant 3 : index
    %c4_68 = arith.constant 4 : index
    %104 = vector.load %arg7[%c3_67, %c4_68] : memref<20x44xf32, #tpu.memory_space<vmem>>, vector<16x40xf32>
    %c19 = arith.constant 19 : index
    %c0_69 = arith.constant 0 : index
    %105 = vector.load %arg2[%c19, %c0_69] : memref<25x40xf32, #tpu.memory_space<vmem>>, vector<1x40xf32>
    %106 = vector.broadcast %105 : vector<1x40xf32> to vector<16x40xf32>
    %107 = arith.mulf %104, %106 : vector<16x40xf32>
    %108 = arith.addf %103, %107 : vector<16x40xf32>
    %c4_70 = arith.constant 4 : index
    %c0_71 = arith.constant 0 : index
    %109 = vector.load %arg7[%c4_70, %c0_71] : memref<20x44xf32, #tpu.memory_space<vmem>>, vector<16x40xf32>
    %c20 = arith.constant 20 : index
    %c0_72 = arith.constant 0 : index
    %110 = vector.load %arg2[%c20, %c0_72] : memref<25x40xf32, #tpu.memory_space<vmem>>, vector<1x40xf32>
    %111 = vector.broadcast %110 : vector<1x40xf32> to vector<16x40xf32>
    %112 = arith.mulf %109, %111 : vector<16x40xf32>
    %113 = arith.addf %108, %112 : vector<16x40xf32>
    %c4_73 = arith.constant 4 : index
    %c1_74 = arith.constant 1 : index
    %114 = vector.load %arg7[%c4_73, %c1_74] : memref<20x44xf32, #tpu.memory_space<vmem>>, vector<16x40xf32>
    %c21 = arith.constant 21 : index
    %c0_75 = arith.constant 0 : index
    %115 = vector.load %arg2[%c21, %c0_75] : memref<25x40xf32, #tpu.memory_space<vmem>>, vector<1x40xf32>
    %116 = vector.broadcast %115 : vector<1x40xf32> to vector<16x40xf32>
    %117 = arith.mulf %114, %116 : vector<16x40xf32>
    %118 = arith.addf %113, %117 : vector<16x40xf32>
    %c4_76 = arith.constant 4 : index
    %c2_77 = arith.constant 2 : index
    %119 = vector.load %arg7[%c4_76, %c2_77] : memref<20x44xf32, #tpu.memory_space<vmem>>, vector<16x40xf32>
    %c22 = arith.constant 22 : index
    %c0_78 = arith.constant 0 : index
    %120 = vector.load %arg2[%c22, %c0_78] : memref<25x40xf32, #tpu.memory_space<vmem>>, vector<1x40xf32>
    %121 = vector.broadcast %120 : vector<1x40xf32> to vector<16x40xf32>
    %122 = arith.mulf %119, %121 : vector<16x40xf32>
    %123 = arith.addf %118, %122 : vector<16x40xf32>
    %c4_79 = arith.constant 4 : index
    %c3_80 = arith.constant 3 : index
    %124 = vector.load %arg7[%c4_79, %c3_80] : memref<20x44xf32, #tpu.memory_space<vmem>>, vector<16x40xf32>
    %c23 = arith.constant 23 : index
    %c0_81 = arith.constant 0 : index
    %125 = vector.load %arg2[%c23, %c0_81] : memref<25x40xf32, #tpu.memory_space<vmem>>, vector<1x40xf32>
    %126 = vector.broadcast %125 : vector<1x40xf32> to vector<16x40xf32>
    %127 = arith.mulf %124, %126 : vector<16x40xf32>
    %128 = arith.addf %123, %127 : vector<16x40xf32>
    %c4_82 = arith.constant 4 : index
    %c4_83 = arith.constant 4 : index
    %129 = vector.load %arg7[%c4_82, %c4_83] : memref<20x44xf32, #tpu.memory_space<vmem>>, vector<16x40xf32>
    %c24 = arith.constant 24 : index
    %c0_84 = arith.constant 0 : index
    %130 = vector.load %arg2[%c24, %c0_84] : memref<25x40xf32, #tpu.memory_space<vmem>>, vector<1x40xf32>
    %131 = vector.broadcast %130 : vector<1x40xf32> to vector<16x40xf32>
    %132 = arith.mulf %129, %131 : vector<16x40xf32>
    %133 = arith.addf %128, %132 : vector<16x40xf32>
    %c0_85 = arith.constant 0 : index
    %c0_86 = arith.constant 0 : index
    %c0_87 = arith.constant 0 : index
    %134 = vector.load %arg4[%c0_85, %c0_86, %c0_87] : memref<5x40x64xf32, #tpu.memory_space<vmem>>, vector<1x40x64xf32>
    %135 = vector.shape_cast %134 : vector<1x40x64xf32> to vector<40x64xf32>
    %cst_88 = arith.constant dense<0.000000e+00> : vector<16x64xf32>
    %136 = tpu.matmul %133, %135, %cst_88 {dimension_numbers = #tpu.dot_dimension_numbers<[1], [0], [0], [1], [0, 0, 1, 1], [], []>} : vector<16x40xf32>, vector<40x64xf32>, vector<16x64xf32> -> vector<16x64xf32>
    %c1_89 = arith.constant 1 : index
    %c0_90 = arith.constant 0 : index
    %c0_91 = arith.constant 0 : index
    %137 = vector.load %arg4[%c1_89, %c0_90, %c0_91] : memref<5x40x64xf32, #tpu.memory_space<vmem>>, vector<1x40x64xf32>
    %138 = vector.shape_cast %137 : vector<1x40x64xf32> to vector<40x64xf32>
    %cst_92 = arith.constant dense<0.000000e+00> : vector<16x64xf32>
    %139 = tpu.matmul %133, %138, %cst_92 {dimension_numbers = #tpu.dot_dimension_numbers<[1], [0], [0], [1], [0, 0, 1, 1], [], []>} : vector<16x40xf32>, vector<40x64xf32>, vector<16x64xf32> -> vector<16x64xf32>
    %140 = arith.maximumf %136, %139 : vector<16x64xf32>
    %c2_93 = arith.constant 2 : index
    %c0_94 = arith.constant 0 : index
    %c0_95 = arith.constant 0 : index
    %141 = vector.load %arg4[%c2_93, %c0_94, %c0_95] : memref<5x40x64xf32, #tpu.memory_space<vmem>>, vector<1x40x64xf32>
    %142 = vector.shape_cast %141 : vector<1x40x64xf32> to vector<40x64xf32>
    %cst_96 = arith.constant dense<0.000000e+00> : vector<16x64xf32>
    %143 = tpu.matmul %133, %142, %cst_96 {dimension_numbers = #tpu.dot_dimension_numbers<[1], [0], [0], [1], [0, 0, 1, 1], [], []>} : vector<16x40xf32>, vector<40x64xf32>, vector<16x64xf32> -> vector<16x64xf32>
    %144 = arith.maximumf %140, %143 : vector<16x64xf32>
    %c3_97 = arith.constant 3 : index
    %c0_98 = arith.constant 0 : index
    %c0_99 = arith.constant 0 : index
    %145 = vector.load %arg4[%c3_97, %c0_98, %c0_99] : memref<5x40x64xf32, #tpu.memory_space<vmem>>, vector<1x40x64xf32>
    %146 = vector.shape_cast %145 : vector<1x40x64xf32> to vector<40x64xf32>
    %cst_100 = arith.constant dense<0.000000e+00> : vector<16x64xf32>
    %147 = tpu.matmul %133, %146, %cst_100 {dimension_numbers = #tpu.dot_dimension_numbers<[1], [0], [0], [1], [0, 0, 1, 1], [], []>} : vector<16x40xf32>, vector<40x64xf32>, vector<16x64xf32> -> vector<16x64xf32>
    %148 = arith.maximumf %144, %147 : vector<16x64xf32>
    %c4_101 = arith.constant 4 : index
    %c0_102 = arith.constant 0 : index
    %c0_103 = arith.constant 0 : index
    %149 = vector.load %arg4[%c4_101, %c0_102, %c0_103] : memref<5x40x64xf32, #tpu.memory_space<vmem>>, vector<1x40x64xf32>
    %150 = vector.shape_cast %149 : vector<1x40x64xf32> to vector<40x64xf32>
    %cst_104 = arith.constant dense<0.000000e+00> : vector<16x64xf32>
    %151 = tpu.matmul %133, %150, %cst_104 {dimension_numbers = #tpu.dot_dimension_numbers<[1], [0], [0], [1], [0, 0, 1, 1], [], []>} : vector<16x40xf32>, vector<40x64xf32>, vector<16x64xf32> -> vector<16x64xf32>
    %152 = arith.maximumf %148, %151 : vector<16x64xf32>
    %c0_105 = arith.constant 0 : index
    %c0_106 = arith.constant 0 : index
    %153 = vector.load %arg5[%c0_105, %c0_106] : memref<1x64xf32, #tpu.memory_space<vmem>>, vector<1x64xf32>
    %154 = vector.broadcast %153 : vector<1x64xf32> to vector<16x64xf32>
    %155 = arith.addf %152, %154 : vector<16x64xf32>
    %cst_107 = arith.constant 0.000000e+00 : f32
    %156 = vector.broadcast %cst_107 : f32 to vector<16x64xf32>
    %157 = arith.maximumf %155, %156 : vector<16x64xf32>
    %c0_108 = arith.constant 0 : index
    %c0_109 = arith.constant 0 : index
    %c0_110 = arith.constant 0 : index
    %158 = vector.load %arg6[%c0_108, %c0_109, %c0_110] : memref<1x16x64xf32, #tpu.memory_space<vmem>>, vector<1x16x64xf32>
    %159 = vector.shape_cast %158 : vector<1x16x64xf32> to vector<16x64xf32>
    %160 = vector.shape_cast %157 : vector<16x64xf32> to vector<1x16x64xf32>
    tpu.vector_store %arg6[%c0_108, %c0_109, %c0_110], %160 {strides = array<i32>} : memref<1x16x64xf32, #tpu.memory_space<vmem>>, vector<1x16x64xf32>,
    return
  }
  func.func @transform_0(%arg0: i32) -> (i32, i32, i32) {
    %c0_i32 = arith.constant 0 : i32
    %c0_i32_0 = arith.constant 0 : i32
    %c0_i32_1 = arith.constant 0 : i32
    return %arg0, %c0_i32, %c0_i32_0 : i32, i32, i32
  }
  func.func @transform_1(%arg0: i32) -> (i32, i32) {
    %c0_i32 = arith.constant 0 : i32
    %c0_i32_0 = arith.constant 0 : i32
    %c0_i32_1 = arith.constant 0 : i32
    return %c0_i32, %c0_i32_0 : i32, i32
  }
  func.func @transform_2(%arg0: i32) -> (i32, i32) {
    %c0_i32 = arith.constant 0 : i32
    %c0_i32_0 = arith.constant 0 : i32
    %c0_i32_1 = arith.constant 0 : i32
    return %c0_i32, %c0_i32_0 : i32, i32
  }
  func.func @transform_3(%arg0: i32) -> (i32, i32, i32) {
    %c0_i32 = arith.constant 0 : i32
    %c0_i32_0 = arith.constant 0 : i32
    %c0_i32_1 = arith.constant 0 : i32
    %c0_i32_2 = arith.constant 0 : i32
    return %c0_i32, %c0_i32_0, %c0_i32_1 : i32, i32, i32
  }
  func.func @transform_4(%arg0: i32) -> (i32, i32) {
    %c0_i32 = arith.constant 0 : i32
    %c0_i32_0 = arith.constant 0 : i32
    %c0_i32_1 = arith.constant 0 : i32
    return %c0_i32, %c0_i32_0 : i32, i32
  }
  func.func @transform_5(%arg0: i32) -> (i32, i32, i32) {
    %c0_i32 = arith.constant 0 : i32
    %c0_i32_0 = arith.constant 0 : i32
    %c0_i32_1 = arith.constant 0 : i32
    return %arg0, %c0_i32, %c0_i32_0 : i32, i32, i32
  }
}

module attributes {stable_mosaic.version = 11 : i64} {
  func.func @_enc_block_kernel(%arg0: i32, %arg1: memref<1x16x16xf32, #tpu.memory_space<vmem>>, %arg2: memref<25x16xf32, #tpu.memory_space<vmem>>, %arg3: memref<1x16xf32, #tpu.memory_space<vmem>>, %arg4: memref<2x16x8xf32, #tpu.memory_space<vmem>>, %arg5: memref<1x8xf32, #tpu.memory_space<vmem>>, %arg6: memref<8x128xf32, #tpu.memory_space<vmem>>, %arg7: memref<1x128xf32, #tpu.memory_space<vmem>>, %arg8: memref<1x16x128xf32, #tpu.memory_space<vmem>>, %arg9: memref<20x48xf32, #tpu.memory_space<vmem>>) attributes {dimension_semantics = [#tpu.dimension_semantics<parallel>], iteration_bounds = array<i64: 2>, scalar_prefetch = 0 : i64, scratch_operands = 1 : i64, tpu.core_type = #tpu.core_type<tc>, window_params = [{transform_indices = @transform_0, window_bounds = array<i64: 1, 16, 16>}, {pipeline_mode = #tpu.pipeline_mode<synchronous>, transform_indices = @transform_1, window_bounds = array<i64: 25, 16>}, {pipeline_mode = #tpu.pipeline_mode<synchronous>, transform_indices = @transform_2, window_bounds = array<i64: 1, 16>}, {pipeline_mode = #tpu.pipeline_mode<synchronous>, transform_indices = @transform_3, window_bounds = array<i64: 2, 16, 8>}, {pipeline_mode = #tpu.pipeline_mode<synchronous>, transform_indices = @transform_4, window_bounds = array<i64: 1, 8>}, {pipeline_mode = #tpu.pipeline_mode<synchronous>, transform_indices = @transform_5, window_bounds = array<i64: 8, 128>}, {pipeline_mode = #tpu.pipeline_mode<synchronous>, transform_indices = @transform_6, window_bounds = array<i64: 1, 128>}, {transform_indices = @transform_7, window_bounds = array<i64: 1, 16, 128>}]} {
    %cst = arith.constant 0.000000e+00 : f32
    %0 = vector.broadcast %cst : f32 to vector<20x48xf32>
    %c0 = arith.constant 0 : index
    %c0_0 = arith.constant 0 : index
    %1 = vector.load %arg9[%c0, %c0_0] : memref<20x48xf32, #tpu.memory_space<vmem>>, vector<20x48xf32>
    tpu.vector_store %arg9[%c0, %c0_0], %0 {strides = array<i32>} : memref<20x48xf32, #tpu.memory_space<vmem>>, vector<20x48xf32>,
    %c0_1 = arith.constant 0 : index
    %c0_2 = arith.constant 0 : index
    %c0_3 = arith.constant 0 : index
    %2 = vector.load %arg1[%c0_1, %c0_2, %c0_3] : memref<1x16x16xf32, #tpu.memory_space<vmem>>, vector<1x16x16xf32>
    %3 = vector.shape_cast %2 : vector<1x16x16xf32> to vector<16x16xf32>
    %c2 = arith.constant 2 : index
    %c16 = arith.constant 16 : index
    %4 = vector.load %arg9[%c2, %c16] : memref<20x48xf32, #tpu.memory_space<vmem>>, vector<16x16xf32>
    tpu.vector_store %arg9[%c2, %c16], %3 {strides = array<i32>} : memref<20x48xf32, #tpu.memory_space<vmem>>, vector<16x16xf32>,
    %cst_4 = arith.constant 0.000000e+00 : f32
    %5 = vector.broadcast %cst_4 : f32 to vector<16x16xf32>
    %c0_5 = arith.constant 0 : index
    %c0_6 = arith.constant 0 : index
    %6 = vector.load %arg3[%c0_5, %c0_6] : memref<1x16xf32, #tpu.memory_space<vmem>>, vector<1x16xf32>
    %7 = vector.broadcast %6 : vector<1x16xf32> to vector<16x16xf32>
    %8 = arith.addf %5, %7 : vector<16x16xf32>
    %c0_7 = arith.constant 0 : index
    %c0_8 = arith.constant 0 : index
    %9 = vector.load %arg9[%c0_7, %c0_8] : memref<20x48xf32, #tpu.memory_space<vmem>>, vector<16x16xf32>
    %c0_9 = arith.constant 0 : index
    %c0_10 = arith.constant 0 : index
    %10 = vector.load %arg2[%c0_9, %c0_10] : memref<25x16xf32, #tpu.memory_space<vmem>>, vector<1x16xf32>
    %11 = vector.broadcast %10 : vector<1x16xf32> to vector<16x16xf32>
    %12 = arith.mulf %9, %11 : vector<16x16xf32>
    %13 = arith.addf %8, %12 : vector<16x16xf32>
    %c0_11 = arith.constant 0 : index
    %c8 = arith.constant 8 : index
    %14 = vector.load %arg9[%c0_11, %c8] : memref<20x48xf32, #tpu.memory_space<vmem>>, vector<16x16xf32>
    %c1 = arith.constant 1 : index
    %c0_12 = arith.constant 0 : index
    %15 = vector.load %arg2[%c1, %c0_12] : memref<25x16xf32, #tpu.memory_space<vmem>>, vector<1x16xf32>
    %16 = vector.broadcast %15 : vector<1x16xf32> to vector<16x16xf32>
    %17 = arith.mulf %14, %16 : vector<16x16xf32>
    %18 = arith.addf %13, %17 : vector<16x16xf32>
    %c0_13 = arith.constant 0 : index
    %c16_14 = arith.constant 16 : index
    %19 = vector.load %arg9[%c0_13, %c16_14] : memref<20x48xf32, #tpu.memory_space<vmem>>, vector<16x16xf32>
    %c2_15 = arith.constant 2 : index
    %c0_16 = arith.constant 0 : index
    %20 = vector.load %arg2[%c2_15, %c0_16] : memref<25x16xf32, #tpu.memory_space<vmem>>, vector<1x16xf32>
    %21 = vector.broadcast %20 : vector<1x16xf32> to vector<16x16xf32>
    %22 = arith.mulf %19, %21 : vector<16x16xf32>
    %23 = arith.addf %18, %22 : vector<16x16xf32>
    %c0_17 = arith.constant 0 : index
    %c24 = arith.constant 24 : index
    %24 = vector.load %arg9[%c0_17, %c24] : memref<20x48xf32, #tpu.memory_space<vmem>>, vector<16x16xf32>
    %c3 = arith.constant 3 : index
    %c0_18 = arith.constant 0 : index
    %25 = vector.load %arg2[%c3, %c0_18] : memref<25x16xf32, #tpu.memory_space<vmem>>, vector<1x16xf32>
    %26 = vector.broadcast %25 : vector<1x16xf32> to vector<16x16xf32>
    %27 = arith.mulf %24, %26 : vector<16x16xf32>
    %28 = arith.addf %23, %27 : vector<16x16xf32>
    %c0_19 = arith.constant 0 : index
    %c32 = arith.constant 32 : index
    %29 = vector.load %arg9[%c0_19, %c32] : memref<20x48xf32, #tpu.memory_space<vmem>>, vector<16x16xf32>
    %c4 = arith.constant 4 : index
    %c0_20 = arith.constant 0 : index
    %30 = vector.load %arg2[%c4, %c0_20] : memref<25x16xf32, #tpu.memory_space<vmem>>, vector<1x16xf32>
    %31 = vector.broadcast %30 : vector<1x16xf32> to vector<16x16xf32>
    %32 = arith.mulf %29, %31 : vector<16x16xf32>
    %33 = arith.addf %28, %32 : vector<16x16xf32>
    %c1_21 = arith.constant 1 : index
    %c0_22 = arith.constant 0 : index
    %34 = vector.load %arg9[%c1_21, %c0_22] : memref<20x48xf32, #tpu.memory_space<vmem>>, vector<16x16xf32>
    %c5 = arith.constant 5 : index
    %c0_23 = arith.constant 0 : index
    %35 = vector.load %arg2[%c5, %c0_23] : memref<25x16xf32, #tpu.memory_space<vmem>>, vector<1x16xf32>
    %36 = vector.broadcast %35 : vector<1x16xf32> to vector<16x16xf32>
    %37 = arith.mulf %34, %36 : vector<16x16xf32>
    %38 = arith.addf %33, %37 : vector<16x16xf32>
    %c1_24 = arith.constant 1 : index
    %c8_25 = arith.constant 8 : index
    %39 = vector.load %arg9[%c1_24, %c8_25] : memref<20x48xf32, #tpu.memory_space<vmem>>, vector<16x16xf32>
    %c6 = arith.constant 6 : index
    %c0_26 = arith.constant 0 : index
    %40 = vector.load %arg2[%c6, %c0_26] : memref<25x16xf32, #tpu.memory_space<vmem>>, vector<1x16xf32>
    %41 = vector.broadcast %40 : vector<1x16xf32> to vector<16x16xf32>
    %42 = arith.mulf %39, %41 : vector<16x16xf32>
    %43 = arith.addf %38, %42 : vector<16x16xf32>
    %c1_27 = arith.constant 1 : index
    %c16_28 = arith.constant 16 : index
    %44 = vector.load %arg9[%c1_27, %c16_28] : memref<20x48xf32, #tpu.memory_space<vmem>>, vector<16x16xf32>
    %c7 = arith.constant 7 : index
    %c0_29 = arith.constant 0 : index
    %45 = vector.load %arg2[%c7, %c0_29] : memref<25x16xf32, #tpu.memory_space<vmem>>, vector<1x16xf32>
    %46 = vector.broadcast %45 : vector<1x16xf32> to vector<16x16xf32>
    %47 = arith.mulf %44, %46 : vector<16x16xf32>
    %48 = arith.addf %43, %47 : vector<16x16xf32>
    %c1_30 = arith.constant 1 : index
    %c24_31 = arith.constant 24 : index
    %49 = vector.load %arg9[%c1_30, %c24_31] : memref<20x48xf32, #tpu.memory_space<vmem>>, vector<16x16xf32>
    %c8_32 = arith.constant 8 : index
    %c0_33 = arith.constant 0 : index
    %50 = vector.load %arg2[%c8_32, %c0_33] : memref<25x16xf32, #tpu.memory_space<vmem>>, vector<1x16xf32>
    %51 = vector.broadcast %50 : vector<1x16xf32> to vector<16x16xf32>
    %52 = arith.mulf %49, %51 : vector<16x16xf32>
    %53 = arith.addf %48, %52 : vector<16x16xf32>
    %c1_34 = arith.constant 1 : index
    %c32_35 = arith.constant 32 : index
    %54 = vector.load %arg9[%c1_34, %c32_35] : memref<20x48xf32, #tpu.memory_space<vmem>>, vector<16x16xf32>
    %c9 = arith.constant 9 : index
    %c0_36 = arith.constant 0 : index
    %55 = vector.load %arg2[%c9, %c0_36] : memref<25x16xf32, #tpu.memory_space<vmem>>, vector<1x16xf32>
    %56 = vector.broadcast %55 : vector<1x16xf32> to vector<16x16xf32>
    %57 = arith.mulf %54, %56 : vector<16x16xf32>
    %58 = arith.addf %53, %57 : vector<16x16xf32>
    %c2_37 = arith.constant 2 : index
    %c0_38 = arith.constant 0 : index
    %59 = vector.load %arg9[%c2_37, %c0_38] : memref<20x48xf32, #tpu.memory_space<vmem>>, vector<16x16xf32>
    %c10 = arith.constant 10 : index
    %c0_39 = arith.constant 0 : index
    %60 = vector.load %arg2[%c10, %c0_39] : memref<25x16xf32, #tpu.memory_space<vmem>>, vector<1x16xf32>
    %61 = vector.broadcast %60 : vector<1x16xf32> to vector<16x16xf32>
    %62 = arith.mulf %59, %61 : vector<16x16xf32>
    %63 = arith.addf %58, %62 : vector<16x16xf32>
    %c2_40 = arith.constant 2 : index
    %c8_41 = arith.constant 8 : index
    %64 = vector.load %arg9[%c2_40, %c8_41] : memref<20x48xf32, #tpu.memory_space<vmem>>, vector<16x16xf32>
    %c11 = arith.constant 11 : index
    %c0_42 = arith.constant 0 : index
    %65 = vector.load %arg2[%c11, %c0_42] : memref<25x16xf32, #tpu.memory_space<vmem>>, vector<1x16xf32>
    %66 = vector.broadcast %65 : vector<1x16xf32> to vector<16x16xf32>
    %67 = arith.mulf %64, %66 : vector<16x16xf32>
    %68 = arith.addf %63, %67 : vector<16x16xf32>
    %c2_43 = arith.constant 2 : index
    %c16_44 = arith.constant 16 : index
    %69 = vector.load %arg9[%c2_43, %c16_44] : memref<20x48xf32, #tpu.memory_space<vmem>>, vector<16x16xf32>
    %c12 = arith.constant 12 : index
    %c0_45 = arith.constant 0 : index
    %70 = vector.load %arg2[%c12, %c0_45] : memref<25x16xf32, #tpu.memory_space<vmem>>, vector<1x16xf32>
    %71 = vector.broadcast %70 : vector<1x16xf32> to vector<16x16xf32>
    %72 = arith.mulf %69, %71 : vector<16x16xf32>
    %73 = arith.addf %68, %72 : vector<16x16xf32>
    %c2_46 = arith.constant 2 : index
    %c24_47 = arith.constant 24 : index
    %74 = vector.load %arg9[%c2_46, %c24_47] : memref<20x48xf32, #tpu.memory_space<vmem>>, vector<16x16xf32>
    %c13 = arith.constant 13 : index
    %c0_48 = arith.constant 0 : index
    %75 = vector.load %arg2[%c13, %c0_48] : memref<25x16xf32, #tpu.memory_space<vmem>>, vector<1x16xf32>
    %76 = vector.broadcast %75 : vector<1x16xf32> to vector<16x16xf32>
    %77 = arith.mulf %74, %76 : vector<16x16xf32>
    %78 = arith.addf %73, %77 : vector<16x16xf32>
    %c2_49 = arith.constant 2 : index
    %c32_50 = arith.constant 32 : index
    %79 = vector.load %arg9[%c2_49, %c32_50] : memref<20x48xf32, #tpu.memory_space<vmem>>, vector<16x16xf32>
    %c14 = arith.constant 14 : index
    %c0_51 = arith.constant 0 : index
    %80 = vector.load %arg2[%c14, %c0_51] : memref<25x16xf32, #tpu.memory_space<vmem>>, vector<1x16xf32>
    %81 = vector.broadcast %80 : vector<1x16xf32> to vector<16x16xf32>
    %82 = arith.mulf %79, %81 : vector<16x16xf32>
    %83 = arith.addf %78, %82 : vector<16x16xf32>
    %c3_52 = arith.constant 3 : index
    %c0_53 = arith.constant 0 : index
    %84 = vector.load %arg9[%c3_52, %c0_53] : memref<20x48xf32, #tpu.memory_space<vmem>>, vector<16x16xf32>
    %c15 = arith.constant 15 : index
    %c0_54 = arith.constant 0 : index
    %85 = vector.load %arg2[%c15, %c0_54] : memref<25x16xf32, #tpu.memory_space<vmem>>, vector<1x16xf32>
    %86 = vector.broadcast %85 : vector<1x16xf32> to vector<16x16xf32>
    %87 = arith.mulf %84, %86 : vector<16x16xf32>
    %88 = arith.addf %83, %87 : vector<16x16xf32>
    %c3_55 = arith.constant 3 : index
    %c8_56 = arith.constant 8 : index
    %89 = vector.load %arg9[%c3_55, %c8_56] : memref<20x48xf32, #tpu.memory_space<vmem>>, vector<16x16xf32>
    %c16_57 = arith.constant 16 : index
    %c0_58 = arith.constant 0 : index
    %90 = vector.load %arg2[%c16_57, %c0_58] : memref<25x16xf32, #tpu.memory_space<vmem>>, vector<1x16xf32>
    %91 = vector.broadcast %90 : vector<1x16xf32> to vector<16x16xf32>
    %92 = arith.mulf %89, %91 : vector<16x16xf32>
    %93 = arith.addf %88, %92 : vector<16x16xf32>
    %c3_59 = arith.constant 3 : index
    %c16_60 = arith.constant 16 : index
    %94 = vector.load %arg9[%c3_59, %c16_60] : memref<20x48xf32, #tpu.memory_space<vmem>>, vector<16x16xf32>
    %c17 = arith.constant 17 : index
    %c0_61 = arith.constant 0 : index
    %95 = vector.load %arg2[%c17, %c0_61] : memref<25x16xf32, #tpu.memory_space<vmem>>, vector<1x16xf32>
    %96 = vector.broadcast %95 : vector<1x16xf32> to vector<16x16xf32>
    %97 = arith.mulf %94, %96 : vector<16x16xf32>
    %98 = arith.addf %93, %97 : vector<16x16xf32>
    %c3_62 = arith.constant 3 : index
    %c24_63 = arith.constant 24 : index
    %99 = vector.load %arg9[%c3_62, %c24_63] : memref<20x48xf32, #tpu.memory_space<vmem>>, vector<16x16xf32>
    %c18 = arith.constant 18 : index
    %c0_64 = arith.constant 0 : index
    %100 = vector.load %arg2[%c18, %c0_64] : memref<25x16xf32, #tpu.memory_space<vmem>>, vector<1x16xf32>
    %101 = vector.broadcast %100 : vector<1x16xf32> to vector<16x16xf32>
    %102 = arith.mulf %99, %101 : vector<16x16xf32>
    %103 = arith.addf %98, %102 : vector<16x16xf32>
    %c3_65 = arith.constant 3 : index
    %c32_66 = arith.constant 32 : index
    %104 = vector.load %arg9[%c3_65, %c32_66] : memref<20x48xf32, #tpu.memory_space<vmem>>, vector<16x16xf32>
    %c19 = arith.constant 19 : index
    %c0_67 = arith.constant 0 : index
    %105 = vector.load %arg2[%c19, %c0_67] : memref<25x16xf32, #tpu.memory_space<vmem>>, vector<1x16xf32>
    %106 = vector.broadcast %105 : vector<1x16xf32> to vector<16x16xf32>
    %107 = arith.mulf %104, %106 : vector<16x16xf32>
    %108 = arith.addf %103, %107 : vector<16x16xf32>
    %c4_68 = arith.constant 4 : index
    %c0_69 = arith.constant 0 : index
    %109 = vector.load %arg9[%c4_68, %c0_69] : memref<20x48xf32, #tpu.memory_space<vmem>>, vector<16x16xf32>
    %c20 = arith.constant 20 : index
    %c0_70 = arith.constant 0 : index
    %110 = vector.load %arg2[%c20, %c0_70] : memref<25x16xf32, #tpu.memory_space<vmem>>, vector<1x16xf32>
    %111 = vector.broadcast %110 : vector<1x16xf32> to vector<16x16xf32>
    %112 = arith.mulf %109, %111 : vector<16x16xf32>
    %113 = arith.addf %108, %112 : vector<16x16xf32>
    %c4_71 = arith.constant 4 : index
    %c8_72 = arith.constant 8 : index
    %114 = vector.load %arg9[%c4_71, %c8_72] : memref<20x48xf32, #tpu.memory_space<vmem>>, vector<16x16xf32>
    %c21 = arith.constant 21 : index
    %c0_73 = arith.constant 0 : index
    %115 = vector.load %arg2[%c21, %c0_73] : memref<25x16xf32, #tpu.memory_space<vmem>>, vector<1x16xf32>
    %116 = vector.broadcast %115 : vector<1x16xf32> to vector<16x16xf32>
    %117 = arith.mulf %114, %116 : vector<16x16xf32>
    %118 = arith.addf %113, %117 : vector<16x16xf32>
    %c4_74 = arith.constant 4 : index
    %c16_75 = arith.constant 16 : index
    %119 = vector.load %arg9[%c4_74, %c16_75] : memref<20x48xf32, #tpu.memory_space<vmem>>, vector<16x16xf32>
    %c22 = arith.constant 22 : index
    %c0_76 = arith.constant 0 : index
    %120 = vector.load %arg2[%c22, %c0_76] : memref<25x16xf32, #tpu.memory_space<vmem>>, vector<1x16xf32>
    %121 = vector.broadcast %120 : vector<1x16xf32> to vector<16x16xf32>
    %122 = arith.mulf %119, %121 : vector<16x16xf32>
    %123 = arith.addf %118, %122 : vector<16x16xf32>
    %c4_77 = arith.constant 4 : index
    %c24_78 = arith.constant 24 : index
    %124 = vector.load %arg9[%c4_77, %c24_78] : memref<20x48xf32, #tpu.memory_space<vmem>>, vector<16x16xf32>
    %c23 = arith.constant 23 : index
    %c0_79 = arith.constant 0 : index
    %125 = vector.load %arg2[%c23, %c0_79] : memref<25x16xf32, #tpu.memory_space<vmem>>, vector<1x16xf32>
    %126 = vector.broadcast %125 : vector<1x16xf32> to vector<16x16xf32>
    %127 = arith.mulf %124, %126 : vector<16x16xf32>
    %128 = arith.addf %123, %127 : vector<16x16xf32>
    %c4_80 = arith.constant 4 : index
    %c32_81 = arith.constant 32 : index
    %129 = vector.load %arg9[%c4_80, %c32_81] : memref<20x48xf32, #tpu.memory_space<vmem>>, vector<16x16xf32>
    %c24_82 = arith.constant 24 : index
    %c0_83 = arith.constant 0 : index
    %130 = vector.load %arg2[%c24_82, %c0_83] : memref<25x16xf32, #tpu.memory_space<vmem>>, vector<1x16xf32>
    %131 = vector.broadcast %130 : vector<1x16xf32> to vector<16x16xf32>
    %132 = arith.mulf %129, %131 : vector<16x16xf32>
    %133 = arith.addf %128, %132 : vector<16x16xf32>
    %c0_84 = arith.constant 0 : index
    %c0_85 = arith.constant 0 : index
    %c0_86 = arith.constant 0 : index
    %134 = vector.load %arg4[%c0_84, %c0_85, %c0_86] : memref<2x16x8xf32, #tpu.memory_space<vmem>>, vector<1x16x8xf32>
    %135 = vector.shape_cast %134 : vector<1x16x8xf32> to vector<16x8xf32>
    %cst_87 = arith.constant dense<0.000000e+00> : vector<16x8xf32>
    %136 = tpu.matmul %133, %135, %cst_87 {dimension_numbers = #tpu.dot_dimension_numbers<[1], [0], [0], [1], [0, 0, 1, 1], [], []>} : vector<16x16xf32>, vector<16x8xf32>, vector<16x8xf32> -> vector<16x8xf32>
    %c1_88 = arith.constant 1 : index
    %c0_89 = arith.constant 0 : index
    %c0_90 = arith.constant 0 : index
    %137 = vector.load %arg4[%c1_88, %c0_89, %c0_90] : memref<2x16x8xf32, #tpu.memory_space<vmem>>, vector<1x16x8xf32>
    %138 = vector.shape_cast %137 : vector<1x16x8xf32> to vector<16x8xf32>
    %cst_91 = arith.constant dense<0.000000e+00> : vector<16x8xf32>
    %139 = tpu.matmul %133, %138, %cst_91 {dimension_numbers = #tpu.dot_dimension_numbers<[1], [0], [0], [1], [0, 0, 1, 1], [], []>} : vector<16x16xf32>, vector<16x8xf32>, vector<16x8xf32> -> vector<16x8xf32>
    %140 = arith.maximumf %136, %139 : vector<16x8xf32>
    %c0_92 = arith.constant 0 : index
    %c0_93 = arith.constant 0 : index
    %141 = vector.load %arg5[%c0_92, %c0_93] : memref<1x8xf32, #tpu.memory_space<vmem>>, vector<1x8xf32>
    %142 = vector.broadcast %141 : vector<1x8xf32> to vector<16x8xf32>
    %143 = arith.addf %140, %142 : vector<16x8xf32>
    %cst_94 = arith.constant 0.000000e+00 : f32
    %144 = vector.broadcast %cst_94 : f32 to vector<16x8xf32>
    %145 = arith.maximumf %143, %144 : vector<16x8xf32>
    %c0_95 = arith.constant 0 : index
    %c0_96 = arith.constant 0 : index
    %146 = vector.load %arg6[%c0_95, %c0_96] : memref<8x128xf32, #tpu.memory_space<vmem>>, vector<8x128xf32>
    %cst_97 = arith.constant dense<0.000000e+00> : vector<16x128xf32>
    %147 = tpu.matmul %145, %146, %cst_97 {dimension_numbers = #tpu.dot_dimension_numbers<[1], [0], [0], [1], [0, 0, 1, 1], [], []>} : vector<16x8xf32>, vector<8x128xf32>, vector<16x128xf32> -> vector<16x128xf32>
    %c0_98 = arith.constant 0 : index
    %c0_99 = arith.constant 0 : index
    %148 = vector.load %arg7[%c0_98, %c0_99] : memref<1x128xf32, #tpu.memory_space<vmem>>, vector<1x128xf32>
    %149 = vector.broadcast %148 : vector<1x128xf32> to vector<16x128xf32>
    %150 = arith.addf %147, %149 : vector<16x128xf32>
    %c0_100 = arith.constant 0 : index
    %c0_101 = arith.constant 0 : index
    %c0_102 = arith.constant 0 : index
    %151 = vector.load %arg8[%c0_100, %c0_101, %c0_102] : memref<1x16x128xf32, #tpu.memory_space<vmem>>, vector<1x16x128xf32>
    %152 = vector.shape_cast %151 : vector<1x16x128xf32> to vector<16x128xf32>
    %153 = vector.shape_cast %150 : vector<16x128xf32> to vector<1x16x128xf32>
    tpu.vector_store %arg8[%c0_100, %c0_101, %c0_102], %153 {strides = array<i32>} : memref<1x16x128xf32, #tpu.memory_space<vmem>>, vector<1x16x128xf32>,
    return
  }
  func.func @transform_0(%arg0: i32) -> (i32, i32, i32) {
    %c0_i32 = arith.constant 0 : i32
    %c0_i32_0 = arith.constant 0 : i32
    %c0_i32_1 = arith.constant 0 : i32
    return %arg0, %c0_i32, %c0_i32_0 : i32, i32, i32
  }
  func.func @transform_1(%arg0: i32) -> (i32, i32) {
    %c0_i32 = arith.constant 0 : i32
    %c0_i32_0 = arith.constant 0 : i32
    %c0_i32_1 = arith.constant 0 : i32
    return %c0_i32, %c0_i32_0 : i32, i32
  }
  func.func @transform_2(%arg0: i32) -> (i32, i32) {
    %c0_i32 = arith.constant 0 : i32
    %c0_i32_0 = arith.constant 0 : i32
    %c0_i32_1 = arith.constant 0 : i32
    return %c0_i32, %c0_i32_0 : i32, i32
  }
  func.func @transform_3(%arg0: i32) -> (i32, i32, i32) {
    %c0_i32 = arith.constant 0 : i32
    %c0_i32_0 = arith.constant 0 : i32
    %c0_i32_1 = arith.constant 0 : i32
    %c0_i32_2 = arith.constant 0 : i32
    return %c0_i32, %c0_i32_0, %c0_i32_1 : i32, i32, i32
  }
  func.func @transform_4(%arg0: i32) -> (i32, i32) {
    %c0_i32 = arith.constant 0 : i32
    %c0_i32_0 = arith.constant 0 : i32
    %c0_i32_1 = arith.constant 0 : i32
    return %c0_i32, %c0_i32_0 : i32, i32
  }
  func.func @transform_5(%arg0: i32) -> (i32, i32) {
    %c0_i32 = arith.constant 0 : i32
    %c0_i32_0 = arith.constant 0 : i32
    %c0_i32_1 = arith.constant 0 : i32
    return %c0_i32, %c0_i32_0 : i32, i32
  }
  func.func @transform_6(%arg0: i32) -> (i32, i32) {
    %c0_i32 = arith.constant 0 : i32
    %c0_i32_0 = arith.constant 0 : i32
    %c0_i32_1 = arith.constant 0 : i32
    return %c0_i32, %c0_i32_0 : i32, i32
  }
  func.func @transform_7(%arg0: i32) -> (i32, i32, i32) {
    %c0_i32 = arith.constant 0 : i32
    %c0_i32_0 = arith.constant 0 : i32
    %c0_i32_1 = arith.constant 0 : i32
    return %arg0, %c0_i32, %c0_i32_0 : i32, i32, i32
  }
}

module attributes {stable_mosaic.version = 11 : i64} {
  func.func @_enc_block_kernel(%arg0: i32, %arg1: memref<1x16x64xf32, #tpu.memory_space<vmem>>, %arg2: memref<25x64xf32, #tpu.memory_space<vmem>>, %arg3: memref<1x64xf32, #tpu.memory_space<vmem>>, %arg4: memref<4x64x16xf32, #tpu.memory_space<vmem>>, %arg5: memref<1x16xf32, #tpu.memory_space<vmem>>, %arg6: memref<1x16x16xf32, #tpu.memory_space<vmem>>, %arg7: memref<20x96xf32, #tpu.memory_space<vmem>>) attributes {dimension_semantics = [#tpu.dimension_semantics<parallel>], iteration_bounds = array<i64: 2>, scalar_prefetch = 0 : i64, scratch_operands = 1 : i64, tpu.core_type = #tpu.core_type<tc>, window_params = [{transform_indices = @transform_0, window_bounds = array<i64: 1, 16, 64>}, {pipeline_mode = #tpu.pipeline_mode<synchronous>, transform_indices = @transform_1, window_bounds = array<i64: 25, 64>}, {pipeline_mode = #tpu.pipeline_mode<synchronous>, transform_indices = @transform_2, window_bounds = array<i64: 1, 64>}, {pipeline_mode = #tpu.pipeline_mode<synchronous>, transform_indices = @transform_3, window_bounds = array<i64: 4, 64, 16>}, {pipeline_mode = #tpu.pipeline_mode<synchronous>, transform_indices = @transform_4, window_bounds = array<i64: 1, 16>}, {transform_indices = @transform_5, window_bounds = array<i64: 1, 16, 16>}]} {
    %cst = arith.constant 0.000000e+00 : f32
    %0 = vector.broadcast %cst : f32 to vector<20x96xf32>
    %c0 = arith.constant 0 : index
    %c0_0 = arith.constant 0 : index
    %1 = vector.load %arg7[%c0, %c0_0] : memref<20x96xf32, #tpu.memory_space<vmem>>, vector<20x96xf32>
    tpu.vector_store %arg7[%c0, %c0_0], %0 {strides = array<i32>} : memref<20x96xf32, #tpu.memory_space<vmem>>, vector<20x96xf32>,
    %c0_1 = arith.constant 0 : index
    %c0_2 = arith.constant 0 : index
    %c0_3 = arith.constant 0 : index
    %2 = vector.load %arg1[%c0_1, %c0_2, %c0_3] : memref<1x16x64xf32, #tpu.memory_space<vmem>>, vector<1x16x64xf32>
    %3 = vector.shape_cast %2 : vector<1x16x64xf32> to vector<16x64xf32>
    %c2 = arith.constant 2 : index
    %c16 = arith.constant 16 : index
    %4 = vector.load %arg7[%c2, %c16] : memref<20x96xf32, #tpu.memory_space<vmem>>, vector<16x64xf32>
    tpu.vector_store %arg7[%c2, %c16], %3 {strides = array<i32>} : memref<20x96xf32, #tpu.memory_space<vmem>>, vector<16x64xf32>,
    %cst_4 = arith.constant 0.000000e+00 : f32
    %5 = vector.broadcast %cst_4 : f32 to vector<16x64xf32>
    %c0_5 = arith.constant 0 : index
    %c0_6 = arith.constant 0 : index
    %6 = vector.load %arg3[%c0_5, %c0_6] : memref<1x64xf32, #tpu.memory_space<vmem>>, vector<1x64xf32>
    %7 = vector.broadcast %6 : vector<1x64xf32> to vector<16x64xf32>
    %8 = arith.addf %5, %7 : vector<16x64xf32>
    %c0_7 = arith.constant 0 : index
    %c0_8 = arith.constant 0 : index
    %9 = vector.load %arg7[%c0_7, %c0_8] : memref<20x96xf32, #tpu.memory_space<vmem>>, vector<16x64xf32>
    %c0_9 = arith.constant 0 : index
    %c0_10 = arith.constant 0 : index
    %10 = vector.load %arg2[%c0_9, %c0_10] : memref<25x64xf32, #tpu.memory_space<vmem>>, vector<1x64xf32>
    %11 = vector.broadcast %10 : vector<1x64xf32> to vector<16x64xf32>
    %12 = arith.mulf %9, %11 : vector<16x64xf32>
    %13 = arith.addf %8, %12 : vector<16x64xf32>
    %c0_11 = arith.constant 0 : index
    %c8 = arith.constant 8 : index
    %14 = vector.load %arg7[%c0_11, %c8] : memref<20x96xf32, #tpu.memory_space<vmem>>, vector<16x64xf32>
    %c1 = arith.constant 1 : index
    %c0_12 = arith.constant 0 : index
    %15 = vector.load %arg2[%c1, %c0_12] : memref<25x64xf32, #tpu.memory_space<vmem>>, vector<1x64xf32>
    %16 = vector.broadcast %15 : vector<1x64xf32> to vector<16x64xf32>
    %17 = arith.mulf %14, %16 : vector<16x64xf32>
    %18 = arith.addf %13, %17 : vector<16x64xf32>
    %c0_13 = arith.constant 0 : index
    %c16_14 = arith.constant 16 : index
    %19 = vector.load %arg7[%c0_13, %c16_14] : memref<20x96xf32, #tpu.memory_space<vmem>>, vector<16x64xf32>
    %c2_15 = arith.constant 2 : index
    %c0_16 = arith.constant 0 : index
    %20 = vector.load %arg2[%c2_15, %c0_16] : memref<25x64xf32, #tpu.memory_space<vmem>>, vector<1x64xf32>
    %21 = vector.broadcast %20 : vector<1x64xf32> to vector<16x64xf32>
    %22 = arith.mulf %19, %21 : vector<16x64xf32>
    %23 = arith.addf %18, %22 : vector<16x64xf32>
    %c0_17 = arith.constant 0 : index
    %c24 = arith.constant 24 : index
    %24 = vector.load %arg7[%c0_17, %c24] : memref<20x96xf32, #tpu.memory_space<vmem>>, vector<16x64xf32>
    %c3 = arith.constant 3 : index
    %c0_18 = arith.constant 0 : index
    %25 = vector.load %arg2[%c3, %c0_18] : memref<25x64xf32, #tpu.memory_space<vmem>>, vector<1x64xf32>
    %26 = vector.broadcast %25 : vector<1x64xf32> to vector<16x64xf32>
    %27 = arith.mulf %24, %26 : vector<16x64xf32>
    %28 = arith.addf %23, %27 : vector<16x64xf32>
    %c0_19 = arith.constant 0 : index
    %c32 = arith.constant 32 : index
    %29 = vector.load %arg7[%c0_19, %c32] : memref<20x96xf32, #tpu.memory_space<vmem>>, vector<16x64xf32>
    %c4 = arith.constant 4 : index
    %c0_20 = arith.constant 0 : index
    %30 = vector.load %arg2[%c4, %c0_20] : memref<25x64xf32, #tpu.memory_space<vmem>>, vector<1x64xf32>
    %31 = vector.broadcast %30 : vector<1x64xf32> to vector<16x64xf32>
    %32 = arith.mulf %29, %31 : vector<16x64xf32>
    %33 = arith.addf %28, %32 : vector<16x64xf32>
    %c1_21 = arith.constant 1 : index
    %c0_22 = arith.constant 0 : index
    %34 = vector.load %arg7[%c1_21, %c0_22] : memref<20x96xf32, #tpu.memory_space<vmem>>, vector<16x64xf32>
    %c5 = arith.constant 5 : index
    %c0_23 = arith.constant 0 : index
    %35 = vector.load %arg2[%c5, %c0_23] : memref<25x64xf32, #tpu.memory_space<vmem>>, vector<1x64xf32>
    %36 = vector.broadcast %35 : vector<1x64xf32> to vector<16x64xf32>
    %37 = arith.mulf %34, %36 : vector<16x64xf32>
    %38 = arith.addf %33, %37 : vector<16x64xf32>
    %c1_24 = arith.constant 1 : index
    %c8_25 = arith.constant 8 : index
    %39 = vector.load %arg7[%c1_24, %c8_25] : memref<20x96xf32, #tpu.memory_space<vmem>>, vector<16x64xf32>
    %c6 = arith.constant 6 : index
    %c0_26 = arith.constant 0 : index
    %40 = vector.load %arg2[%c6, %c0_26] : memref<25x64xf32, #tpu.memory_space<vmem>>, vector<1x64xf32>
    %41 = vector.broadcast %40 : vector<1x64xf32> to vector<16x64xf32>
    %42 = arith.mulf %39, %41 : vector<16x64xf32>
    %43 = arith.addf %38, %42 : vector<16x64xf32>
    %c1_27 = arith.constant 1 : index
    %c16_28 = arith.constant 16 : index
    %44 = vector.load %arg7[%c1_27, %c16_28] : memref<20x96xf32, #tpu.memory_space<vmem>>, vector<16x64xf32>
    %c7 = arith.constant 7 : index
    %c0_29 = arith.constant 0 : index
    %45 = vector.load %arg2[%c7, %c0_29] : memref<25x64xf32, #tpu.memory_space<vmem>>, vector<1x64xf32>
    %46 = vector.broadcast %45 : vector<1x64xf32> to vector<16x64xf32>
    %47 = arith.mulf %44, %46 : vector<16x64xf32>
    %48 = arith.addf %43, %47 : vector<16x64xf32>
    %c1_30 = arith.constant 1 : index
    %c24_31 = arith.constant 24 : index
    %49 = vector.load %arg7[%c1_30, %c24_31] : memref<20x96xf32, #tpu.memory_space<vmem>>, vector<16x64xf32>
    %c8_32 = arith.constant 8 : index
    %c0_33 = arith.constant 0 : index
    %50 = vector.load %arg2[%c8_32, %c0_33] : memref<25x64xf32, #tpu.memory_space<vmem>>, vector<1x64xf32>
    %51 = vector.broadcast %50 : vector<1x64xf32> to vector<16x64xf32>
    %52 = arith.mulf %49, %51 : vector<16x64xf32>
    %53 = arith.addf %48, %52 : vector<16x64xf32>
    %c1_34 = arith.constant 1 : index
    %c32_35 = arith.constant 32 : index
    %54 = vector.load %arg7[%c1_34, %c32_35] : memref<20x96xf32, #tpu.memory_space<vmem>>, vector<16x64xf32>
    %c9 = arith.constant 9 : index
    %c0_36 = arith.constant 0 : index
    %55 = vector.load %arg2[%c9, %c0_36] : memref<25x64xf32, #tpu.memory_space<vmem>>, vector<1x64xf32>
    %56 = vector.broadcast %55 : vector<1x64xf32> to vector<16x64xf32>
    %57 = arith.mulf %54, %56 : vector<16x64xf32>
    %58 = arith.addf %53, %57 : vector<16x64xf32>
    %c2_37 = arith.constant 2 : index
    %c0_38 = arith.constant 0 : index
    %59 = vector.load %arg7[%c2_37, %c0_38] : memref<20x96xf32, #tpu.memory_space<vmem>>, vector<16x64xf32>
    %c10 = arith.constant 10 : index
    %c0_39 = arith.constant 0 : index
    %60 = vector.load %arg2[%c10, %c0_39] : memref<25x64xf32, #tpu.memory_space<vmem>>, vector<1x64xf32>
    %61 = vector.broadcast %60 : vector<1x64xf32> to vector<16x64xf32>
    %62 = arith.mulf %59, %61 : vector<16x64xf32>
    %63 = arith.addf %58, %62 : vector<16x64xf32>
    %c2_40 = arith.constant 2 : index
    %c8_41 = arith.constant 8 : index
    %64 = vector.load %arg7[%c2_40, %c8_41] : memref<20x96xf32, #tpu.memory_space<vmem>>, vector<16x64xf32>
    %c11 = arith.constant 11 : index
    %c0_42 = arith.constant 0 : index
    %65 = vector.load %arg2[%c11, %c0_42] : memref<25x64xf32, #tpu.memory_space<vmem>>, vector<1x64xf32>
    %66 = vector.broadcast %65 : vector<1x64xf32> to vector<16x64xf32>
    %67 = arith.mulf %64, %66 : vector<16x64xf32>
    %68 = arith.addf %63, %67 : vector<16x64xf32>
    %c2_43 = arith.constant 2 : index
    %c16_44 = arith.constant 16 : index
    %69 = vector.load %arg7[%c2_43, %c16_44] : memref<20x96xf32, #tpu.memory_space<vmem>>, vector<16x64xf32>
    %c12 = arith.constant 12 : index
    %c0_45 = arith.constant 0 : index
    %70 = vector.load %arg2[%c12, %c0_45] : memref<25x64xf32, #tpu.memory_space<vmem>>, vector<1x64xf32>
    %71 = vector.broadcast %70 : vector<1x64xf32> to vector<16x64xf32>
    %72 = arith.mulf %69, %71 : vector<16x64xf32>
    %73 = arith.addf %68, %72 : vector<16x64xf32>
    %c2_46 = arith.constant 2 : index
    %c24_47 = arith.constant 24 : index
    %74 = vector.load %arg7[%c2_46, %c24_47] : memref<20x96xf32, #tpu.memory_space<vmem>>, vector<16x64xf32>
    %c13 = arith.constant 13 : index
    %c0_48 = arith.constant 0 : index
    %75 = vector.load %arg2[%c13, %c0_48] : memref<25x64xf32, #tpu.memory_space<vmem>>, vector<1x64xf32>
    %76 = vector.broadcast %75 : vector<1x64xf32> to vector<16x64xf32>
    %77 = arith.mulf %74, %76 : vector<16x64xf32>
    %78 = arith.addf %73, %77 : vector<16x64xf32>
    %c2_49 = arith.constant 2 : index
    %c32_50 = arith.constant 32 : index
    %79 = vector.load %arg7[%c2_49, %c32_50] : memref<20x96xf32, #tpu.memory_space<vmem>>, vector<16x64xf32>
    %c14 = arith.constant 14 : index
    %c0_51 = arith.constant 0 : index
    %80 = vector.load %arg2[%c14, %c0_51] : memref<25x64xf32, #tpu.memory_space<vmem>>, vector<1x64xf32>
    %81 = vector.broadcast %80 : vector<1x64xf32> to vector<16x64xf32>
    %82 = arith.mulf %79, %81 : vector<16x64xf32>
    %83 = arith.addf %78, %82 : vector<16x64xf32>
    %c3_52 = arith.constant 3 : index
    %c0_53 = arith.constant 0 : index
    %84 = vector.load %arg7[%c3_52, %c0_53] : memref<20x96xf32, #tpu.memory_space<vmem>>, vector<16x64xf32>
    %c15 = arith.constant 15 : index
    %c0_54 = arith.constant 0 : index
    %85 = vector.load %arg2[%c15, %c0_54] : memref<25x64xf32, #tpu.memory_space<vmem>>, vector<1x64xf32>
    %86 = vector.broadcast %85 : vector<1x64xf32> to vector<16x64xf32>
    %87 = arith.mulf %84, %86 : vector<16x64xf32>
    %88 = arith.addf %83, %87 : vector<16x64xf32>
    %c3_55 = arith.constant 3 : index
    %c8_56 = arith.constant 8 : index
    %89 = vector.load %arg7[%c3_55, %c8_56] : memref<20x96xf32, #tpu.memory_space<vmem>>, vector<16x64xf32>
    %c16_57 = arith.constant 16 : index
    %c0_58 = arith.constant 0 : index
    %90 = vector.load %arg2[%c16_57, %c0_58] : memref<25x64xf32, #tpu.memory_space<vmem>>, vector<1x64xf32>
    %91 = vector.broadcast %90 : vector<1x64xf32> to vector<16x64xf32>
    %92 = arith.mulf %89, %91 : vector<16x64xf32>
    %93 = arith.addf %88, %92 : vector<16x64xf32>
    %c3_59 = arith.constant 3 : index
    %c16_60 = arith.constant 16 : index
    %94 = vector.load %arg7[%c3_59, %c16_60] : memref<20x96xf32, #tpu.memory_space<vmem>>, vector<16x64xf32>
    %c17 = arith.constant 17 : index
    %c0_61 = arith.constant 0 : index
    %95 = vector.load %arg2[%c17, %c0_61] : memref<25x64xf32, #tpu.memory_space<vmem>>, vector<1x64xf32>
    %96 = vector.broadcast %95 : vector<1x64xf32> to vector<16x64xf32>
    %97 = arith.mulf %94, %96 : vector<16x64xf32>
    %98 = arith.addf %93, %97 : vector<16x64xf32>
    %c3_62 = arith.constant 3 : index
    %c24_63 = arith.constant 24 : index
    %99 = vector.load %arg7[%c3_62, %c24_63] : memref<20x96xf32, #tpu.memory_space<vmem>>, vector<16x64xf32>
    %c18 = arith.constant 18 : index
    %c0_64 = arith.constant 0 : index
    %100 = vector.load %arg2[%c18, %c0_64] : memref<25x64xf32, #tpu.memory_space<vmem>>, vector<1x64xf32>
    %101 = vector.broadcast %100 : vector<1x64xf32> to vector<16x64xf32>
    %102 = arith.mulf %99, %101 : vector<16x64xf32>
    %103 = arith.addf %98, %102 : vector<16x64xf32>
    %c3_65 = arith.constant 3 : index
    %c32_66 = arith.constant 32 : index
    %104 = vector.load %arg7[%c3_65, %c32_66] : memref<20x96xf32, #tpu.memory_space<vmem>>, vector<16x64xf32>
    %c19 = arith.constant 19 : index
    %c0_67 = arith.constant 0 : index
    %105 = vector.load %arg2[%c19, %c0_67] : memref<25x64xf32, #tpu.memory_space<vmem>>, vector<1x64xf32>
    %106 = vector.broadcast %105 : vector<1x64xf32> to vector<16x64xf32>
    %107 = arith.mulf %104, %106 : vector<16x64xf32>
    %108 = arith.addf %103, %107 : vector<16x64xf32>
    %c4_68 = arith.constant 4 : index
    %c0_69 = arith.constant 0 : index
    %109 = vector.load %arg7[%c4_68, %c0_69] : memref<20x96xf32, #tpu.memory_space<vmem>>, vector<16x64xf32>
    %c20 = arith.constant 20 : index
    %c0_70 = arith.constant 0 : index
    %110 = vector.load %arg2[%c20, %c0_70] : memref<25x64xf32, #tpu.memory_space<vmem>>, vector<1x64xf32>
    %111 = vector.broadcast %110 : vector<1x64xf32> to vector<16x64xf32>
    %112 = arith.mulf %109, %111 : vector<16x64xf32>
    %113 = arith.addf %108, %112 : vector<16x64xf32>
    %c4_71 = arith.constant 4 : index
    %c8_72 = arith.constant 8 : index
    %114 = vector.load %arg7[%c4_71, %c8_72] : memref<20x96xf32, #tpu.memory_space<vmem>>, vector<16x64xf32>
    %c21 = arith.constant 21 : index
    %c0_73 = arith.constant 0 : index
    %115 = vector.load %arg2[%c21, %c0_73] : memref<25x64xf32, #tpu.memory_space<vmem>>, vector<1x64xf32>
    %116 = vector.broadcast %115 : vector<1x64xf32> to vector<16x64xf32>
    %117 = arith.mulf %114, %116 : vector<16x64xf32>
    %118 = arith.addf %113, %117 : vector<16x64xf32>
    %c4_74 = arith.constant 4 : index
    %c16_75 = arith.constant 16 : index
    %119 = vector.load %arg7[%c4_74, %c16_75] : memref<20x96xf32, #tpu.memory_space<vmem>>, vector<16x64xf32>
    %c22 = arith.constant 22 : index
    %c0_76 = arith.constant 0 : index
    %120 = vector.load %arg2[%c22, %c0_76] : memref<25x64xf32, #tpu.memory_space<vmem>>, vector<1x64xf32>
    %121 = vector.broadcast %120 : vector<1x64xf32> to vector<16x64xf32>
    %122 = arith.mulf %119, %121 : vector<16x64xf32>
    %123 = arith.addf %118, %122 : vector<16x64xf32>
    %c4_77 = arith.constant 4 : index
    %c24_78 = arith.constant 24 : index
    %124 = vector.load %arg7[%c4_77, %c24_78] : memref<20x96xf32, #tpu.memory_space<vmem>>, vector<16x64xf32>
    %c23 = arith.constant 23 : index
    %c0_79 = arith.constant 0 : index
    %125 = vector.load %arg2[%c23, %c0_79] : memref<25x64xf32, #tpu.memory_space<vmem>>, vector<1x64xf32>
    %126 = vector.broadcast %125 : vector<1x64xf32> to vector<16x64xf32>
    %127 = arith.mulf %124, %126 : vector<16x64xf32>
    %128 = arith.addf %123, %127 : vector<16x64xf32>
    %c4_80 = arith.constant 4 : index
    %c32_81 = arith.constant 32 : index
    %129 = vector.load %arg7[%c4_80, %c32_81] : memref<20x96xf32, #tpu.memory_space<vmem>>, vector<16x64xf32>
    %c24_82 = arith.constant 24 : index
    %c0_83 = arith.constant 0 : index
    %130 = vector.load %arg2[%c24_82, %c0_83] : memref<25x64xf32, #tpu.memory_space<vmem>>, vector<1x64xf32>
    %131 = vector.broadcast %130 : vector<1x64xf32> to vector<16x64xf32>
    %132 = arith.mulf %129, %131 : vector<16x64xf32>
    %133 = arith.addf %128, %132 : vector<16x64xf32>
    %c0_84 = arith.constant 0 : index
    %c0_85 = arith.constant 0 : index
    %c0_86 = arith.constant 0 : index
    %134 = vector.load %arg4[%c0_84, %c0_85, %c0_86] : memref<4x64x16xf32, #tpu.memory_space<vmem>>, vector<1x64x16xf32>
    %135 = vector.shape_cast %134 : vector<1x64x16xf32> to vector<64x16xf32>
    %cst_87 = arith.constant dense<0.000000e+00> : vector<16x16xf32>
    %136 = tpu.matmul %133, %135, %cst_87 {dimension_numbers = #tpu.dot_dimension_numbers<[1], [0], [0], [1], [0, 0, 1, 1], [], []>} : vector<16x64xf32>, vector<64x16xf32>, vector<16x16xf32> -> vector<16x16xf32>
    %c1_88 = arith.constant 1 : index
    %c0_89 = arith.constant 0 : index
    %c0_90 = arith.constant 0 : index
    %137 = vector.load %arg4[%c1_88, %c0_89, %c0_90] : memref<4x64x16xf32, #tpu.memory_space<vmem>>, vector<1x64x16xf32>
    %138 = vector.shape_cast %137 : vector<1x64x16xf32> to vector<64x16xf32>
    %cst_91 = arith.constant dense<0.000000e+00> : vector<16x16xf32>
    %139 = tpu.matmul %133, %138, %cst_91 {dimension_numbers = #tpu.dot_dimension_numbers<[1], [0], [0], [1], [0, 0, 1, 1], [], []>} : vector<16x64xf32>, vector<64x16xf32>, vector<16x16xf32> -> vector<16x16xf32>
    %140 = arith.maximumf %136, %139 : vector<16x16xf32>
    %c2_92 = arith.constant 2 : index
    %c0_93 = arith.constant 0 : index
    %c0_94 = arith.constant 0 : index
    %141 = vector.load %arg4[%c2_92, %c0_93, %c0_94] : memref<4x64x16xf32, #tpu.memory_space<vmem>>, vector<1x64x16xf32>
    %142 = vector.shape_cast %141 : vector<1x64x16xf32> to vector<64x16xf32>
    %cst_95 = arith.constant dense<0.000000e+00> : vector<16x16xf32>
    %143 = tpu.matmul %133, %142, %cst_95 {dimension_numbers = #tpu.dot_dimension_numbers<[1], [0], [0], [1], [0, 0, 1, 1], [], []>} : vector<16x64xf32>, vector<64x16xf32>, vector<16x16xf32> -> vector<16x16xf32>
    %144 = arith.maximumf %140, %143 : vector<16x16xf32>
    %c3_96 = arith.constant 3 : index
    %c0_97 = arith.constant 0 : index
    %c0_98 = arith.constant 0 : index
    %145 = vector.load %arg4[%c3_96, %c0_97, %c0_98] : memref<4x64x16xf32, #tpu.memory_space<vmem>>, vector<1x64x16xf32>
    %146 = vector.shape_cast %145 : vector<1x64x16xf32> to vector<64x16xf32>
    %cst_99 = arith.constant dense<0.000000e+00> : vector<16x16xf32>
    %147 = tpu.matmul %133, %146, %cst_99 {dimension_numbers = #tpu.dot_dimension_numbers<[1], [0], [0], [1], [0, 0, 1, 1], [], []>} : vector<16x64xf32>, vector<64x16xf32>, vector<16x16xf32> -> vector<16x16xf32>
    %148 = arith.maximumf %144, %147 : vector<16x16xf32>
    %c0_100 = arith.constant 0 : index
    %c0_101 = arith.constant 0 : index
    %149 = vector.load %arg5[%c0_100, %c0_101] : memref<1x16xf32, #tpu.memory_space<vmem>>, vector<1x16xf32>
    %150 = vector.broadcast %149 : vector<1x16xf32> to vector<16x16xf32>
    %151 = arith.addf %148, %150 : vector<16x16xf32>
    %cst_102 = arith.constant 0.000000e+00 : f32
    %152 = vector.broadcast %cst_102 : f32 to vector<16x16xf32>
    %153 = arith.maximumf %151, %152 : vector<16x16xf32>
    %c0_103 = arith.constant 0 : index
    %c0_104 = arith.constant 0 : index
    %c0_105 = arith.constant 0 : index
    %154 = vector.load %arg6[%c0_103, %c0_104, %c0_105] : memref<1x16x16xf32, #tpu.memory_space<vmem>>, vector<1x16x16xf32>
    %155 = vector.shape_cast %154 : vector<1x16x16xf32> to vector<16x16xf32>
    %156 = vector.shape_cast %153 : vector<16x16xf32> to vector<1x16x16xf32>
    tpu.vector_store %arg6[%c0_103, %c0_104, %c0_105], %156 {strides = array<i32>} : memref<1x16x16xf32, #tpu.memory_space<vmem>>, vector<1x16x16xf32>,
    return
  }
  func.func @transform_0(%arg0: i32) -> (i32, i32, i32) {
    %c0_i32 = arith.constant 0 : i32
    %c0_i32_0 = arith.constant 0 : i32
    %c0_i32_1 = arith.constant 0 : i32
    return %arg0, %c0_i32, %c0_i32_0 : i32, i32, i32
  }
  func.func @transform_1(%arg0: i32) -> (i32, i32) {
    %c0_i32 = arith.constant 0 : i32
    %c0_i32_0 = arith.constant 0 : i32
    %c0_i32_1 = arith.constant 0 : i32
    return %c0_i32, %c0_i32_0 : i32, i32
  }
  func.func @transform_2(%arg0: i32) -> (i32, i32) {
    %c0_i32 = arith.constant 0 : i32
    %c0_i32_0 = arith.constant 0 : i32
    %c0_i32_1 = arith.constant 0 : i32
    return %c0_i32, %c0_i32_0 : i32, i32
  }
  func.func @transform_3(%arg0: i32) -> (i32, i32, i32) {
    %c0_i32 = arith.constant 0 : i32
    %c0_i32_0 = arith.constant 0 : i32
    %c0_i32_1 = arith.constant 0 : i32
    %c0_i32_2 = arith.constant 0 : i32
    return %c0_i32, %c0_i32_0, %c0_i32_1 : i32, i32, i32
  }
  func.func @transform_4(%arg0: i32) -> (i32, i32) {
    %c0_i32 = arith.constant 0 : i32
    %c0_i32_0 = arith.constant 0 : i32
    %c0_i32_1 = arith.constant 0 : i32
    return %c0_i32, %c0_i32_0 : i32, i32
  }
  func.func @transform_5(%arg0: i32) -> (i32, i32, i32) {
    %c0_i32 = arith.constant 0 : i32
    %c0_i32_0 = arith.constant 0 : i32
    %c0_i32_1 = arith.constant 0 : i32
    return %arg0, %c0_i32, %c0_i32_0 : i32, i32, i32
  }
}

module attributes {stable_mosaic.version = 11 : i64} {
  func.func @_decoder_block_kernel(%arg0: i32, %arg1: memref<1x8x32xf32, #tpu.memory_space<vmem>>, %arg2: memref<1x16x32xf32, #tpu.memory_space<vmem>>, %arg3: memref<32x96xf32, #tpu.memory_space<vmem>>, %arg4: memref<1x96xf32, #tpu.memory_space<vmem>>, %arg5: memref<32x32xf32, #tpu.memory_space<vmem>>, %arg6: memref<1x32xf32, #tpu.memory_space<vmem>>, %arg7: memref<32x32xf32, #tpu.memory_space<vmem>>, %arg8: memref<1x32xf32, #tpu.memory_space<vmem>>, %arg9: memref<32x64xf32, #tpu.memory_space<vmem>>, %arg10: memref<1x64xf32, #tpu.memory_space<vmem>>, %arg11: memref<32x32xf32, #tpu.memory_space<vmem>>, %arg12: memref<1x32xf32, #tpu.memory_space<vmem>>, %arg13: memref<1x32xf32, #tpu.memory_space<vmem>>, %arg14: memref<1x32xf32, #tpu.memory_space<vmem>>, %arg15: memref<1x32xf32, #tpu.memory_space<vmem>>, %arg16: memref<1x32xf32, #tpu.memory_space<vmem>>, %arg17: memref<1x32xf32, #tpu.memory_space<vmem>>, %arg18: memref<1x32xf32, #tpu.memory_space<vmem>>, %arg19: memref<32x64xf32, #tpu.memory_space<vmem>>, %arg20: memref<1x64xf32, #tpu.memory_space<vmem>>, %arg21: memref<64x32xf32, #tpu.memory_space<vmem>>, %arg22: memref<1x32xf32, #tpu.memory_space<vmem>>, %arg23: memref<1x8x32xf32, #tpu.memory_space<vmem>>) attributes {dimension_semantics = [#tpu.dimension_semantics<parallel>], iteration_bounds = array<i64: 2>, scalar_prefetch = 0 : i64, scratch_operands = 0 : i64, tpu.core_type = #tpu.core_type<tc>, window_params = [{transform_indices = @transform_0, window_bounds = array<i64: 1, 8, 32>}, {transform_indices = @transform_1, window_bounds = array<i64: 1, 16, 32>}, {pipeline_mode = #tpu.pipeline_mode<synchronous>, transform_indices = @transform_2, window_bounds = array<i64: 32, 96>}, {pipeline_mode = #tpu.pipeline_mode<synchronous>, transform_indices = @transform_3, window_bounds = array<i64: 1, 96>}, {pipeline_mode = #tpu.pipeline_mode<synchronous>, transform_indices = @transform_4, window_bounds = array<i64: 32, 32>}, {pipeline_mode = #tpu.pipeline_mode<synchronous>, transform_indices = @transform_5, window_bounds = array<i64: 1, 32>}, {pipeline_mode = #tpu.pipeline_mode<synchronous>, transform_indices = @transform_6, window_bounds = array<i64: 32, 32>}, {pipeline_mode = #tpu.pipeline_mode<synchronous>, transform_indices = @transform_7, window_bounds = array<i64: 1, 32>}, {pipeline_mode = #tpu.pipeline_mode<synchronous>, transform_indices = @transform_8, window_bounds = array<i64: 32, 64>}, {pipeline_mode = #tpu.pipeline_mode<synchronous>, transform_indices = @transform_9, window_bounds = array<i64: 1, 64>}, {pipeline_mode = #tpu.pipeline_mode<synchronous>, transform_indices = @transform_10, window_bounds = array<i64: 32, 32>}, {pipeline_mode = #tpu.pipeline_mode<synchronous>, transform_indices = @transform_11, window_bounds = array<i64: 1, 32>}, {pipeline_mode = #tpu.pipeline_mode<synchronous>, transform_indices = @transform_12, window_bounds = array<i64: 1, 32>}, {pipeline_mode = #tpu.pipeline_mode<synchronous>, transform_indices = @transform_13, window_bounds = array<i64: 1, 32>}, {pipeline_mode = #tpu.pipeline_mode<synchronous>, transform_indices = @transform_14, window_bounds = array<i64: 1, 32>}, {pipeline_mode = #tpu.pipeline_mode<synchronous>, transform_indices = @transform_15, window_bounds = array<i64: 1, 32>}, {pipeline_mode = #tpu.pipeline_mode<synchronous>, transform_indices = @transform_16, window_bounds = array<i64: 1, 32>}, {pipeline_mode = #tpu.pipeline_mode<synchronous>, transform_indices = @transform_17, window_bounds = array<i64: 1, 32>}, {pipeline_mode = #tpu.pipeline_mode<synchronous>, transform_indices = @transform_18, window_bounds = array<i64: 32, 64>}, {pipeline_mode = #tpu.pipeline_mode<synchronous>, transform_indices = @transform_19, window_bounds = array<i64: 1, 64>}, {pipeline_mode = #tpu.pipeline_mode<synchronous>, transform_indices = @transform_20, window_bounds = array<i64: 64, 32>}, {pipeline_mode = #tpu.pipeline_mode<synchronous>, transform_indices = @transform_21, window_bounds = array<i64: 1, 32>}, {transform_indices = @transform_22, window_bounds = array<i64: 1, 8, 32>}]} {
    %c0 = arith.constant 0 : index
    %c0_0 = arith.constant 0 : index
    %c0_1 = arith.constant 0 : index
    %0 = vector.load %arg1[%c0, %c0_0, %c0_1] : memref<1x8x32xf32, #tpu.memory_space<vmem>>, vector<1x8x32xf32>
    %1 = vector.shape_cast %0 : vector<1x8x32xf32> to vector<8x32xf32>
    %c0_2 = arith.constant 0 : index
    %c0_3 = arith.constant 0 : index
    %c0_4 = arith.constant 0 : index
    %2 = vector.load %arg2[%c0_2, %c0_3, %c0_4] : memref<1x16x32xf32, #tpu.memory_space<vmem>>, vector<1x16x32xf32>
    %3 = vector.shape_cast %2 : vector<1x16x32xf32> to vector<16x32xf32>
    %c0_5 = arith.constant 0 : index
    %c0_6 = arith.constant 0 : index
    %4 = vector.load %arg3[%c0_5, %c0_6] : memref<32x96xf32, #tpu.memory_space<vmem>>, vector<32x96xf32>
    %cst = arith.constant dense<0.000000e+00> : vector<8x96xf32>
    %5 = tpu.matmul %1, %4, %cst {dimension_numbers = #tpu.dot_dimension_numbers<[1], [0], [0], [1], [0, 0, 1, 1], [], []>} : vector<8x32xf32>, vector<32x96xf32>, vector<8x96xf32> -> vector<8x96xf32>
    %c0_7 = arith.constant 0 : index
    %c0_8 = arith.constant 0 : index
    %6 = vector.load %arg4[%c0_7, %c0_8] : memref<1x96xf32, #tpu.memory_space<vmem>>, vector<1x96xf32>
    %7 = vector.broadcast %6 : vector<1x96xf32> to vector<8x96xf32>
    %8 = arith.addf %5, %7 : vector<8x96xf32>
    %9 = vector.extract_strided_slice %8 {offsets = [0, 0], sizes = [8, 32], strides = [1, 1]} : vector<8x96xf32> to vector<8x32xf32>
    %10 = vector.extract_strided_slice %8 {offsets = [0, 32], sizes = [8, 32], strides = [1, 1]} : vector<8x96xf32> to vector<8x32xf32>
    %11 = vector.extract_strided_slice %8 {offsets = [0, 64], sizes = [8, 32], strides = [1, 1]} : vector<8x96xf32> to vector<8x32xf32>
    %cst_9 = arith.constant 0.000000e+00 : f32
    %12 = vector.broadcast %cst_9 : f32 to vector<8x32xf32>
    %c0_10 = arith.constant 0 : index
    %c0_11 = arith.constant 0 : index
    %13 = vector.load %arg6[%c0_10, %c0_11] : memref<1x32xf32, #tpu.memory_space<vmem>>, vector<1x32xf32>
    %14 = vector.broadcast %13 : vector<1x32xf32> to vector<8x32xf32>
    %15 = arith.addf %12, %14 : vector<8x32xf32>
    %16 = vector.extract_strided_slice %9 {offsets = [0, 0], sizes = [8, 8], strides = [1, 1]} : vector<8x32xf32> to vector<8x8xf32>
    %17 = vector.extract_strided_slice %10 {offsets = [0, 0], sizes = [8, 8], strides = [1, 1]} : vector<8x32xf32> to vector<8x8xf32>
    %18 = vector.extract_strided_slice %11 {offsets = [0, 0], sizes = [8, 8], strides = [1, 1]} : vector<8x32xf32> to vector<8x8xf32>
    %cst_12 = arith.constant dense<0.000000e+00> : vector<8x8xf32>
    %19 = tpu.matmul %16, %17, %cst_12 {dimension_numbers = #tpu.dot_dimension_numbers<[1], [1], [0], [0], [0, 0, 1, 0], [], []>} : vector<8x8xf32>, vector<8x8xf32>, vector<8x8xf32> -> vector<8x8xf32>
    %cst_13 = arith.constant 0.353553385 : f32
    %20 = vector.broadcast %cst_13 : f32 to vector<8x8xf32>
    %21 = arith.mulf %19, %20 : vector<8x8xf32>
    %cst_14 = arith.constant dense<0xFF800000> : vector<8xf32>
    %22 = vector.multi_reduction <maximumf>, %21, %cst_14 [1] : vector<8x8xf32> to vector<8xf32>
    %23 = vector.shape_cast %22 : vector<8xf32> to vector<8x1xf32>
    %24 = vector.broadcast %23 : vector<8x1xf32> to vector<8x8xf32>
    %25 = arith.subf %21, %24 : vector<8x8xf32>
    %26 = math.exp %25 : vector<8x8xf32>
    %cst_15 = arith.constant dense<0.000000e+00> : vector<8xf32>
    %27 = vector.multi_reduction <add>, %26, %cst_15 [1] : vector<8x8xf32> to vector<8xf32>
    %28 = vector.shape_cast %27 : vector<8xf32> to vector<8x1xf32>
    %29 = tpu.reciprocal %28 {approx = true} : vector<8x1xf32> -> vector<8x1xf32>
    %30 = vector.broadcast %29 : vector<8x1xf32> to vector<8x8xf32>
    %31 = arith.mulf %26, %30 : vector<8x8xf32>
    %cst_16 = arith.constant dense<0.000000e+00> : vector<8x8xf32>
    %32 = tpu.matmul %31, %18, %cst_16 {dimension_numbers = #tpu.dot_dimension_numbers<[1], [0], [0], [1], [0, 0, 1, 1], [], []>} : vector<8x8xf32>, vector<8x8xf32>, vector<8x8xf32> -> vector<8x8xf32>
    %c0_17 = arith.constant 0 : index
    %c0_18 = arith.constant 0 : index
    %33 = vector.load %arg5[%c0_17, %c0_18] : memref<32x32xf32, #tpu.memory_space<vmem>>, vector<8x32xf32>
    %cst_19 = arith.constant dense<0.000000e+00> : vector<8x32xf32>
    %34 = tpu.matmul %32, %33, %cst_19 {dimension_numbers = #tpu.dot_dimension_numbers<[1], [0], [0], [1], [0, 0, 1, 1], [], []>} : vector<8x8xf32>, vector<8x32xf32>, vector<8x32xf32> -> vector<8x32xf32>
    %35 = arith.addf %15, %34 : vector<8x32xf32>
    %36 = vector.extract_strided_slice %9 {offsets = [0, 8], sizes = [8, 8], strides = [1, 1]} : vector<8x32xf32> to vector<8x8xf32>
    %37 = vector.extract_strided_slice %10 {offsets = [0, 8], sizes = [8, 8], strides = [1, 1]} : vector<8x32xf32> to vector<8x8xf32>
    %38 = vector.extract_strided_slice %11 {offsets = [0, 8], sizes = [8, 8], strides = [1, 1]} : vector<8x32xf32> to vector<8x8xf32>
    %cst_20 = arith.constant dense<0.000000e+00> : vector<8x8xf32>
    %39 = tpu.matmul %36, %37, %cst_20 {dimension_numbers = #tpu.dot_dimension_numbers<[1], [1], [0], [0], [0, 0, 1, 0], [], []>} : vector<8x8xf32>, vector<8x8xf32>, vector<8x8xf32> -> vector<8x8xf32>
    %cst_21 = arith.constant 0.353553385 : f32
    %40 = vector.broadcast %cst_21 : f32 to vector<8x8xf32>
    %41 = arith.mulf %39, %40 : vector<8x8xf32>
    %cst_22 = arith.constant dense<0xFF800000> : vector<8xf32>
    %42 = vector.multi_reduction <maximumf>, %41, %cst_22 [1] : vector<8x8xf32> to vector<8xf32>
    %43 = vector.shape_cast %42 : vector<8xf32> to vector<8x1xf32>
    %44 = vector.broadcast %43 : vector<8x1xf32> to vector<8x8xf32>
    %45 = arith.subf %41, %44 : vector<8x8xf32>
    %46 = math.exp %45 : vector<8x8xf32>
    %cst_23 = arith.constant dense<0.000000e+00> : vector<8xf32>
    %47 = vector.multi_reduction <add>, %46, %cst_23 [1] : vector<8x8xf32> to vector<8xf32>
    %48 = vector.shape_cast %47 : vector<8xf32> to vector<8x1xf32>
    %49 = tpu.reciprocal %48 {approx = true} : vector<8x1xf32> -> vector<8x1xf32>
    %50 = vector.broadcast %49 : vector<8x1xf32> to vector<8x8xf32>
    %51 = arith.mulf %46, %50 : vector<8x8xf32>
    %cst_24 = arith.constant dense<0.000000e+00> : vector<8x8xf32>
    %52 = tpu.matmul %51, %38, %cst_24 {dimension_numbers = #tpu.dot_dimension_numbers<[1], [0], [0], [1], [0, 0, 1, 1], [], []>} : vector<8x8xf32>, vector<8x8xf32>, vector<8x8xf32> -> vector<8x8xf32>
    %c8 = arith.constant 8 : index
    %c0_25 = arith.constant 0 : index
    %53 = vector.load %arg5[%c8, %c0_25] : memref<32x32xf32, #tpu.memory_space<vmem>>, vector<8x32xf32>
    %cst_26 = arith.constant dense<0.000000e+00> : vector<8x32xf32>
    %54 = tpu.matmul %52, %53, %cst_26 {dimension_numbers = #tpu.dot_dimension_numbers<[1], [0], [0], [1], [0, 0, 1, 1], [], []>} : vector<8x8xf32>, vector<8x32xf32>, vector<8x32xf32> -> vector<8x32xf32>
    %55 = arith.addf %35, %54 : vector<8x32xf32>
    %56 = vector.extract_strided_slice %9 {offsets = [0, 16], sizes = [8, 8], strides = [1, 1]} : vector<8x32xf32> to vector<8x8xf32>
    %57 = vector.extract_strided_slice %10 {offsets = [0, 16], sizes = [8, 8], strides = [1, 1]} : vector<8x32xf32> to vector<8x8xf32>
    %58 = vector.extract_strided_slice %11 {offsets = [0, 16], sizes = [8, 8], strides = [1, 1]} : vector<8x32xf32> to vector<8x8xf32>
    %cst_27 = arith.constant dense<0.000000e+00> : vector<8x8xf32>
    %59 = tpu.matmul %56, %57, %cst_27 {dimension_numbers = #tpu.dot_dimension_numbers<[1], [1], [0], [0], [0, 0, 1, 0], [], []>} : vector<8x8xf32>, vector<8x8xf32>, vector<8x8xf32> -> vector<8x8xf32>
    %cst_28 = arith.constant 0.353553385 : f32
    %60 = vector.broadcast %cst_28 : f32 to vector<8x8xf32>
    %61 = arith.mulf %59, %60 : vector<8x8xf32>
    %cst_29 = arith.constant dense<0xFF800000> : vector<8xf32>
    %62 = vector.multi_reduction <maximumf>, %61, %cst_29 [1] : vector<8x8xf32> to vector<8xf32>
    %63 = vector.shape_cast %62 : vector<8xf32> to vector<8x1xf32>
    %64 = vector.broadcast %63 : vector<8x1xf32> to vector<8x8xf32>
    %65 = arith.subf %61, %64 : vector<8x8xf32>
    %66 = math.exp %65 : vector<8x8xf32>
    %cst_30 = arith.constant dense<0.000000e+00> : vector<8xf32>
    %67 = vector.multi_reduction <add>, %66, %cst_30 [1] : vector<8x8xf32> to vector<8xf32>
    %68 = vector.shape_cast %67 : vector<8xf32> to vector<8x1xf32>
    %69 = tpu.reciprocal %68 {approx = true} : vector<8x1xf32> -> vector<8x1xf32>
    %70 = vector.broadcast %69 : vector<8x1xf32> to vector<8x8xf32>
    %71 = arith.mulf %66, %70 : vector<8x8xf32>
    %cst_31 = arith.constant dense<0.000000e+00> : vector<8x8xf32>
    %72 = tpu.matmul %71, %58, %cst_31 {dimension_numbers = #tpu.dot_dimension_numbers<[1], [0], [0], [1], [0, 0, 1, 1], [], []>} : vector<8x8xf32>, vector<8x8xf32>, vector<8x8xf32> -> vector<8x8xf32>
    %c16 = arith.constant 16 : index
    %c0_32 = arith.constant 0 : index
    %73 = vector.load %arg5[%c16, %c0_32] : memref<32x32xf32, #tpu.memory_space<vmem>>, vector<8x32xf32>
    %cst_33 = arith.constant dense<0.000000e+00> : vector<8x32xf32>
    %74 = tpu.matmul %72, %73, %cst_33 {dimension_numbers = #tpu.dot_dimension_numbers<[1], [0], [0], [1], [0, 0, 1, 1], [], []>} : vector<8x8xf32>, vector<8x32xf32>, vector<8x32xf32> -> vector<8x32xf32>
    %75 = arith.addf %55, %74 : vector<8x32xf32>
    %76 = vector.extract_strided_slice %9 {offsets = [0, 24], sizes = [8, 8], strides = [1, 1]} : vector<8x32xf32> to vector<8x8xf32>
    %77 = vector.extract_strided_slice %10 {offsets = [0, 24], sizes = [8, 8], strides = [1, 1]} : vector<8x32xf32> to vector<8x8xf32>
    %78 = vector.extract_strided_slice %11 {offsets = [0, 24], sizes = [8, 8], strides = [1, 1]} : vector<8x32xf32> to vector<8x8xf32>
    %cst_34 = arith.constant dense<0.000000e+00> : vector<8x8xf32>
    %79 = tpu.matmul %76, %77, %cst_34 {dimension_numbers = #tpu.dot_dimension_numbers<[1], [1], [0], [0], [0, 0, 1, 0], [], []>} : vector<8x8xf32>, vector<8x8xf32>, vector<8x8xf32> -> vector<8x8xf32>
    %cst_35 = arith.constant 0.353553385 : f32
    %80 = vector.broadcast %cst_35 : f32 to vector<8x8xf32>
    %81 = arith.mulf %79, %80 : vector<8x8xf32>
    %cst_36 = arith.constant dense<0xFF800000> : vector<8xf32>
    %82 = vector.multi_reduction <maximumf>, %81, %cst_36 [1] : vector<8x8xf32> to vector<8xf32>
    %83 = vector.shape_cast %82 : vector<8xf32> to vector<8x1xf32>
    %84 = vector.broadcast %83 : vector<8x1xf32> to vector<8x8xf32>
    %85 = arith.subf %81, %84 : vector<8x8xf32>
    %86 = math.exp %85 : vector<8x8xf32>
    %cst_37 = arith.constant dense<0.000000e+00> : vector<8xf32>
    %87 = vector.multi_reduction <add>, %86, %cst_37 [1] : vector<8x8xf32> to vector<8xf32>
    %88 = vector.shape_cast %87 : vector<8xf32> to vector<8x1xf32>
    %89 = tpu.reciprocal %88 {approx = true} : vector<8x1xf32> -> vector<8x1xf32>
    %90 = vector.broadcast %89 : vector<8x1xf32> to vector<8x8xf32>
    %91 = arith.mulf %86, %90 : vector<8x8xf32>
    %cst_38 = arith.constant dense<0.000000e+00> : vector<8x8xf32>
    %92 = tpu.matmul %91, %78, %cst_38 {dimension_numbers = #tpu.dot_dimension_numbers<[1], [0], [0], [1], [0, 0, 1, 1], [], []>} : vector<8x8xf32>, vector<8x8xf32>, vector<8x8xf32> -> vector<8x8xf32>
    %c24 = arith.constant 24 : index
    %c0_39 = arith.constant 0 : index
    %93 = vector.load %arg5[%c24, %c0_39] : memref<32x32xf32, #tpu.memory_space<vmem>>, vector<8x32xf32>
    %cst_40 = arith.constant dense<0.000000e+00> : vector<8x32xf32>
    %94 = tpu.matmul %92, %93, %cst_40 {dimension_numbers = #tpu.dot_dimension_numbers<[1], [0], [0], [1], [0, 0, 1, 1], [], []>} : vector<8x8xf32>, vector<8x32xf32>, vector<8x32xf32> -> vector<8x32xf32>
    %95 = arith.addf %75, %94 : vector<8x32xf32>
    %96 = arith.addf %1, %95 : vector<8x32xf32>
    %cst_41 = arith.constant dense<0.000000e+00> : vector<8xf32>
    %97 = vector.multi_reduction <add>, %96, %cst_41 [1] : vector<8x32xf32> to vector<8xf32>
    %98 = vector.shape_cast %97 : vector<8xf32> to vector<8x1xf32>
    %cst_42 = arith.constant 3.200000e+01 : f32
    %99 = vector.broadcast %cst_42 : f32 to vector<8x1xf32>
    %100 = arith.divf %98, %99 : vector<8x1xf32>
    %101 = vector.broadcast %100 : vector<8x1xf32> to vector<8x32xf32>
    %102 = arith.subf %96, %101 : vector<8x32xf32>
    %103 = arith.mulf %102, %102 : vector<8x32xf32>
    %cst_43 = arith.constant dense<0.000000e+00> : vector<8xf32>
    %104 = vector.multi_reduction <add>, %103, %cst_43 [1] : vector<8x32xf32> to vector<8xf32>
    %105 = vector.shape_cast %104 : vector<8xf32> to vector<8x1xf32>
    %cst_44 = arith.constant 3.200000e+01 : f32
    %106 = vector.broadcast %cst_44 : f32 to vector<8x1xf32>
    %107 = arith.divf %105, %106 : vector<8x1xf32>
    %108 = vector.broadcast %100 : vector<8x1xf32> to vector<8x32xf32>
    %109 = arith.subf %96, %108 : vector<8x32xf32>
    %cst_45 = arith.constant 9.99999974E-6 : f32
    %110 = vector.broadcast %cst_45 : f32 to vector<8x1xf32>
    %111 = arith.addf %107, %110 : vector<8x1xf32>
    %112 = math.rsqrt %111 : vector<8x1xf32>
    %113 = vector.broadcast %112 : vector<8x1xf32> to vector<8x32xf32>
    %114 = arith.mulf %109, %113 : vector<8x32xf32>
    %c0_46 = arith.constant 0 : index
    %c0_47 = arith.constant 0 : index
    %115 = vector.load %arg13[%c0_46, %c0_47] : memref<1x32xf32, #tpu.memory_space<vmem>>, vector<1x32xf32>
    %116 = vector.broadcast %115 : vector<1x32xf32> to vector<8x32xf32>
    %117 = arith.mulf %114, %116 : vector<8x32xf32>
    %c0_48 = arith.constant 0 : index
    %c0_49 = arith.constant 0 : index
    %118 = vector.load %arg14[%c0_48, %c0_49] : memref<1x32xf32, #tpu.memory_space<vmem>>, vector<1x32xf32>
    %119 = vector.broadcast %118 : vector<1x32xf32> to vector<8x32xf32>
    %120 = arith.addf %117, %119 : vector<8x32xf32>
    %c0_50 = arith.constant 0 : index
    %c0_51 = arith.constant 0 : index
    %121 = vector.load %arg7[%c0_50, %c0_51] : memref<32x32xf32, #tpu.memory_space<vmem>>, vector<32x32xf32>
    %cst_52 = arith.constant dense<0.000000e+00> : vector<8x32xf32>
    %122 = tpu.matmul %120, %121, %cst_52 {dimension_numbers = #tpu.dot_dimension_numbers<[1], [0], [0], [1], [0, 0, 1, 1], [], []>} : vector<8x32xf32>, vector<32x32xf32>, vector<8x32xf32> -> vector<8x32xf32>
    %c0_53 = arith.constant 0 : index
    %c0_54 = arith.constant 0 : index
    %123 = vector.load %arg8[%c0_53, %c0_54] : memref<1x32xf32, #tpu.memory_space<vmem>>, vector<1x32xf32>
    %124 = vector.broadcast %123 : vector<1x32xf32> to vector<8x32xf32>
    %125 = arith.addf %122, %124 : vector<8x32xf32>
    %c0_55 = arith.constant 0 : index
    %c0_56 = arith.constant 0 : index
    %126 = vector.load %arg9[%c0_55, %c0_56] : memref<32x64xf32, #tpu.memory_space<vmem>>, vector<32x64xf32>
    %cst_57 = arith.constant dense<0.000000e+00> : vector<16x64xf32>
    %127 = tpu.matmul %3, %126, %cst_57 {dimension_numbers = #tpu.dot_dimension_numbers<[1], [0], [0], [1], [0, 0, 1, 1], [], []>} : vector<16x32xf32>, vector<32x64xf32>, vector<16x64xf32> -> vector<16x64xf32>
    %c0_58 = arith.constant 0 : index
    %c0_59 = arith.constant 0 : index
    %128 = vector.load %arg10[%c0_58, %c0_59] : memref<1x64xf32, #tpu.memory_space<vmem>>, vector<1x64xf32>
    %129 = vector.broadcast %128 : vector<1x64xf32> to vector<16x64xf32>
    %130 = arith.addf %127, %129 : vector<16x64xf32>
    %131 = vector.extract_strided_slice %130 {offsets = [0, 0], sizes = [16, 32], strides = [1, 1]} : vector<16x64xf32> to vector<16x32xf32>
    %132 = vector.extract_strided_slice %130 {offsets = [0, 32], sizes = [16, 32], strides = [1, 1]} : vector<16x64xf32> to vector<16x32xf32>
    %cst_60 = arith.constant 0.000000e+00 : f32
    %133 = vector.broadcast %cst_60 : f32 to vector<8x32xf32>
    %c0_61 = arith.constant 0 : index
    %c0_62 = arith.constant 0 : index
    %134 = vector.load %arg12[%c0_61, %c0_62] : memref<1x32xf32, #tpu.memory_space<vmem>>, vector<1x32xf32>
    %135 = vector.broadcast %134 : vector<1x32xf32> to vector<8x32xf32>
    %136 = arith.addf %133, %135 : vector<8x32xf32>
    %137 = vector.extract_strided_slice %125 {offsets = [0, 0], sizes = [8, 8], strides = [1, 1]} : vector<8x32xf32> to vector<8x8xf32>
    %138 = vector.extract_strided_slice %131 {offsets = [0, 0], sizes = [16, 8], strides = [1, 1]} : vector<16x32xf32> to vector<16x8xf32>
    %139 = vector.extract_strided_slice %132 {offsets = [0, 0], sizes = [16, 8], strides = [1, 1]} : vector<16x32xf32> to vector<16x8xf32>
    %cst_63 = arith.constant dense<0.000000e+00> : vector<8x16xf32>
    %140 = tpu.matmul %137, %138, %cst_63 {dimension_numbers = #tpu.dot_dimension_numbers<[1], [1], [0], [0], [0, 0, 1, 0], [], []>} : vector<8x8xf32>, vector<16x8xf32>, vector<8x16xf32> -> vector<8x16xf32>
    %cst_64 = arith.constant 0.353553385 : f32
    %141 = vector.broadcast %cst_64 : f32 to vector<8x16xf32>
    %142 = arith.mulf %140, %141 : vector<8x16xf32>
    %cst_65 = arith.constant dense<0xFF800000> : vector<8xf32>
    %143 = vector.multi_reduction <maximumf>, %142, %cst_65 [1] : vector<8x16xf32> to vector<8xf32>
    %144 = vector.shape_cast %143 : vector<8xf32> to vector<8x1xf32>
    %145 = vector.broadcast %144 : vector<8x1xf32> to vector<8x16xf32>
    %146 = arith.subf %142, %145 : vector<8x16xf32>
    %147 = math.exp %146 : vector<8x16xf32>
    %cst_66 = arith.constant dense<0.000000e+00> : vector<8xf32>
    %148 = vector.multi_reduction <add>, %147, %cst_66 [1] : vector<8x16xf32> to vector<8xf32>
    %149 = vector.shape_cast %148 : vector<8xf32> to vector<8x1xf32>
    %150 = tpu.reciprocal %149 {approx = true} : vector<8x1xf32> -> vector<8x1xf32>
    %151 = vector.broadcast %150 : vector<8x1xf32> to vector<8x16xf32>
    %152 = arith.mulf %147, %151 : vector<8x16xf32>
    %cst_67 = arith.constant dense<0.000000e+00> : vector<8x8xf32>
    %153 = tpu.matmul %152, %139, %cst_67 {dimension_numbers = #tpu.dot_dimension_numbers<[1], [0], [0], [1], [0, 0, 1, 1], [], []>} : vector<8x16xf32>, vector<16x8xf32>, vector<8x8xf32> -> vector<8x8xf32>
    %c0_68 = arith.constant 0 : index
    %c0_69 = arith.constant 0 : index
    %154 = vector.load %arg11[%c0_68, %c0_69] : memref<32x32xf32, #tpu.memory_space<vmem>>, vector<8x32xf32>
    %cst_70 = arith.constant dense<0.000000e+00> : vector<8x32xf32>
    %155 = tpu.matmul %153, %154, %cst_70 {dimension_numbers = #tpu.dot_dimension_numbers<[1], [0], [0], [1], [0, 0, 1, 1], [], []>} : vector<8x8xf32>, vector<8x32xf32>, vector<8x32xf32> -> vector<8x32xf32>
    %156 = arith.addf %136, %155 : vector<8x32xf32>
    %157 = vector.extract_strided_slice %125 {offsets = [0, 8], sizes = [8, 8], strides = [1, 1]} : vector<8x32xf32> to vector<8x8xf32>
    %158 = vector.extract_strided_slice %131 {offsets = [0, 8], sizes = [16, 8], strides = [1, 1]} : vector<16x32xf32> to vector<16x8xf32>
    %159 = vector.extract_strided_slice %132 {offsets = [0, 8], sizes = [16, 8], strides = [1, 1]} : vector<16x32xf32> to vector<16x8xf32>
    %cst_71 = arith.constant dense<0.000000e+00> : vector<8x16xf32>
    %160 = tpu.matmul %157, %158, %cst_71 {dimension_numbers = #tpu.dot_dimension_numbers<[1], [1], [0], [0], [0, 0, 1, 0], [], []>} : vector<8x8xf32>, vector<16x8xf32>, vector<8x16xf32> -> vector<8x16xf32>
    %cst_72 = arith.constant 0.353553385 : f32
    %161 = vector.broadcast %cst_72 : f32 to vector<8x16xf32>
    %162 = arith.mulf %160, %161 : vector<8x16xf32>
    %cst_73 = arith.constant dense<0xFF800000> : vector<8xf32>
    %163 = vector.multi_reduction <maximumf>, %162, %cst_73 [1] : vector<8x16xf32> to vector<8xf32>
    %164 = vector.shape_cast %163 : vector<8xf32> to vector<8x1xf32>
    %165 = vector.broadcast %164 : vector<8x1xf32> to vector<8x16xf32>
    %166 = arith.subf %162, %165 : vector<8x16xf32>
    %167 = math.exp %166 : vector<8x16xf32>
    %cst_74 = arith.constant dense<0.000000e+00> : vector<8xf32>
    %168 = vector.multi_reduction <add>, %167, %cst_74 [1] : vector<8x16xf32> to vector<8xf32>
    %169 = vector.shape_cast %168 : vector<8xf32> to vector<8x1xf32>
    %170 = tpu.reciprocal %169 {approx = true} : vector<8x1xf32> -> vector<8x1xf32>
    %171 = vector.broadcast %170 : vector<8x1xf32> to vector<8x16xf32>
    %172 = arith.mulf %167, %171 : vector<8x16xf32>
    %cst_75 = arith.constant dense<0.000000e+00> : vector<8x8xf32>
    %173 = tpu.matmul %172, %159, %cst_75 {dimension_numbers = #tpu.dot_dimension_numbers<[1], [0], [0], [1], [0, 0, 1, 1], [], []>} : vector<8x16xf32>, vector<16x8xf32>, vector<8x8xf32> -> vector<8x8xf32>
    %c8_76 = arith.constant 8 : index
    %c0_77 = arith.constant 0 : index
    %174 = vector.load %arg11[%c8_76, %c0_77] : memref<32x32xf32, #tpu.memory_space<vmem>>, vector<8x32xf32>
    %cst_78 = arith.constant dense<0.000000e+00> : vector<8x32xf32>
    %175 = tpu.matmul %173, %174, %cst_78 {dimension_numbers = #tpu.dot_dimension_numbers<[1], [0], [0], [1], [0, 0, 1, 1], [], []>} : vector<8x8xf32>, vector<8x32xf32>, vector<8x32xf32> -> vector<8x32xf32>
    %176 = arith.addf %156, %175 : vector<8x32xf32>
    %177 = vector.extract_strided_slice %125 {offsets = [0, 16], sizes = [8, 8], strides = [1, 1]} : vector<8x32xf32> to vector<8x8xf32>
    %178 = vector.extract_strided_slice %131 {offsets = [0, 16], sizes = [16, 8], strides = [1, 1]} : vector<16x32xf32> to vector<16x8xf32>
    %179 = vector.extract_strided_slice %132 {offsets = [0, 16], sizes = [16, 8], strides = [1, 1]} : vector<16x32xf32> to vector<16x8xf32>
    %cst_79 = arith.constant dense<0.000000e+00> : vector<8x16xf32>
    %180 = tpu.matmul %177, %178, %cst_79 {dimension_numbers = #tpu.dot_dimension_numbers<[1], [1], [0], [0], [0, 0, 1, 0], [], []>} : vector<8x8xf32>, vector<16x8xf32>, vector<8x16xf32> -> vector<8x16xf32>
    %cst_80 = arith.constant 0.353553385 : f32
    %181 = vector.broadcast %cst_80 : f32 to vector<8x16xf32>
    %182 = arith.mulf %180, %181 : vector<8x16xf32>
    %cst_81 = arith.constant dense<0xFF800000> : vector<8xf32>
    %183 = vector.multi_reduction <maximumf>, %182, %cst_81 [1] : vector<8x16xf32> to vector<8xf32>
    %184 = vector.shape_cast %183 : vector<8xf32> to vector<8x1xf32>
    %185 = vector.broadcast %184 : vector<8x1xf32> to vector<8x16xf32>
    %186 = arith.subf %182, %185 : vector<8x16xf32>
    %187 = math.exp %186 : vector<8x16xf32>
    %cst_82 = arith.constant dense<0.000000e+00> : vector<8xf32>
    %188 = vector.multi_reduction <add>, %187, %cst_82 [1] : vector<8x16xf32> to vector<8xf32>
    %189 = vector.shape_cast %188 : vector<8xf32> to vector<8x1xf32>
    %190 = tpu.reciprocal %189 {approx = true} : vector<8x1xf32> -> vector<8x1xf32>
    %191 = vector.broadcast %190 : vector<8x1xf32> to vector<8x16xf32>
    %192 = arith.mulf %187, %191 : vector<8x16xf32>
    %cst_83 = arith.constant dense<0.000000e+00> : vector<8x8xf32>
    %193 = tpu.matmul %192, %179, %cst_83 {dimension_numbers = #tpu.dot_dimension_numbers<[1], [0], [0], [1], [0, 0, 1, 1], [], []>} : vector<8x16xf32>, vector<16x8xf32>, vector<8x8xf32> -> vector<8x8xf32>
    %c16_84 = arith.constant 16 : index
    %c0_85 = arith.constant 0 : index
    %194 = vector.load %arg11[%c16_84, %c0_85] : memref<32x32xf32, #tpu.memory_space<vmem>>, vector<8x32xf32>
    %cst_86 = arith.constant dense<0.000000e+00> : vector<8x32xf32>
    %195 = tpu.matmul %193, %194, %cst_86 {dimension_numbers = #tpu.dot_dimension_numbers<[1], [0], [0], [1], [0, 0, 1, 1], [], []>} : vector<8x8xf32>, vector<8x32xf32>, vector<8x32xf32> -> vector<8x32xf32>
    %196 = arith.addf %176, %195 : vector<8x32xf32>
    %197 = vector.extract_strided_slice %125 {offsets = [0, 24], sizes = [8, 8], strides = [1, 1]} : vector<8x32xf32> to vector<8x8xf32>
    %198 = vector.extract_strided_slice %131 {offsets = [0, 24], sizes = [16, 8], strides = [1, 1]} : vector<16x32xf32> to vector<16x8xf32>
    %199 = vector.extract_strided_slice %132 {offsets = [0, 24], sizes = [16, 8], strides = [1, 1]} : vector<16x32xf32> to vector<16x8xf32>
    %cst_87 = arith.constant dense<0.000000e+00> : vector<8x16xf32>
    %200 = tpu.matmul %197, %198, %cst_87 {dimension_numbers = #tpu.dot_dimension_numbers<[1], [1], [0], [0], [0, 0, 1, 0], [], []>} : vector<8x8xf32>, vector<16x8xf32>, vector<8x16xf32> -> vector<8x16xf32>
    %cst_88 = arith.constant 0.353553385 : f32
    %201 = vector.broadcast %cst_88 : f32 to vector<8x16xf32>
    %202 = arith.mulf %200, %201 : vector<8x16xf32>
    %cst_89 = arith.constant dense<0xFF800000> : vector<8xf32>
    %203 = vector.multi_reduction <maximumf>, %202, %cst_89 [1] : vector<8x16xf32> to vector<8xf32>
    %204 = vector.shape_cast %203 : vector<8xf32> to vector<8x1xf32>
    %205 = vector.broadcast %204 : vector<8x1xf32> to vector<8x16xf32>
    %206 = arith.subf %202, %205 : vector<8x16xf32>
    %207 = math.exp %206 : vector<8x16xf32>
    %cst_90 = arith.constant dense<0.000000e+00> : vector<8xf32>
    %208 = vector.multi_reduction <add>, %207, %cst_90 [1] : vector<8x16xf32> to vector<8xf32>
    %209 = vector.shape_cast %208 : vector<8xf32> to vector<8x1xf32>
    %210 = tpu.reciprocal %209 {approx = true} : vector<8x1xf32> -> vector<8x1xf32>
    %211 = vector.broadcast %210 : vector<8x1xf32> to vector<8x16xf32>
    %212 = arith.mulf %207, %211 : vector<8x16xf32>
    %cst_91 = arith.constant dense<0.000000e+00> : vector<8x8xf32>
    %213 = tpu.matmul %212, %199, %cst_91 {dimension_numbers = #tpu.dot_dimension_numbers<[1], [0], [0], [1], [0, 0, 1, 1], [], []>} : vector<8x16xf32>, vector<16x8xf32>, vector<8x8xf32> -> vector<8x8xf32>
    %c24_92 = arith.constant 24 : index
    %c0_93 = arith.constant 0 : index
    %214 = vector.load %arg11[%c24_92, %c0_93] : memref<32x32xf32, #tpu.memory_space<vmem>>, vector<8x32xf32>
    %cst_94 = arith.constant dense<0.000000e+00> : vector<8x32xf32>
    %215 = tpu.matmul %213, %214, %cst_94 {dimension_numbers = #tpu.dot_dimension_numbers<[1], [0], [0], [1], [0, 0, 1, 1], [], []>} : vector<8x8xf32>, vector<8x32xf32>, vector<8x32xf32> -> vector<8x32xf32>
    %216 = arith.addf %196, %215 : vector<8x32xf32>
    %217 = arith.addf %120, %216 : vector<8x32xf32>
    %cst_95 = arith.constant dense<0.000000e+00> : vector<8xf32>
    %218 = vector.multi_reduction <add>, %217, %cst_95 [1] : vector<8x32xf32> to vector<8xf32>
    %219 = vector.shape_cast %218 : vector<8xf32> to vector<8x1xf32>
    %cst_96 = arith.constant 3.200000e+01 : f32
    %220 = vector.broadcast %cst_96 : f32 to vector<8x1xf32>
    %221 = arith.divf %219, %220 : vector<8x1xf32>
    %222 = vector.broadcast %221 : vector<8x1xf32> to vector<8x32xf32>
    %223 = arith.subf %217, %222 : vector<8x32xf32>
    %224 = arith.mulf %223, %223 : vector<8x32xf32>
    %cst_97 = arith.constant dense<0.000000e+00> : vector<8xf32>
    %225 = vector.multi_reduction <add>, %224, %cst_97 [1] : vector<8x32xf32> to vector<8xf32>
    %226 = vector.shape_cast %225 : vector<8xf32> to vector<8x1xf32>
    %cst_98 = arith.constant 3.200000e+01 : f32
    %227 = vector.broadcast %cst_98 : f32 to vector<8x1xf32>
    %228 = arith.divf %226, %227 : vector<8x1xf32>
    %229 = vector.broadcast %221 : vector<8x1xf32> to vector<8x32xf32>
    %230 = arith.subf %217, %229 : vector<8x32xf32>
    %cst_99 = arith.constant 9.99999974E-6 : f32
    %231 = vector.broadcast %cst_99 : f32 to vector<8x1xf32>
    %232 = arith.addf %228, %231 : vector<8x1xf32>
    %233 = math.rsqrt %232 : vector<8x1xf32>
    %234 = vector.broadcast %233 : vector<8x1xf32> to vector<8x32xf32>
    %235 = arith.mulf %230, %234 : vector<8x32xf32>
    %c0_100 = arith.constant 0 : index
    %c0_101 = arith.constant 0 : index
    %236 = vector.load %arg15[%c0_100, %c0_101] : memref<1x32xf32, #tpu.memory_space<vmem>>, vector<1x32xf32>
    %237 = vector.broadcast %236 : vector<1x32xf32> to vector<8x32xf32>
    %238 = arith.mulf %235, %237 : vector<8x32xf32>
    %c0_102 = arith.constant 0 : index
    %c0_103 = arith.constant 0 : index
    %239 = vector.load %arg16[%c0_102, %c0_103] : memref<1x32xf32, #tpu.memory_space<vmem>>, vector<1x32xf32>
    %240 = vector.broadcast %239 : vector<1x32xf32> to vector<8x32xf32>
    %241 = arith.addf %238, %240 : vector<8x32xf32>
    %c0_104 = arith.constant 0 : index
    %c0_105 = arith.constant 0 : index
    %242 = vector.load %arg19[%c0_104, %c0_105] : memref<32x64xf32, #tpu.memory_space<vmem>>, vector<32x64xf32>
    %cst_106 = arith.constant dense<0.000000e+00> : vector<8x64xf32>
    %243 = tpu.matmul %241, %242, %cst_106 {dimension_numbers = #tpu.dot_dimension_numbers<[1], [0], [0], [1], [0, 0, 1, 1], [], []>} : vector<8x32xf32>, vector<32x64xf32>, vector<8x64xf32> -> vector<8x64xf32>
    %c0_107 = arith.constant 0 : index
    %c0_108 = arith.constant 0 : index
    %244 = vector.load %arg20[%c0_107, %c0_108] : memref<1x64xf32, #tpu.memory_space<vmem>>, vector<1x64xf32>
    %245 = vector.broadcast %244 : vector<1x64xf32> to vector<8x64xf32>
    %246 = arith.addf %243, %245 : vector<8x64xf32>
    %cst_109 = arith.constant 0.000000e+00 : f32
    %247 = vector.broadcast %cst_109 : f32 to vector<8x64xf32>
    %248 = arith.maximumf %246, %247 : vector<8x64xf32>
    %c0_110 = arith.constant 0 : index
    %c0_111 = arith.constant 0 : index
    %249 = vector.load %arg21[%c0_110, %c0_111] : memref<64x32xf32, #tpu.memory_space<vmem>>, vector<64x32xf32>
    %cst_112 = arith.constant dense<0.000000e+00> : vector<8x32xf32>
    %250 = tpu.matmul %248, %249, %cst_112 {dimension_numbers = #tpu.dot_dimension_numbers<[1], [0], [0], [1], [0, 0, 1, 1], [], []>} : vector<8x64xf32>, vector<64x32xf32>, vector<8x32xf32> -> vector<8x32xf32>
    %c0_113 = arith.constant 0 : index
    %c0_114 = arith.constant 0 : index
    %251 = vector.load %arg22[%c0_113, %c0_114] : memref<1x32xf32, #tpu.memory_space<vmem>>, vector<1x32xf32>
    %252 = vector.broadcast %251 : vector<1x32xf32> to vector<8x32xf32>
    %253 = arith.addf %250, %252 : vector<8x32xf32>
    %254 = arith.addf %241, %253 : vector<8x32xf32>
    %cst_115 = arith.constant dense<0.000000e+00> : vector<8xf32>
    %255 = vector.multi_reduction <add>, %254, %cst_115 [1] : vector<8x32xf32> to vector<8xf32>
    %256 = vector.shape_cast %255 : vector<8xf32> to vector<8x1xf32>
    %cst_116 = arith.constant 3.200000e+01 : f32
    %257 = vector.broadcast %cst_116 : f32 to vector<8x1xf32>
    %258 = arith.divf %256, %257 : vector<8x1xf32>
    %259 = vector.broadcast %258 : vector<8x1xf32> to vector<8x32xf32>
    %260 = arith.subf %254, %259 : vector<8x32xf32>
    %261 = arith.mulf %260, %260 : vector<8x32xf32>
    %cst_117 = arith.constant dense<0.000000e+00> : vector<8xf32>
    %262 = vector.multi_reduction <add>, %261, %cst_117 [1] : vector<8x32xf32> to vector<8xf32>
    %263 = vector.shape_cast %262 : vector<8xf32> to vector<8x1xf32>
    %cst_118 = arith.constant 3.200000e+01 : f32
    %264 = vector.broadcast %cst_118 : f32 to vector<8x1xf32>
    %265 = arith.divf %263, %264 : vector<8x1xf32>
    %266 = vector.broadcast %258 : vector<8x1xf32> to vector<8x32xf32>
    %267 = arith.subf %254, %266 : vector<8x32xf32>
    %cst_119 = arith.constant 9.99999974E-6 : f32
    %268 = vector.broadcast %cst_119 : f32 to vector<8x1xf32>
    %269 = arith.addf %265, %268 : vector<8x1xf32>
    %270 = math.rsqrt %269 : vector<8x1xf32>
    %271 = vector.broadcast %270 : vector<8x1xf32> to vector<8x32xf32>
    %272 = arith.mulf %267, %271 : vector<8x32xf32>
    %c0_120 = arith.constant 0 : index
    %c0_121 = arith.constant 0 : index
    %273 = vector.load %arg17[%c0_120, %c0_121] : memref<1x32xf32, #tpu.memory_space<vmem>>, vector<1x32xf32>
    %274 = vector.broadcast %273 : vector<1x32xf32> to vector<8x32xf32>
    %275 = arith.mulf %272, %274 : vector<8x32xf32>
    %c0_122 = arith.constant 0 : index
    %c0_123 = arith.constant 0 : index
    %276 = vector.load %arg18[%c0_122, %c0_123] : memref<1x32xf32, #tpu.memory_space<vmem>>, vector<1x32xf32>
    %277 = vector.broadcast %276 : vector<1x32xf32> to vector<8x32xf32>
    %278 = arith.addf %275, %277 : vector<8x32xf32>
    %c0_124 = arith.constant 0 : index
    %c0_125 = arith.constant 0 : index
    %c0_126 = arith.constant 0 : index
    %279 = vector.load %arg23[%c0_124, %c0_125, %c0_126] : memref<1x8x32xf32, #tpu.memory_space<vmem>>, vector<1x8x32xf32>
    %280 = vector.shape_cast %279 : vector<1x8x32xf32> to vector<8x32xf32>
    %281 = vector.shape_cast %278 : vector<8x32xf32> to vector<1x8x32xf32>
    tpu.vector_store %arg23[%c0_124, %c0_125, %c0_126], %281 {strides = array<i32>} : memref<1x8x32xf32, #tpu.memory_space<vmem>>, vector<1x8x32xf32>,
    return
  }
  func.func @transform_0(%arg0: i32) -> (i32, i32, i32) {
    %c0_i32 = arith.constant 0 : i32
    %c0_i32_0 = arith.constant 0 : i32
    %c0_i32_1 = arith.constant 0 : i32
    return %arg0, %c0_i32, %c0_i32_0 : i32, i32, i32
  }
  func.func @transform_1(%arg0: i32) -> (i32, i32, i32) {
    %c0_i32 = arith.constant 0 : i32
    %c0_i32_0 = arith.constant 0 : i32
    %c0_i32_1 = arith.constant 0 : i32
    return %arg0, %c0_i32, %c0_i32_0 : i32, i32, i32
  }
  func.func @transform_2(%arg0: i32) -> (i32, i32) {
    %c0_i32 = arith.constant 0 : i32
    %c0_i32_0 = arith.constant 0 : i32
    %c0_i32_1 = arith.constant 0 : i32
    return %c0_i32, %c0_i32_0 : i32, i32
  }
  func.func @transform_3(%arg0: i32) -> (i32, i32) {
    %c0_i32 = arith.constant 0 : i32
    %c0_i32_0 = arith.constant 0 : i32
    %c0_i32_1 = arith.constant 0 : i32
    return %c0_i32, %c0_i32_0 : i32, i32
  }
  func.func @transform_4(%arg0: i32) -> (i32, i32) {
    %c0_i32 = arith.constant 0 : i32
    %c0_i32_0 = arith.constant 0 : i32
    %c0_i32_1 = arith.constant 0 : i32
    return %c0_i32, %c0_i32_0 : i32, i32
  }
  func.func @transform_5(%arg0: i32) -> (i32, i32) {
    %c0_i32 = arith.constant 0 : i32
    %c0_i32_0 = arith.constant 0 : i32
    %c0_i32_1 = arith.constant 0 : i32
    return %c0_i32, %c0_i32_0 : i32, i32
  }
  func.func @transform_6(%arg0: i32) -> (i32, i32) {
    %c0_i32 = arith.constant 0 : i32
    %c0_i32_0 = arith.constant 0 : i32
    %c0_i32_1 = arith.constant 0 : i32
    return %c0_i32, %c0_i32_0 : i32, i32
  }
  func.func @transform_7(%arg0: i32) -> (i32, i32) {
    %c0_i32 = arith.constant 0 : i32
    %c0_i32_0 = arith.constant 0 : i32
    %c0_i32_1 = arith.constant 0 : i32
    return %c0_i32, %c0_i32_0 : i32, i32
  }
  func.func @transform_8(%arg0: i32) -> (i32, i32) {
    %c0_i32 = arith.constant 0 : i32
    %c0_i32_0 = arith.constant 0 : i32
    %c0_i32_1 = arith.constant 0 : i32
    return %c0_i32, %c0_i32_0 : i32, i32
  }
  func.func @transform_9(%arg0: i32) -> (i32, i32) {
    %c0_i32 = arith.constant 0 : i32
    %c0_i32_0 = arith.constant 0 : i32
    %c0_i32_1 = arith.constant 0 : i32
    return %c0_i32, %c0_i32_0 : i32, i32
  }
  func.func @transform_10(%arg0: i32) -> (i32, i32) {
    %c0_i32 = arith.constant 0 : i32
    %c0_i32_0 = arith.constant 0 : i32
    %c0_i32_1 = arith.constant 0 : i32
    return %c0_i32, %c0_i32_0 : i32, i32
  }
  func.func @transform_11(%arg0: i32) -> (i32, i32) {
    %c0_i32 = arith.constant 0 : i32
    %c0_i32_0 = arith.constant 0 : i32
    %c0_i32_1 = arith.constant 0 : i32
    return %c0_i32, %c0_i32_0 : i32, i32
  }
  func.func @transform_12(%arg0: i32) -> (i32, i32) {
    %c0_i32 = arith.constant 0 : i32
    %c0_i32_0 = arith.constant 0 : i32
    %c0_i32_1 = arith.constant 0 : i32
    return %c0_i32, %c0_i32_0 : i32, i32
  }
  func.func @transform_13(%arg0: i32) -> (i32, i32) {
    %c0_i32 = arith.constant 0 : i32
    %c0_i32_0 = arith.constant 0 : i32
    %c0_i32_1 = arith.constant 0 : i32
    return %c0_i32, %c0_i32_0 : i32, i32
  }
  func.func @transform_14(%arg0: i32) -> (i32, i32) {
    %c0_i32 = arith.constant 0 : i32
    %c0_i32_0 = arith.constant 0 : i32
    %c0_i32_1 = arith.constant 0 : i32
    return %c0_i32, %c0_i32_0 : i32, i32
  }
  func.func @transform_15(%arg0: i32) -> (i32, i32) {
    %c0_i32 = arith.constant 0 : i32
    %c0_i32_0 = arith.constant 0 : i32
    %c0_i32_1 = arith.constant 0 : i32
    return %c0_i32, %c0_i32_0 : i32, i32
  }
  func.func @transform_16(%arg0: i32) -> (i32, i32) {
    %c0_i32 = arith.constant 0 : i32
    %c0_i32_0 = arith.constant 0 : i32
    %c0_i32_1 = arith.constant 0 : i32
    return %c0_i32, %c0_i32_0 : i32, i32
  }
  func.func @transform_17(%arg0: i32) -> (i32, i32) {
    %c0_i32 = arith.constant 0 : i32
    %c0_i32_0 = arith.constant 0 : i32
    %c0_i32_1 = arith.constant 0 : i32
    return %c0_i32, %c0_i32_0 : i32, i32
  }
  func.func @transform_18(%arg0: i32) -> (i32, i32) {
    %c0_i32 = arith.constant 0 : i32
    %c0_i32_0 = arith.constant 0 : i32
    %c0_i32_1 = arith.constant 0 : i32
    return %c0_i32, %c0_i32_0 : i32, i32
  }
  func.func @transform_19(%arg0: i32) -> (i32, i32) {
    %c0_i32 = arith.constant 0 : i32
    %c0_i32_0 = arith.constant 0 : i32
    %c0_i32_1 = arith.constant 0 : i32
    return %c0_i32, %c0_i32_0 : i32, i32
  }
  func.func @transform_20(%arg0: i32) -> (i32, i32) {
    %c0_i32 = arith.constant 0 : i32
    %c0_i32_0 = arith.constant 0 : i32
    %c0_i32_1 = arith.constant 0 : i32
    return %c0_i32, %c0_i32_0 : i32, i32
  }
  func.func @transform_21(%arg0: i32) -> (i32, i32) {
    %c0_i32 = arith.constant 0 : i32
    %c0_i32_0 = arith.constant 0 : i32
    %c0_i32_1 = arith.constant 0 : i32
    return %c0_i32, %c0_i32_0 : i32, i32
  }
  func.func @transform_22(%arg0: i32) -> (i32, i32, i32) {
    %c0_i32 = arith.constant 0 : i32
    %c0_i32_0 = arith.constant 0 : i32
    %c0_i32_1 = arith.constant 0 : i32
    return %arg0, %c0_i32, %c0_i32_0 : i32, i32, i32
  }
}

module attributes {stable_mosaic.version = 11 : i64} {
  func.func @_decoder_block_kernel(%arg0: i32, %arg1: memref<1x8x32xf32, #tpu.memory_space<vmem>>, %arg2: memref<1x16x32xf32, #tpu.memory_space<vmem>>, %arg3: memref<32x96xf32, #tpu.memory_space<vmem>>, %arg4: memref<1x96xf32, #tpu.memory_space<vmem>>, %arg5: memref<32x32xf32, #tpu.memory_space<vmem>>, %arg6: memref<1x32xf32, #tpu.memory_space<vmem>>, %arg7: memref<32x32xf32, #tpu.memory_space<vmem>>, %arg8: memref<1x32xf32, #tpu.memory_space<vmem>>, %arg9: memref<32x64xf32, #tpu.memory_space<vmem>>, %arg10: memref<1x64xf32, #tpu.memory_space<vmem>>, %arg11: memref<32x32xf32, #tpu.memory_space<vmem>>, %arg12: memref<1x32xf32, #tpu.memory_space<vmem>>, %arg13: memref<1x32xf32, #tpu.memory_space<vmem>>, %arg14: memref<1x32xf32, #tpu.memory_space<vmem>>, %arg15: memref<1x32xf32, #tpu.memory_space<vmem>>, %arg16: memref<1x32xf32, #tpu.memory_space<vmem>>, %arg17: memref<1x32xf32, #tpu.memory_space<vmem>>, %arg18: memref<1x32xf32, #tpu.memory_space<vmem>>, %arg19: memref<32x64xf32, #tpu.memory_space<vmem>>, %arg20: memref<1x64xf32, #tpu.memory_space<vmem>>, %arg21: memref<64x32xf32, #tpu.memory_space<vmem>>, %arg22: memref<1x32xf32, #tpu.memory_space<vmem>>, %arg23: memref<32x128xf32, #tpu.memory_space<vmem>>, %arg24: memref<1x128xf32, #tpu.memory_space<vmem>>, %arg25: memref<1x8x128xf32, #tpu.memory_space<vmem>>) attributes {dimension_semantics = [#tpu.dimension_semantics<parallel>], iteration_bounds = array<i64: 2>, scalar_prefetch = 0 : i64, scratch_operands = 0 : i64, tpu.core_type = #tpu.core_type<tc>, window_params = [{transform_indices = @transform_0, window_bounds = array<i64: 1, 8, 32>}, {transform_indices = @transform_1, window_bounds = array<i64: 1, 16, 32>}, {pipeline_mode = #tpu.pipeline_mode<synchronous>, transform_indices = @transform_2, window_bounds = array<i64: 32, 96>}, {pipeline_mode = #tpu.pipeline_mode<synchronous>, transform_indices = @transform_3, window_bounds = array<i64: 1, 96>}, {pipeline_mode = #tpu.pipeline_mode<synchronous>, transform_indices = @transform_4, window_bounds = array<i64: 32, 32>}, {pipeline_mode = #tpu.pipeline_mode<synchronous>, transform_indices = @transform_5, window_bounds = array<i64: 1, 32>}, {pipeline_mode = #tpu.pipeline_mode<synchronous>, transform_indices = @transform_6, window_bounds = array<i64: 32, 32>}, {pipeline_mode = #tpu.pipeline_mode<synchronous>, transform_indices = @transform_7, window_bounds = array<i64: 1, 32>}, {pipeline_mode = #tpu.pipeline_mode<synchronous>, transform_indices = @transform_8, window_bounds = array<i64: 32, 64>}, {pipeline_mode = #tpu.pipeline_mode<synchronous>, transform_indices = @transform_9, window_bounds = array<i64: 1, 64>}, {pipeline_mode = #tpu.pipeline_mode<synchronous>, transform_indices = @transform_10, window_bounds = array<i64: 32, 32>}, {pipeline_mode = #tpu.pipeline_mode<synchronous>, transform_indices = @transform_11, window_bounds = array<i64: 1, 32>}, {pipeline_mode = #tpu.pipeline_mode<synchronous>, transform_indices = @transform_12, window_bounds = array<i64: 1, 32>}, {pipeline_mode = #tpu.pipeline_mode<synchronous>, transform_indices = @transform_13, window_bounds = array<i64: 1, 32>}, {pipeline_mode = #tpu.pipeline_mode<synchronous>, transform_indices = @transform_14, window_bounds = array<i64: 1, 32>}, {pipeline_mode = #tpu.pipeline_mode<synchronous>, transform_indices = @transform_15, window_bounds = array<i64: 1, 32>}, {pipeline_mode = #tpu.pipeline_mode<synchronous>, transform_indices = @transform_16, window_bounds = array<i64: 1, 32>}, {pipeline_mode = #tpu.pipeline_mode<synchronous>, transform_indices = @transform_17, window_bounds = array<i64: 1, 32>}, {pipeline_mode = #tpu.pipeline_mode<synchronous>, transform_indices = @transform_18, window_bounds = array<i64: 32, 64>}, {pipeline_mode = #tpu.pipeline_mode<synchronous>, transform_indices = @transform_19, window_bounds = array<i64: 1, 64>}, {pipeline_mode = #tpu.pipeline_mode<synchronous>, transform_indices = @transform_20, window_bounds = array<i64: 64, 32>}, {pipeline_mode = #tpu.pipeline_mode<synchronous>, transform_indices = @transform_21, window_bounds = array<i64: 1, 32>}, {pipeline_mode = #tpu.pipeline_mode<synchronous>, transform_indices = @transform_22, window_bounds = array<i64: 32, 128>}, {pipeline_mode = #tpu.pipeline_mode<synchronous>, transform_indices = @transform_23, window_bounds = array<i64: 1, 128>}, {transform_indices = @transform_24, window_bounds = array<i64: 1, 8, 128>}]} {
    %c0 = arith.constant 0 : index
    %c0_0 = arith.constant 0 : index
    %c0_1 = arith.constant 0 : index
    %0 = vector.load %arg1[%c0, %c0_0, %c0_1] : memref<1x8x32xf32, #tpu.memory_space<vmem>>, vector<1x8x32xf32>
    %1 = vector.shape_cast %0 : vector<1x8x32xf32> to vector<8x32xf32>
    %c0_2 = arith.constant 0 : index
    %c0_3 = arith.constant 0 : index
    %c0_4 = arith.constant 0 : index
    %2 = vector.load %arg2[%c0_2, %c0_3, %c0_4] : memref<1x16x32xf32, #tpu.memory_space<vmem>>, vector<1x16x32xf32>
    %3 = vector.shape_cast %2 : vector<1x16x32xf32> to vector<16x32xf32>
    %c0_5 = arith.constant 0 : index
    %c0_6 = arith.constant 0 : index
    %4 = vector.load %arg3[%c0_5, %c0_6] : memref<32x96xf32, #tpu.memory_space<vmem>>, vector<32x96xf32>
    %cst = arith.constant dense<0.000000e+00> : vector<8x96xf32>
    %5 = tpu.matmul %1, %4, %cst {dimension_numbers = #tpu.dot_dimension_numbers<[1], [0], [0], [1], [0, 0, 1, 1], [], []>} : vector<8x32xf32>, vector<32x96xf32>, vector<8x96xf32> -> vector<8x96xf32>
    %c0_7 = arith.constant 0 : index
    %c0_8 = arith.constant 0 : index
    %6 = vector.load %arg4[%c0_7, %c0_8] : memref<1x96xf32, #tpu.memory_space<vmem>>, vector<1x96xf32>
    %7 = vector.broadcast %6 : vector<1x96xf32> to vector<8x96xf32>
    %8 = arith.addf %5, %7 : vector<8x96xf32>
    %9 = vector.extract_strided_slice %8 {offsets = [0, 0], sizes = [8, 32], strides = [1, 1]} : vector<8x96xf32> to vector<8x32xf32>
    %10 = vector.extract_strided_slice %8 {offsets = [0, 32], sizes = [8, 32], strides = [1, 1]} : vector<8x96xf32> to vector<8x32xf32>
    %11 = vector.extract_strided_slice %8 {offsets = [0, 64], sizes = [8, 32], strides = [1, 1]} : vector<8x96xf32> to vector<8x32xf32>
    %cst_9 = arith.constant 0.000000e+00 : f32
    %12 = vector.broadcast %cst_9 : f32 to vector<8x32xf32>
    %c0_10 = arith.constant 0 : index
    %c0_11 = arith.constant 0 : index
    %13 = vector.load %arg6[%c0_10, %c0_11] : memref<1x32xf32, #tpu.memory_space<vmem>>, vector<1x32xf32>
    %14 = vector.broadcast %13 : vector<1x32xf32> to vector<8x32xf32>
    %15 = arith.addf %12, %14 : vector<8x32xf32>
    %16 = vector.extract_strided_slice %9 {offsets = [0, 0], sizes = [8, 8], strides = [1, 1]} : vector<8x32xf32> to vector<8x8xf32>
    %17 = vector.extract_strided_slice %10 {offsets = [0, 0], sizes = [8, 8], strides = [1, 1]} : vector<8x32xf32> to vector<8x8xf32>
    %18 = vector.extract_strided_slice %11 {offsets = [0, 0], sizes = [8, 8], strides = [1, 1]} : vector<8x32xf32> to vector<8x8xf32>
    %cst_12 = arith.constant dense<0.000000e+00> : vector<8x8xf32>
    %19 = tpu.matmul %16, %17, %cst_12 {dimension_numbers = #tpu.dot_dimension_numbers<[1], [1], [0], [0], [0, 0, 1, 0], [], []>} : vector<8x8xf32>, vector<8x8xf32>, vector<8x8xf32> -> vector<8x8xf32>
    %cst_13 = arith.constant 0.353553385 : f32
    %20 = vector.broadcast %cst_13 : f32 to vector<8x8xf32>
    %21 = arith.mulf %19, %20 : vector<8x8xf32>
    %cst_14 = arith.constant dense<0xFF800000> : vector<8xf32>
    %22 = vector.multi_reduction <maximumf>, %21, %cst_14 [1] : vector<8x8xf32> to vector<8xf32>
    %23 = vector.shape_cast %22 : vector<8xf32> to vector<8x1xf32>
    %24 = vector.broadcast %23 : vector<8x1xf32> to vector<8x8xf32>
    %25 = arith.subf %21, %24 : vector<8x8xf32>
    %26 = math.exp %25 : vector<8x8xf32>
    %cst_15 = arith.constant dense<0.000000e+00> : vector<8xf32>
    %27 = vector.multi_reduction <add>, %26, %cst_15 [1] : vector<8x8xf32> to vector<8xf32>
    %28 = vector.shape_cast %27 : vector<8xf32> to vector<8x1xf32>
    %29 = tpu.reciprocal %28 {approx = true} : vector<8x1xf32> -> vector<8x1xf32>
    %30 = vector.broadcast %29 : vector<8x1xf32> to vector<8x8xf32>
    %31 = arith.mulf %26, %30 : vector<8x8xf32>
    %cst_16 = arith.constant dense<0.000000e+00> : vector<8x8xf32>
    %32 = tpu.matmul %31, %18, %cst_16 {dimension_numbers = #tpu.dot_dimension_numbers<[1], [0], [0], [1], [0, 0, 1, 1], [], []>} : vector<8x8xf32>, vector<8x8xf32>, vector<8x8xf32> -> vector<8x8xf32>
    %c0_17 = arith.constant 0 : index
    %c0_18 = arith.constant 0 : index
    %33 = vector.load %arg5[%c0_17, %c0_18] : memref<32x32xf32, #tpu.memory_space<vmem>>, vector<8x32xf32>
    %cst_19 = arith.constant dense<0.000000e+00> : vector<8x32xf32>
    %34 = tpu.matmul %32, %33, %cst_19 {dimension_numbers = #tpu.dot_dimension_numbers<[1], [0], [0], [1], [0, 0, 1, 1], [], []>} : vector<8x8xf32>, vector<8x32xf32>, vector<8x32xf32> -> vector<8x32xf32>
    %35 = arith.addf %15, %34 : vector<8x32xf32>
    %36 = vector.extract_strided_slice %9 {offsets = [0, 8], sizes = [8, 8], strides = [1, 1]} : vector<8x32xf32> to vector<8x8xf32>
    %37 = vector.extract_strided_slice %10 {offsets = [0, 8], sizes = [8, 8], strides = [1, 1]} : vector<8x32xf32> to vector<8x8xf32>
    %38 = vector.extract_strided_slice %11 {offsets = [0, 8], sizes = [8, 8], strides = [1, 1]} : vector<8x32xf32> to vector<8x8xf32>
    %cst_20 = arith.constant dense<0.000000e+00> : vector<8x8xf32>
    %39 = tpu.matmul %36, %37, %cst_20 {dimension_numbers = #tpu.dot_dimension_numbers<[1], [1], [0], [0], [0, 0, 1, 0], [], []>} : vector<8x8xf32>, vector<8x8xf32>, vector<8x8xf32> -> vector<8x8xf32>
    %cst_21 = arith.constant 0.353553385 : f32
    %40 = vector.broadcast %cst_21 : f32 to vector<8x8xf32>
    %41 = arith.mulf %39, %40 : vector<8x8xf32>
    %cst_22 = arith.constant dense<0xFF800000> : vector<8xf32>
    %42 = vector.multi_reduction <maximumf>, %41, %cst_22 [1] : vector<8x8xf32> to vector<8xf32>
    %43 = vector.shape_cast %42 : vector<8xf32> to vector<8x1xf32>
    %44 = vector.broadcast %43 : vector<8x1xf32> to vector<8x8xf32>
    %45 = arith.subf %41, %44 : vector<8x8xf32>
    %46 = math.exp %45 : vector<8x8xf32>
    %cst_23 = arith.constant dense<0.000000e+00> : vector<8xf32>
    %47 = vector.multi_reduction <add>, %46, %cst_23 [1] : vector<8x8xf32> to vector<8xf32>
    %48 = vector.shape_cast %47 : vector<8xf32> to vector<8x1xf32>
    %49 = tpu.reciprocal %48 {approx = true} : vector<8x1xf32> -> vector<8x1xf32>
    %50 = vector.broadcast %49 : vector<8x1xf32> to vector<8x8xf32>
    %51 = arith.mulf %46, %50 : vector<8x8xf32>
    %cst_24 = arith.constant dense<0.000000e+00> : vector<8x8xf32>
    %52 = tpu.matmul %51, %38, %cst_24 {dimension_numbers = #tpu.dot_dimension_numbers<[1], [0], [0], [1], [0, 0, 1, 1], [], []>} : vector<8x8xf32>, vector<8x8xf32>, vector<8x8xf32> -> vector<8x8xf32>
    %c8 = arith.constant 8 : index
    %c0_25 = arith.constant 0 : index
    %53 = vector.load %arg5[%c8, %c0_25] : memref<32x32xf32, #tpu.memory_space<vmem>>, vector<8x32xf32>
    %cst_26 = arith.constant dense<0.000000e+00> : vector<8x32xf32>
    %54 = tpu.matmul %52, %53, %cst_26 {dimension_numbers = #tpu.dot_dimension_numbers<[1], [0], [0], [1], [0, 0, 1, 1], [], []>} : vector<8x8xf32>, vector<8x32xf32>, vector<8x32xf32> -> vector<8x32xf32>
    %55 = arith.addf %35, %54 : vector<8x32xf32>
    %56 = vector.extract_strided_slice %9 {offsets = [0, 16], sizes = [8, 8], strides = [1, 1]} : vector<8x32xf32> to vector<8x8xf32>
    %57 = vector.extract_strided_slice %10 {offsets = [0, 16], sizes = [8, 8], strides = [1, 1]} : vector<8x32xf32> to vector<8x8xf32>
    %58 = vector.extract_strided_slice %11 {offsets = [0, 16], sizes = [8, 8], strides = [1, 1]} : vector<8x32xf32> to vector<8x8xf32>
    %cst_27 = arith.constant dense<0.000000e+00> : vector<8x8xf32>
    %59 = tpu.matmul %56, %57, %cst_27 {dimension_numbers = #tpu.dot_dimension_numbers<[1], [1], [0], [0], [0, 0, 1, 0], [], []>} : vector<8x8xf32>, vector<8x8xf32>, vector<8x8xf32> -> vector<8x8xf32>
    %cst_28 = arith.constant 0.353553385 : f32
    %60 = vector.broadcast %cst_28 : f32 to vector<8x8xf32>
    %61 = arith.mulf %59, %60 : vector<8x8xf32>
    %cst_29 = arith.constant dense<0xFF800000> : vector<8xf32>
    %62 = vector.multi_reduction <maximumf>, %61, %cst_29 [1] : vector<8x8xf32> to vector<8xf32>
    %63 = vector.shape_cast %62 : vector<8xf32> to vector<8x1xf32>
    %64 = vector.broadcast %63 : vector<8x1xf32> to vector<8x8xf32>
    %65 = arith.subf %61, %64 : vector<8x8xf32>
    %66 = math.exp %65 : vector<8x8xf32>
    %cst_30 = arith.constant dense<0.000000e+00> : vector<8xf32>
    %67 = vector.multi_reduction <add>, %66, %cst_30 [1] : vector<8x8xf32> to vector<8xf32>
    %68 = vector.shape_cast %67 : vector<8xf32> to vector<8x1xf32>
    %69 = tpu.reciprocal %68 {approx = true} : vector<8x1xf32> -> vector<8x1xf32>
    %70 = vector.broadcast %69 : vector<8x1xf32> to vector<8x8xf32>
    %71 = arith.mulf %66, %70 : vector<8x8xf32>
    %cst_31 = arith.constant dense<0.000000e+00> : vector<8x8xf32>
    %72 = tpu.matmul %71, %58, %cst_31 {dimension_numbers = #tpu.dot_dimension_numbers<[1], [0], [0], [1], [0, 0, 1, 1], [], []>} : vector<8x8xf32>, vector<8x8xf32>, vector<8x8xf32> -> vector<8x8xf32>
    %c16 = arith.constant 16 : index
    %c0_32 = arith.constant 0 : index
    %73 = vector.load %arg5[%c16, %c0_32] : memref<32x32xf32, #tpu.memory_space<vmem>>, vector<8x32xf32>
    %cst_33 = arith.constant dense<0.000000e+00> : vector<8x32xf32>
    %74 = tpu.matmul %72, %73, %cst_33 {dimension_numbers = #tpu.dot_dimension_numbers<[1], [0], [0], [1], [0, 0, 1, 1], [], []>} : vector<8x8xf32>, vector<8x32xf32>, vector<8x32xf32> -> vector<8x32xf32>
    %75 = arith.addf %55, %74 : vector<8x32xf32>
    %76 = vector.extract_strided_slice %9 {offsets = [0, 24], sizes = [8, 8], strides = [1, 1]} : vector<8x32xf32> to vector<8x8xf32>
    %77 = vector.extract_strided_slice %10 {offsets = [0, 24], sizes = [8, 8], strides = [1, 1]} : vector<8x32xf32> to vector<8x8xf32>
    %78 = vector.extract_strided_slice %11 {offsets = [0, 24], sizes = [8, 8], strides = [1, 1]} : vector<8x32xf32> to vector<8x8xf32>
    %cst_34 = arith.constant dense<0.000000e+00> : vector<8x8xf32>
    %79 = tpu.matmul %76, %77, %cst_34 {dimension_numbers = #tpu.dot_dimension_numbers<[1], [1], [0], [0], [0, 0, 1, 0], [], []>} : vector<8x8xf32>, vector<8x8xf32>, vector<8x8xf32> -> vector<8x8xf32>
    %cst_35 = arith.constant 0.353553385 : f32
    %80 = vector.broadcast %cst_35 : f32 to vector<8x8xf32>
    %81 = arith.mulf %79, %80 : vector<8x8xf32>
    %cst_36 = arith.constant dense<0xFF800000> : vector<8xf32>
    %82 = vector.multi_reduction <maximumf>, %81, %cst_36 [1] : vector<8x8xf32> to vector<8xf32>
    %83 = vector.shape_cast %82 : vector<8xf32> to vector<8x1xf32>
    %84 = vector.broadcast %83 : vector<8x1xf32> to vector<8x8xf32>
    %85 = arith.subf %81, %84 : vector<8x8xf32>
    %86 = math.exp %85 : vector<8x8xf32>
    %cst_37 = arith.constant dense<0.000000e+00> : vector<8xf32>
    %87 = vector.multi_reduction <add>, %86, %cst_37 [1] : vector<8x8xf32> to vector<8xf32>
    %88 = vector.shape_cast %87 : vector<8xf32> to vector<8x1xf32>
    %89 = tpu.reciprocal %88 {approx = true} : vector<8x1xf32> -> vector<8x1xf32>
    %90 = vector.broadcast %89 : vector<8x1xf32> to vector<8x8xf32>
    %91 = arith.mulf %86, %90 : vector<8x8xf32>
    %cst_38 = arith.constant dense<0.000000e+00> : vector<8x8xf32>
    %92 = tpu.matmul %91, %78, %cst_38 {dimension_numbers = #tpu.dot_dimension_numbers<[1], [0], [0], [1], [0, 0, 1, 1], [], []>} : vector<8x8xf32>, vector<8x8xf32>, vector<8x8xf32> -> vector<8x8xf32>
    %c24 = arith.constant 24 : index
    %c0_39 = arith.constant 0 : index
    %93 = vector.load %arg5[%c24, %c0_39] : memref<32x32xf32, #tpu.memory_space<vmem>>, vector<8x32xf32>
    %cst_40 = arith.constant dense<0.000000e+00> : vector<8x32xf32>
    %94 = tpu.matmul %92, %93, %cst_40 {dimension_numbers = #tpu.dot_dimension_numbers<[1], [0], [0], [1], [0, 0, 1, 1], [], []>} : vector<8x8xf32>, vector<8x32xf32>, vector<8x32xf32> -> vector<8x32xf32>
    %95 = arith.addf %75, %94 : vector<8x32xf32>
    %96 = arith.addf %1, %95 : vector<8x32xf32>
    %cst_41 = arith.constant dense<0.000000e+00> : vector<8xf32>
    %97 = vector.multi_reduction <add>, %96, %cst_41 [1] : vector<8x32xf32> to vector<8xf32>
    %98 = vector.shape_cast %97 : vector<8xf32> to vector<8x1xf32>
    %cst_42 = arith.constant 3.200000e+01 : f32
    %99 = vector.broadcast %cst_42 : f32 to vector<8x1xf32>
    %100 = arith.divf %98, %99 : vector<8x1xf32>
    %101 = vector.broadcast %100 : vector<8x1xf32> to vector<8x32xf32>
    %102 = arith.subf %96, %101 : vector<8x32xf32>
    %103 = arith.mulf %102, %102 : vector<8x32xf32>
    %cst_43 = arith.constant dense<0.000000e+00> : vector<8xf32>
    %104 = vector.multi_reduction <add>, %103, %cst_43 [1] : vector<8x32xf32> to vector<8xf32>
    %105 = vector.shape_cast %104 : vector<8xf32> to vector<8x1xf32>
    %cst_44 = arith.constant 3.200000e+01 : f32
    %106 = vector.broadcast %cst_44 : f32 to vector<8x1xf32>
    %107 = arith.divf %105, %106 : vector<8x1xf32>
    %108 = vector.broadcast %100 : vector<8x1xf32> to vector<8x32xf32>
    %109 = arith.subf %96, %108 : vector<8x32xf32>
    %cst_45 = arith.constant 9.99999974E-6 : f32
    %110 = vector.broadcast %cst_45 : f32 to vector<8x1xf32>
    %111 = arith.addf %107, %110 : vector<8x1xf32>
    %112 = math.rsqrt %111 : vector<8x1xf32>
    %113 = vector.broadcast %112 : vector<8x1xf32> to vector<8x32xf32>
    %114 = arith.mulf %109, %113 : vector<8x32xf32>
    %c0_46 = arith.constant 0 : index
    %c0_47 = arith.constant 0 : index
    %115 = vector.load %arg13[%c0_46, %c0_47] : memref<1x32xf32, #tpu.memory_space<vmem>>, vector<1x32xf32>
    %116 = vector.broadcast %115 : vector<1x32xf32> to vector<8x32xf32>
    %117 = arith.mulf %114, %116 : vector<8x32xf32>
    %c0_48 = arith.constant 0 : index
    %c0_49 = arith.constant 0 : index
    %118 = vector.load %arg14[%c0_48, %c0_49] : memref<1x32xf32, #tpu.memory_space<vmem>>, vector<1x32xf32>
    %119 = vector.broadcast %118 : vector<1x32xf32> to vector<8x32xf32>
    %120 = arith.addf %117, %119 : vector<8x32xf32>
    %c0_50 = arith.constant 0 : index
    %c0_51 = arith.constant 0 : index
    %121 = vector.load %arg7[%c0_50, %c0_51] : memref<32x32xf32, #tpu.memory_space<vmem>>, vector<32x32xf32>
    %cst_52 = arith.constant dense<0.000000e+00> : vector<8x32xf32>
    %122 = tpu.matmul %120, %121, %cst_52 {dimension_numbers = #tpu.dot_dimension_numbers<[1], [0], [0], [1], [0, 0, 1, 1], [], []>} : vector<8x32xf32>, vector<32x32xf32>, vector<8x32xf32> -> vector<8x32xf32>
    %c0_53 = arith.constant 0 : index
    %c0_54 = arith.constant 0 : index
    %123 = vector.load %arg8[%c0_53, %c0_54] : memref<1x32xf32, #tpu.memory_space<vmem>>, vector<1x32xf32>
    %124 = vector.broadcast %123 : vector<1x32xf32> to vector<8x32xf32>
    %125 = arith.addf %122, %124 : vector<8x32xf32>
    %c0_55 = arith.constant 0 : index
    %c0_56 = arith.constant 0 : index
    %126 = vector.load %arg9[%c0_55, %c0_56] : memref<32x64xf32, #tpu.memory_space<vmem>>, vector<32x64xf32>
    %cst_57 = arith.constant dense<0.000000e+00> : vector<16x64xf32>
    %127 = tpu.matmul %3, %126, %cst_57 {dimension_numbers = #tpu.dot_dimension_numbers<[1], [0], [0], [1], [0, 0, 1, 1], [], []>} : vector<16x32xf32>, vector<32x64xf32>, vector<16x64xf32> -> vector<16x64xf32>
    %c0_58 = arith.constant 0 : index
    %c0_59 = arith.constant 0 : index
    %128 = vector.load %arg10[%c0_58, %c0_59] : memref<1x64xf32, #tpu.memory_space<vmem>>, vector<1x64xf32>
    %129 = vector.broadcast %128 : vector<1x64xf32> to vector<16x64xf32>
    %130 = arith.addf %127, %129 : vector<16x64xf32>
    %131 = vector.extract_strided_slice %130 {offsets = [0, 0], sizes = [16, 32], strides = [1, 1]} : vector<16x64xf32> to vector<16x32xf32>
    %132 = vector.extract_strided_slice %130 {offsets = [0, 32], sizes = [16, 32], strides = [1, 1]} : vector<16x64xf32> to vector<16x32xf32>
    %cst_60 = arith.constant 0.000000e+00 : f32
    %133 = vector.broadcast %cst_60 : f32 to vector<8x32xf32>
    %c0_61 = arith.constant 0 : index
    %c0_62 = arith.constant 0 : index
    %134 = vector.load %arg12[%c0_61, %c0_62] : memref<1x32xf32, #tpu.memory_space<vmem>>, vector<1x32xf32>
    %135 = vector.broadcast %134 : vector<1x32xf32> to vector<8x32xf32>
    %136 = arith.addf %133, %135 : vector<8x32xf32>
    %137 = vector.extract_strided_slice %125 {offsets = [0, 0], sizes = [8, 8], strides = [1, 1]} : vector<8x32xf32> to vector<8x8xf32>
    %138 = vector.extract_strided_slice %131 {offsets = [0, 0], sizes = [16, 8], strides = [1, 1]} : vector<16x32xf32> to vector<16x8xf32>
    %139 = vector.extract_strided_slice %132 {offsets = [0, 0], sizes = [16, 8], strides = [1, 1]} : vector<16x32xf32> to vector<16x8xf32>
    %cst_63 = arith.constant dense<0.000000e+00> : vector<8x16xf32>
    %140 = tpu.matmul %137, %138, %cst_63 {dimension_numbers = #tpu.dot_dimension_numbers<[1], [1], [0], [0], [0, 0, 1, 0], [], []>} : vector<8x8xf32>, vector<16x8xf32>, vector<8x16xf32> -> vector<8x16xf32>
    %cst_64 = arith.constant 0.353553385 : f32
    %141 = vector.broadcast %cst_64 : f32 to vector<8x16xf32>
    %142 = arith.mulf %140, %141 : vector<8x16xf32>
    %cst_65 = arith.constant dense<0xFF800000> : vector<8xf32>
    %143 = vector.multi_reduction <maximumf>, %142, %cst_65 [1] : vector<8x16xf32> to vector<8xf32>
    %144 = vector.shape_cast %143 : vector<8xf32> to vector<8x1xf32>
    %145 = vector.broadcast %144 : vector<8x1xf32> to vector<8x16xf32>
    %146 = arith.subf %142, %145 : vector<8x16xf32>
    %147 = math.exp %146 : vector<8x16xf32>
    %cst_66 = arith.constant dense<0.000000e+00> : vector<8xf32>
    %148 = vector.multi_reduction <add>, %147, %cst_66 [1] : vector<8x16xf32> to vector<8xf32>
    %149 = vector.shape_cast %148 : vector<8xf32> to vector<8x1xf32>
    %150 = tpu.reciprocal %149 {approx = true} : vector<8x1xf32> -> vector<8x1xf32>
    %151 = vector.broadcast %150 : vector<8x1xf32> to vector<8x16xf32>
    %152 = arith.mulf %147, %151 : vector<8x16xf32>
    %cst_67 = arith.constant dense<0.000000e+00> : vector<8x8xf32>
    %153 = tpu.matmul %152, %139, %cst_67 {dimension_numbers = #tpu.dot_dimension_numbers<[1], [0], [0], [1], [0, 0, 1, 1], [], []>} : vector<8x16xf32>, vector<16x8xf32>, vector<8x8xf32> -> vector<8x8xf32>
    %c0_68 = arith.constant 0 : index
    %c0_69 = arith.constant 0 : index
    %154 = vector.load %arg11[%c0_68, %c0_69] : memref<32x32xf32, #tpu.memory_space<vmem>>, vector<8x32xf32>
    %cst_70 = arith.constant dense<0.000000e+00> : vector<8x32xf32>
    %155 = tpu.matmul %153, %154, %cst_70 {dimension_numbers = #tpu.dot_dimension_numbers<[1], [0], [0], [1], [0, 0, 1, 1], [], []>} : vector<8x8xf32>, vector<8x32xf32>, vector<8x32xf32> -> vector<8x32xf32>
    %156 = arith.addf %136, %155 : vector<8x32xf32>
    %157 = vector.extract_strided_slice %125 {offsets = [0, 8], sizes = [8, 8], strides = [1, 1]} : vector<8x32xf32> to vector<8x8xf32>
    %158 = vector.extract_strided_slice %131 {offsets = [0, 8], sizes = [16, 8], strides = [1, 1]} : vector<16x32xf32> to vector<16x8xf32>
    %159 = vector.extract_strided_slice %132 {offsets = [0, 8], sizes = [16, 8], strides = [1, 1]} : vector<16x32xf32> to vector<16x8xf32>
    %cst_71 = arith.constant dense<0.000000e+00> : vector<8x16xf32>
    %160 = tpu.matmul %157, %158, %cst_71 {dimension_numbers = #tpu.dot_dimension_numbers<[1], [1], [0], [0], [0, 0, 1, 0], [], []>} : vector<8x8xf32>, vector<16x8xf32>, vector<8x16xf32> -> vector<8x16xf32>
    %cst_72 = arith.constant 0.353553385 : f32
    %161 = vector.broadcast %cst_72 : f32 to vector<8x16xf32>
    %162 = arith.mulf %160, %161 : vector<8x16xf32>
    %cst_73 = arith.constant dense<0xFF800000> : vector<8xf32>
    %163 = vector.multi_reduction <maximumf>, %162, %cst_73 [1] : vector<8x16xf32> to vector<8xf32>
    %164 = vector.shape_cast %163 : vector<8xf32> to vector<8x1xf32>
    %165 = vector.broadcast %164 : vector<8x1xf32> to vector<8x16xf32>
    %166 = arith.subf %162, %165 : vector<8x16xf32>
    %167 = math.exp %166 : vector<8x16xf32>
    %cst_74 = arith.constant dense<0.000000e+00> : vector<8xf32>
    %168 = vector.multi_reduction <add>, %167, %cst_74 [1] : vector<8x16xf32> to vector<8xf32>
    %169 = vector.shape_cast %168 : vector<8xf32> to vector<8x1xf32>
    %170 = tpu.reciprocal %169 {approx = true} : vector<8x1xf32> -> vector<8x1xf32>
    %171 = vector.broadcast %170 : vector<8x1xf32> to vector<8x16xf32>
    %172 = arith.mulf %167, %171 : vector<8x16xf32>
    %cst_75 = arith.constant dense<0.000000e+00> : vector<8x8xf32>
    %173 = tpu.matmul %172, %159, %cst_75 {dimension_numbers = #tpu.dot_dimension_numbers<[1], [0], [0], [1], [0, 0, 1, 1], [], []>} : vector<8x16xf32>, vector<16x8xf32>, vector<8x8xf32> -> vector<8x8xf32>
    %c8_76 = arith.constant 8 : index
    %c0_77 = arith.constant 0 : index
    %174 = vector.load %arg11[%c8_76, %c0_77] : memref<32x32xf32, #tpu.memory_space<vmem>>, vector<8x32xf32>
    %cst_78 = arith.constant dense<0.000000e+00> : vector<8x32xf32>
    %175 = tpu.matmul %173, %174, %cst_78 {dimension_numbers = #tpu.dot_dimension_numbers<[1], [0], [0], [1], [0, 0, 1, 1], [], []>} : vector<8x8xf32>, vector<8x32xf32>, vector<8x32xf32> -> vector<8x32xf32>
    %176 = arith.addf %156, %175 : vector<8x32xf32>
    %177 = vector.extract_strided_slice %125 {offsets = [0, 16], sizes = [8, 8], strides = [1, 1]} : vector<8x32xf32> to vector<8x8xf32>
    %178 = vector.extract_strided_slice %131 {offsets = [0, 16], sizes = [16, 8], strides = [1, 1]} : vector<16x32xf32> to vector<16x8xf32>
    %179 = vector.extract_strided_slice %132 {offsets = [0, 16], sizes = [16, 8], strides = [1, 1]} : vector<16x32xf32> to vector<16x8xf32>
    %cst_79 = arith.constant dense<0.000000e+00> : vector<8x16xf32>
    %180 = tpu.matmul %177, %178, %cst_79 {dimension_numbers = #tpu.dot_dimension_numbers<[1], [1], [0], [0], [0, 0, 1, 0], [], []>} : vector<8x8xf32>, vector<16x8xf32>, vector<8x16xf32> -> vector<8x16xf32>
    %cst_80 = arith.constant 0.353553385 : f32
    %181 = vector.broadcast %cst_80 : f32 to vector<8x16xf32>
    %182 = arith.mulf %180, %181 : vector<8x16xf32>
    %cst_81 = arith.constant dense<0xFF800000> : vector<8xf32>
    %183 = vector.multi_reduction <maximumf>, %182, %cst_81 [1] : vector<8x16xf32> to vector<8xf32>
    %184 = vector.shape_cast %183 : vector<8xf32> to vector<8x1xf32>
    %185 = vector.broadcast %184 : vector<8x1xf32> to vector<8x16xf32>
    %186 = arith.subf %182, %185 : vector<8x16xf32>
    %187 = math.exp %186 : vector<8x16xf32>
    %cst_82 = arith.constant dense<0.000000e+00> : vector<8xf32>
    %188 = vector.multi_reduction <add>, %187, %cst_82 [1] : vector<8x16xf32> to vector<8xf32>
    %189 = vector.shape_cast %188 : vector<8xf32> to vector<8x1xf32>
    %190 = tpu.reciprocal %189 {approx = true} : vector<8x1xf32> -> vector<8x1xf32>
    %191 = vector.broadcast %190 : vector<8x1xf32> to vector<8x16xf32>
    %192 = arith.mulf %187, %191 : vector<8x16xf32>
    %cst_83 = arith.constant dense<0.000000e+00> : vector<8x8xf32>
    %193 = tpu.matmul %192, %179, %cst_83 {dimension_numbers = #tpu.dot_dimension_numbers<[1], [0], [0], [1], [0, 0, 1, 1], [], []>} : vector<8x16xf32>, vector<16x8xf32>, vector<8x8xf32> -> vector<8x8xf32>
    %c16_84 = arith.constant 16 : index
    %c0_85 = arith.constant 0 : index
    %194 = vector.load %arg11[%c16_84, %c0_85] : memref<32x32xf32, #tpu.memory_space<vmem>>, vector<8x32xf32>
    %cst_86 = arith.constant dense<0.000000e+00> : vector<8x32xf32>
    %195 = tpu.matmul %193, %194, %cst_86 {dimension_numbers = #tpu.dot_dimension_numbers<[1], [0], [0], [1], [0, 0, 1, 1], [], []>} : vector<8x8xf32>, vector<8x32xf32>, vector<8x32xf32> -> vector<8x32xf32>
    %196 = arith.addf %176, %195 : vector<8x32xf32>
    %197 = vector.extract_strided_slice %125 {offsets = [0, 24], sizes = [8, 8], strides = [1, 1]} : vector<8x32xf32> to vector<8x8xf32>
    %198 = vector.extract_strided_slice %131 {offsets = [0, 24], sizes = [16, 8], strides = [1, 1]} : vector<16x32xf32> to vector<16x8xf32>
    %199 = vector.extract_strided_slice %132 {offsets = [0, 24], sizes = [16, 8], strides = [1, 1]} : vector<16x32xf32> to vector<16x8xf32>
    %cst_87 = arith.constant dense<0.000000e+00> : vector<8x16xf32>
    %200 = tpu.matmul %197, %198, %cst_87 {dimension_numbers = #tpu.dot_dimension_numbers<[1], [1], [0], [0], [0, 0, 1, 0], [], []>} : vector<8x8xf32>, vector<16x8xf32>, vector<8x16xf32> -> vector<8x16xf32>
    %cst_88 = arith.constant 0.353553385 : f32
    %201 = vector.broadcast %cst_88 : f32 to vector<8x16xf32>
    %202 = arith.mulf %200, %201 : vector<8x16xf32>
    %cst_89 = arith.constant dense<0xFF800000> : vector<8xf32>
    %203 = vector.multi_reduction <maximumf>, %202, %cst_89 [1] : vector<8x16xf32> to vector<8xf32>
    %204 = vector.shape_cast %203 : vector<8xf32> to vector<8x1xf32>
    %205 = vector.broadcast %204 : vector<8x1xf32> to vector<8x16xf32>
    %206 = arith.subf %202, %205 : vector<8x16xf32>
    %207 = math.exp %206 : vector<8x16xf32>
    %cst_90 = arith.constant dense<0.000000e+00> : vector<8xf32>
    %208 = vector.multi_reduction <add>, %207, %cst_90 [1] : vector<8x16xf32> to vector<8xf32>
    %209 = vector.shape_cast %208 : vector<8xf32> to vector<8x1xf32>
    %210 = tpu.reciprocal %209 {approx = true} : vector<8x1xf32> -> vector<8x1xf32>
    %211 = vector.broadcast %210 : vector<8x1xf32> to vector<8x16xf32>
    %212 = arith.mulf %207, %211 : vector<8x16xf32>
    %cst_91 = arith.constant dense<0.000000e+00> : vector<8x8xf32>
    %213 = tpu.matmul %212, %199, %cst_91 {dimension_numbers = #tpu.dot_dimension_numbers<[1], [0], [0], [1], [0, 0, 1, 1], [], []>} : vector<8x16xf32>, vector<16x8xf32>, vector<8x8xf32> -> vector<8x8xf32>
    %c24_92 = arith.constant 24 : index
    %c0_93 = arith.constant 0 : index
    %214 = vector.load %arg11[%c24_92, %c0_93] : memref<32x32xf32, #tpu.memory_space<vmem>>, vector<8x32xf32>
    %cst_94 = arith.constant dense<0.000000e+00> : vector<8x32xf32>
    %215 = tpu.matmul %213, %214, %cst_94 {dimension_numbers = #tpu.dot_dimension_numbers<[1], [0], [0], [1], [0, 0, 1, 1], [], []>} : vector<8x8xf32>, vector<8x32xf32>, vector<8x32xf32> -> vector<8x32xf32>
    %216 = arith.addf %196, %215 : vector<8x32xf32>
    %217 = arith.addf %120, %216 : vector<8x32xf32>
    %cst_95 = arith.constant dense<0.000000e+00> : vector<8xf32>
    %218 = vector.multi_reduction <add>, %217, %cst_95 [1] : vector<8x32xf32> to vector<8xf32>
    %219 = vector.shape_cast %218 : vector<8xf32> to vector<8x1xf32>
    %cst_96 = arith.constant 3.200000e+01 : f32
    %220 = vector.broadcast %cst_96 : f32 to vector<8x1xf32>
    %221 = arith.divf %219, %220 : vector<8x1xf32>
    %222 = vector.broadcast %221 : vector<8x1xf32> to vector<8x32xf32>
    %223 = arith.subf %217, %222 : vector<8x32xf32>
    %224 = arith.mulf %223, %223 : vector<8x32xf32>
    %cst_97 = arith.constant dense<0.000000e+00> : vector<8xf32>
    %225 = vector.multi_reduction <add>, %224, %cst_97 [1] : vector<8x32xf32> to vector<8xf32>
    %226 = vector.shape_cast %225 : vector<8xf32> to vector<8x1xf32>
    %cst_98 = arith.constant 3.200000e+01 : f32
    %227 = vector.broadcast %cst_98 : f32 to vector<8x1xf32>
    %228 = arith.divf %226, %227 : vector<8x1xf32>
    %229 = vector.broadcast %221 : vector<8x1xf32> to vector<8x32xf32>
    %230 = arith.subf %217, %229 : vector<8x32xf32>
    %cst_99 = arith.constant 9.99999974E-6 : f32
    %231 = vector.broadcast %cst_99 : f32 to vector<8x1xf32>
    %232 = arith.addf %228, %231 : vector<8x1xf32>
    %233 = math.rsqrt %232 : vector<8x1xf32>
    %234 = vector.broadcast %233 : vector<8x1xf32> to vector<8x32xf32>
    %235 = arith.mulf %230, %234 : vector<8x32xf32>
    %c0_100 = arith.constant 0 : index
    %c0_101 = arith.constant 0 : index
    %236 = vector.load %arg15[%c0_100, %c0_101] : memref<1x32xf32, #tpu.memory_space<vmem>>, vector<1x32xf32>
    %237 = vector.broadcast %236 : vector<1x32xf32> to vector<8x32xf32>
    %238 = arith.mulf %235, %237 : vector<8x32xf32>
    %c0_102 = arith.constant 0 : index
    %c0_103 = arith.constant 0 : index
    %239 = vector.load %arg16[%c0_102, %c0_103] : memref<1x32xf32, #tpu.memory_space<vmem>>, vector<1x32xf32>
    %240 = vector.broadcast %239 : vector<1x32xf32> to vector<8x32xf32>
    %241 = arith.addf %238, %240 : vector<8x32xf32>
    %c0_104 = arith.constant 0 : index
    %c0_105 = arith.constant 0 : index
    %242 = vector.load %arg19[%c0_104, %c0_105] : memref<32x64xf32, #tpu.memory_space<vmem>>, vector<32x64xf32>
    %cst_106 = arith.constant dense<0.000000e+00> : vector<8x64xf32>
    %243 = tpu.matmul %241, %242, %cst_106 {dimension_numbers = #tpu.dot_dimension_numbers<[1], [0], [0], [1], [0, 0, 1, 1], [], []>} : vector<8x32xf32>, vector<32x64xf32>, vector<8x64xf32> -> vector<8x64xf32>
    %c0_107 = arith.constant 0 : index
    %c0_108 = arith.constant 0 : index
    %244 = vector.load %arg20[%c0_107, %c0_108] : memref<1x64xf32, #tpu.memory_space<vmem>>, vector<1x64xf32>
    %245 = vector.broadcast %244 : vector<1x64xf32> to vector<8x64xf32>
    %246 = arith.addf %243, %245 : vector<8x64xf32>
    %cst_109 = arith.constant 0.000000e+00 : f32
    %247 = vector.broadcast %cst_109 : f32 to vector<8x64xf32>
    %248 = arith.maximumf %246, %247 : vector<8x64xf32>
    %c0_110 = arith.constant 0 : index
    %c0_111 = arith.constant 0 : index
    %249 = vector.load %arg21[%c0_110, %c0_111] : memref<64x32xf32, #tpu.memory_space<vmem>>, vector<64x32xf32>
    %cst_112 = arith.constant dense<0.000000e+00> : vector<8x32xf32>
    %250 = tpu.matmul %248, %249, %cst_112 {dimension_numbers = #tpu.dot_dimension_numbers<[1], [0], [0], [1], [0, 0, 1, 1], [], []>} : vector<8x64xf32>, vector<64x32xf32>, vector<8x32xf32> -> vector<8x32xf32>
    %c0_113 = arith.constant 0 : index
    %c0_114 = arith.constant 0 : index
    %251 = vector.load %arg22[%c0_113, %c0_114] : memref<1x32xf32, #tpu.memory_space<vmem>>, vector<1x32xf32>
    %252 = vector.broadcast %251 : vector<1x32xf32> to vector<8x32xf32>
    %253 = arith.addf %250, %252 : vector<8x32xf32>
    %254 = arith.addf %241, %253 : vector<8x32xf32>
    %cst_115 = arith.constant dense<0.000000e+00> : vector<8xf32>
    %255 = vector.multi_reduction <add>, %254, %cst_115 [1] : vector<8x32xf32> to vector<8xf32>
    %256 = vector.shape_cast %255 : vector<8xf32> to vector<8x1xf32>
    %cst_116 = arith.constant 3.200000e+01 : f32
    %257 = vector.broadcast %cst_116 : f32 to vector<8x1xf32>
    %258 = arith.divf %256, %257 : vector<8x1xf32>
    %259 = vector.broadcast %258 : vector<8x1xf32> to vector<8x32xf32>
    %260 = arith.subf %254, %259 : vector<8x32xf32>
    %261 = arith.mulf %260, %260 : vector<8x32xf32>
    %cst_117 = arith.constant dense<0.000000e+00> : vector<8xf32>
    %262 = vector.multi_reduction <add>, %261, %cst_117 [1] : vector<8x32xf32> to vector<8xf32>
    %263 = vector.shape_cast %262 : vector<8xf32> to vector<8x1xf32>
    %cst_118 = arith.constant 3.200000e+01 : f32
    %264 = vector.broadcast %cst_118 : f32 to vector<8x1xf32>
    %265 = arith.divf %263, %264 : vector<8x1xf32>
    %266 = vector.broadcast %258 : vector<8x1xf32> to vector<8x32xf32>
    %267 = arith.subf %254, %266 : vector<8x32xf32>
    %cst_119 = arith.constant 9.99999974E-6 : f32
    %268 = vector.broadcast %cst_119 : f32 to vector<8x1xf32>
    %269 = arith.addf %265, %268 : vector<8x1xf32>
    %270 = math.rsqrt %269 : vector<8x1xf32>
    %271 = vector.broadcast %270 : vector<8x1xf32> to vector<8x32xf32>
    %272 = arith.mulf %267, %271 : vector<8x32xf32>
    %c0_120 = arith.constant 0 : index
    %c0_121 = arith.constant 0 : index
    %273 = vector.load %arg17[%c0_120, %c0_121] : memref<1x32xf32, #tpu.memory_space<vmem>>, vector<1x32xf32>
    %274 = vector.broadcast %273 : vector<1x32xf32> to vector<8x32xf32>
    %275 = arith.mulf %272, %274 : vector<8x32xf32>
    %c0_122 = arith.constant 0 : index
    %c0_123 = arith.constant 0 : index
    %276 = vector.load %arg18[%c0_122, %c0_123] : memref<1x32xf32, #tpu.memory_space<vmem>>, vector<1x32xf32>
    %277 = vector.broadcast %276 : vector<1x32xf32> to vector<8x32xf32>
    %278 = arith.addf %275, %277 : vector<8x32xf32>
    %c0_124 = arith.constant 0 : index
    %c0_125 = arith.constant 0 : index
    %279 = vector.load %arg23[%c0_124, %c0_125] : memref<32x128xf32, #tpu.memory_space<vmem>>, vector<32x128xf32>
    %cst_126 = arith.constant dense<0.000000e+00> : vector<8x128xf32>
    %280 = tpu.matmul %278, %279, %cst_126 {dimension_numbers = #tpu.dot_dimension_numbers<[1], [0], [0], [1], [0, 0, 1, 1], [], []>} : vector<8x32xf32>, vector<32x128xf32>, vector<8x128xf32> -> vector<8x128xf32>
    %c0_127 = arith.constant 0 : index
    %c0_128 = arith.constant 0 : index
    %281 = vector.load %arg24[%c0_127, %c0_128] : memref<1x128xf32, #tpu.memory_space<vmem>>, vector<1x128xf32>
    %282 = vector.broadcast %281 : vector<1x128xf32> to vector<8x128xf32>
    %283 = arith.addf %280, %282 : vector<8x128xf32>
    %c0_129 = arith.constant 0 : index
    %c0_130 = arith.constant 0 : index
    %c0_131 = arith.constant 0 : index
    %284 = vector.load %arg25[%c0_129, %c0_130, %c0_131] : memref<1x8x128xf32, #tpu.memory_space<vmem>>, vector<1x8x128xf32>
    %285 = vector.shape_cast %284 : vector<1x8x128xf32> to vector<8x128xf32>
    %286 = vector.shape_cast %283 : vector<8x128xf32> to vector<1x8x128xf32>
    tpu.vector_store %arg25[%c0_129, %c0_130, %c0_131], %286 {strides = array<i32>} : memref<1x8x128xf32, #tpu.memory_space<vmem>>, vector<1x8x128xf32>,
    return
  }
  func.func @transform_0(%arg0: i32) -> (i32, i32, i32) {
    %c0_i32 = arith.constant 0 : i32
    %c0_i32_0 = arith.constant 0 : i32
    %c0_i32_1 = arith.constant 0 : i32
    return %arg0, %c0_i32, %c0_i32_0 : i32, i32, i32
  }
  func.func @transform_1(%arg0: i32) -> (i32, i32, i32) {
    %c0_i32 = arith.constant 0 : i32
    %c0_i32_0 = arith.constant 0 : i32
    %c0_i32_1 = arith.constant 0 : i32
    return %arg0, %c0_i32, %c0_i32_0 : i32, i32, i32
  }
  func.func @transform_2(%arg0: i32) -> (i32, i32) {
    %c0_i32 = arith.constant 0 : i32
    %c0_i32_0 = arith.constant 0 : i32
    %c0_i32_1 = arith.constant 0 : i32
    return %c0_i32, %c0_i32_0 : i32, i32
  }
  func.func @transform_3(%arg0: i32) -> (i32, i32) {
    %c0_i32 = arith.constant 0 : i32
    %c0_i32_0 = arith.constant 0 : i32
    %c0_i32_1 = arith.constant 0 : i32
    return %c0_i32, %c0_i32_0 : i32, i32
  }
  func.func @transform_4(%arg0: i32) -> (i32, i32) {
    %c0_i32 = arith.constant 0 : i32
    %c0_i32_0 = arith.constant 0 : i32
    %c0_i32_1 = arith.constant 0 : i32
    return %c0_i32, %c0_i32_0 : i32, i32
  }
  func.func @transform_5(%arg0: i32) -> (i32, i32) {
    %c0_i32 = arith.constant 0 : i32
    %c0_i32_0 = arith.constant 0 : i32
    %c0_i32_1 = arith.constant 0 : i32
    return %c0_i32, %c0_i32_0 : i32, i32
  }
  func.func @transform_6(%arg0: i32) -> (i32, i32) {
    %c0_i32 = arith.constant 0 : i32
    %c0_i32_0 = arith.constant 0 : i32
    %c0_i32_1 = arith.constant 0 : i32
    return %c0_i32, %c0_i32_0 : i32, i32
  }
  func.func @transform_7(%arg0: i32) -> (i32, i32) {
    %c0_i32 = arith.constant 0 : i32
    %c0_i32_0 = arith.constant 0 : i32
    %c0_i32_1 = arith.constant 0 : i32
    return %c0_i32, %c0_i32_0 : i32, i32
  }
  func.func @transform_8(%arg0: i32) -> (i32, i32) {
    %c0_i32 = arith.constant 0 : i32
    %c0_i32_0 = arith.constant 0 : i32
    %c0_i32_1 = arith.constant 0 : i32
    return %c0_i32, %c0_i32_0 : i32, i32
  }
  func.func @transform_9(%arg0: i32) -> (i32, i32) {
    %c0_i32 = arith.constant 0 : i32
    %c0_i32_0 = arith.constant 0 : i32
    %c0_i32_1 = arith.constant 0 : i32
    return %c0_i32, %c0_i32_0 : i32, i32
  }
  func.func @transform_10(%arg0: i32) -> (i32, i32) {
    %c0_i32 = arith.constant 0 : i32
    %c0_i32_0 = arith.constant 0 : i32
    %c0_i32_1 = arith.constant 0 : i32
    return %c0_i32, %c0_i32_0 : i32, i32
  }
  func.func @transform_11(%arg0: i32) -> (i32, i32) {
    %c0_i32 = arith.constant 0 : i32
    %c0_i32_0 = arith.constant 0 : i32
    %c0_i32_1 = arith.constant 0 : i32
    return %c0_i32, %c0_i32_0 : i32, i32
  }
  func.func @transform_12(%arg0: i32) -> (i32, i32) {
    %c0_i32 = arith.constant 0 : i32
    %c0_i32_0 = arith.constant 0 : i32
    %c0_i32_1 = arith.constant 0 : i32
    return %c0_i32, %c0_i32_0 : i32, i32
  }
  func.func @transform_13(%arg0: i32) -> (i32, i32) {
    %c0_i32 = arith.constant 0 : i32
    %c0_i32_0 = arith.constant 0 : i32
    %c0_i32_1 = arith.constant 0 : i32
    return %c0_i32, %c0_i32_0 : i32, i32
  }
  func.func @transform_14(%arg0: i32) -> (i32, i32) {
    %c0_i32 = arith.constant 0 : i32
    %c0_i32_0 = arith.constant 0 : i32
    %c0_i32_1 = arith.constant 0 : i32
    return %c0_i32, %c0_i32_0 : i32, i32
  }
  func.func @transform_15(%arg0: i32) -> (i32, i32) {
    %c0_i32 = arith.constant 0 : i32
    %c0_i32_0 = arith.constant 0 : i32
    %c0_i32_1 = arith.constant 0 : i32
    return %c0_i32, %c0_i32_0 : i32, i32
  }
  func.func @transform_16(%arg0: i32) -> (i32, i32) {
    %c0_i32 = arith.constant 0 : i32
    %c0_i32_0 = arith.constant 0 : i32
    %c0_i32_1 = arith.constant 0 : i32
    return %c0_i32, %c0_i32_0 : i32, i32
  }
  func.func @transform_17(%arg0: i32) -> (i32, i32) {
    %c0_i32 = arith.constant 0 : i32
    %c0_i32_0 = arith.constant 0 : i32
    %c0_i32_1 = arith.constant 0 : i32
    return %c0_i32, %c0_i32_0 : i32, i32
  }
  func.func @transform_18(%arg0: i32) -> (i32, i32) {
    %c0_i32 = arith.constant 0 : i32
    %c0_i32_0 = arith.constant 0 : i32
    %c0_i32_1 = arith.constant 0 : i32
    return %c0_i32, %c0_i32_0 : i32, i32
  }
  func.func @transform_19(%arg0: i32) -> (i32, i32) {
    %c0_i32 = arith.constant 0 : i32
    %c0_i32_0 = arith.constant 0 : i32
    %c0_i32_1 = arith.constant 0 : i32
    return %c0_i32, %c0_i32_0 : i32, i32
  }
  func.func @transform_20(%arg0: i32) -> (i32, i32) {
    %c0_i32 = arith.constant 0 : i32
    %c0_i32_0 = arith.constant 0 : i32
    %c0_i32_1 = arith.constant 0 : i32
    return %c0_i32, %c0_i32_0 : i32, i32
  }
  func.func @transform_21(%arg0: i32) -> (i32, i32) {
    %c0_i32 = arith.constant 0 : i32
    %c0_i32_0 = arith.constant 0 : i32
    %c0_i32_1 = arith.constant 0 : i32
    return %c0_i32, %c0_i32_0 : i32, i32
  }
  func.func @transform_22(%arg0: i32) -> (i32, i32) {
    %c0_i32 = arith.constant 0 : i32
    %c0_i32_0 = arith.constant 0 : i32
    %c0_i32_1 = arith.constant 0 : i32
    return %c0_i32, %c0_i32_0 : i32, i32
  }
  func.func @transform_23(%arg0: i32) -> (i32, i32) {
    %c0_i32 = arith.constant 0 : i32
    %c0_i32_0 = arith.constant 0 : i32
    %c0_i32_1 = arith.constant 0 : i32
    return %c0_i32, %c0_i32_0 : i32, i32
  }
  func.func @transform_24(%arg0: i32) -> (i32, i32, i32) {
    %c0_i32 = arith.constant 0 : i32
    %c0_i32_0 = arith.constant 0 : i32
    %c0_i32_1 = arith.constant 0 : i32
    return %arg0, %c0_i32, %c0_i32_0 : i32, i32, i32
  }
}

</mosaic_0001>

<bundles_post_ra>
// kernel: tile.53
= control target key start
LH: loop header
LB: loop body
LE: loop exit
PB: predicated region body
PF: predicated region fallthrough
CT: control target
= control target key end

     0   :  { %s67_s10 = smov 56   ;;  %s68_s11 = smov 40   ;;  %vm3_vm0 = vcmask 64512   ;;  %vm9_vm1 = vcmask 523712   ;;  %vm15_vm2 = vcmask 458112   ;;  %vm21_vm3 = vcmask 392512   ;;  %s111_s0 = inlined_call_operand.vmem [shape: f32[8,8], index: 0, kind: input, shape index: {}]   ;;  %s112_s1 = inlined_call_operand.vmem [shape: f32[1,64], index: 1, kind: output, shape index: {}]  }
   0x1   :  { %v53_v0 = vld [vmem:[%s111_s0 + $0x7] sm:$0x1]   ;;  %v55_v1 = vld [vmem:[%s111_s0 + $0x5] sm:$0x1]   ;;  %v54_v2 = vld [vmem:[%s111_s0 + $0x6] sm:$0x1]  }
   0x2   :  { %7 = vrot.lane.b32.xlu0 %v53_v0, %s67_s10  ;;  %19 = vrot.lane.b32.xlu1 %v55_v1, %s68_s11  ;;  %v56_v3 = vld [vmem:[%s111_s0 + $0x4] sm:$0x1]   ;;  %v2_v4 = vld [vmem:[%s111_s0] sm:$0x1]   ;;  %s69_s18 = smov 48   ;;  %s70_s19 = smov 32  }
   0x3   :  { %4 = vst.msk [vmem:[#allocation0] sm:$0x1] %vm3_vm0, %v2_v4   ;;  %v57_v5 = vld [vmem:[%s111_s0 + $0x3] sm:$0x1]   ;;  %v58_v6 = vld [vmem:[%s111_s0 + $0x2] sm:$0x1]  }
   0x4   :  { %s71_s24 = smov 24   ;;  %s72_s25 = smov 16   ;;  %v59_v7 = vld [vmem:[%s111_s0 + $0x1] sm:$0x1]   ;;  %vm27_vm4 = vcmask 326912   ;;  %vm33_vm5 = vcmask 261312  }
   0x5   :  { %s73_s0 = smov 8   ;;  %vm39_vm6 = vcmask 195712   ;;  %vm45_vm7 = vcmask 130112  }
   0x6   :  { %13 = vrot.lane.b32.xlu0 %v54_v2, %s69_s18  ;;  %25 = vrot.lane.b32.xlu1 %v56_v3, %s70_s19 }
   0xa   :  { %31 = vrot.lane.b32.xlu0 %v57_v5, %s71_s24  ;;  %37 = vrot.lane.b32.xlu1 %v58_v6, %s72_s25 }
   0xe   :  { %43 = vrot.lane.b32.xlu0 %v59_v7, %s73_s0 }
  0x74   :  { %v8_v8 = vpop.permute.xlu0 %7   ;;  %v20_v9 = vpop.permute.xlu1 %19  }
  0x75   :  { %10 = vst.msk [vmem:[#allocation0] sm:$0x1] %vm9_vm1, %v8_v8  }
  0x78   :  { %v14_v10 = vpop.permute.xlu0 %13   ;;  %v26_v11 = vpop.permute.xlu1 %25  }
  0x79   :  { %16 = vst.msk [vmem:[#allocation0] sm:$0x1] %vm15_vm2, %v14_v10  }
  0x7a   :  { %22 = vst.msk [vmem:[#allocation0] sm:$0x1] %vm21_vm3, %v20_v9  }
  0x7b   :  { %28 = vst.msk [vmem:[#allocation0] sm:$0x1] %vm27_vm4, %v26_v11  }
  0x7c   :  { %v32_v12 = vpop.permute.xlu0 %31   ;;  %v38_v13 = vpop.permute.xlu1 %37  }
  0x7d   :  { %34 = vst.msk [vmem:[#allocation0] sm:$0x1] %vm33_vm5, %v32_v12  }
  0x7e   :  { %40 = vst.msk [vmem:[#allocation0] sm:$0x1] %vm39_vm6, %v38_v13  }
  0x80   :  { %v44_v14 = vpop.permute.xlu0 %43  }
  0x81   :  { %46 = vst.msk [vmem:[#allocation0] sm:$0x1] %vm45_vm7, %v44_v14  }
  0x88   :  { %v50_v15 = vld [vmem:[#allocation0] sm:$0x1] }
  0x89   :  { %52 = vst [vmem:[%s112_s1] sm:$0x1] %v50_v15 }

// kernel: tile.67
= control target key start
LH: loop header
LB: loop body
LE: loop exit
PB: predicated region body
PF: predicated region fallthrough
CT: control target
= control target key end

     0   :  { %s22_s0 = inlined_call_operand.vmem [shape: f32[8], index: 0, kind: input, shape index: {}]   ;;  %s23_s1 = inlined_call_operand.vmem [shape: f32[2,8], index: 1, kind: output, shape index: {}]  }
   0x1   :  { %v4_v0 = vld [vmem:[%s22_s0] ss:$0 sm:$0xff] }
   0x2   :  { %5 = vst [vmem:[%s23_s1] sm:$0x3] %v4_v0 }

// kernel: tile.68
= control target key start
LH: loop header
LB: loop body
LE: loop exit
PB: predicated region body
PF: predicated region fallthrough
CT: control target
= control target key end

     0   :  { %vm7_vm0 = vcmask 64512   ;;  %vm13_vm1 = vcmask 130112   ;;  %s39_s0 = inlined_call_operand.vmem [shape: f32[2,8], index: 0, kind: input, shape index: {}]   ;;  %s40_s1 = inlined_call_operand.vmem [shape: f32[1,16], index: 1, kind: output, shape index: {}]  }
   0x1   :  { %v4_v0 = vld [vmem:[%s39_s0] sm:$0x3]  ;;  %s22_s0 = smov 8  }
   0x2   :  { %5 = vst [vmem:[#allocation1] sm:$0x3] %v4_v0 }
   0x9   :  { %v10_v1 = vld [vmem:[#allocation1 + $0x1] sm:$0x1]   ;;  %v6_v2 = vld [vmem:[#allocation1] sm:$0x1]  }
   0xa   :  { %11 = vrot.lane.b32.xlu0 %v10_v1, %s22_s0  ;;  %8 = vst.msk [vmem:[#allocation0] sm:$0x1] %vm7_vm0, %v6_v2  }
  0x7c   :  { %v12_v3 = vpop.permute.xlu0 %11  }
  0x7d   :  { %14 = vst.msk [vmem:[#allocation0] sm:$0x1] %vm13_vm1, %v12_v3  }
  0x84   :  { %v18_v4 = vld [vmem:[#allocation0] sm:$0x1] }
  0x85   :  { %20 = vst [vmem:[%s40_s1] sm:$0x1] %v18_v4 }

// kernel: wave_transformer8_forward.5
= control target key start
LH: loop header
LB: loop body
LE: loop exit
PB: predicated region body
PF: predicated region fallthrough
CT: control target
= control target key end

     0   :  { %s1488_s18 = smov 0   ;;  %s1818_s0 = inlined_call_operand.vmem [shape: f32[2,16,40], index: 0, kind: input, shape index: {}]   ;;  %s1819_s1 = inlined_call_operand.vmem [shape: f32[25,40], index: 1, kind: input, shape index: {}]   ;;  %s1820_s2 = inlined_call_operand.vmem [shape: f32[1,40], index: 2, kind: input, shape index: {}]   ;;  %s1821_s3 = inlined_call_operand.vmem [shape: f32[5,40,64], index: 3, kind: input, shape index: {}]   ;;  %s1822_s4 = inlined_call_operand.vmem [shape: f32[1,64], index: 4, kind: input, shape index: {}]   ;;  %s1823_s5 = inlined_call_operand.vmem [shape: f32[2,16,64], index: 5, kind: output, shape index: {}]  }
   0x1 LB: > { %s1214_s19 = sadd.s32 4294967295, %s1447_s18   ;;  %p1218_p0 = scmp.ge.s32.totalorder %s1447_s18, 1  ;;  %s1447_s18 = sphi %s1488_s18, %s15_s18  }
   0x2   : > { %p187_p1 = scmp.lt.s32.totalorder %s1447_s18, 3 }
   0x4   : > { %p188_p2 = pnand %p1218_p0, %p187_p1 }
   0x5   : > { %v1225_v0 = vld [vmem:[%s1819_s1 + $0x1] ss:$0 sm:$0xff] (!%p188_p2)  ;;  %s1449_s22 = smov (!%p188_p2), 1   ;;  %p215_p3 = scmp.lt.s32.totalorder (!%p188_p2), %s1214_s19, 1  ;;  %v1226_v1 = vld [vmem:[%s1819_s1 + $0x2] ss:$0 sm:$0xff] (!%p188_p2) }
   0x6   : > { %191 = sbr.rel (%p188_p2) target bundleno = 580 (0x244), region = 40  ;;  %268 = vrot.lane.b32.xlu1 (!%p188_p2), %v1225_v0, %s1449_s22  ;;  %vm225_vm0 = vcmask (!%p188_p2), 359424   ;;  %v1450_v2 = vmov (!%p188_p2), 0.0   ;;  %s1451_s25 = smov (!%p188_p2), 2   ;;  %v1228_v3 = vld [vmem:[%s1819_s1 + $0x4] ss:$0 sm:$0xff] (!%p188_p2) }
   0x7   : > { %226 = vst.msk [vmem:[#allocation2] sm:$0xff] (!%p188_p2), %vm225_vm0, %v1450_v2  ;;  %227 = vst.msk [vmem:[#allocation2 + $0x8] sm:$0xff] (!%p188_p2), %vm225_vm0, %v1450_v2  ;;  %vm228_vm1 = vcmask (!%p188_p2), 355328   ;;  %s1452_s7 = smov (!%p188_p2), 4   ;;  %v1231_v6 = vld [vmem:[%s1819_s1 + $0x7] ss:$0 sm:$0xff] (!%p188_p2) }
   0x8   : > { %229 = vst.msk [vmem:[#allocation2 + $0x10] sm:$0xf] (!%p188_p2), %vm228_vm1, %v1450_v2  ;;  %v1227_v7 = vld [vmem:[%s1819_s1 + $0x3] ss:$0 sm:$0xff] (!%p188_p2)  ;;  %v1233_v8 = vld [vmem:[%s1819_s1 + $0x9] ss:$0 sm:$0xff] (!%p188_p2) }
   0x9   : > { %s1453_s14 = smov (!%p188_p2), 3   ;;  %v1230_v9 = vld [vmem:[%s1819_s1 + $0x6] ss:$0 sm:$0xff] (!%p188_p2)  ;;  %v1236_v10 = vld [vmem:[%s1819_s1 + $0xc] ss:$0 sm:$0xff] (!%p188_p2)  ;;  %vm240_vm2 = vcmask (!%p188_p2), 343056  }
   0xa   : > { %289 = vrot.lane.b32.xlu1 (!%p188_p2), %v1226_v1, %s1451_s25  ;;  %v1232_v11 = vld [vmem:[%s1819_s1 + $0x8] ss:$0 sm:$0xff] (!%p188_p2)  ;;  %v1238_v12 = vld [vmem:[%s1819_s1 + $0xe] ss:$0 sm:$0xff] (!%p188_p2)  ;;  %v1235_v13 = vld [vmem:[%s1819_s1 + $0xb] ss:$0 sm:$0xff] (!%p188_p2) }
   0xb   : > { %v1241_v14 = vld [vmem:[%s1819_s1 + $0x11] ss:$0 sm:$0xff] (!%p188_p2)  ;;  %v1237_v15 = vld [vmem:[%s1819_s1 + $0xd] ss:$0 sm:$0xff] (!%p188_p2)  ;;  %v1243_v16 = vld [vmem:[%s1819_s1 + $0x13] ss:$0 sm:$0xff] (!%p188_p2) }
   0xc   : > { %v1240_v17 = vld [vmem:[%s1819_s1 + $0x10] ss:$0 sm:$0xff] (!%p188_p2)  ;;  %v1246_v18 = vld [vmem:[%s1819_s1 + $0x16] ss:$0 sm:$0xff] (!%p188_p2)  ;;  %v1242_v19 = vld [vmem:[%s1819_s1 + $0x12] ss:$0 sm:$0xff] (!%p188_p2) }
   0xd   : > { %s1825_s19 = smov (!%p215_p3, %s1214_s19), 1  ;;  %v1248_v20 = vld [vmem:[%s1819_s1 + $0x18] ss:$0 sm:$0xff]  ;;  %v1245_v21 = vld [vmem:[%s1819_s1 + $0x15] ss:$0 sm:$0xff]  ;;  %vm731_vm3 = vcmask 326656  }
   0xe   : > { %s1282_s26 = sshll.u32 %s1825_s19, 4  ;;  %331 = vrot.lane.b32.xlu1 %v1228_v3, %s1452_s7  ;;  %v1247_v22 = vld [vmem:[%s1819_s1 + $0x17] ss:$0 sm:$0xff]  ;;  %vm1156_vm4 = vcmask 523264  }
   0xf   : > { %s219_s29 = scalar_lea.vmem %s1818_s0, %s1282_s26  ;;  %s224_s10 = scalar_lea.vmem %s1823_s5, %s1282_s26 }
  0x10   : > { %v230_v4 = vld [vmem:[%s219_s29] sm:$0xff]  ;;  %v231_v5 = vld [vmem:[%s219_s29 + $0x8] sm:$0xff]  ;;  %s1457_s29 = smov 124  }
  0x11   : > { %234 = vrot.lane.b32.xlu0 %v230_v4, %s1451_s25 }
  0x12   : > { %384 = vrot.lane.b32.xlu1 %v1231_v6, %s1451_s25 }
  0x15   : > { %236 = vrot.lane.b32.xlu0 %v231_v5, %s1451_s25 }
  0x16   : > { %426 = vrot.lane.b32.xlu1 %v1233_v8, %s1452_s7 }
  0x19   : > { %310 = vrot.lane.b32.xlu0 %v1227_v7, %s1453_s14 }
  0x1a   : > { %479 = vrot.lane.b32.xlu1 %v1236_v10, %s1451_s25 }
  0x1d   : > { %363 = vrot.lane.b32.xlu0 %v1230_v9, %s1449_s22 }
  0x1e   : > { %521 = vrot.lane.b32.xlu1 %v1238_v12, %s1452_s7 }
  0x21   : > { %405 = vrot.lane.b32.xlu0 %v1232_v11, %s1453_s14 }
  0x22   : > { %574 = vrot.lane.b32.xlu1 %v1241_v14, %s1451_s25  ;;  %v726_v14 = vld [vmem:[%s1821_s3] sm:$0xff] }
  0x25   : > { %458 = vrot.lane.b32.xlu0 %v1235_v13, %s1449_s22 }
  0x26   : > { %616 = vrot.lane.b32.xlu1 %v1243_v16, %s1452_s7  ;;  %v1251_v16 = vld [vmem:[%s1821_s3 + $0x28] sm:$0xff] }
  0x29   : > { %500 = vrot.lane.b32.xlu0 %v1237_v15, %s1453_s14  ;;  %v727_v15 = vld [vmem:[%s1821_s3 + $0x8] sm:$0xff] }
  0x2a   : > { %669 = vrot.lane.b32.xlu1 %v1246_v18, %s1451_s25  ;;  %v1252_v18 = vld [vmem:[%s1821_s3 + $0x30] sm:$0xff] }
  0x2d   : > { %553 = vrot.lane.b32.xlu0 %v1240_v17, %s1449_s22  ;;  %v1384_v17 = vpack.c.bf16 %v727_v15, %v726_v14 }
  0x2e   : > { %711 = vrot.lane.b32.xlu1 %v1248_v20, %s1452_s7  ;;  %s1454_s7 = smov 127   ;;  %v1392_v20 = vpack.c.bf16 %v1252_v18, %v1251_v16 }
  0x2f   : > { %1385 = vmatprep.subr.bf16.mxu0 %v1384_v17 }
  0x30   : > { %1393 = vmatprep.subr.bf16.mxu1 %v1392_v20  ;;  %1387 = vmatpush3.bf16.msra.mxu0 %v1384_v17 }
  0x31   : > { %595 = vrot.lane.b32.xlu0 %v1242_v19, %s1453_s14  ;;  %1395 = vmatpush3.bf16.msra.mxu1 %v1392_v20 }
  0x35   : > { %648 = vrot.lane.b32.xlu0 %v1245_v21, %s1449_s22  ;;  %s1455_s22 = smov 126  }
  0x39   : > { %690 = vrot.lane.b32.xlu0 %v1247_v22, %s1453_s14  ;;  %s1456_s14 = smov 125  }
  0x78   : > { %v269_v25 = vpop.permute.xlu1 %268 }
  0x7c   : > { %v290_v28 = vpop.permute.xlu1 %289 }
  0x80   : > { %v332_v35 = vpop.permute.xlu1 %331 }
  0x83   : > { %v235_v23 = vpop.permute.xlu0 %234 }
  0x84   : > { %241 = vst.msk [vmem:[#allocation2 + $0x2] sm:$0xff] %vm240_vm2, %v235_v23  ;;  %v385_v43 = vpop.permute.xlu1 %384  ;;  %v728_v23 = vld [vmem:[%s1821_s3 + $0x10] sm:$0xff] }
  0x87   : > { %v237_v24 = vpop.permute.xlu0 %236 }
  0x88   : > { %242 = vst.msk [vmem:[#allocation2 + $0xa] sm:$0xff] %vm240_vm2, %v237_v24  ;;  %v427_v49 = vpop.permute.xlu1 %426  ;;  %v729_v24 = vld [vmem:[%s1821_s3 + $0x18] sm:$0xff] }
  0x8b   : > { %v1586_v26 = vld [vmem:[#allocation2] sm:$0xff]  ;;  %v311_v31 = vpop.permute.xlu0 %310 }
  0x8c   : > { %v271_v27 = vmul.f32 %v269_v25, %v1586_v26  ;;  %v292_v30 = vmul.f32 %v290_v28, %v1586_v26  ;;  %v313_v33 = vmul.f32 %v311_v31, %v1586_v26  ;;  %v334_v36 = vmul.f32 %v332_v35, %v1586_v26  ;;  %v1603_v39 = vld [vmem:[#allocation2 + $0x1] sm:$0xff]  ;;  %v480_v56 = vpop.permute.xlu1 %479 }
  0x8d   : > { %v387_v44 = vmul.f32 %v385_v43, %v1603_v39  ;;  %v429_v50 = vmul.f32 %v427_v49, %v1603_v39  ;;  %v1623_v53 = vld [vmem:[#allocation2 + $0x2] sm:$0xff] }
  0x8e   : > { %275 = vrot.lane.b32.xlu0 %v271_v27, %s1454_s7  ;;  %v482_v58 = vmul.f32 %v480_v56, %v1623_v53 }
  0x8f   : > { %v1590_v29 = vld [vmem:[#allocation2 + $0x8] sm:$0xff]  ;;  %v364_v38 = vpop.permute.xlu0 %363 }
  0x90   : > { %v272_v32 = vmul.f32 %v269_v25, %v1590_v29  ;;  %v293_v34 = vmul.f32 %v290_v28, %v1590_v29  ;;  %v314_v37 = vmul.f32 %v311_v31, %v1590_v29  ;;  %v366_v40 = vmul.f32 %v364_v38, %v1603_v39  ;;  %v1608_v42 = vld [vmem:[#allocation2 + $0x9] sm:$0xff]  ;;  %v522_v63 = vpop.permute.xlu1 %521  ;;  %v1253_v25 = vld [vmem:[%s1821_s3 + $0x38] sm:$0xff] }
  0x91   : > { %v335_v41 = vmul.f32 %v332_v35, %v1590_v29  ;;  %v367_v45 = vmul.f32 %v364_v38, %v1608_v42  ;;  %v388_v48 = vmul.f32 %v385_v43, %v1608_v42  ;;  %v430_v55 = vmul.f32 %v427_v49, %v1608_v42  ;;  %v1630_v57 = vld [vmem:[#allocation2 + $0xa] sm:$0xff]  ;;  %v730_v35 = vld [vmem:[%s1821_s3 + $0x20] sm:$0xff] }
  0x92   : > { %296 = vrot.lane.b32.xlu0 %v292_v30, %s1455_s22  ;;  %277 = vrot.lane.b32.xlu1 %v272_v32, %s1454_s7  ;;  %v483_v62 = vmul.f32 %v480_v56, %v1630_v57  ;;  %v524_v0 = vmul.f32 %v522_v63, %v1623_v53  ;;  %v1643_v3 = vld [vmem:[#allocation2 + $0x3] sm:$0xff]  ;;  %v525_v5 = vmul.f32 %v522_v63, %v1630_v57  ;;  %v1650_v7 = vld [vmem:[#allocation2 + $0xb] sm:$0xff]  ;;  %v1224_v56 = vld [vmem:[%s1819_s1] ss:$0 sm:$0xff] }
  0x93   : > { %v406_v46 = vpop.permute.xlu0 %405  ;;  %v1684_v27 = vld [vmem:[#allocation2 + $0x4] sm:$0xff]  ;;  %v1388_v28 = vpack.c.bf16 %v729_v24, %v728_v23  ;;  %v1258_v43 = vld [vmem:[%s1821_s3 + $0x50] sm:$0xff] }
  0x94   : > { %v408_v47 = vmul.f32 %v406_v46, %v1603_v39  ;;  %v409_v51 = vmul.f32 %v406_v46, %v1608_v42  ;;  %v575_v6 = vpop.permute.xlu1 %574  ;;  %v1254_v30 = vld [vmem:[%s1821_s3 + $0x40] sm:$0xff] }
  0x95   : > { %v577_v8 = vmul.f32 %v575_v6, %v1643_v3  ;;  %v578_v12 = vmul.f32 %v575_v6, %v1650_v7  ;;  %v1396_v32 = vpack.c.bf16 %v1254_v30, %v1253_v25  ;;  %1389 = vmatprep.subr.bf16.mxu0 %v1388_v28  ;;  %v1234_v30 = vld [vmem:[%s1819_s1 + $0xa] ss:$0 sm:$0xff] }
  0x96   : > { %317 = vrot.lane.b32.xlu0 %v313_v33, %s1456_s14  ;;  %298 = vrot.lane.b32.xlu1 %v293_v34, %s1455_s22 }
  0x97   : > { %v459_v52 = vpop.permute.xlu0 %458  ;;  %1397 = vmatprep.subr.bf16.mxu1 %v1396_v32  ;;  %1391 = vmatpush3.bf16.msra.mxu0 %v1388_v28 }
  0x98   : > { %v461_v54 = vmul.f32 %v459_v52, %v1623_v53  ;;  %v462_v59 = vmul.f32 %v459_v52, %v1630_v57  ;;  %v617_v13 = vpop.permute.xlu1 %616  ;;  %1399 = vmatpush3.bf16.msra.mxu1 %v1396_v32  ;;  %1327 = vmatprep.subr.mxu0 %v730_v35 }
  0x99   : > { %v619_v19 = vmul.f32 %v617_v13, %v1643_v3  ;;  %v620_v33 = vmul.f32 %v617_v13, %v1650_v7 }
  0x9a   : > { %338 = vrot.lane.b32.xlu0 %v334_v36, %s1457_s29  ;;  %319 = vrot.lane.b32.xlu1 %v314_v37, %s1456_s14  ;;  %v1255_v36 = vld [vmem:[%s1821_s3 + $0x48] sm:$0xff] }
  0x9b   : > { %v501_v60 = vpop.permute.xlu0 %500  ;;  %v1700_v37 = vld [vmem:[#allocation2 + $0xc] sm:$0xff]  ;;  %1340 = vmatprep.subr.mxu1 %v1255_v36  ;;  %1328 = vmatpush3.msra.mxu0 %v730_v35  ;;  %v448_v35 = vmul.f32 %v1234_v30, %v1623_v53 }
  0x9c   : > { %v503_v61 = vmul.f32 %v501_v60, %v1623_v53  ;;  %v504_v1 = vmul.f32 %v501_v60, %v1630_v57  ;;  %v670_v34 = vpop.permute.xlu1 %669  ;;  %1341 = vmatpush3.msra.mxu1 %v1255_v36  ;;  %v1223_v60 = vld [vmem:[%s1820_s2] ss:$0 sm:$0xff] }
  0x9d   : > { %v672_v38 = vmul.f32 %v670_v34, %v1684_v27 }
  0x9e   : > { %370 = vrot.lane.b32.xlu0 %v366_v40, %s1454_s7  ;;  %340 = vrot.lane.b32.xlu1 %v335_v41, %s1457_s29 }
  0x9f   : > { %v554_v2 = vpop.permute.xlu0 %553 }
  0xa0   : > { %v556_v4 = vmul.f32 %v554_v2, %v1643_v3  ;;  %v557_v9 = vmul.f32 %v554_v2, %v1650_v7 }
  0xa2   : > { %391 = vrot.lane.b32.xlu0 %v387_v44, %s1455_s22  ;;  %372 = vrot.lane.b32.xlu1 %v367_v45, %s1454_s7  ;;  %v1259_v44 = vld [vmem:[%s1821_s3 + $0x58] sm:$0xff] }
  0xa3   : > { %v596_v10 = vpop.permute.xlu0 %595  ;;  %v1265_v45 = vld [vmem:[%s1821_s3 + $0x78] sm:$0xff]  ;;  %v1715_v46 = vpack.c.bf16 %v1259_v44, %v1258_v43  ;;  %v449_v44 = vmul.f32 %v1234_v30, %v1630_v57 }
  0xa4   : > { %v598_v11 = vmul.f32 %v596_v10, %v1643_v3  ;;  %v599_v21 = vmul.f32 %v596_v10, %v1650_v7 }
  0xa5   : > { %1401 = vmatprep.subr.bf16.mxu0 %v1715_v46 }
  0xa6   : > { %412 = vrot.lane.b32.xlu0 %v408_v47, %s1456_s14  ;;  %393 = vrot.lane.b32.xlu1 %v388_v48, %s1455_s22  ;;  %v1266_v47 = vld [vmem:[%s1821_s3 + $0x80] sm:$0xff] }
  0xa7   : > { %v649_v22 = vpop.permute.xlu0 %648  ;;  %v1721_v49 = vpack.c.bf16 %v1266_v47, %v1265_v45 }
  0xa8   : > { %v651_v31 = vmul.f32 %v649_v22, %v1684_v27  ;;  %v652_v40 = vmul.f32 %v649_v22, %v1700_v37 }
  0xa9   : > { %1409 = vmatprep.subr.bf16.mxu1 %v1721_v49 }
  0xaa   : > { %433 = vrot.lane.b32.xlu0 %v429_v50, %s1457_s29  ;;  %414 = vrot.lane.b32.xlu1 %v409_v51, %s1456_s14  ;;  %v673_v50 = vmul.f32 %v670_v34, %v1700_v37  ;;  %v712_v51 = vpop.permute.xlu1 %711 }
  0xab   : > { %v691_v41 = vpop.permute.xlu0 %690  ;;  %v714_v52 = vmul.f32 %v712_v51, %v1684_v27 }
  0xac   : > { %v693_v48 = vmul.f32 %v691_v41, %v1684_v27 }
  0xae   : > { %465 = vrot.lane.b32.xlu0 %v461_v54, %s1454_s7  ;;  %435 = vrot.lane.b32.xlu1 %v430_v55, %s1457_s29  ;;  %v694_v54 = vmul.f32 %v691_v41, %v1700_v37  ;;  %v715_v55 = vmul.f32 %v712_v51, %v1700_v37 }
  0xb2   : > { %486 = vrot.lane.b32.xlu0 %v482_v58, %s1455_s22  ;;  %467 = vrot.lane.b32.xlu1 %v462_v59, %s1454_s7  ;;  %v258_v59 = vmul.f32 %v1224_v56, %v1586_v26 }
  0xb6   : > { %507 = vrot.lane.b32.xlu0 %v503_v61, %s1456_s14  ;;  %488 = vrot.lane.b32.xlu1 %v483_v62, %s1455_s22  ;;  %v260_v62 = vadd.f32 %v1223_v60, %v258_v59 }
  0xba   : > { %528 = vrot.lane.b32.xlu0 %v524_v0, %s1457_s29  ;;  %509 = vrot.lane.b32.xlu1 %v504_v1, %s1456_s14  ;;  %v259_v0 = vmul.f32 %v1224_v56, %v1590_v29 }
  0xbc   : > { %v261_v6 = vadd.f32 %v1223_v60, %v259_v0 }
  0xbe   : > { %560 = vrot.lane.b32.xlu0 %v556_v4, %s1454_s7  ;;  %530 = vrot.lane.b32.xlu1 %v525_v5, %s1457_s29 }
  0xc2   : > { %581 = vrot.lane.b32.xlu0 %v577_v8, %s1455_s22  ;;  %562 = vrot.lane.b32.xlu1 %v557_v9, %s1454_s7  ;;  %v1229_v8 = vld [vmem:[%s1819_s1 + $0x5] ss:$0 sm:$0xff] }
  0xc3   : > { %v353_v13 = vmul.f32 %v1229_v8, %v1603_v39 }
  0xc6   : > { %602 = vrot.lane.b32.xlu0 %v598_v11, %s1456_s14  ;;  %583 = vrot.lane.b32.xlu1 %v578_v12, %s1455_s22 }
  0xca   : > { %623 = vrot.lane.b32.xlu0 %v619_v19, %s1457_s29  ;;  %604 = vrot.lane.b32.xlu1 %v599_v21, %s1456_s14  ;;  %v354_v19 = vmul.f32 %v1229_v8, %v1608_v42 }
  0xce   : > { %655 = vrot.lane.b32.xlu0 %v651_v31, %s1454_s7  ;;  %625 = vrot.lane.b32.xlu1 %v620_v33, %s1457_s29 }
  0xd2   : > { %676 = vrot.lane.b32.xlu0 %v672_v38, %s1455_s22  ;;  %657 = vrot.lane.b32.xlu1 %v652_v40, %s1454_s7 }
  0xd6   : > { %697 = vrot.lane.b32.xlu0 %v693_v48, %s1456_s14  ;;  %678 = vrot.lane.b32.xlu1 %v673_v50, %s1455_s22 }
  0xda   : > { %718 = vrot.lane.b32.xlu0 %v714_v52, %s1457_s29  ;;  %699 = vrot.lane.b32.xlu1 %v694_v54, %s1456_s14 }
  0xde   : > { %720 = vrot.lane.b32.xlu1 %v715_v55, %s1457_s29  ;;  %v1239_v55 = vld [vmem:[%s1819_s1 + $0xf] ss:$0 sm:$0xff] }
 0x100   : > { %v276_v58 = vpop.permute.xlu0 %275 }
 0x101   : > { %v281_v1 = vadd.f32 %v276_v58, %v260_v62 }
 0x104   : > { %v297_v61 = vpop.permute.xlu0 %296  ;;  %v278_v63 = vpop.permute.xlu1 %277 }
 0x105   : > { %v302_v4 = vadd.f32 %v297_v61, %v281_v1  ;;  %v282_v26 = vadd.f32 %v278_v63, %v261_v6  ;;  %v543_v61 = vmul.f32 %v1239_v55, %v1643_v3 }
 0x108   : > { %v318_v2 = vpop.permute.xlu0 %317  ;;  %v299_v5 = vpop.permute.xlu1 %298 }
 0x109   : > { %v323_v9 = vadd.f32 %v318_v2, %v302_v4  ;;  %v303_v14 = vadd.f32 %v299_v5, %v282_v26  ;;  %v544_v4 = vmul.f32 %v1239_v55, %v1650_v7 }
 0x10c   : > { %v339_v10 = vpop.permute.xlu0 %338  ;;  %v320_v11 = vpop.permute.xlu1 %319 }
 0x10d   : > { %v344_v12 = vadd.f32 %v339_v10, %v323_v9  ;;  %v324_v16 = vadd.f32 %v320_v11, %v303_v14 }
 0x10f   : > { %v355_v15 = vadd.f32 %v353_v13, %v344_v12  ;;  %v1244_v12 = vld [vmem:[%s1819_s1 + $0x14] ss:$0 sm:$0xff] }
 0x110   : > { %v371_v29 = vpop.permute.xlu0 %370  ;;  %v341_v17 = vpop.permute.xlu1 %340 }
 0x111   : > { %v345_v18 = vadd.f32 %v341_v17, %v324_v16  ;;  %v376_v23 = vadd.f32 %v371_v29, %v355_v15  ;;  %v638_v29 = vmul.f32 %v1244_v12, %v1684_v27 }
 0x113   : > { %v356_v20 = vadd.f32 %v354_v19, %v345_v18 }
 0x114   : > { %v392_v21 = vpop.permute.xlu0 %391  ;;  %v373_v22 = vpop.permute.xlu1 %372 }
 0x115   : > { %v397_v25 = vadd.f32 %v392_v21, %v376_v23  ;;  %v377_v31 = vadd.f32 %v373_v22, %v356_v20  ;;  %v639_v22 = vmul.f32 %v1244_v12, %v1700_v37  ;;  %v1260_v37 = vld [vmem:[%s1821_s3 + $0x60] sm:$0xff] }
 0x118   : > { %v413_v24 = vpop.permute.xlu0 %412  ;;  %v394_v28 = vpop.permute.xlu1 %393 }
 0x119   : > { %v418_v39 = vadd.f32 %v413_v24, %v397_v25  ;;  %v398_v36 = vadd.f32 %v394_v28, %v377_v31 }
 0x11c   : > { %v434_v32 = vpop.permute.xlu0 %433  ;;  %v415_v33 = vpop.permute.xlu1 %414 }
 0x11d   : > { %v439_v34 = vadd.f32 %v434_v32, %v418_v39  ;;  %v419_v38 = vadd.f32 %v415_v33, %v398_v36 }
 0x11f   : > { %v450_v42 = vadd.f32 %v448_v35, %v439_v34 }
 0x120   : > { %v466_v40 = vpop.permute.xlu0 %465  ;;  %v436_v41 = vpop.permute.xlu1 %435 }
 0x121   : > { %v440_v43 = vadd.f32 %v436_v41, %v419_v38  ;;  %v471_v50 = vadd.f32 %v466_v40, %v450_v42  ;;  %v1261_v38 = vld [vmem:[%s1821_s3 + $0x68] sm:$0xff]  ;;  %v1268_v41 = vld [vmem:[%s1821_s3 + $0x90] sm:$0xff] }
 0x122   : > { %v1267_v40 = vld [vmem:[%s1821_s3 + $0x88] sm:$0xff] }
 0x123   : > { %v451_v45 = vadd.f32 %v449_v44, %v440_v43 }
 0x124   : > { %v487_v47 = vpop.permute.xlu0 %486  ;;  %v468_v48 = vpop.permute.xlu1 %467 }
 0x125   : > { %v492_v52 = vadd.f32 %v487_v47, %v471_v50  ;;  %v472_v56 = vadd.f32 %v468_v48, %v451_v45  ;;  %v1404_v45 = vpack.c.bf16 %v1261_v38, %v1260_v37  ;;  %v1412_v47 = vpack.c.bf16 %v1268_v41, %v1267_v40  ;;  %v1262_v48 = vld [vmem:[%s1821_s3 + $0x70] sm:$0xff]  ;;  %v1269_v50 = vld [vmem:[%s1821_s3 + $0x98] sm:$0xff] }
 0x128   : > { %v508_v51 = vpop.permute.xlu0 %507  ;;  %v489_v54 = vpop.permute.xlu1 %488 }
 0x129   : > { %v513_v53 = vadd.f32 %v508_v51, %v492_v52  ;;  %v493_v62 = vadd.f32 %v489_v54, %v472_v56  ;;  %v1274_v51 = vld [vmem:[%s1821_s3 + $0xb0] sm:$0xff]  ;;  %v1275_v52 = vld [vmem:[%s1821_s3 + $0xb8] sm:$0xff] }
 0x12a   : > { %v1420_v55 = vpack.c.bf16 %v1275_v52, %v1274_v51 }
 0x12c   : > { %v529_v58 = vpop.permute.xlu0 %528  ;;  %v510_v59 = vpop.permute.xlu1 %509 }
 0x12d   : > { %v534_v60 = vadd.f32 %v529_v58, %v513_v53  ;;  %v514_v63 = vadd.f32 %v510_v59, %v493_v62  ;;  %v1276_v53 = vld [vmem:[%s1821_s3 + $0xc0] sm:$0xff] }
 0x12f   : > { %v545_v57 = vadd.f32 %v543_v61, %v534_v60 }
 0x130   : > { %v561_v0 = vpop.permute.xlu0 %560  ;;  %v531_v1 = vpop.permute.xlu1 %530 }
 0x131   : > { %v535_v2 = vadd.f32 %v531_v1, %v514_v63  ;;  %v566_v9 = vadd.f32 %v561_v0, %v545_v57 }
 0x133   : > { %v546_v5 = vadd.f32 %v544_v4, %v535_v2 }
 0x134   : > { %v582_v6 = vpop.permute.xlu0 %581  ;;  %v563_v8 = vpop.permute.xlu1 %562 }
 0x135   : > { %v587_v10 = vadd.f32 %v582_v6, %v566_v9  ;;  %v567_v13 = vadd.f32 %v563_v8, %v546_v5  ;;  %v1279_v9 = vld [vmem:[%s1822_s4] ss:$0 sm:$0xff] }
 0x138   : > { %v603_v26 = vpop.permute.xlu0 %602  ;;  %v584_v11 = vpop.permute.xlu1 %583 }
 0x139   : > { %v608_v3 = vadd.f32 %v603_v26, %v587_v10  ;;  %v588_v17 = vadd.f32 %v584_v11, %v567_v13 }
 0x13c   : > { %v624_v14 = vpop.permute.xlu0 %623  ;;  %v605_v15 = vpop.permute.xlu1 %604 }
 0x13d   : > { %v629_v16 = vadd.f32 %v624_v14, %v608_v3  ;;  %v609_v18 = vadd.f32 %v605_v15, %v588_v17 }
 0x13f   : > { %v640_v7 = vadd.f32 %v638_v29, %v629_v16 }
 0x140   : > { %v656_v19 = vpop.permute.xlu0 %655  ;;  %v626_v20 = vpop.permute.xlu1 %625 }
 0x141   : > { %v630_v21 = vadd.f32 %v626_v20, %v609_v18  ;;  %v661_v28 = vadd.f32 %v656_v19, %v640_v7 }
 0x143   : > { %v641_v23 = vadd.f32 %v639_v22, %v630_v21 }
 0x144   : > { %v677_v24 = vpop.permute.xlu0 %676  ;;  %v658_v25 = vpop.permute.xlu1 %657 }
 0x145   : > { %v682_v39 = vadd.f32 %v677_v24, %v661_v28  ;;  %v662_v33 = vadd.f32 %v658_v25, %v641_v23 }
 0x148   : > { %v698_v30 = vpop.permute.xlu0 %697  ;;  %v679_v31 = vpop.permute.xlu1 %678 }
 0x149   : > { %v703_v32 = vadd.f32 %v698_v30, %v682_v39  ;;  %v683_v36 = vadd.f32 %v679_v31, %v662_v33 }
 0x14c   : > { %v719_v34 = vpop.permute.xlu0 %718  ;;  %v700_v27 = vpop.permute.xlu1 %699 }
 0x14d   : > { %v724_v35 = vadd.f32 %v719_v34, %v703_v32  ;;  %v704_v42 = vadd.f32 %v700_v27, %v683_v36 }
 0x14f   : > { %1329 = vmatprep.mubr.msk.f32.mxu0 %vm731_vm3, %v724_v35  ;;  %1342 = vmatprep.mubr.msk.f32.mxu1 %vm731_vm3, %v724_v35 }
 0x150   : > { %v721_v43 = vpop.permute.xlu1 %720 }
 0x151   : > { %v725_v44 = vadd.f32 %v721_v43, %v704_v42 }
 0x153   : > { %1330 = vmatmul.mubr.msk.f32.vlgmr.msra.gmra.mrb[0].mxu0 %vm731_vm3, %v725_v44  ;;  %1343 = vmatmul.mubr.msk.f32.vlgmr.msra.gmra.mrb[0].mxu1 %vm731_vm3, %v725_v44 }
 0x154   : > { %1403 = vmatpush3.bf16.msra.mxu0 %v1715_v46  ;;  %1411 = vmatpush3.bf16.msra.mxu1 %v1721_v49  ;;  %v1272_v46 = vld [vmem:[%s1821_s3 + $0xa0] sm:$0xff]  ;;  %v1273_v49 = vld [vmem:[%s1821_s3 + $0xa8] sm:$0xff] }
 0x155   : > { %1355 = vmatprep.mubr.msk.f32.mxu0 %vm731_vm3, %v724_v35  ;;  %1368 = vmatprep.mubr.msk.f32.mxu1 %vm731_vm3, %v724_v35  ;;  %v1416_v54 = vpack.c.bf16 %v1273_v49, %v1272_v46 }
 0x156   : > { %1405 = vmatprep.subr.bf16.mxu0 %v1404_v45  ;;  %1413 = vmatprep.subr.bf16.mxu1 %v1412_v47 }
 0x158   : > { %1407 = vmatpush3.bf16.msra.mxu0 %v1404_v45  ;;  %1415 = vmatpush3.bf16.msra.mxu1 %v1412_v47 }
 0x159   : > { %1353 = vmatprep.subr.mxu0 %v1262_v48  ;;  %1366 = vmatprep.subr.mxu1 %v1269_v50 }
 0x15c   : > { %1354 = vmatpush3.msra.mxu0 %v1262_v48  ;;  %1367 = vmatpush3.msra.mxu1 %v1269_v50 }
 0x15d   : > { %1356 = vmatmul.mubr.msk.f32.vlgmr.msra.gmra.mrb[2].mxu0 %vm731_vm3, %v725_v44  ;;  %1369 = vmatmul.mubr.msk.f32.vlgmr.msra.gmra.mrb[2].mxu1 %vm731_vm3, %v725_v44 }
 0x15e   : > { %1417 = vmatprep.subr.bf16.mxu0 %v1416_v54  ;;  %1381 = vmatprep.mubr.msk.f32.mxu0 %vm731_vm3, %v724_v35 }
 0x15f   : > { %1419 = vmatpush3.bf16.msra.mxu0 %v1416_v54 }
 0x160   : > { %1421 = vmatprep.subr.bf16.mxu0 %v1420_v55 }
 0x163   : > { %1423 = vmatpush3.bf16.msra.mxu0 %v1420_v55 }
 0x164   : > { %1379 = vmatprep.subr.mxu0 %v1276_v53 }
 0x167   : > { %1380 = vmatpush3.msra.mxu0 %v1276_v53 }
 0x168   : > { %1382 = vmatmul.mubr.msk.f32.vlgmr.msra.gmra.mrb[4].mxu0 %vm731_vm3, %v725_v44 }
 0x226   : > { %v1331_v56 = vpop.f32.mrb[0].mxu0  ;;  %v1344_v58 = vpop.f32.mrb[0].mxu1 }
 0x227   : > { %v895_v59 = vmax.f32 %v1331_v56, %v1344_v58  ;;  %v804_v60 = vpop.f32.mrb[1].mxu0  ;;  %v885_v61 = vpop.f32.mrb[1].mxu1 }
 0x228   : > { %v894_v62 = vmax.f32 %v804_v60, %v885_v61 }
 0x230   : > { %v1357_v57 = vpop.f32.mrb[2].mxu0  ;;  %v1370_v63 = vpop.f32.mrb[2].mxu1 }
 0x231   : > { %v978_v0 = vmax.f32 %v895_v59, %v1357_v57  ;;  %v968_v1 = vpop.f32.mrb[3].mxu0  ;;  %v1051_v2 = vpop.f32.mrb[3].mxu1 }
 0x232   : > { %v977_v4 = vmax.f32 %v894_v62, %v968_v1 }
 0x233   : > { %v1061_v5 = vmax.f32 %v978_v0, %v1370_v63 }
 0x234   : > { %v1060_v6 = vmax.f32 %v977_v4, %v1051_v2 }
 0x23b   : > { %v1383_v8 = vpop.f32.mrb[4].mxu0 }
 0x23c   : > { %v1144_v26 = vmax.f32 %v1061_v5, %v1383_v8  ;;  %v1134_v10 = vpop.f32.mrb[5].mxu0 }
 0x23d   : > { %v1143_v11 = vmax.f32 %v1060_v6, %v1134_v10 }
 0x23e   : > { %v1153_v12 = vadd.f32 %v1279_v9, %v1144_v26 }
 0x23f   : > { %v1152_v3 = vadd.f32 %v1279_v9, %v1143_v11 }
 0x240   : > { %v1155_v13 = vmax.f32 %v1153_v12, 0.0 }
 0x241   : > { %v1154_v14 = vmax.f32 %v1152_v3, 0.0 }
 0x242   : > { %1158 = vst.msk [vmem:[%s224_s10 + $0x8] sm:$0xff] %vm1156_vm4, %v1155_v13 }
 0x243   : > { %1157 = vst.msk [vmem:[%s224_s10] sm:$0xff] %vm1156_vm4, %v1154_v14 }
 0x244 PF: > { %s15_s18 = sadd.s32 1, %s1447_s18  }
 0x245   : > { %p12_p4 = scmp.ge.s32.totalorder %s15_s18, 4  }
 0x247   :  { %14 = sbr.rel (!%p12_p4) target bundleno = 1 (0x1), region = 74 }

// kernel: wave_transformer8_forward.7
= control target key start
LH: loop header
LB: loop body
LE: loop exit
PB: predicated region body
PF: predicated region fallthrough
CT: control target
= control target key end

     0   :  { %s1263_s24 = smov 0   ;;  %s1518_s0 = inlined_call_operand.vmem [shape: f32[2,16,16], index: 0, kind: input, shape index: {}]   ;;  %s1519_s1 = inlined_call_operand.vmem [shape: f32[25,16], index: 1, kind: input, shape index: {}]   ;;  %s1520_s2 = inlined_call_operand.vmem [shape: f32[1,16], index: 2, kind: input, shape index: {}]   ;;  %s1521_s3 = inlined_call_operand.vmem [shape: f32[2,16,8], index: 3, kind: input, shape index: {}]   ;;  %s1522_s4 = inlined_call_operand.vmem [shape: f32[1,8], index: 4, kind: input, shape index: {}]   ;;  %s1523_s5 = inlined_call_operand.vmem [shape: f32[8,128], index: 5, kind: input, shape index: {}]   ;;  %s1524_s6 = inlined_call_operand.vmem [shape: f32[1,128], index: 6, kind: input, shape index: {}]   ;;  %s1525_s7 = inlined_call_operand.vmem [shape: f32[2,16,128], index: 7, kind: output, shape index: {}]  }
   0x1 LB: > { %s1102_s25 = sadd.s32 4294967295, %s1212_s24   ;;  %p1106_p0 = scmp.ge.s32.totalorder %s1212_s24, 1  ;;  %s1212_s24 = sphi %s1263_s24, %s17_s24  }
   0x2   : > { %p237_p1 = scmp.lt.s32.totalorder %s1212_s24, 3 }
   0x4   : > { %p238_p2 = pnand %p1106_p0, %p237_p1 }
   0x5   : > { %v1113_v0 = vld [vmem:[%s1519_s1 + $0x1] ss:$0 sm:$0xff] (!%p238_p2)  ;;  %s1214_s28 = smov (!%p238_p2), 8   ;;  %p269_p3 = scmp.lt.s32.totalorder (!%p238_p2), %s1102_s25, 1  ;;  %v1114_v1 = vld [vmem:[%s1519_s1 + $0x2] ss:$0 sm:$0xff] (!%p238_p2) }
   0x6   : > { %241 = sbr.rel (%p238_p2) target bundleno = 775 (0x307), region = 48  ;;  %322 = vrot.lane.b32.xlu1 (!%p238_p2), %v1113_v0, %s1214_s28  ;;  %vm279_vm0 = vcmask (!%p238_p2), 392192   ;;  %v1215_v2 = vmov (!%p238_p2), 0.0   ;;  %s1216_s8 = smov (!%p238_p2), 16   ;;  %v1116_v3 = vld [vmem:[%s1519_s1 + $0x4] ss:$0 sm:$0xff] (!%p238_p2) }
   0x7   : > { %280 = vst.msk [vmem:[#allocation2] sm:$0xff] (!%p238_p2), %vm279_vm0, %v1215_v2  ;;  %281 = vst.msk [vmem:[#allocation2 + $0x8] sm:$0xff] (!%p238_p2), %vm279_vm0, %v1215_v2  ;;  %vm282_vm1 = vcmask (!%p238_p2), 388096   ;;  %s1217_s15 = smov (!%p238_p2), 32   ;;  %v1119_v6 = vld [vmem:[%s1519_s1 + $0x7] ss:$0 sm:$0xff] (!%p238_p2) }
   0x8   : > { %283 = vst.msk [vmem:[#allocation2 + $0x10] sm:$0xf] (!%p238_p2), %vm282_vm1, %v1215_v2  ;;  %v1115_v7 = vld [vmem:[%s1519_s1 + $0x3] ss:$0 sm:$0xff] (!%p238_p2)  ;;  %v1121_v8 = vld [vmem:[%s1519_s1 + $0x9] ss:$0 sm:$0xff] (!%p238_p2) }
   0x9   : > { %s1218_s22 = smov (!%p238_p2), 24   ;;  %v1118_v9 = vld [vmem:[%s1519_s1 + $0x6] ss:$0 sm:$0xff] (!%p238_p2)  ;;  %v1124_v10 = vld [vmem:[%s1519_s1 + $0xc] ss:$0 sm:$0xff] (!%p238_p2)  ;;  %vm294_vm2 = vcmask (!%p238_p2), 261248  }
   0xa   : > { %343 = vrot.lane.b32.xlu1 (!%p238_p2), %v1114_v1, %s1216_s8  ;;  %v1120_v11 = vld [vmem:[%s1519_s1 + $0x8] ss:$0 sm:$0xff] (!%p238_p2)  ;;  %v1126_v12 = vld [vmem:[%s1519_s1 + $0xe] ss:$0 sm:$0xff] (!%p238_p2)  ;;  %v1123_v13 = vld [vmem:[%s1519_s1 + $0xb] ss:$0 sm:$0xff] (!%p238_p2) }
   0xb   : > { %v1129_v14 = vld [vmem:[%s1519_s1 + $0x11] ss:$0 sm:$0xff] (!%p238_p2)  ;;  %v1125_v15 = vld [vmem:[%s1519_s1 + $0xd] ss:$0 sm:$0xff] (!%p238_p2)  ;;  %v1131_v16 = vld [vmem:[%s1519_s1 + $0x13] ss:$0 sm:$0xff] (!%p238_p2) }
   0xc   : > { %v1128_v17 = vld [vmem:[%s1519_s1 + $0x10] ss:$0 sm:$0xff] (!%p238_p2)  ;;  %v1134_v18 = vld [vmem:[%s1519_s1 + $0x16] ss:$0 sm:$0xff] (!%p238_p2)  ;;  %v1130_v19 = vld [vmem:[%s1519_s1 + $0x12] ss:$0 sm:$0xff] (!%p238_p2) }
   0xd   : > { %s1527_s25 = smov (!%p269_p3, %s1102_s25), 1  ;;  %v1136_v20 = vld [vmem:[%s1519_s1 + $0x18] ss:$0 sm:$0xff]  ;;  %v1133_v21 = vld [vmem:[%s1519_s1 + $0x15] ss:$0 sm:$0xff]  ;;  %s1222_s17 = smov 96  }
   0xe   : > { %s1149_s9 = sshll.u32 %s1527_s25, 4  ;;  %385 = vrot.lane.b32.xlu1 %v1116_v3, %s1217_s15  ;;  %v1135_v22 = vld [vmem:[%s1519_s1 + $0x17] ss:$0 sm:$0xff]  ;;  %vm782_vm3 = vcmask 130048   ;;  %vm963_vm4 = vcmask 64512  }
   0xf   : > { %s273_s12 = scalar_lea.vmem %s1518_s0, %s1149_s9  ;;  %s278_s30 = scalar_lea.vmem %s1525_s7, %s1149_s9 }
  0x10   : > { %v284_v4 = vld [vmem:[%s273_s12] sm:$0xff]  ;;  %v285_v5 = vld [vmem:[%s273_s12 + $0x8] sm:$0xff] }
  0x11   : > { %288 = vrot.lane.b32.xlu0 %v284_v4, %s1216_s8 }
  0x12   : > { %438 = vrot.lane.b32.xlu1 %v1119_v6, %s1216_s8 }
  0x15   : > { %290 = vrot.lane.b32.xlu0 %v285_v5, %s1216_s8 }
  0x16   : > { %480 = vrot.lane.b32.xlu1 %v1121_v8, %s1217_s15 }
  0x19   : > { %364 = vrot.lane.b32.xlu0 %v1115_v7, %s1218_s22 }
  0x1a   : > { %533 = vrot.lane.b32.xlu1 %v1124_v10, %s1216_s8 }
  0x1d   : > { %417 = vrot.lane.b32.xlu0 %v1118_v9, %s1214_s28 }
  0x1e   : > { %575 = vrot.lane.b32.xlu1 %v1126_v12, %s1217_s15 }
  0x21   : > { %459 = vrot.lane.b32.xlu0 %v1120_v11, %s1218_s22 }
  0x22   : > { %628 = vrot.lane.b32.xlu1 %v1129_v14, %s1216_s8 }
  0x25   : > { %512 = vrot.lane.b32.xlu0 %v1123_v13, %s1214_s28 }
  0x26   : > { %670 = vrot.lane.b32.xlu1 %v1131_v16, %s1217_s15 }
  0x29   : > { %554 = vrot.lane.b32.xlu0 %v1125_v15, %s1218_s22 }
  0x2a   : > { %723 = vrot.lane.b32.xlu1 %v1134_v18, %s1216_s8 }
  0x2d   : > { %607 = vrot.lane.b32.xlu0 %v1128_v17, %s1214_s28 }
  0x2e   : > { %765 = vrot.lane.b32.xlu1 %v1136_v20, %s1217_s15  ;;  %s1219_s15 = smov 120  }
  0x31   : > { %649 = vrot.lane.b32.xlu0 %v1130_v19, %s1218_s22 }
  0x35   : > { %702 = vrot.lane.b32.xlu0 %v1133_v21, %s1214_s28  ;;  %s1220_s28 = smov 112   ;;  %v780_v21 = vld [vmem:[%s1521_s3] sm:$0xff] }
  0x39   : > { %744 = vrot.lane.b32.xlu0 %v1135_v22, %s1218_s22  ;;  %s1221_s22 = smov 104   ;;  %v781_v22 = vld [vmem:[%s1521_s3 + $0x8] sm:$0xff] }
  0x78   : > { %v323_v25 = vpop.permute.xlu1 %322 }
  0x7c   : > { %v344_v28 = vpop.permute.xlu1 %343 }
  0x80   : > { %v386_v35 = vpop.permute.xlu1 %385 }
  0x83   : > { %v289_v23 = vpop.permute.xlu0 %288 }
  0x84   : > { %295 = vst.msk [vmem:[#allocation2 + $0x2] sm:$0xff] %vm294_vm2, %v289_v23  ;;  %v439_v43 = vpop.permute.xlu1 %438  ;;  %v1181_v23 = vpack.c.bf16 %v781_v22, %v780_v21 }
  0x86   : > { %1182 = vmatprep.subr.bf16.mxu0 %v1181_v23 }
  0x87   : > { %v291_v24 = vpop.permute.xlu0 %290  ;;  %1184 = vmatpush3.bf16.msra.mxu0 %v1181_v23 }
  0x88   : > { %296 = vst.msk [vmem:[#allocation2 + $0xa] sm:$0xff] %vm294_vm2, %v291_v24  ;;  %v481_v49 = vpop.permute.xlu1 %480  ;;  %v1139_v24 = vld [vmem:[%s1521_s3 + $0x10] sm:$0xff] }
  0x8b   : > { %v1361_v26 = vld [vmem:[#allocation2] sm:$0xff]  ;;  %v365_v31 = vpop.permute.xlu0 %364 }
  0x8c   : > { %v325_v27 = vmul.f32 %v323_v25, %v1361_v26  ;;  %v346_v30 = vmul.f32 %v344_v28, %v1361_v26  ;;  %v367_v33 = vmul.f32 %v365_v31, %v1361_v26  ;;  %v388_v36 = vmul.f32 %v386_v35, %v1361_v26  ;;  %v1378_v39 = vld [vmem:[#allocation2 + $0x1] sm:$0xff]  ;;  %v534_v56 = vpop.permute.xlu1 %533 }
  0x8d   : > { %v441_v44 = vmul.f32 %v439_v43, %v1378_v39  ;;  %v483_v50 = vmul.f32 %v481_v49, %v1378_v39  ;;  %v1398_v53 = vld [vmem:[#allocation2 + $0x2] sm:$0xff] }
  0x8e   : > { %329 = vrot.lane.b32.xlu0 %v325_v27, %s1219_s15  ;;  %v536_v58 = vmul.f32 %v534_v56, %v1398_v53 }
  0x8f   : > { %v1365_v29 = vld [vmem:[#allocation2 + $0x8] sm:$0xff]  ;;  %v418_v38 = vpop.permute.xlu0 %417 }
  0x90   : > { %v326_v32 = vmul.f32 %v323_v25, %v1365_v29  ;;  %v347_v34 = vmul.f32 %v344_v28, %v1365_v29  ;;  %v368_v37 = vmul.f32 %v365_v31, %v1365_v29  ;;  %v420_v40 = vmul.f32 %v418_v38, %v1378_v39  ;;  %v1383_v42 = vld [vmem:[#allocation2 + $0x9] sm:$0xff]  ;;  %v576_v63 = vpop.permute.xlu1 %575  ;;  %v1140_v25 = vld [vmem:[%s1521_s3 + $0x18] sm:$0xff] }
  0x91   : > { %v389_v41 = vmul.f32 %v386_v35, %v1365_v29  ;;  %v421_v45 = vmul.f32 %v418_v38, %v1383_v42  ;;  %v442_v48 = vmul.f32 %v439_v43, %v1383_v42  ;;  %v484_v55 = vmul.f32 %v481_v49, %v1383_v42  ;;  %v1405_v57 = vld [vmem:[#allocation2 + $0xa] sm:$0xff] }
  0x92   : > { %350 = vrot.lane.b32.xlu0 %v346_v30, %s1220_s28  ;;  %331 = vrot.lane.b32.xlu1 %v326_v32, %s1219_s15  ;;  %v537_v62 = vmul.f32 %v534_v56, %v1405_v57  ;;  %v578_v0 = vmul.f32 %v576_v63, %v1398_v53  ;;  %v1418_v3 = vld [vmem:[#allocation2 + $0x3] sm:$0xff]  ;;  %v579_v5 = vmul.f32 %v576_v63, %v1405_v57  ;;  %v1425_v7 = vld [vmem:[#allocation2 + $0xb] sm:$0xff] }
  0x93   : > { %v460_v46 = vpop.permute.xlu0 %459  ;;  %v1438_v17 = vld [vmem:[#allocation2 + $0x4] sm:$0xff]  ;;  %v1457_v27 = vld [vmem:[#allocation2 + $0xc] sm:$0xff]  ;;  %v1185_v30 = vpack.c.bf16 %v1140_v25, %v1139_v24 }
  0x94   : > { %v462_v47 = vmul.f32 %v460_v46, %v1378_v39  ;;  %v463_v51 = vmul.f32 %v460_v46, %v1383_v42  ;;  %v629_v6 = vpop.permute.xlu1 %628 }
  0x95   : > { %v631_v8 = vmul.f32 %v629_v6, %v1418_v3  ;;  %v632_v12 = vmul.f32 %v629_v6, %v1425_v7  ;;  %1186 = vmatprep.subr.bf16.mxu1 %v1185_v30 }
  0x96   : > { %371 = vrot.lane.b32.xlu0 %v367_v33, %s1221_s22  ;;  %352 = vrot.lane.b32.xlu1 %v347_v34, %s1220_s28 }
  0x97   : > { %v513_v52 = vpop.permute.xlu0 %512  ;;  %1188 = vmatpush3.bf16.msra.mxu1 %v1185_v30 }
  0x98   : > { %v515_v54 = vmul.f32 %v513_v52, %v1398_v53  ;;  %v516_v59 = vmul.f32 %v513_v52, %v1405_v57  ;;  %v671_v13 = vpop.permute.xlu1 %670 }
  0x99   : > { %v673_v14 = vmul.f32 %v671_v13, %v1418_v3  ;;  %v674_v19 = vmul.f32 %v671_v13, %v1425_v7  ;;  %v1122_v13 = vld [vmem:[%s1519_s1 + $0xa] ss:$0 sm:$0xff] }
  0x9a   : > { %392 = vrot.lane.b32.xlu0 %v388_v36, %s1222_s17  ;;  %373 = vrot.lane.b32.xlu1 %v368_v37, %s1221_s22  ;;  %v503_v25 = vmul.f32 %v1122_v13, %v1405_v57 }
  0x9b   : > { %v555_v60 = vpop.permute.xlu0 %554 }
  0x9c   : > { %v557_v61 = vmul.f32 %v555_v60, %v1398_v53  ;;  %v558_v1 = vmul.f32 %v555_v60, %v1405_v57  ;;  %v724_v20 = vpop.permute.xlu1 %723 }
  0x9d   : > { %v726_v28 = vmul.f32 %v724_v20, %v1438_v17  ;;  %v727_v34 = vmul.f32 %v724_v20, %v1457_v27 }
  0x9e   : > { %424 = vrot.lane.b32.xlu0 %v420_v40, %s1219_s15  ;;  %394 = vrot.lane.b32.xlu1 %v389_v41, %s1222_s17  ;;  %v1112_v40 = vld [vmem:[%s1519_s1] ss:$0 sm:$0xff] }
  0x9f   : > { %v608_v2 = vpop.permute.xlu0 %607  ;;  %v312_v43 = vmul.f32 %v1112_v40, %v1361_v26 }
  0xa0   : > { %v610_v4 = vmul.f32 %v608_v2, %v1418_v3  ;;  %v611_v9 = vmul.f32 %v608_v2, %v1425_v7  ;;  %v766_v35 = vpop.permute.xlu1 %765 }
  0xa1   : > { %v768_v36 = vmul.f32 %v766_v35, %v1438_v17  ;;  %v769_v38 = vmul.f32 %v766_v35, %v1457_v27 }
  0xa2   : > { %445 = vrot.lane.b32.xlu0 %v441_v44, %s1220_s28  ;;  %426 = vrot.lane.b32.xlu1 %v421_v45, %s1219_s15  ;;  %v1111_v44 = vld [vmem:[%s1520_s2] ss:$0 sm:$0xff] }
  0xa3   : > { %v650_v10 = vpop.permute.xlu0 %649  ;;  %v314_v46 = vadd.f32 %v1111_v44, %v312_v43 }
  0xa4   : > { %v652_v11 = vmul.f32 %v650_v10, %v1418_v3  ;;  %v653_v15 = vmul.f32 %v650_v10, %v1425_v7 }
  0xa6   : > { %466 = vrot.lane.b32.xlu0 %v462_v47, %s1221_s22  ;;  %447 = vrot.lane.b32.xlu1 %v442_v48, %s1220_s28  ;;  %v313_v48 = vmul.f32 %v1112_v40, %v1365_v29 }
  0xa7   : > { %v703_v16 = vpop.permute.xlu0 %702 }
  0xa8   : > { %v705_v18 = vmul.f32 %v703_v16, %v1438_v17  ;;  %v706_v31 = vmul.f32 %v703_v16, %v1457_v27 }
  0xaa   : > { %487 = vrot.lane.b32.xlu0 %v483_v50, %s1222_s17  ;;  %468 = vrot.lane.b32.xlu1 %v463_v51, %s1221_s22 }
  0xab   : > { %v745_v32 = vpop.permute.xlu0 %744 }
  0xac   : > { %v747_v33 = vmul.f32 %v745_v32, %v1438_v17  ;;  %v748_v37 = vmul.f32 %v745_v32, %v1457_v27 }
  0xae   : > { %519 = vrot.lane.b32.xlu0 %v515_v54, %s1219_s15  ;;  %489 = vrot.lane.b32.xlu1 %v484_v55, %s1222_s17  ;;  %v315_v54 = vadd.f32 %v1111_v44, %v313_v48  ;;  %v1117_v55 = vld [vmem:[%s1519_s1 + $0x5] ss:$0 sm:$0xff] }
  0xb2   : > { %540 = vrot.lane.b32.xlu0 %v536_v58, %s1220_s28  ;;  %521 = vrot.lane.b32.xlu1 %v516_v59, %s1219_s15 }
  0xb6   : > { %561 = vrot.lane.b32.xlu0 %v557_v61, %s1221_s22  ;;  %542 = vrot.lane.b32.xlu1 %v537_v62, %s1220_s28  ;;  %v407_v61 = vmul.f32 %v1117_v55, %v1378_v39 }
  0xba   : > { %582 = vrot.lane.b32.xlu0 %v578_v0, %s1222_s17  ;;  %563 = vrot.lane.b32.xlu1 %v558_v1, %s1221_s22 }
  0xbe   : > { %614 = vrot.lane.b32.xlu0 %v610_v4, %s1219_s15  ;;  %584 = vrot.lane.b32.xlu1 %v579_v5, %s1222_s17  ;;  %v408_v4 = vmul.f32 %v1117_v55, %v1383_v42 }
  0xc2   : > { %635 = vrot.lane.b32.xlu0 %v631_v8, %s1220_s28  ;;  %616 = vrot.lane.b32.xlu1 %v611_v9, %s1219_s15 }
  0xc6   : > { %656 = vrot.lane.b32.xlu0 %v652_v11, %s1221_s22  ;;  %637 = vrot.lane.b32.xlu1 %v632_v12, %s1220_s28 }
  0xca   : > { %677 = vrot.lane.b32.xlu0 %v673_v14, %s1222_s17  ;;  %658 = vrot.lane.b32.xlu1 %v653_v15, %s1221_s22 }
  0xce   : > { %709 = vrot.lane.b32.xlu0 %v705_v18, %s1219_s15  ;;  %679 = vrot.lane.b32.xlu1 %v674_v19, %s1222_s17  ;;  %v502_v19 = vmul.f32 %v1122_v13, %v1398_v53 }
  0xd2   : > { %730 = vrot.lane.b32.xlu0 %v726_v28, %s1220_s28  ;;  %711 = vrot.lane.b32.xlu1 %v706_v31, %s1219_s15 }
  0xd6   : > { %751 = vrot.lane.b32.xlu0 %v747_v33, %s1221_s22  ;;  %732 = vrot.lane.b32.xlu1 %v727_v34, %s1220_s28 }
  0xda   : > { %772 = vrot.lane.b32.xlu0 %v768_v36, %s1222_s17  ;;  %753 = vrot.lane.b32.xlu1 %v748_v37, %s1221_s22  ;;  %v1127_v36 = vld [vmem:[%s1519_s1 + $0xf] ss:$0 sm:$0xff] }
  0xdb   : > { %v597_v43 = vmul.f32 %v1127_v36, %v1418_v3 }
  0xde   : > { %774 = vrot.lane.b32.xlu1 %v769_v38, %s1222_s17 }
 0x100   : > { %v330_v41 = vpop.permute.xlu0 %329 }
 0x101   : > { %v335_v49 = vadd.f32 %v330_v41, %v314_v46 }
 0x104   : > { %v351_v45 = vpop.permute.xlu0 %350  ;;  %v332_v47 = vpop.permute.xlu1 %331 }
 0x105   : > { %v356_v51 = vadd.f32 %v351_v45, %v335_v49  ;;  %v336_v26 = vadd.f32 %v332_v47, %v315_v54  ;;  %v598_v49 = vmul.f32 %v1127_v36, %v1425_v7 }
 0x108   : > { %v372_v50 = vpop.permute.xlu0 %371  ;;  %v353_v52 = vpop.permute.xlu1 %352 }
 0x109   : > { %v377_v56 = vadd.f32 %v372_v50, %v356_v51  ;;  %v357_v62 = vadd.f32 %v353_v52, %v336_v26 }
 0x10c   : > { %v393_v58 = vpop.permute.xlu0 %392  ;;  %v374_v59 = vpop.permute.xlu1 %373 }
 0x10d   : > { %v398_v60 = vadd.f32 %v393_v58, %v377_v56  ;;  %v378_v0 = vadd.f32 %v374_v59, %v357_v62  ;;  %v1132_v58 = vld [vmem:[%s1519_s1 + $0x14] ss:$0 sm:$0xff] }
 0x10f   : > { %v409_v63 = vadd.f32 %v407_v61, %v398_v60 }
 0x110   : > { %v425_v29 = vpop.permute.xlu0 %424  ;;  %v395_v1 = vpop.permute.xlu1 %394 }
 0x111   : > { %v399_v2 = vadd.f32 %v395_v1, %v378_v0  ;;  %v430_v9 = vadd.f32 %v425_v29, %v409_v63  ;;  %v692_v63 = vmul.f32 %v1132_v58, %v1438_v17 }
 0x113   : > { %v410_v5 = vadd.f32 %v408_v4, %v399_v2 }
 0x114   : > { %v446_v6 = vpop.permute.xlu0 %445  ;;  %v427_v8 = vpop.permute.xlu1 %426 }
 0x115   : > { %v451_v11 = vadd.f32 %v446_v6, %v430_v9  ;;  %v431_v14 = vadd.f32 %v427_v8, %v410_v5  ;;  %v693_v5 = vmul.f32 %v1132_v58, %v1457_v27  ;;  %v955_v27 = vld [vmem:[%s1523_s5] sm:$0xff] }
 0x116   : > { %1176 = vmatprep.subr.mxu0 %v955_v27 }
 0x118   : > { %v467_v10 = vpop.permute.xlu0 %466  ;;  %v448_v12 = vpop.permute.xlu1 %447 }
 0x119   : > { %v472_v39 = vadd.f32 %v467_v10, %v451_v11  ;;  %v452_v20 = vadd.f32 %v448_v12, %v431_v14 }
 0x11c   : > { %v488_v15 = vpop.permute.xlu0 %487  ;;  %v469_v16 = vpop.permute.xlu1 %468 }
 0x11d   : > { %v493_v18 = vadd.f32 %v488_v15, %v472_v39  ;;  %v473_v21 = vadd.f32 %v469_v16, %v452_v20 }
 0x11f   : > { %v504_v42 = vadd.f32 %v502_v19, %v493_v18 }
 0x120   : > { %v520_v22 = vpop.permute.xlu0 %519  ;;  %v490_v23 = vpop.permute.xlu1 %489 }
 0x121   : > { %v494_v24 = vadd.f32 %v490_v23, %v473_v21  ;;  %v525_v32 = vadd.f32 %v520_v22, %v504_v42  ;;  %v1143_v23 = vld [vmem:[%s1522_s4] ss:$0 sm:$0xff] }
 0x123   : > { %v505_v28 = vadd.f32 %v503_v25, %v494_v24 }
 0x124   : > { %v541_v30 = vpop.permute.xlu0 %540  ;;  %v522_v31 = vpop.permute.xlu1 %521 }
 0x125   : > { %v546_v34 = vadd.f32 %v541_v30, %v525_v32  ;;  %v526_v37 = vadd.f32 %v522_v31, %v505_v28 }
 0x128   : > { %v562_v33 = vpop.permute.xlu0 %561  ;;  %v543_v35 = vpop.permute.xlu1 %542 }
 0x129   : > { %v567_v53 = vadd.f32 %v562_v33, %v546_v34  ;;  %v547_v44 = vadd.f32 %v543_v35, %v526_v37  ;;  %v1144_v35 = vld [vmem:[%s1524_s6] ss:$0 sm:$0xff] }
 0x12c   : > { %v583_v38 = vpop.permute.xlu0 %582  ;;  %v564_v40 = vpop.permute.xlu1 %563 }
 0x12d   : > { %v588_v41 = vadd.f32 %v583_v38, %v567_v53  ;;  %v568_v45 = vadd.f32 %v564_v40, %v547_v44 }
 0x12f   : > { %v599_v57 = vadd.f32 %v597_v43, %v588_v41 }
 0x130   : > { %v615_v46 = vpop.permute.xlu0 %614  ;;  %v585_v47 = vpop.permute.xlu1 %584 }
 0x131   : > { %v589_v48 = vadd.f32 %v585_v47, %v568_v45  ;;  %v620_v54 = vadd.f32 %v615_v46, %v599_v57 }
 0x133   : > { %v600_v50 = vadd.f32 %v598_v49, %v589_v48 }
 0x134   : > { %v636_v51 = vpop.permute.xlu0 %635  ;;  %v617_v52 = vpop.permute.xlu1 %616 }
 0x135   : > { %v641_v56 = vadd.f32 %v636_v51, %v620_v54  ;;  %v621_v59 = vadd.f32 %v617_v52, %v600_v50 }
 0x138   : > { %v657_v55 = vpop.permute.xlu0 %656  ;;  %v638_v26 = vpop.permute.xlu1 %637 }
 0x139   : > { %v662_v3 = vadd.f32 %v657_v55, %v641_v56  ;;  %v642_v0 = vadd.f32 %v638_v26, %v621_v59 }
 0x13c   : > { %v678_v60 = vpop.permute.xlu0 %677  ;;  %v659_v61 = vpop.permute.xlu1 %658 }
 0x13d   : > { %v683_v62 = vadd.f32 %v678_v60, %v662_v3  ;;  %v663_v29 = vadd.f32 %v659_v61, %v642_v0 }
 0x13f   : > { %v694_v7 = vadd.f32 %v692_v63, %v683_v62 }
 0x140   : > { %v710_v1 = vpop.permute.xlu0 %709  ;;  %v680_v2 = vpop.permute.xlu1 %679 }
 0x141   : > { %v684_v4 = vadd.f32 %v680_v2, %v663_v29  ;;  %v715_v10 = vadd.f32 %v710_v1, %v694_v7 }
 0x143   : > { %v695_v6 = vadd.f32 %v693_v5, %v684_v4 }
 0x144   : > { %v731_v8 = vpop.permute.xlu0 %730  ;;  %v712_v9 = vpop.permute.xlu1 %711 }
 0x145   : > { %v736_v12 = vadd.f32 %v731_v8, %v715_v10  ;;  %v716_v14 = vadd.f32 %v712_v9, %v695_v6 }
 0x148   : > { %v752_v11 = vpop.permute.xlu0 %751  ;;  %v733_v13 = vpop.permute.xlu1 %732 }
 0x149   : > { %v757_v39 = vadd.f32 %v752_v11, %v736_v12  ;;  %v737_v18 = vadd.f32 %v733_v13, %v716_v14 }
 0x14c   : > { %v773_v15 = vpop.permute.xlu0 %772  ;;  %v754_v17 = vpop.permute.xlu1 %753 }
 0x14d   : > { %v778_v16 = vadd.f32 %v773_v15, %v757_v39  ;;  %v758_v19 = vadd.f32 %v754_v17, %v737_v18 }
 0x14f   : > { %1166 = vmatprep.mubr.msk.f32.mxu0 %vm782_vm3, %v778_v16  ;;  %1173 = vmatprep.mubr.msk.f32.mxu1 %vm782_vm3, %v778_v16 }
 0x150   : > { %v775_v20 = vpop.permute.xlu1 %774 }
 0x151   : > { %v779_v42 = vadd.f32 %v775_v20, %v758_v19 }
 0x153   : > { %1167 = vmatmul.mubr.msk.f32.vlgmr.msra.gmra.mrb[0].mxu0 %vm782_vm3, %v779_v42  ;;  %1174 = vmatmul.mubr.msk.f32.vlgmr.msra.gmra.mrb[0].mxu1 %vm782_vm3, %v779_v42 }
 0x154   : > { %1177 = vmatpush3.msra.mxu0 %v955_v27 }
 0x226   : > { %v1168_v21 = vpop.f32.mrb[0].mxu0  ;;  %v1175_v22 = vpop.f32.mrb[0].mxu1 }
 0x227   : > { %v943_v24 = vmax.f32 %v1168_v21, %v1175_v22  ;;  %v855_v25 = vpop.f32.mrb[1].mxu0  ;;  %v933_v28 = vpop.f32.mrb[1].mxu1 }
 0x228   : > { %v942_v30 = vmax.f32 %v855_v25, %v933_v28 }
 0x229   : > { %v952_v31 = vadd.f32 %v1143_v23, %v943_v24 }
 0x22a   : > { %v951_v32 = vadd.f32 %v1143_v23, %v942_v30 }
 0x22b   : > { %v954_v34 = vmax.f32 %v952_v31, 0.0 }
 0x22c   : > { %v953_v33 = vmax.f32 %v951_v32, 0.0 }
 0x22e   : > { %1178 = vmatprep.mubr.msk.f32.mxu0 %vm963_vm4, %v953_v33 }
 0x22f   : > { %1179 = vmatmul.mubr.msk.f32.vlgmr.msra.gmra.mrb[2].mxu0 %vm963_vm4, %v954_v34 }
 0x302   : > { %v1180_v36 = vpop.f32.mrb[2].mxu0 }
 0x303   : > { %v1042_v53 = vadd.f32 %v1180_v36, %v1144_v35  ;;  %v1036_v37 = vpop.f32.mrb[3].mxu0 }
 0x304   : > { %v1037_v38 = vadd.f32 %v1144_v35, %v1036_v37 }
 0x305   : > { %1046 = vst [vmem:[%s278_s30 + $0x8] sm:$0xff] %v1042_v53 }
 0x306   : > { %1045 = vst [vmem:[%s278_s30] sm:$0xff] %v1037_v38 }
 0x307 PF: > { %s17_s24 = sadd.s32 1, %s1212_s24  }
 0x308   : > { %p14_p4 = scmp.ge.s32.totalorder %s17_s24, 4  }
 0x30a   :  { %16 = sbr.rel (!%p14_p4) target bundleno = 1 (0x1), region = 79 }

// kernel: wave_transformer8_forward.6
= control target key start
LH: loop header
LB: loop body
LE: loop exit
PB: predicated region body
PF: predicated region fallthrough
CT: control target
= control target key end

     0   :  { %s1459_s18 = smov 0   ;;  %s1808_s0 = inlined_call_operand.vmem [shape: f32[2,16,64], index: 0, kind: input, shape index: {}]   ;;  %s1809_s1 = inlined_call_operand.vmem [shape: f32[25,64], index: 1, kind: input, shape index: {}]   ;;  %s1810_s2 = inlined_call_operand.vmem [shape: f32[1,64], index: 2, kind: input, shape index: {}]   ;;  %s1811_s3 = inlined_call_operand.vmem [shape: f32[4,64,16], index: 3, kind: input, shape index: {}]   ;;  %s1812_s4 = inlined_call_operand.vmem [shape: f32[1,16], index: 4, kind: input, shape index: {}]   ;;  %s1813_s5 = inlined_call_operand.vmem [shape: f32[2,16,16], index: 5, kind: output, shape index: {}]  }
   0x1 LB: > { %s1143_s19 = sadd.s32 4294967295, %s1418_s18   ;;  %p1147_p0 = scmp.ge.s32.totalorder %s1418_s18, 1  ;;  %s1418_s18 = sphi %s1459_s18, %s15_s18  }
   0x2   : > { %p187_p1 = scmp.lt.s32.totalorder %s1418_s18, 3 }
   0x4   : > { %p188_p2 = pnand %p1147_p0, %p187_p1 }
   0x5   : > { %v1154_v0 = vld [vmem:[%s1809_s1 + $0x1] ss:$0 sm:$0xff] (!%p188_p2)  ;;  %s1420_s22 = smov (!%p188_p2), 8   ;;  %p215_p3 = scmp.lt.s32.totalorder (!%p188_p2), %s1143_s19, 1  ;;  %v1155_v1 = vld [vmem:[%s1809_s1 + $0x2] ss:$0 sm:$0xff] (!%p188_p2) }
   0x6   : > { %191 = sbr.rel (%p188_p2) target bundleno = 577 (0x241), region = 40  ;;  %268 = vrot.lane.b32.xlu1 (!%p188_p2), %v1154_v0, %s1420_s22  ;;  %vm225_vm0 = vcmask (!%p188_p2), 785408   ;;  %v1421_v2 = vmov (!%p188_p2), 0.0   ;;  %s1422_s25 = smov (!%p188_p2), 16   ;;  %v1157_v3 = vld [vmem:[%s1809_s1 + $0x4] ss:$0 sm:$0xff] (!%p188_p2) }
   0x7   : > { %226 = vst.msk [vmem:[#allocation2] sm:$0xff] (!%p188_p2), %vm225_vm0, %v1421_v2  ;;  %227 = vst.msk [vmem:[#allocation2 + $0x8] sm:$0xff] (!%p188_p2), %vm225_vm0, %v1421_v2  ;;  %vm228_vm1 = vcmask (!%p188_p2), 781312   ;;  %s1423_s7 = smov (!%p188_p2), 32   ;;  %v1160_v6 = vld [vmem:[%s1809_s1 + $0x7] ss:$0 sm:$0xff] (!%p188_p2) }
   0x8   : > { %229 = vst.msk [vmem:[#allocation2 + $0x10] sm:$0xf] (!%p188_p2), %vm228_vm1, %v1421_v2  ;;  %v1156_v7 = vld [vmem:[%s1809_s1 + $0x3] ss:$0 sm:$0xff] (!%p188_p2)  ;;  %v1162_v8 = vld [vmem:[%s1809_s1 + $0x9] ss:$0 sm:$0xff] (!%p188_p2) }
   0x9   : > { %s1424_s14 = smov (!%p188_p2), 24   ;;  %v1159_v9 = vld [vmem:[%s1809_s1 + $0x6] ss:$0 sm:$0xff] (!%p188_p2)  ;;  %v1165_v10 = vld [vmem:[%s1809_s1 + $0xc] ss:$0 sm:$0xff] (!%p188_p2)  ;;  %vm240_vm2 = vcmask (!%p188_p2), 654464  }
   0xa   : > { %289 = vrot.lane.b32.xlu1 (!%p188_p2), %v1155_v1, %s1422_s25  ;;  %v1161_v11 = vld [vmem:[%s1809_s1 + $0x8] ss:$0 sm:$0xff] (!%p188_p2)  ;;  %v1167_v12 = vld [vmem:[%s1809_s1 + $0xe] ss:$0 sm:$0xff] (!%p188_p2)  ;;  %v1164_v13 = vld [vmem:[%s1809_s1 + $0xb] ss:$0 sm:$0xff] (!%p188_p2) }
   0xb   : > { %v1170_v14 = vld [vmem:[%s1809_s1 + $0x11] ss:$0 sm:$0xff] (!%p188_p2)  ;;  %v1166_v15 = vld [vmem:[%s1809_s1 + $0xd] ss:$0 sm:$0xff] (!%p188_p2)  ;;  %v1172_v16 = vld [vmem:[%s1809_s1 + $0x13] ss:$0 sm:$0xff] (!%p188_p2) }
   0xc   : > { %v1169_v17 = vld [vmem:[%s1809_s1 + $0x10] ss:$0 sm:$0xff] (!%p188_p2)  ;;  %v1175_v18 = vld [vmem:[%s1809_s1 + $0x16] ss:$0 sm:$0xff] (!%p188_p2)  ;;  %v1171_v19 = vld [vmem:[%s1809_s1 + $0x12] ss:$0 sm:$0xff] (!%p188_p2) }
   0xd   : > { %s1815_s19 = smov (!%p215_p3, %s1143_s19), 1  ;;  %v1177_v20 = vld [vmem:[%s1809_s1 + $0x18] ss:$0 sm:$0xff]  ;;  %v1174_v21 = vld [vmem:[%s1809_s1 + $0x15] ss:$0 sm:$0xff]  ;;  %vm734_vm3 = vcmask 523264  }
   0xe   : > { %s1213_s26 = sshll.u32 %s1815_s19, 4  ;;  %331 = vrot.lane.b32.xlu1 %v1157_v3, %s1423_s7  ;;  %v1176_v22 = vld [vmem:[%s1809_s1 + $0x17] ss:$0 sm:$0xff]  ;;  %vm1085_vm4 = vcmask 130048  }
   0xf   : > { %s219_s29 = scalar_lea.vmem %s1808_s0, %s1213_s26  ;;  %s224_s30 = scalar_lea.vmem %s1813_s5, %s1213_s26 }
  0x10   : > { %v230_v4 = vld [vmem:[%s219_s29] sm:$0xff]  ;;  %v231_v5 = vld [vmem:[%s219_s29 + $0x8] sm:$0xff]  ;;  %s1428_s29 = smov 96  }
  0x11   : > { %234 = vrot.lane.b32.xlu0 %v230_v4, %s1422_s25 }
  0x12   : > { %384 = vrot.lane.b32.xlu1 %v1160_v6, %s1422_s25 }
  0x15   : > { %236 = vrot.lane.b32.xlu0 %v231_v5, %s1422_s25 }
  0x16   : > { %426 = vrot.lane.b32.xlu1 %v1162_v8, %s1423_s7 }
  0x19   : > { %310 = vrot.lane.b32.xlu0 %v1156_v7, %s1424_s14 }
  0x1a   : > { %479 = vrot.lane.b32.xlu1 %v1165_v10, %s1422_s25 }
  0x1d   : > { %363 = vrot.lane.b32.xlu0 %v1159_v9, %s1420_s22 }
  0x1e   : > { %521 = vrot.lane.b32.xlu1 %v1167_v12, %s1423_s7  ;;  %v727_v12 = vld [vmem:[%s1811_s3 + $0x8] sm:$0xff] }
  0x21   : > { %405 = vrot.lane.b32.xlu0 %v1161_v11, %s1424_s14  ;;  %v726_v11 = vld [vmem:[%s1811_s3] sm:$0xff] }
  0x22   : > { %574 = vrot.lane.b32.xlu1 %v1170_v14, %s1422_s25  ;;  %v1331_v14 = vpack.c.bf16 %v727_v12, %v726_v11 }
  0x24   : > { %1332 = vmatprep.subr.bf16.mxu0 %v1331_v14 }
  0x25   : > { %458 = vrot.lane.b32.xlu0 %v1164_v13, %s1420_s22  ;;  %v1180_v13 = vld [vmem:[%s1811_s3 + $0x40] sm:$0xff]  ;;  %1334 = vmatpush3.bf16.msra.mxu0 %v1331_v14 }
  0x26   : > { %616 = vrot.lane.b32.xlu1 %v1172_v16, %s1423_s7 }
  0x29   : > { %500 = vrot.lane.b32.xlu0 %v1166_v15, %s1424_s14  ;;  %v1181_v15 = vld [vmem:[%s1811_s3 + $0x48] sm:$0xff] }
  0x2a   : > { %669 = vrot.lane.b32.xlu1 %v1175_v18, %s1422_s25 }
  0x2d   : > { %553 = vrot.lane.b32.xlu0 %v1169_v17, %s1420_s22  ;;  %v1347_v17 = vpack.c.bf16 %v1181_v15, %v1180_v13 }
  0x2e   : > { %711 = vrot.lane.b32.xlu1 %v1177_v20, %s1423_s7  ;;  %s1425_s7 = smov 120   ;;  %v728_v20 = vld [vmem:[%s1811_s3 + $0x10] sm:$0xff] }
  0x2f   : > { %1348 = vmatprep.subr.bf16.mxu1 %v1347_v17 }
  0x30   : > { %1350 = vmatpush3.bf16.msra.mxu1 %v1347_v17 }
  0x31   : > { %595 = vrot.lane.b32.xlu0 %v1171_v19, %s1424_s14 }
  0x35   : > { %648 = vrot.lane.b32.xlu0 %v1174_v21, %s1420_s22  ;;  %s1426_s22 = smov 112   ;;  %v729_v21 = vld [vmem:[%s1811_s3 + $0x18] sm:$0xff] }
  0x39   : > { %690 = vrot.lane.b32.xlu0 %v1176_v22, %s1424_s14  ;;  %s1427_s14 = smov 104   ;;  %v1182_v22 = vld [vmem:[%s1811_s3 + $0x50] sm:$0xff] }
  0x78   : > { %v269_v25 = vpop.permute.xlu1 %268 }
  0x7c   : > { %v290_v28 = vpop.permute.xlu1 %289 }
  0x80   : > { %v332_v35 = vpop.permute.xlu1 %331 }
  0x83   : > { %v235_v23 = vpop.permute.xlu0 %234 }
  0x84   : > { %241 = vst.msk [vmem:[#allocation2 + $0x2] sm:$0xff] %vm240_vm2, %v235_v23  ;;  %v385_v43 = vpop.permute.xlu1 %384  ;;  %v1335_v23 = vpack.c.bf16 %v729_v21, %v728_v20 }
  0x86   : > { %1336 = vmatprep.subr.bf16.mxu0 %v1335_v23 }
  0x87   : > { %v237_v24 = vpop.permute.xlu0 %236  ;;  %1338 = vmatpush3.bf16.msra.mxu0 %v1335_v23 }
  0x88   : > { %242 = vst.msk [vmem:[#allocation2 + $0xa] sm:$0xff] %vm240_vm2, %v237_v24  ;;  %v427_v49 = vpop.permute.xlu1 %426  ;;  %v1183_v24 = vld [vmem:[%s1811_s3 + $0x58] sm:$0xff] }
  0x8b   : > { %v1557_v26 = vld [vmem:[#allocation2] sm:$0xff]  ;;  %v311_v31 = vpop.permute.xlu0 %310 }
  0x8c   : > { %v271_v27 = vmul.f32 %v269_v25, %v1557_v26  ;;  %v292_v30 = vmul.f32 %v290_v28, %v1557_v26  ;;  %v313_v33 = vmul.f32 %v311_v31, %v1557_v26  ;;  %v334_v36 = vmul.f32 %v332_v35, %v1557_v26  ;;  %v1574_v39 = vld [vmem:[#allocation2 + $0x1] sm:$0xff]  ;;  %v480_v56 = vpop.permute.xlu1 %479 }
  0x8d   : > { %v387_v44 = vmul.f32 %v385_v43, %v1574_v39  ;;  %v429_v50 = vmul.f32 %v427_v49, %v1574_v39  ;;  %v1594_v53 = vld [vmem:[#allocation2 + $0x2] sm:$0xff] }
  0x8e   : > { %275 = vrot.lane.b32.xlu0 %v271_v27, %s1425_s7  ;;  %v482_v58 = vmul.f32 %v480_v56, %v1594_v53  ;;  %v1351_v27 = vpack.c.bf16 %v1183_v24, %v1182_v22 }
  0x8f   : > { %v1561_v29 = vld [vmem:[#allocation2 + $0x8] sm:$0xff]  ;;  %v364_v38 = vpop.permute.xlu0 %363 }
  0x90   : > { %v272_v32 = vmul.f32 %v269_v25, %v1561_v29  ;;  %v293_v34 = vmul.f32 %v290_v28, %v1561_v29  ;;  %v314_v37 = vmul.f32 %v311_v31, %v1561_v29  ;;  %v366_v40 = vmul.f32 %v364_v38, %v1574_v39  ;;  %v1579_v42 = vld [vmem:[#allocation2 + $0x9] sm:$0xff]  ;;  %v522_v63 = vpop.permute.xlu1 %521  ;;  %1352 = vmatprep.subr.bf16.mxu1 %v1351_v27  ;;  %v730_v31 = vld [vmem:[%s1811_s3 + $0x20] sm:$0xff] }
  0x91   : > { %v335_v41 = vmul.f32 %v332_v35, %v1561_v29  ;;  %v367_v45 = vmul.f32 %v364_v38, %v1579_v42  ;;  %v388_v48 = vmul.f32 %v385_v43, %v1579_v42  ;;  %v430_v55 = vmul.f32 %v427_v49, %v1579_v42  ;;  %v1601_v57 = vld [vmem:[#allocation2 + $0xa] sm:$0xff]  ;;  %1354 = vmatpush3.bf16.msra.mxu1 %v1351_v27 }
  0x92   : > { %296 = vrot.lane.b32.xlu0 %v292_v30, %s1426_s22  ;;  %277 = vrot.lane.b32.xlu1 %v272_v32, %s1425_s7  ;;  %v483_v62 = vmul.f32 %v480_v56, %v1601_v57  ;;  %v524_v0 = vmul.f32 %v522_v63, %v1594_v53  ;;  %v1614_v3 = vld [vmem:[#allocation2 + $0x3] sm:$0xff]  ;;  %v525_v5 = vmul.f32 %v522_v63, %v1601_v57  ;;  %v1621_v7 = vld [vmem:[#allocation2 + $0xb] sm:$0xff] }
  0x93   : > { %v406_v46 = vpop.permute.xlu0 %405  ;;  %v731_v32 = vld [vmem:[%s1811_s3 + $0x28] sm:$0xff]  ;;  %v732_v43 = vld [vmem:[%s1811_s3 + $0x30] sm:$0xff]  ;;  %v1200_v56 = vld [vmem:[%s1811_s3 + $0xc0] sm:$0xff] }
  0x94   : > { %v408_v47 = vmul.f32 %v406_v46, %v1574_v39  ;;  %v409_v51 = vmul.f32 %v406_v46, %v1579_v42  ;;  %v575_v6 = vpop.permute.xlu1 %574  ;;  %v1339_v35 = vpack.c.bf16 %v731_v32, %v730_v31 }
  0x95   : > { %v577_v8 = vmul.f32 %v575_v6, %v1614_v3  ;;  %v578_v18 = vmul.f32 %v575_v6, %v1621_v7 }
  0x96   : > { %317 = vrot.lane.b32.xlu0 %v313_v33, %s1427_s14  ;;  %298 = vrot.lane.b32.xlu1 %v293_v34, %s1426_s22  ;;  %v1184_v33 = vld [vmem:[%s1811_s3 + $0x60] sm:$0xff] }
  0x97   : > { %v459_v52 = vpop.permute.xlu0 %458  ;;  %v1667_v34 = vld [vmem:[#allocation2 + $0x4] sm:$0xff]  ;;  %1340 = vmatprep.subr.bf16.mxu0 %v1339_v35 }
  0x98   : > { %v461_v54 = vmul.f32 %v459_v52, %v1594_v53  ;;  %v462_v59 = vmul.f32 %v459_v52, %v1601_v57  ;;  %v617_v19 = vpop.permute.xlu1 %616  ;;  %1342 = vmatpush3.bf16.msra.mxu0 %v1339_v35 }
  0x99   : > { %v619_v25 = vmul.f32 %v617_v19, %v1614_v3 }
  0x9a   : > { %338 = vrot.lane.b32.xlu0 %v334_v36, %s1428_s29  ;;  %319 = vrot.lane.b32.xlu1 %v314_v37, %s1427_s14  ;;  %v1185_v36 = vld [vmem:[%s1811_s3 + $0x68] sm:$0xff] }
  0x9b   : > { %v501_v60 = vpop.permute.xlu0 %500  ;;  %v1355_v38 = vpack.c.bf16 %v1185_v36, %v1184_v33 }
  0x9c   : > { %v503_v61 = vmul.f32 %v501_v60, %v1594_v53  ;;  %v504_v1 = vmul.f32 %v501_v60, %v1601_v57 }
  0x9d   : > { %1356 = vmatprep.subr.bf16.mxu1 %v1355_v38 }
  0x9e   : > { %370 = vrot.lane.b32.xlu0 %v366_v40, %s1425_s7  ;;  %340 = vrot.lane.b32.xlu1 %v335_v41, %s1428_s29  ;;  %v620_v40 = vmul.f32 %v617_v19, %v1621_v7  ;;  %v670_v41 = vpop.permute.xlu1 %669 }
  0x9f   : > { %v554_v2 = vpop.permute.xlu0 %553  ;;  %v672_v49 = vmul.f32 %v670_v41, %v1667_v34  ;;  %1358 = vmatpush3.bf16.msra.mxu1 %v1355_v38 }
  0xa0   : > { %v556_v4 = vmul.f32 %v554_v2, %v1614_v3  ;;  %v557_v9 = vmul.f32 %v554_v2, %v1621_v7 }
  0xa2   : > { %391 = vrot.lane.b32.xlu0 %v387_v44, %s1426_s22  ;;  %372 = vrot.lane.b32.xlu1 %v367_v45, %s1425_s7  ;;  %v733_v44 = vld [vmem:[%s1811_s3 + $0x38] sm:$0xff]  ;;  %v1186_v45 = vld [vmem:[%s1811_s3 + $0x70] sm:$0xff]  ;;  %v712_v63 = vpop.permute.xlu1 %711 }
  0xa3   : > { %v596_v10 = vpop.permute.xlu0 %595  ;;  %v1343_v46 = vpack.c.bf16 %v733_v44, %v732_v43 }
  0xa4   : > { %v598_v16 = vmul.f32 %v596_v10, %v1614_v3  ;;  %v599_v28 = vmul.f32 %v596_v10, %v1621_v7 }
  0xa5   : > { %1344 = vmatprep.subr.bf16.mxu0 %v1343_v46 }
  0xa6   : > { %412 = vrot.lane.b32.xlu0 %v408_v47, %s1427_s14  ;;  %393 = vrot.lane.b32.xlu1 %v388_v48, %s1426_s22  ;;  %v1187_v47 = vld [vmem:[%s1811_s3 + $0x78] sm:$0xff]  ;;  %v1689_v48 = vld [vmem:[#allocation2 + $0xc] sm:$0xff] }
  0xa7   : > { %v649_v30 = vpop.permute.xlu0 %648  ;;  %1346 = vmatpush3.bf16.msra.mxu0 %v1343_v46  ;;  %v715_v2 = vmul.f32 %v712_v63, %v1689_v48 }
  0xa8   : > { %v651_v37 = vmul.f32 %v649_v30, %v1667_v34 }
  0xaa   : > { %433 = vrot.lane.b32.xlu0 %v429_v50, %s1428_s29  ;;  %414 = vrot.lane.b32.xlu1 %v409_v51, %s1427_s14  ;;  %v1359_v50 = vpack.c.bf16 %v1187_v47, %v1186_v45  ;;  %v652_v51 = vmul.f32 %v649_v30, %v1689_v48 }
  0xab   : > { %v691_v52 = vpop.permute.xlu0 %690 }
  0xac   : > { %1360 = vmatprep.subr.bf16.mxu1 %v1359_v50  ;;  %v693_v60 = vmul.f32 %v691_v52, %v1667_v34 }
  0xad   : > { %1362 = vmatpush3.bf16.msra.mxu1 %v1359_v50 }
  0xae   : > { %465 = vrot.lane.b32.xlu0 %v461_v54, %s1425_s7  ;;  %435 = vrot.lane.b32.xlu1 %v430_v55, %s1428_s29  ;;  %v1190_v54 = vld [vmem:[%s1811_s3 + $0x80] sm:$0xff]  ;;  %v1191_v55 = vld [vmem:[%s1811_s3 + $0x88] sm:$0xff] }
  0xb2   : > { %486 = vrot.lane.b32.xlu0 %v482_v58, %s1426_s22  ;;  %467 = vrot.lane.b32.xlu1 %v462_v59, %s1425_s7  ;;  %v1704_v58 = vpack.c.bf16 %v1191_v55, %v1190_v54  ;;  %v1201_v59 = vld [vmem:[%s1811_s3 + $0xc8] sm:$0xff] }
  0xb4   : > { %1364 = vmatprep.subr.bf16.mxu0 %v1704_v58 }
  0xb6   : > { %507 = vrot.lane.b32.xlu0 %v503_v61, %s1427_s14  ;;  %488 = vrot.lane.b32.xlu1 %v483_v62, %s1426_s22  ;;  %v1710_v61 = vpack.c.bf16 %v1201_v59, %v1200_v56  ;;  %v673_v62 = vmul.f32 %v670_v41, %v1689_v48  ;;  %v1163_v41 = vld [vmem:[%s1809_s1 + $0xa] ss:$0 sm:$0xff] }
  0xb7   : > { %v448_v47 = vmul.f32 %v1163_v41, %v1594_v53  ;;  %v449_v55 = vmul.f32 %v1163_v41, %v1601_v57 }
  0xb8   : > { %1380 = vmatprep.subr.bf16.mxu1 %v1710_v61 }
  0xba   : > { %528 = vrot.lane.b32.xlu0 %v524_v0, %s1428_s29  ;;  %509 = vrot.lane.b32.xlu1 %v504_v1, %s1427_s14  ;;  %v714_v0 = vmul.f32 %v712_v63, %v1667_v34  ;;  %v694_v1 = vmul.f32 %v691_v52, %v1689_v48 }
  0xbe   : > { %560 = vrot.lane.b32.xlu0 %v556_v4, %s1425_s7  ;;  %530 = vrot.lane.b32.xlu1 %v525_v5, %s1428_s29  ;;  %v1153_v4 = vld [vmem:[%s1809_s1] ss:$0 sm:$0xff] }
  0xbf   : > { %v258_v6 = vmul.f32 %v1153_v4, %v1557_v26  ;;  %v259_v12 = vmul.f32 %v1153_v4, %v1561_v29 }
  0xc2   : > { %581 = vrot.lane.b32.xlu0 %v577_v8, %s1426_s22  ;;  %562 = vrot.lane.b32.xlu1 %v557_v9, %s1425_s7  ;;  %v1152_v8 = vld [vmem:[%s1810_s2] ss:$0 sm:$0xff] }
  0xc3   : > { %v260_v10 = vadd.f32 %v1152_v8, %v258_v6  ;;  %v261_v17 = vadd.f32 %v1152_v8, %v259_v12 }
  0xc6   : > { %602 = vrot.lane.b32.xlu0 %v598_v16, %s1427_s14  ;;  %583 = vrot.lane.b32.xlu1 %v578_v18, %s1426_s22  ;;  %v1158_v18 = vld [vmem:[%s1809_s1 + $0x5] ss:$0 sm:$0xff] }
  0xc7   : > { %v353_v23 = vmul.f32 %v1158_v18, %v1574_v39  ;;  %v354_v31 = vmul.f32 %v1158_v18, %v1579_v42 }
  0xca   : > { %623 = vrot.lane.b32.xlu0 %v619_v25, %s1428_s29  ;;  %604 = vrot.lane.b32.xlu1 %v599_v28, %s1427_s14 }
  0xce   : > { %655 = vrot.lane.b32.xlu0 %v651_v37, %s1425_s7  ;;  %625 = vrot.lane.b32.xlu1 %v620_v40, %s1428_s29 }
  0xd2   : > { %676 = vrot.lane.b32.xlu0 %v672_v49, %s1426_s22  ;;  %657 = vrot.lane.b32.xlu1 %v652_v51, %s1425_s7 }
  0xd6   : > { %697 = vrot.lane.b32.xlu0 %v693_v60, %s1427_s14  ;;  %678 = vrot.lane.b32.xlu1 %v673_v62, %s1426_s22 }
  0xda   : > { %718 = vrot.lane.b32.xlu0 %v714_v0, %s1428_s29  ;;  %699 = vrot.lane.b32.xlu1 %v694_v1, %s1427_s14 }
  0xde   : > { %720 = vrot.lane.b32.xlu1 %v715_v2, %s1428_s29  ;;  %v1168_v2 = vld [vmem:[%s1809_s1 + $0xf] ss:$0 sm:$0xff] }
 0x100   : > { %v276_v5 = vpop.permute.xlu0 %275 }
 0x101   : > { %v281_v13 = vadd.f32 %v276_v5, %v260_v10 }
 0x104   : > { %v297_v9 = vpop.permute.xlu0 %296  ;;  %v278_v11 = vpop.permute.xlu1 %277 }
 0x105   : > { %v302_v15 = vadd.f32 %v297_v9, %v281_v13  ;;  %v282_v26 = vadd.f32 %v278_v11, %v261_v17  ;;  %v543_v9 = vmul.f32 %v1168_v2, %v1614_v3 }
 0x108   : > { %v318_v14 = vpop.permute.xlu0 %317  ;;  %v299_v16 = vpop.permute.xlu1 %298 }
 0x109   : > { %v323_v19 = vadd.f32 %v318_v14, %v302_v15  ;;  %v303_v24 = vadd.f32 %v299_v16, %v282_v26  ;;  %v544_v15 = vmul.f32 %v1168_v2, %v1621_v7 }
 0x10c   : > { %v339_v20 = vpop.permute.xlu0 %338  ;;  %v320_v21 = vpop.permute.xlu1 %319 }
 0x10d   : > { %v344_v22 = vadd.f32 %v339_v20, %v323_v19  ;;  %v324_v27 = vadd.f32 %v320_v21, %v303_v24 }
 0x10f   : > { %v355_v25 = vadd.f32 %v353_v23, %v344_v22  ;;  %v1173_v22 = vld [vmem:[%s1809_s1 + $0x14] ss:$0 sm:$0xff] }
 0x110   : > { %v371_v29 = vpop.permute.xlu0 %370  ;;  %v341_v28 = vpop.permute.xlu1 %340 }
 0x111   : > { %v345_v30 = vadd.f32 %v341_v28, %v324_v27  ;;  %v376_v36 = vadd.f32 %v371_v29, %v355_v25  ;;  %v638_v29 = vmul.f32 %v1173_v22, %v1667_v34 }
 0x113   : > { %v356_v32 = vadd.f32 %v354_v31, %v345_v30 }
 0x114   : > { %v392_v33 = vpop.permute.xlu0 %391  ;;  %v373_v35 = vpop.permute.xlu1 %372 }
 0x115   : > { %v397_v38 = vadd.f32 %v392_v33, %v376_v36  ;;  %v377_v43 = vadd.f32 %v373_v35, %v356_v32  ;;  %v639_v35 = vmul.f32 %v1173_v22, %v1689_v48  ;;  %v1192_v48 = vld [vmem:[%s1811_s3 + $0x90] sm:$0xff] }
 0x118   : > { %v413_v37 = vpop.permute.xlu0 %412  ;;  %v394_v40 = vpop.permute.xlu1 %393 }
 0x119   : > { %v418_v39 = vadd.f32 %v413_v37, %v397_v38  ;;  %v398_v49 = vadd.f32 %v394_v40, %v377_v43 }
 0x11c   : > { %v434_v44 = vpop.permute.xlu0 %433  ;;  %v415_v45 = vpop.permute.xlu1 %414 }
 0x11d   : > { %v439_v46 = vadd.f32 %v434_v44, %v418_v39  ;;  %v419_v50 = vadd.f32 %v415_v45, %v398_v49 }
 0x11f   : > { %v450_v42 = vadd.f32 %v448_v47, %v439_v46 }
 0x120   : > { %v466_v51 = vpop.permute.xlu0 %465  ;;  %v436_v52 = vpop.permute.xlu1 %435 }
 0x121   : > { %v440_v54 = vadd.f32 %v436_v52, %v419_v50  ;;  %v471_v62 = vadd.f32 %v466_v51, %v450_v42  ;;  %v1193_v50 = vld [vmem:[%s1811_s3 + $0x98] sm:$0xff]  ;;  %v1202_v51 = vld [vmem:[%s1811_s3 + $0xd0] sm:$0xff] }
 0x122   : > { %v1203_v52 = vld [vmem:[%s1811_s3 + $0xd8] sm:$0xff] }
 0x123   : > { %v451_v56 = vadd.f32 %v449_v55, %v440_v54 }
 0x124   : > { %v487_v59 = vpop.permute.xlu0 %486  ;;  %v468_v60 = vpop.permute.xlu1 %467 }
 0x125   : > { %v492_v0 = vadd.f32 %v487_v59, %v471_v62  ;;  %v472_v4 = vadd.f32 %v468_v60, %v451_v56  ;;  %v1194_v56 = vld [vmem:[%s1811_s3 + $0xa0] sm:$0xff]  ;;  %v1367_v59 = vpack.c.bf16 %v1193_v50, %v1192_v48  ;;  %v1383_v60 = vpack.c.bf16 %v1203_v52, %v1202_v51  ;;  %v1195_v62 = vld [vmem:[%s1811_s3 + $0xa8] sm:$0xff] }
 0x128   : > { %v508_v63 = vpop.permute.xlu0 %507  ;;  %v489_v1 = vpop.permute.xlu1 %488 }
 0x129   : > { %v513_v53 = vadd.f32 %v508_v63, %v492_v0  ;;  %v493_v10 = vadd.f32 %v489_v1, %v472_v4  ;;  %v1204_v63 = vld [vmem:[%s1811_s3 + $0xe0] sm:$0xff]  ;;  %v1205_v0 = vld [vmem:[%s1811_s3 + $0xe8] sm:$0xff]  ;;  %v1371_v1 = vpack.c.bf16 %v1195_v62, %v1194_v56  ;;  %v1197_v4 = vld [vmem:[%s1811_s3 + $0xb8] sm:$0xff] }
 0x12a   : > { %v1387_v2 = vpack.c.bf16 %v1205_v0, %v1204_v63 }
 0x12c   : > { %v529_v5 = vpop.permute.xlu0 %528  ;;  %v510_v6 = vpop.permute.xlu1 %509 }
 0x12d   : > { %v534_v8 = vadd.f32 %v529_v5, %v513_v53  ;;  %v514_v11 = vadd.f32 %v510_v6, %v493_v10  ;;  %v1196_v53 = vld [vmem:[%s1811_s3 + $0xb0] sm:$0xff] }
 0x12e   : > { %v1375_v5 = vpack.c.bf16 %v1197_v4, %v1196_v53 }
 0x12f   : > { %v545_v57 = vadd.f32 %v543_v9, %v534_v8 }
 0x130   : > { %v561_v12 = vpop.permute.xlu0 %560  ;;  %v531_v13 = vpop.permute.xlu1 %530 }
 0x131   : > { %v535_v14 = vadd.f32 %v531_v13, %v514_v11  ;;  %v566_v19 = vadd.f32 %v561_v12, %v545_v57 }
 0x133   : > { %v546_v16 = vadd.f32 %v544_v15, %v535_v14 }
 0x134   : > { %v582_v17 = vpop.permute.xlu0 %581  ;;  %v563_v18 = vpop.permute.xlu1 %562 }
 0x135   : > { %v587_v20 = vadd.f32 %v582_v17, %v566_v19  ;;  %v567_v23 = vadd.f32 %v563_v18, %v546_v16  ;;  %v1210_v18 = vld [vmem:[%s1812_s4] ss:$0 sm:$0xff] }
 0x138   : > { %v603_v26 = vpop.permute.xlu0 %602  ;;  %v584_v21 = vpop.permute.xlu1 %583 }
 0x139   : > { %v608_v3 = vadd.f32 %v603_v26, %v587_v20  ;;  %v588_v28 = vadd.f32 %v584_v21, %v567_v23 }
 0x13c   : > { %v624_v24 = vpop.permute.xlu0 %623  ;;  %v605_v25 = vpop.permute.xlu1 %604 }
 0x13d   : > { %v629_v27 = vadd.f32 %v624_v24, %v608_v3  ;;  %v609_v30 = vadd.f32 %v605_v25, %v588_v28 }
 0x13f   : > { %v640_v7 = vadd.f32 %v638_v29, %v629_v27 }
 0x140   : > { %v656_v31 = vpop.permute.xlu0 %655  ;;  %v626_v32 = vpop.permute.xlu1 %625 }
 0x141   : > { %v630_v33 = vadd.f32 %v626_v32, %v609_v30  ;;  %v661_v40 = vadd.f32 %v656_v31, %v640_v7 }
 0x143   : > { %v641_v36 = vadd.f32 %v639_v35, %v630_v33 }
 0x144   : > { %v677_v37 = vpop.permute.xlu0 %676  ;;  %v658_v38 = vpop.permute.xlu1 %657 }
 0x145   : > { %v682_v39 = vadd.f32 %v677_v37, %v661_v40  ;;  %v662_v45 = vadd.f32 %v658_v38, %v641_v36 }
 0x148   : > { %v698_v41 = vpop.permute.xlu0 %697  ;;  %v679_v43 = vpop.permute.xlu1 %678 }
 0x149   : > { %v703_v44 = vadd.f32 %v698_v41, %v682_v39  ;;  %v683_v49 = vadd.f32 %v679_v43, %v662_v45 }
 0x14c   : > { %v719_v46 = vpop.permute.xlu0 %718  ;;  %v700_v34 = vpop.permute.xlu1 %699 }
 0x14d   : > { %v724_v47 = vadd.f32 %v719_v46, %v703_v44  ;;  %v704_v42 = vadd.f32 %v700_v34, %v683_v49 }
 0x14f   : > { %1271 = vmatprep.mubr.msk.f32.mxu0 %vm734_vm3, %v724_v47  ;;  %1290 = vmatprep.mubr.msk.f32.mxu1 %vm734_vm3, %v724_v47 }
 0x150   : > { %v721_v54 = vpop.permute.xlu1 %720 }
 0x151   : > { %v725_v55 = vadd.f32 %v721_v54, %v704_v42 }
 0x153   : > { %1272 = vmatmul.mubr.msk.f32.vlgmr.msra.gmra.mrb[0].mxu0 %vm734_vm3, %v725_v55  ;;  %1291 = vmatmul.mubr.msk.f32.vlgmr.msra.gmra.mrb[0].mxu1 %vm734_vm3, %v725_v55 }
 0x154   : > { %1366 = vmatpush3.bf16.msra.mxu0 %v1704_v58  ;;  %1382 = vmatpush3.bf16.msra.mxu1 %v1710_v61  ;;  %v1206_v58 = vld [vmem:[%s1811_s3 + $0xf0] sm:$0xff]  ;;  %v1207_v61 = vld [vmem:[%s1811_s3 + $0xf8] sm:$0xff] }
 0x155   : > { %1309 = vmatprep.mubr.msk.f32.mxu0 %vm734_vm3, %v724_v47  ;;  %1328 = vmatprep.mubr.msk.f32.mxu1 %vm734_vm3, %v724_v47  ;;  %v1391_v6 = vpack.c.bf16 %v1207_v61, %v1206_v58 }
 0x156   : > { %1368 = vmatprep.subr.bf16.mxu0 %v1367_v59  ;;  %1384 = vmatprep.subr.bf16.mxu1 %v1383_v60 }
 0x158   : > { %1370 = vmatpush3.bf16.msra.mxu0 %v1367_v59  ;;  %1386 = vmatpush3.bf16.msra.mxu1 %v1383_v60 }
 0x159   : > { %1372 = vmatprep.subr.bf16.mxu0 %v1371_v1  ;;  %1388 = vmatprep.subr.bf16.mxu1 %v1387_v2 }
 0x15c   : > { %1374 = vmatpush3.bf16.msra.mxu0 %v1371_v1  ;;  %1390 = vmatpush3.bf16.msra.mxu1 %v1387_v2 }
 0x15d   : > { %1376 = vmatprep.subr.bf16.mxu0 %v1375_v5  ;;  %1392 = vmatprep.subr.bf16.mxu1 %v1391_v6 }
 0x160   : > { %1378 = vmatpush3.bf16.msra.mxu0 %v1375_v5  ;;  %1394 = vmatpush3.bf16.msra.mxu1 %v1391_v6 }
 0x163   : > { %1310 = vmatmul.mubr.msk.f32.vlgmr.msra.gmra.mrb[2].mxu0 %vm734_vm3, %v725_v55  ;;  %1329 = vmatmul.mubr.msk.f32.vlgmr.msra.gmra.mrb[2].mxu1 %vm734_vm3, %v725_v55 }
 0x226   : > { %v1273_v8 = vpop.f32.mrb[0].mxu0  ;;  %v1292_v9 = vpop.f32.mrb[0].mxu1 }
 0x227   : > { %v901_v10 = vmax.f32 %v1273_v8, %v1292_v9  ;;  %v807_v57 = vpop.f32.mrb[1].mxu0  ;;  %v891_v11 = vpop.f32.mrb[1].mxu1 }
 0x228   : > { %v900_v12 = vmax.f32 %v807_v57, %v891_v11 }
 0x236   : > { %v1311_v13 = vpop.f32.mrb[2].mxu0  ;;  %v1330_v14 = vpop.f32.mrb[2].mxu1 }
 0x237   : > { %v987_v15 = vmax.f32 %v901_v10, %v1311_v13  ;;  %v977_v16 = vpop.f32.mrb[3].mxu0  ;;  %v1063_v17 = vpop.f32.mrb[3].mxu1 }
 0x238   : > { %v986_v19 = vmax.f32 %v900_v12, %v977_v16 }
 0x239   : > { %v1073_v26 = vmax.f32 %v987_v15, %v1330_v14 }
 0x23a   : > { %v1072_v20 = vmax.f32 %v986_v19, %v1063_v17 }
 0x23b   : > { %v1082_v21 = vadd.f32 %v1210_v18, %v1073_v26 }
 0x23c   : > { %v1081_v22 = vadd.f32 %v1210_v18, %v1072_v20 }
 0x23d   : > { %v1084_v3 = vmax.f32 %v1082_v21, 0.0 }
 0x23e   : > { %v1083_v23 = vmax.f32 %v1081_v22, 0.0 }
 0x23f   : > { %1087 = vst.msk [vmem:[%s224_s30 + $0x8] sm:$0xff] %vm1085_vm4, %v1084_v3 }
 0x240   : > { %1086 = vst.msk [vmem:[%s224_s30] sm:$0xff] %vm1085_vm4, %v1083_v23 }
 0x241 PF: > { %s15_s18 = sadd.s32 1, %s1418_s18  }
 0x242   : > { %p12_p4 = scmp.ge.s32.totalorder %s15_s18, 4  }
 0x244   :  { %14 = sbr.rel (!%p12_p4) target bundleno = 1 (0x1), region = 73 }

// kernel: wave_transformer8_forward.8
= control target key start
LH: loop header
LB: loop body
LE: loop exit
PB: predicated region body
PF: predicated region fallthrough
CT: control target
= control target key end

     0   :  { %s4291_s0 = inlined_call_operand.vmem [shape: f32[2,8,32], index: 0, kind: input, shape index: {}]   ;;  %s4292_s1 = inlined_call_operand.vmem [shape: f32[2,16,32], index: 1, kind: input, shape index: {}]   ;;  %s4293_s2 = inlined_call_operand.vmem [shape: f32[32,96], index: 2, kind: input, shape index: {}]   ;;  %s4294_s3 = inlined_call_operand.vmem [shape: f32[1,96], index: 3, kind: input, shape index: {}]   ;;  %s4295_s4 = inlined_call_operand.vmem [shape: f32[32,32], index: 4, kind: input, shape index: {}]   ;;  %s4296_s5 = inlined_call_operand.vmem [shape: f32[1,32], index: 5, kind: input, shape index: {}]   ;;  %s4297_s6 = inlined_call_operand.vmem [shape: f32[32,32], index: 6, kind: input, shape index: {}]   ;;  %s4298_s7 = inlined_call_operand.vmem [shape: f32[1,32], index: 7, kind: input, shape index: {}]   ;;  %s4299_s8 = inlined_call_operand.vmem [shape: f32[32,64], index: 8, kind: input, shape index: {}]   ;;  %s4300_s9 = inlined_call_operand.vmem [shape: f32[1,64], index: 9, kind: input, shape index: {}]   ;;  %s4301_s10 = inlined_call_operand.vmem [shape: f32[32,32], index: 10, kind: input, shape index: {}]   ;;  %s4302_s11 = inlined_call_operand.vmem [shape: f32[1,32], index: 11, kind: input, shape index: {}]   ;;  %s4303_s12 = inlined_call_operand.vmem [shape: f32[1,32], index: 12, kind: input, shape index: {}]   ;;  %s4304_s13 = inlined_call_operand.vmem [shape: f32[1,32], index: 13, kind: input, shape index: {}]   ;;  %s4305_s14 = inlined_call_operand.vmem [shape: f32[1,32], index: 14, kind: input, shape index: {}]   ;;  %s4306_s15 = inlined_call_operand.vmem [shape: f32[1,32], index: 15, kind: input, shape index: {}]   ;;  %s4307_s16 = inlined_call_operand.vmem [shape: f32[1,32], index: 16, kind: input, shape index: {}]   ;;  %s4308_s17 = inlined_call_operand.vmem [shape: f32[1,32], index: 17, kind: input, shape index: {}]   ;;  %s4309_s18 = inlined_call_operand.vmem [shape: f32[32,64], index: 18, kind: input, shape index: {}]   ;;  %s4310_s19 = inlined_call_operand.vmem [shape: f32[1,64], index: 19, kind: input, shape index: {}]   ;;  %s4311_s20 = inlined_call_operand.vmem [shape: f32[64,32], index: 20, kind: input, shape index: {}]   ;;  %s4312_s21 = inlined_call_operand.vmem [shape: f32[1,32], index: 21, kind: input, shape index: {}]   ;;  %s4313_s22 = inlined_call_operand.vmem [shape: f32[2,8,32], index: 22, kind: output, shape index: {}]  }
   0x1   :  { %4326 = sst [smem:[#allocation2_spill]] %s4291_s0 }
   0x2   :  { %4327 = sst [smem:[#allocation3_spill]] %s4292_s1 }
   0x3   :  { %4328 = sst [smem:[#allocation4_spill]] %s4293_s2 }
   0x4   :  { %4329 = sst [smem:[#allocation5_spill]] %s4294_s3  ;;  %s3914_s3 = smov 0  }
   0x5   :  { %4330 = sst [smem:[#allocation6_spill]] %s4295_s4 }
   0x6   :  { %4331 = sst [smem:[#allocation7_spill]] %s4296_s5 }
   0x7   :  { %4332 = sst [smem:[#allocation8_spill]] %s4297_s6 }
   0x8 LB: > { %s3264_s28 = sadd.s32 4294967295, %s3783_s3   ;;  %p3268_p0 = scmp.ge.s32.totalorder %s3783_s3, 1  ;;  %s3783_s3 = sphi %s3914_s3, %s32_s3  }
   0x9   : > { %p621_p1 = scmp.lt.s32.totalorder %s3783_s3, 3 }
   0xb   : > { %p622_p2 = pnand %p3268_p0, %p621_p1 }
   0xc   : > { %s4333_s4 = sld [smem:[#allocation4_spill]] (!%p622_p2)  ;;  %v3785_v3 = vmov (!%p622_p2), 0.0|0.0   ;;  %vm3786_vm0 = vmmov (!%p622_p2), 0   ;;  %v3787_v6 = vmov (!%p622_p2), 0.0   ;;  %p686_p3 = scmp.lt.s32.totalorder (!%p622_p2), %s3264_s28, 1  ;;  %vm713_vm1 = vcmask (!%p622_p2), 261120  }
   0xd   : > { %625 = sbr.rel (%p622_p2) target bundleno = 6207 (0x183f), region = 108  ;;  %3616 = vmatprep.subr.bf16.mxu0 (!%p622_p2), %v3785_v3  ;;  %3425 = vmatprep.mubr.msk.f32.mxu0 (!%p622_p2), %vm3786_vm0, %v3787_v6  ;;  %s4334_s27 = sld [smem:[#allocation2_spill]] (!%p622_p2)  ;;  %vm798_vm2 = vcmask (!%p622_p2), 64512   ;;  %vm2054_vm4 = vcmask (!%p622_p2), 130048   ;;  %vm3094_vm5 = vcmask (!%p622_p2), 523264  }
   0xe   : > { %3433 = vmatprep.subr.mxu1 (!%p622_p2), %v3787_v6  ;;  %3435 = vmatprep.mubr.msk.f32.mxu1 (!%p622_p2), %vm3786_vm0, %v3787_v6  ;;  %s4335_s23 = sld [smem:[#allocation5_spill]] (!%p622_p2)  ;;  %s3788_s1 = smov (!%p622_p2), 64   ;;  %vm4107_vm3 = vmpackc.low (!%p622_p2), %vm798_vm2, %vm798_vm2 }
   0xf   : > { %s4325_s5 = smov (!%p622_p2), 96   ;;  %s4322_s24 = smov (!%p622_p2), 88  }
  0x10   : > { %s3791_s6 = smov (!%p622_p2), 56   ;;  %s4319_s26 = smov (!%p622_p2), 80  }
  0x11   : > { %s3793_s2 = smov (!%p622_p2), 120   ;;  %s4336_s30 = sld [smem:[#allocation6_spill]] (!%p622_p2) }
  0x12   : > { %v702_v0 = vld [vmem:[%s4333_s4] sm:$0xff] (!%p622_p2)  ;;  %v703_v1 = vld [vmem:[%s4333_s4 + $0x8] sm:$0xff] (!%p622_p2)  ;;  %v704_v2 = vld [vmem:[%s4333_s4 + $0x10] sm:$0xff] (!%p622_p2)  ;;  %s4323_s0 = smov (!%p622_p2), 112  }
  0x13   : > { %v3617_v4 = vpack.c.bf16 (!%p622_p2), %v703_v1, %v702_v0  ;;  %v705_v5 = vld [vmem:[%s4333_s4 + $0x18] sm:$0xff] (!%p622_p2) }
  0x14   : > { %v3620_v7 = vpack.c.bf16 %v705_v5, %v704_v2  ;;  %s4350_s28 = smov (!%p686_p3, %s3264_s28), 1  ;;  %v3273_v9 = vld [vmem:[%s4335_s23] ss:$0 sm:$0xff] }
  0x15   : > { %3618 = vmatpush3.bf16.msra.mxu0 %v3617_v4  ;;  %s4317_s25 = sshll.u32 %s4350_s28, 3 }
  0x16   : > { %3619 = vmatprep.subr.bf16.mxu0 %v3785_v3  ;;  %s689_s29 = scalar_lea.vmem %s4334_s27, %s4317_s25  ;;  %s4318_s27 = smov 72  }
  0x17   : > { %v3949_v8 = vld [vmem:[%s689_s29] sm:$0xff]  ;;  %v1202_v49 = vld [vmem:[%s4336_s30 + $0x8] sm:$0xff]  ;;  %s4320_s29 = smov 104   ;;  %s3330_s25 = sshll.u32 %s4350_s28, 4 }
  0x18   : > { %v961_v24 = vld [vmem:[%s4336_s30] sm:$0xff] }
  0x19   : > { %3621 = vmatpush3.bf16.msra.mxu0 %v3620_v7 }
  0x1a   : > { %3428 = vmatprep.subr.mxu0 %v3787_v6 }
  0x1c   : > { %3426 = vmatmul.mubr.msk.f32.vlgmr.msra.gmra.mrb[0].mxu0 %vm713_vm1, %v3949_v8 }
  0x1d   : > { %3430 = vmatprep.mubr.msk.f32.mxu0 %vm3786_vm0, %v3787_v6 }
  0xef   : > { %v783_v10 = vpop.f32.mrb[0].mxu0 }
  0xf0   : > { %v3959_v11 = vadd.f32 %v3273_v9, %v783_v10  ;;  %v3427_v12 = vpop.f32.mrb[1].mxu0 }
  0xf1   : > { %v1443_v12 = vld [vmem:[%s4336_s30 + $0x10] sm:$0xff] }
  0xf2   : > { %885 = vrot.lane.b32.xlu1 %v3959_v11, %s3788_s1  ;;  %796 = vrot.lane.b32.xlu0 %v3959_v11, %s4325_s5  ;;  %s4344_s5 = smov 88  }
  0xf6   : > { %1038 = vrot.lane.b32.xlu1 %v3959_v11, %s4322_s24  ;;  %s4338_s24 = sld [smem:[#allocation3_spill]] }
 0x164   : > { %v886_v13 = vpop.permute.xlu1 %885  ;;  %v797_v14 = vpop.permute.xlu0 %796 }
 0x165   : > { %3429 = vmatpush3.xpose.msk.msra.mxu0 %vm798_vm2, %v797_v14  ;;  %3434 = vmatpush3.msra.mxu1 %v886_v13 }
 0x166   : > { %3443 = vmatprep.subr.mxu1 %v3787_v6  ;;  %3438 = vmatprep.subr.mxu0 %v3787_v6 }
 0x168   : > { %3431 = vmatmul.mubr.msk.f32.vlgmr.msra.gmra.mrb[2].mxu0 %vm798_vm2, %v3959_v11  ;;  %v1039_v25 = vpop.permute.xlu1 %1038 }
 0x169   : > { %3440 = vmatprep.mubr.msk.f32.mxu0 %vm3786_vm0, %v3787_v6  ;;  %3439 = vmatpush3.msra.mxu0 %v961_v24  ;;  %v1684_v24 = vld [vmem:[%s4336_s30 + $0x18] sm:$0xff] }
 0x16a   : > { %3448 = vmatprep.subr.mxu0 %v3787_v6 }
 0x23b   : > { %v869_v15 = vpop.f32.mrb[2].mxu0 }
 0x23c   : > { %v873_v16 = vmul.f32 0.35355338, %v869_v15  ;;  %v3432_v17 = vpop.f32.mrb[3].mxu0 }
 0x23e   : > { %v874_v18 = vsel %vm798_vm2, %v873_v16, -inf }
 0x23f   : > { %875 = vmax.xlane.f32.xlu0 %v874_v18 }
 0x255   : > { %1126 = vrot.lane.b32.xlu0 %v3959_v11, %s3791_s6  ;;  %s3795_s6 = smov 48  }
 0x259   : > { %1279 = vrot.lane.b32.xlu0 %v3959_v11, %s4319_s26 }
 0x2cc   : > { %v876_v19 = vpop.xlane.xlu0 %875 }
 0x2cd   : > { %v877_v20 = vsub.f32 %v873_v16, %v876_v19 }
 0x2cf   : > { %v878_v21 = vmul.f32 1.442695, %v877_v20 }
 0x2d0   : > { %v1127_v31 = vpop.permute.xlu0 %1126 }
 0x2d1   : > { %3739 = vpow2.f32 %v878_v21 }
 0x2d4   : > { %v1280_v44 = vpop.permute.xlu0 %1279 }
 0x2db   : > { %v3740_v22 = vpop.eup %3739 }
 0x2dc   : > { %v880_v23 = vsel %vm798_vm2, %v3740_v22, 0.0 }
 0x2dd   : > { %881 = vadd.xlane.f32.xlu1 %v880_v23 }
 0x2ee   : > { %1036 = vrot.lane.b32.xlu1 %v3959_v11, %s3793_s2 }
 0x36a   : > { %v882_v26 = vpop.xlane.xlu1 %881 }
 0x36b   : > { %3741 = vrcp.f32 %v882_v26 }
 0x36e   : > { %v1037_v29 = vpop.permute.xlu1 %1036 }
 0x375   : > { %v3742_v27 = vpop.eup %3741 }
 0x376   : > { %v884_v28 = vmul.f32 %v3742_v27, %v3740_v22 }
 0x378   : > { %3436 = vmatmul.mubr.msk.f32.vlgmr.msra.gmra.mrb[0].mxu1 %vm798_vm2, %v884_v28 }
 0x379   : > { %3444 = vmatpush3.xpose.msk.msra.mxu1 %vm798_vm2, %v1039_v25  ;;  %3445 = vmatprep.mubr.msk.f32.mxu1 %vm3786_vm0, %v3787_v6 }
 0x37a   : > { %3453 = vmatprep.subr.mxu1 %v3787_v6 }
 0x37c   : > { %3446 = vmatmul.mubr.msk.f32.vlgmr.msra.gmra.mrb[2].mxu1 %vm798_vm2, %v1037_v29 }
 0x37d   : > { %3455 = vmatprep.mubr.msk.f32.mxu1 %vm3786_vm0, %v3787_v6  ;;  %3454 = vmatpush3.msra.mxu1 %v1202_v49 }
 0x37e   : > { %3463 = vmatprep.subr.mxu1 %v3787_v6 }
 0x44b   : > { %v957_v30 = vpop.f32.mrb[0].mxu1 }
 0x44c   : > { %v3437_v32 = vpop.f32.mrb[1].mxu1  ;;  %3441 = vmatmul.mubr.msk.f32.vlgmr.msra.gmra.mrb[4].mxu0 %vm798_vm2, %v957_v30 }
 0x44d   : > { %3449 = vmatpush3.msra.mxu0 %v1127_v31  ;;  %3450 = vmatprep.mubr.msk.f32.mxu0 %vm3786_vm0, %v3787_v6 }
 0x44e   : > { %3458 = vmatprep.subr.mxu0 %v3787_v6 }
 0x44f   : > { %v1110_v33 = vpop.f32.mrb[2].mxu1 }
 0x450   : > { %v1114_v34 = vmul.f32 0.35355338, %v1110_v33  ;;  %v3447_v35 = vpop.f32.mrb[3].mxu1 }
 0x452   : > { %v1115_v36 = vsel %vm798_vm2, %v1114_v34, -inf }
 0x453   : > { %1116 = vmax.xlane.f32.xlu1 %v1115_v36 }
 0x4e0   : > { %v1117_v37 = vpop.xlane.xlu1 %1116 }
 0x4e1   : > { %v1118_v38 = vsub.f32 %v1114_v34, %v1117_v37 }
 0x4e3   : > { %v1119_v39 = vmul.f32 1.442695, %v1118_v38  ;;  %v1874_v38 = vld [vmem:[%s4299_s8] sm:$0xff] }
 0x4e5   : > { %3743 = vpow2.f32 %v1119_v39  ;;  %v1875_v39 = vld [vmem:[%s4299_s8 + $0x8] sm:$0xff] }
 0x4ef   : > { %v3744_v40 = vpop.eup %3743 }
 0x4f0   : > { %v1121_v41 = vsel %vm798_vm2, %v3744_v40, 0.0 }
 0x4f1   : > { %1122 = vadd.xlane.f32.xlu0 %v1121_v41 }
 0x507   : > { %1277 = vrot.lane.b32.xlu0 %v3959_v11, %s4323_s0  ;;  %s694_s0 = scalar_lea.vmem %s4338_s24, %s3330_s25  ;;  %s4343_s25 = smov 112  }
 0x508   : > { %v701_v49 = vld [vmem:[%s694_s0 + $0x8] sm:$0xff] }
 0x51f   : > { %v1031_v42 = vpop.f32.mrb[4].mxu0 }
 0x520   : > { %v3442_v43 = vpop.f32.mrb[5].mxu0 }
 0x57e   : > { %v1123_v45 = vpop.xlane.xlu0 %1122 }
 0x57f   : > { %3745 = vrcp.f32 %v1123_v45  ;;  %v1876_v45 = vld [vmem:[%s4299_s8 + $0x10] sm:$0xff] }
 0x582   : > { %v1278_v48 = vpop.permute.xlu0 %1277 }
 0x589   : > { %v3746_v46 = vpop.eup %3745 }
 0x58a   : > { %v1125_v47 = vmul.f32 %v3746_v46, %v3744_v40  ;;  %v3628_v40 = vpack.c.bf16 %v1875_v39, %v1874_v38  ;;  %v1877_v46 = vld [vmem:[%s4299_s8 + $0x18] sm:$0xff] }
 0x58c   : > { %3451 = vmatmul.mubr.msk.f32.vlgmr.msra.gmra.mrb[6].mxu0 %vm798_vm2, %v1125_v47  ;;  %v3632_v47 = vpack.c.bf16 %v1877_v46, %v1876_v45 }
 0x58d   : > { %3459 = vmatpush3.xpose.msk.msra.mxu0 %vm798_vm2, %v1280_v44  ;;  %3460 = vmatprep.mubr.msk.f32.mxu0 %vm3786_vm0, %v3787_v6 }
 0x58e   : > { %3468 = vmatprep.subr.mxu0 %v3787_v6 }
 0x590   : > { %3461 = vmatmul.mubr.msk.f32.vlgmr.msra.gmra.mrb[8].mxu0 %vm798_vm2, %v1278_v48  ;;  %v700_v48 = vld [vmem:[%s694_s0] sm:$0xff]  ;;  %s4347_s0 = smov 72  }
 0x591   : > { %3470 = vmatprep.mubr.msk.f32.mxu0 %vm3786_vm0, %v3787_v6  ;;  %3469 = vmatpush3.msra.mxu0 %v1443_v12 }
 0x592   : > { %3478 = vmatprep.subr.mxu0 %v3787_v6 }
 0x65f   : > { %v1198_v50 = vpop.f32.mrb[6].mxu0 }
 0x660   : > { %v3452_v51 = vpop.f32.mrb[7].mxu0  ;;  %3456 = vmatmul.mubr.msk.f32.vlgmr.msra.gmra.mrb[4].mxu1 %vm798_vm2, %v1198_v50 }
 0x661   : > { %3465 = vmatprep.mubr.msk.f32.mxu1 %vm3786_vm0, %v3787_v6 }
 0x663   : > { %v1351_v52 = vpop.f32.mrb[8].mxu0 }
 0x664   : > { %v1355_v53 = vmul.f32 0.35355338, %v1351_v52  ;;  %v3462_v54 = vpop.f32.mrb[9].mxu0 }
 0x666   : > { %v1356_v55 = vsel %vm798_vm2, %v1355_v53, -inf }
 0x667   : > { %1357 = vmax.xlane.f32.xlu1 %v1356_v55 }
 0x678   : > { %1367 = vrot.lane.b32.xlu1 %v3959_v11, %s3795_s6  ;;  %s4337_s6 = sld [smem:[#allocation7_spill]] }
 0x67c   : > { %1520 = vrot.lane.b32.xlu1 %v3959_v11, %s4318_s27  ;;  %s4345_s27 = smov 104  }
 0x67e   : > { %v3275_v62 = vld [vmem:[%s4337_s6] ss:$0 sm:$0xff]  ;;  %s3798_s6 = smov 40  }
 0x67f   : > { %v1035_v63 = vadd.f32 %v3275_v62, %v1031_v42  ;;  %v3293_v62 = vld [vmem:[%s4304_s13] ss:$0 sm:$0xff] }
 0x680   : > { %1518 = vrot.lane.b32.xlu1 %v3959_v11, %s4320_s29  ;;  %s4346_s29 = smov 80  }
 0x6f4   : > { %v1358_v56 = vpop.xlane.xlu1 %1357 }
 0x6f5   : > { %v1359_v57 = vsub.f32 %v1355_v53, %v1358_v56 }
 0x6f7   : > { %v1360_v58 = vmul.f32 1.442695, %v1359_v57 }
 0x6f8   : > { %v1368_v59 = vpop.permute.xlu1 %1367 }
 0x6f9   : > { %3747 = vpow2.f32 %v1360_v58  ;;  %3464 = vmatpush3.msra.mxu1 %v1368_v59 }
 0x6fa   : > { %3473 = vmatprep.subr.mxu1 %v3787_v6 }
 0x6fc   : > { %v1521_v7 = vpop.permute.xlu1 %1520 }
 0x700   : > { %v1519_v10 = vpop.permute.xlu1 %1518 }
 0x703   : > { %v3748_v60 = vpop.eup %3747 }
 0x704   : > { %v1362_v61 = vsel %vm798_vm2, %v3748_v60, 0.0 }
 0x705   : > { %1363 = vadd.xlane.f32.xlu0 %v1362_v61 }
 0x733   : > { %v1272_v0 = vpop.f32.mrb[4].mxu1 }
 0x734   : > { %v1276_v1 = vadd.f32 %v1272_v0, %v1035_v63  ;;  %v3457_v2 = vpop.f32.mrb[5].mxu1 }
 0x792   : > { %v1364_v4 = vpop.xlane.xlu0 %1363 }
 0x793   : > { %3749 = vrcp.f32 %v1364_v4 }
 0x79d   : > { %v3750_v5 = vpop.eup %3749 }
 0x79e   : > { %v1366_v9 = vmul.f32 %v3750_v5, %v3748_v60  ;;  %v3292_v60 = vld [vmem:[%s4303_s12] ss:$0 sm:$0xff] }
 0x7a0   : > { %3466 = vmatmul.mubr.msk.f32.vlgmr.msra.gmra.mrb[6].mxu1 %vm798_vm2, %v1366_v9  ;;  %v2393_v9 = vld [vmem:[%s4301_s10 + $0x8] sm:$0xff] }
 0x7a1   : > { %3474 = vmatpush3.xpose.msk.msra.mxu1 %vm798_vm2, %v1521_v7  ;;  %3475 = vmatprep.mubr.msk.f32.mxu1 %vm3786_vm0, %v3787_v6 }
 0x7a2   : > { %3483 = vmatprep.subr.mxu1 %v3787_v6 }
 0x7a4   : > { %3476 = vmatmul.mubr.msk.f32.vlgmr.msra.gmra.mrb[8].mxu1 %vm798_vm2, %v1519_v10 }
 0x7a5   : > { %3485 = vmatprep.mubr.msk.f32.mxu1 %vm3786_vm0, %v3787_v6  ;;  %3484 = vmatpush3.msra.mxu1 %v1684_v24 }
 0x7a6   : > { %3629 = vmatprep.subr.bf16.mxu1 %v3628_v40 }
 0x873   : > { %v1439_v13 = vpop.f32.mrb[6].mxu1 }
 0x874   : > { %v3467_v14 = vpop.f32.mrb[7].mxu1  ;;  %3471 = vmatmul.mubr.msk.f32.vlgmr.msra.gmra.mrb[10].mxu0 %vm798_vm2, %v1439_v13 }
 0x875   : > { %3480 = vmatprep.mubr.msk.f32.mxu0 %vm3786_vm0, %v3787_v6 }
 0x877   : > { %v1592_v15 = vpop.f32.mrb[8].mxu1 }
 0x878   : > { %v1596_v16 = vmul.f32 0.35355338, %v1592_v15  ;;  %v3477_v17 = vpop.f32.mrb[9].mxu1 }
 0x87a   : > { %v1597_v18 = vsel %vm798_vm2, %v1596_v16, -inf }
 0x87b   : > { %1598 = vmax.xlane.f32.xlu1 %v1597_v18 }
 0x908   : > { %v1599_v19 = vpop.xlane.xlu1 %1598 }
 0x909   : > { %v1600_v20 = vsub.f32 %v1596_v16, %v1599_v19  ;;  %v3294_v16 = vld [vmem:[%s4298_s7] ss:$0 sm:$0xff] }
 0x90b   : > { %v1601_v21 = vmul.f32 1.442695, %v1600_v20 }
 0x90d   : > { %3751 = vpow2.f32 %v1601_v21 }
 0x917   : > { %v3752_v22 = vpop.eup %3751 }
 0x918   : > { %v1603_v23 = vsel %vm798_vm2, %v3752_v22, 0.0 }
 0x919   : > { %1604 = vadd.xlane.f32.xlu0 %v1603_v23 }
 0x92f   : > { %1608 = vrot.lane.b32.xlu0 %v3959_v11, %s3798_s6  ;;  %s4339_s6 = sld [smem:[#allocation8_spill]] }
 0x935   : > { %v1790_v50 = vld [vmem:[%s4339_s6] sm:$0xff]  ;;  %v1791_v51 = vld [vmem:[%s4339_s6 + $0x8] sm:$0xff]  ;;  %v1792_v53 = vld [vmem:[%s4339_s6 + $0x10] sm:$0xff] }
 0x936   : > { %v3623_v52 = vpack.c.bf16 %v1791_v51, %v1790_v50  ;;  %v1793_v54 = vld [vmem:[%s4339_s6 + $0x18] sm:$0xff]  ;;  %v2145_v50 = vld [vmem:[%s4301_s10] sm:$0xff] }
 0x937   : > { %v3626_v55 = vpack.c.bf16 %v1793_v54, %v1792_v53 }
 0x947   : > { %v1513_v25 = vpop.f32.mrb[10].mxu0 }
 0x948   : > { %v1517_v26 = vadd.f32 %v1513_v25, %v1276_v1  ;;  %v3472_v27 = vpop.f32.mrb[11].mxu0  ;;  %v3296_v1 = vld [vmem:[%s4300_s9] ss:$0 sm:$0xff] }
 0x9a6   : > { %v1605_v28 = vpop.xlane.xlu0 %1604 }
 0x9a7   : > { %3753 = vrcp.f32 %v1605_v28 }
 0x9aa   : > { %v1609_v29 = vpop.permute.xlu0 %1608 }
 0x9ab   : > { %3479 = vmatpush3.msra.mxu0 %v1609_v29 }
 0x9ac   : > { %3622 = vmatprep.subr.bf16.mxu0 %v3785_v3 }
 0x9b1   : > { %v3754_v30 = vpop.eup %3753 }
 0x9b2   : > { %v1607_v31 = vmul.f32 %v3754_v30, %v3752_v22 }
 0x9b4   : > { %3481 = vmatmul.mubr.msk.f32.vlgmr.msra.gmra.mrb[12].mxu0 %vm798_vm2, %v1607_v31 }
 0x9b5   : > { %3496 = vmatprep.mubr.msk.f32.mxu0 %vm3786_vm0, %v3787_v6  ;;  %3624 = vmatpush3.bf16.msra.mxu0 %v3623_v52 }
 0x9b6   : > { %3625 = vmatprep.subr.bf16.mxu0 %v3785_v3 }
 0x9b9   : > { %3627 = vmatpush3.bf16.msra.mxu0 %v3626_v55 }
 0x9ba   : > { %3636 = vmatprep.subr.bf16.mxu0 %v3785_v3 }
 0xa87   : > { %v1680_v11 = vpop.f32.mrb[12].mxu0 }
 0xa88   : > { %v3482_v32 = vpop.f32.mrb[13].mxu0  ;;  %3486 = vmatmul.mubr.msk.f32.vlgmr.msra.gmra.mrb[10].mxu1 %vm798_vm2, %v1680_v11 }
 0xa89   : > { %3631 = vmatpush3.bf16.msra.mxu1 %v3628_v40  ;;  %3507 = vmatprep.mubr.msk.f32.mxu1 %vm713_vm1, %v700_v48 }
 0xa8a   : > { %3633 = vmatprep.subr.bf16.mxu1 %v3632_v47 }
 0xa8d   : > { %3635 = vmatpush3.bf16.msra.mxu1 %v3632_v47 }
 0xa8e   : > { %3640 = vmatprep.subr.bf16.mxu1 %v3785_v3 }
 0xa90   : > { %3508 = vmatmul.mubr.msk.f32.vlgmr.msra.gmra.mrb[12].mxu1 %vm713_vm1, %v701_v49 }
 0xa91   : > { %3521 = vmatprep.mubr.msk.f32.mxu1 %vm3786_vm0, %v3787_v6 }
 0xb5b   : > { %v1754_v33 = vpop.f32.mrb[10].mxu1 }
 0xb5c   : > { %v1758_v34 = vadd.f32 %v1754_v33, %v1517_v26  ;;  %v3487_v35 = vpop.f32.mrb[11].mxu1 }
 0xb5e   : > { %v1759_v36 = vadd.f32 %v1758_v34, %v3949_v8 }
 0xb60   : > { %v1760_v37 = vsel %vm713_vm1, %v1759_v36, 0.0 }
 0xb61   : > { %1761 = vadd.xlane.f32.xlu0 %v1760_v37 }
 0xb63   : > { %v3509_v2 = vpop.f32.mrb[12].mxu1 }
 0xb64   : > { %v1963_v4 = vadd.f32 %v3509_v2, %v3296_v1  ;;  %v1957_v5 = vpop.f32.mrb[13].mxu1 }
 0xb65   : > { %v1958_v7 = vadd.f32 %v3296_v1, %v1957_v5 }
 0xb67   : > { %v4111_v10 = vpack.i.bf16 %v1963_v4, %v1958_v7  ;;  %v3637_v12 = vpack.c.bf16 %v1963_v4, %v1958_v7 }
 0xbee   : > { %v1762_v41 = vpop.xlane.xlu0 %1761 }
 0xbef   : > { %v1764_v42 = vmul.f32 0.03125, %v1762_v41 }
 0xbf1   : > { %v1765_v43 = vsub.f32 %v1759_v36, %v1764_v42 }
 0xbf3   : > { %v1766_v44 = vmul.f32 %v1765_v43, %v1765_v43 }
 0xbf5   : > { %v1767_v8 = vsel %vm713_vm1, %v1766_v44, 0.0 }
 0xbf6   : > { %1768 = vadd.xlane.f32.xlu1 %v1767_v8 }
 0xc07   : > { %3705 = vrot.lane.b32.xlu1 %v4111_v10, %s3793_s2 }
 0xc83   : > { %v1769_v56 = vpop.xlane.xlu1 %1768 }
 0xc84   : > { %v1770_v57 = vmul.f32 0.03125, %v1769_v56 }
 0xc86   : > { %v1771_v58 = vadd.f32 1e-05, %v1770_v57 }
 0xc87   : > { %v3706_v13 = vpop.permute.xlu1 %3705 }
 0xc88   : > { %3755 = vrsqrt.f32 %v1771_v58  ;;  %v3708_v14 = vunpack.i.h.bf16 %v3706_v13  ;;  %v3707_v15 = vunpack.i.l.bf16 %v3706_v13 }
 0xc8a   : > { %v3644_v18 = vpack.c.bf16 %v3708_v14, %v3707_v15 }
 0xc92   : > { %v3756_v59 = vpop.eup %3755 }
 0xc93   : > { %v1773_v61 = vmul.f32 %v3756_v59, %v1765_v43 }
 0xc95   : > { %v1781_v63 = vmul.f32 %v3292_v60, %v1773_v61 }
 0xc97   : > { %v4096_v0 = vadd.f32 %v3293_v62, %v1781_v63 }
 0xc99   : > { %3497 = vmatmul.mubr.msk.f32.vlgmr.msra.gmra.mrb[14].mxu0 %vm713_vm1, %v4096_v0 }
 0xc9a   : > { %3514 = vmatprep.mubr.msk.f32.mxu0 %vm3786_vm0, %v3787_v6  ;;  %3639 = vmatpush3.bf16.xpose.msk.msra.mxu0 %vm4107_vm3, %v3637_v12 }
 0xc9b   : > { %3643 = vmatprep.subr.bf16.mxu0 %v3785_v3 }
 0xd6c   : > { %v1870_v17 = vpop.f32.mrb[14].mxu0 }
 0xd6d   : > { %v4121_v19 = vadd.f32 %v3294_v16, %v1870_v17  ;;  %v3498_v20 = vpop.f32.mrb[15].mxu0 }
 0xd6f   : > { %2220 = vrot.lane.b32.xlu1 %v4121_v19, %s3793_s2  ;;  %3515 = vmatmul.mubr.msk.f32.vlgmr.msra.gmra.mrb[16].mxu0 %vm798_vm2, %v4121_v19  ;;  %s4342_s2 = smov 96  }
 0xd70   : > { %3646 = vmatpush3.bf16.xpose.msk.msra.mxu0 %vm4107_vm3, %v3644_v18  ;;  %3533 = vmatprep.mubr.msk.f32.mxu0 %vm3786_vm0, %v3787_v6 }
 0xd71   : > { %3650 = vmatprep.subr.bf16.mxu0 %v3785_v3 }
 0xde1   : > { %v2221_v21 = vpop.permute.xlu1 %2220 }
 0xde2   : > { %3534 = vmatmul.mubr.msk.f32.vlgmr.msra.gmra.mrb[18].mxu0 %vm798_vm2, %v2221_v21 }
 0xde3   : > { %3552 = vmatprep.mubr.msk.f32.mxu0 %vm3786_vm0, %v3787_v6 }
 0xe42   : > { %v2049_v22 = vpop.f32.mrb[16].mxu0 }
 0xe43   : > { %v2053_v23 = vmul.f32 0.35355338, %v2049_v22  ;;  %v3516_v24 = vpop.f32.mrb[17].mxu0 }
 0xe45   : > { %v2055_v25 = vsel %vm2054_vm4, %v2053_v23, -inf }
 0xe46   : > { %2056 = vmax.xlane.f32.xlu1 %v2055_v25 }
 0xeb5   : > { %v2298_v26 = vpop.f32.mrb[18].mxu0 }
 0xeb6   : > { %v3535_v27 = vpop.f32.mrb[19].mxu0  ;;  %v2302_v32 = vmul.f32 0.35355338, %v2298_v26 }
 0xeb8   : > { %v2303_v33 = vsel %vm2054_vm4, %v2302_v32, -inf }
 0xed3   : > { %v2057_v28 = vpop.xlane.xlu1 %2056 }
 0xed4   : > { %v2058_v29 = vsub.f32 %v2053_v23, %v2057_v28 }
 0xed6   : > { %v2059_v30 = vmul.f32 1.442695, %v2058_v29 }
 0xed8   : > { %3757 = vpow2.f32 %v2059_v30 }
 0xee2   : > { %v3758_v31 = vpop.eup %3757 }
 0xee3   : > { %v2061_v11 = vsel %vm2054_vm4, %v3758_v31, 0.0 }
 0xee4   : > { %2062 = vadd.xlane.f32.xlu0 %v2061_v11 }
 0xefa   : > { %3710 = vrot.lane.b32.xlu0 %v4111_v10, %s4342_s2 }
 0xefe   : > { %3715 = vrot.lane.b32.xlu0 %v4111_v10, %s4343_s25 }
 0xf02   : > { %2468 = vrot.lane.b32.xlu0 %v4121_v19, %s4343_s25 }
 0xf21   : > { %2304 = vmax.xlane.f32.xlu0 %v2303_v33 }
 0xf71   : > { %v2063_v34 = vpop.xlane.xlu0 %2062 }
 0xf72   : > { %3759 = vrcp.f32 %v2063_v34 }
 0xf75   : > { %v3711_v35 = vpop.permute.xlu0 %3710 }
 0xf76   : > { %v3713_v36 = vunpack.i.h.bf16 %v3711_v35  ;;  %v3712_v37 = vunpack.i.l.bf16 %v3711_v35 }
 0xf78   : > { %v3641_v38 = vpack.c.bf16 %v3713_v36, %v3712_v37  ;;  %v2641_v36 = vld [vmem:[%s4301_s10 + $0x10] sm:$0xff]  ;;  %v3299_v37 = vld [vmem:[%s4302_s11] ss:$0 sm:$0xff] }
 0xf79   : > { %v3716_v39 = vpop.permute.xlu0 %3715 }
 0xf7a   : > { %v3718_v40 = vunpack.i.h.bf16 %v3716_v39  ;;  %v3717_v41 = vunpack.i.l.bf16 %v3716_v39  ;;  %3642 = vmatpush3.bf16.msra.mxu1 %v3641_v38 }
 0xf7b   : > { %3524 = vmatprep.subr.mxu1 %v3787_v6 }
 0xf7c   : > { %v3760_v42 = vpop.eup %3759  ;;  %v3651_v43 = vpack.c.bf16 %v3718_v40, %v3717_v41 }
 0xf7d   : > { %v2065_v44 = vmul.f32 %v3760_v42, %v3758_v31  ;;  %v2469_v8 = vpop.permute.xlu0 %2468 }
 0xf7e   : > { %3653 = vmatpush3.bf16.xpose.msk.msra.mxu0 %vm4107_vm3, %v3651_v43 }
 0xf7f   : > { %3522 = vmatmul.mubr.msk.f32.vlgmr.msra.gmra.mrb[14].mxu1 %vm2054_vm4, %v2065_v44  ;;  %3657 = vmatprep.subr.bf16.mxu0 %v3785_v3 }
 0xf80   : > { %3526 = vmatprep.mubr.msk.f32.mxu1 %vm3786_vm0, %v3787_v6  ;;  %3525 = vmatpush3.msra.mxu1 %v2145_v50 }
 0xf81   : > { %3647 = vmatprep.subr.bf16.mxu1 %v3785_v3 }
 0xf85   : > { %3553 = vmatmul.mubr.msk.f32.vlgmr.msra.gmra.mrb[20].mxu0 %vm798_vm2, %v2469_v8 }
 0xf86   : > { %3571 = vmatprep.mubr.msk.f32.mxu0 %vm3786_vm0, %v3787_v6 }
 0xfae   : > { %v2305_v45 = vpop.xlane.xlu0 %2304 }
 0xfaf   : > { %v2306_v46 = vsub.f32 %v2302_v32, %v2305_v45 }
 0xfb1   : > { %v2307_v47 = vmul.f32 1.442695, %v2306_v46 }
 0xfb3   : > { %3761 = vpow2.f32 %v2307_v47 }
 0xfbd   : > { %v3762_v48 = vpop.eup %3761 }
 0xfbe   : > { %v2309_v49 = vsel %vm2054_vm4, %v3762_v48, 0.0 }
 0xfbf   : > { %2310 = vadd.xlane.f32.xlu1 %v2309_v49  ;;  %v2889_v49 = vld [vmem:[%s4301_s10 + $0x18] sm:$0xff] }
 0xfd0   : > { %3720 = vrot.lane.b32.xlu1 %v4111_v10, %s4344_s5  ;;  %s4348_s5 = sshll.u32 %s4350_s28, 3 }
 0xfd4   : > { %3725 = vrot.lane.b32.xlu1 %v4111_v10, %s4345_s27 }
 0xfd8   : > { %2716 = vrot.lane.b32.xlu1 %v4121_v19, %s4345_s27  ;;  %s698_s27 = scalar_lea.vmem %s4313_s22, %s4348_s5 }
0x104c   : > { %v2311_v51 = vpop.xlane.xlu1 %2310 }
0x104d   : > { %3763 = vrcp.f32 %v2311_v51 }
0x1050   : > { %v3721_v52 = vpop.permute.xlu1 %3720 }
0x1051   : > { %v3723_v53 = vunpack.i.h.bf16 %v3721_v52  ;;  %v3722_v54 = vunpack.i.l.bf16 %v3721_v52 }
0x1052   : > { %v2141_v55 = vpop.f32.mrb[14].mxu1 }
0x1053   : > { %v3648_v56 = vpack.c.bf16 %v3723_v53, %v3722_v54  ;;  %v3523_v57 = vpop.f32.mrb[15].mxu1  ;;  %3527 = vmatmul.mubr.msk.f32.vlgmr.msra.gmra.mrb[16].mxu1 %vm798_vm2, %v2141_v55 }
0x1054   : > { %v3726_v58 = vpop.permute.xlu1 %3725  ;;  %3540 = vmatprep.mubr.msk.f32.mxu1 %vm3786_vm0, %v3787_v6 }
0x1055   : > { %v3728_v59 = vunpack.i.h.bf16 %v3726_v58  ;;  %v3727_v60 = vunpack.i.l.bf16 %v3726_v58  ;;  %3649 = vmatpush3.bf16.msra.mxu1 %v3648_v56 }
0x1056   : > { %3543 = vmatprep.subr.mxu1 %v3787_v6 }
0x1057   : > { %v3764_v61 = vpop.eup %3763  ;;  %v3658_v62 = vpack.c.bf16 %v3728_v59, %v3727_v60 }
0x1058   : > { %v2313_v63 = vmul.f32 %v3764_v61, %v3762_v48  ;;  %v2546_v1 = vpop.f32.mrb[20].mxu0  ;;  %v2717_v7 = vpop.permute.xlu1 %2716 }
0x1059   : > { %v2550_v2 = vmul.f32 0.35355338, %v2546_v1  ;;  %v3554_v4 = vpop.f32.mrb[21].mxu0  ;;  %3660 = vmatpush3.bf16.xpose.msk.msra.mxu0 %vm4107_vm3, %v3658_v62 }
0x105a   : > { %3541 = vmatmul.mubr.msk.f32.vlgmr.msra.gmra.mrb[18].mxu1 %vm2054_vm4, %v2313_v63  ;;  %3664 = vmatprep.subr.bf16.mxu0 %v3785_v3 }
0x105b   : > { %v2551_v5 = vsel %vm2054_vm4, %v2550_v2, -inf  ;;  %3545 = vmatprep.mubr.msk.f32.mxu1 %vm3786_vm0, %v3787_v6  ;;  %3544 = vmatpush3.msra.mxu1 %v2393_v9  ;;  %v3079_v9 = vld [vmem:[%s4311_s20] sm:$0xff] }
0x105c   : > { %2552 = vmax.xlane.f32.xlu1 %v2551_v5  ;;  %3654 = vmatprep.subr.bf16.mxu1 %v3785_v3  ;;  %v2997_v5 = vld [vmem:[%s4309_s18 + $0x18] sm:$0xff] }
0x1060   : > { %3572 = vmatmul.mubr.msk.f32.vlgmr.msra.gmra.mrb[22].mxu0 %vm798_vm2, %v2717_v7 }
0x1061   : > { %3594 = vmatprep.mubr.msk.f32.mxu0 %vm3786_vm0, %v3787_v6 }
0x10e9   : > { %v2553_v12 = vpop.xlane.xlu1 %2552 }
0x10ea   : > { %v2554_v13 = vsub.f32 %v2550_v2, %v2553_v12  ;;  %v2994_v2 = vld [vmem:[%s4309_s18] sm:$0xff]  ;;  %v3080_v12 = vld [vmem:[%s4311_s20 + $0x8] sm:$0xff] }
0x10ec   : > { %v2555_v14 = vmul.f32 1.442695, %v2554_v13  ;;  %v3081_v13 = vld [vmem:[%s4311_s20 + $0x10] sm:$0xff] }
0x10ee   : > { %3765 = vpow2.f32 %v2555_v14  ;;  %v3671_v14 = vpack.c.bf16 %v3080_v12, %v3079_v9 }
0x10f8   : > { %v3766_v15 = vpop.eup %3765 }
0x10f9   : > { %v2557_v16 = vsel %vm2054_vm4, %v3766_v15, 0.0 }
0x10fa   : > { %2558 = vadd.xlane.f32.xlu0 %v2557_v16 }
0x1110   : > { %3730 = vrot.lane.b32.xlu0 %v4111_v10, %s4346_s29 }
0x1126   : > { %v2215_v17 = vpop.f32.mrb[16].mxu1 }
0x1127   : > { %v3528_v18 = vpop.f32.mrb[17].mxu1  ;;  %v2219_v38 = vadd.f32 %v3299_v37, %v2215_v17  ;;  %v3083_v17 = vld [vmem:[%s4311_s20 + $0x20] sm:$0xff] }
0x1128   : > { %v3084_v18 = vld [vmem:[%s4311_s20 + $0x28] sm:$0xff] }
0x112d   : > { %v2389_v19 = vpop.f32.mrb[18].mxu1 }
0x112e   : > { %v3542_v20 = vpop.f32.mrb[19].mxu1  ;;  %3546 = vmatmul.mubr.msk.f32.vlgmr.msra.gmra.mrb[20].mxu1 %vm798_vm2, %v2389_v19  ;;  %v3677_v19 = vpack.c.bf16 %v3084_v18, %v3083_v17 }
0x112f   : > { %3559 = vmatprep.mubr.msk.f32.mxu1 %vm3786_vm0, %v3787_v6 }
0x1133   : > { %v2794_v21 = vpop.f32.mrb[22].mxu0 }
0x1134   : > { %v2798_v22 = vmul.f32 0.35355338, %v2794_v21  ;;  %v3573_v23 = vpop.f32.mrb[23].mxu0 }
0x1136   : > { %v2799_v24 = vsel %vm2054_vm4, %v2798_v22, -inf }
0x1137   : > { %2800 = vmax.xlane.f32.xlu0 %v2799_v24  ;;  %v3320_v24 = vld [vmem:[%s4305_s14] ss:$0 sm:$0xff] }
0x1187   : > { %v2559_v25 = vpop.xlane.xlu0 %2558 }
0x1188   : > { %3767 = vrcp.f32 %v2559_v25 }
0x118b   : > { %v3731_v26 = vpop.permute.xlu0 %3730 }
0x118c   : > { %v3733_v27 = vunpack.i.h.bf16 %v3731_v26  ;;  %v3732_v28 = vunpack.i.l.bf16 %v3731_v26  ;;  %v3321_v26 = vld [vmem:[%s4306_s15] ss:$0 sm:$0xff] }
0x118e   : > { %v3655_v29 = vpack.c.bf16 %v3733_v27, %v3732_v28 }
0x1190   : > { %3656 = vmatpush3.bf16.msra.mxu1 %v3655_v29  ;;  %v3086_v29 = vld [vmem:[%s4311_s20 + $0x38] sm:$0xff] }
0x1191   : > { %3562 = vmatprep.subr.mxu1 %v3787_v6 }
0x1192   : > { %v3768_v30 = vpop.eup %3767 }
0x1193   : > { %v2561_v31 = vmul.f32 %v3768_v30, %v3766_v15  ;;  %v3082_v15 = vld [vmem:[%s4311_s20 + $0x18] sm:$0xff] }
0x1194   : > { %v3674_v16 = vpack.c.bf16 %v3082_v15, %v3081_v13 }
0x1195   : > { %3560 = vmatmul.mubr.msk.f32.vlgmr.msra.gmra.mrb[22].mxu1 %vm2054_vm4, %v2561_v31  ;;  %v3322_v31 = vld [vmem:[%s4310_s19] ss:$0 sm:$0xff] }
0x1196   : > { %3564 = vmatprep.mubr.msk.f32.mxu1 %vm3786_vm0, %v3787_v6  ;;  %3563 = vmatpush3.msra.mxu1 %v2641_v36 }
0x1197   : > { %3661 = vmatprep.subr.bf16.mxu1 %v3785_v3 }
0x11c4   : > { %v2801_v11 = vpop.xlane.xlu0 %2800 }
0x11c5   : > { %v2802_v32 = vsub.f32 %v2798_v22, %v2801_v11 }
0x11c7   : > { %v2803_v33 = vmul.f32 1.442695, %v2802_v32 }
0x11c9   : > { %3769 = vpow2.f32 %v2803_v33 }
0x11d3   : > { %v3770_v34 = vpop.eup %3769 }
0x11d4   : > { %v2805_v35 = vsel %vm2054_vm4, %v3770_v34, 0.0 }
0x11d5   : > { %2806 = vadd.xlane.f32.xlu1 %v2805_v35  ;;  %v3324_v35 = vld [vmem:[%s4312_s21] ss:$0 sm:$0xff] }
0x11e6   : > { %3735 = vrot.lane.b32.xlu1 %v4111_v10, %s4347_s0 }
0x1201   : > { %v2463_v39 = vpop.f32.mrb[20].mxu1 }
0x1202   : > { %v2467_v40 = vadd.f32 %v2463_v39, %v2219_v38  ;;  %v3547_v41 = vpop.f32.mrb[21].mxu1 }
0x1262   : > { %v2807_v42 = vpop.xlane.xlu1 %2806 }
0x1263   : > { %3771 = vrcp.f32 %v2807_v42 }
0x1266   : > { %v3736_v43 = vpop.permute.xlu1 %3735 }
0x1267   : > { %v3738_v44 = vunpack.i.h.bf16 %v3736_v43  ;;  %v3737_v10 = vunpack.i.l.bf16 %v3736_v43 }
0x1268   : > { %v2637_v8 = vpop.f32.mrb[22].mxu1 }
0x1269   : > { %v3662_v45 = vpack.c.bf16 %v3738_v44, %v3737_v10  ;;  %v3561_v46 = vpop.f32.mrb[23].mxu1  ;;  %3565 = vmatmul.mubr.msk.f32.vlgmr.msra.gmra.mrb[24].mxu1 %vm798_vm2, %v2637_v8 }
0x126a   : > { %3578 = vmatprep.mubr.msk.f32.mxu1 %vm3786_vm0, %v3787_v6 }
0x126b   : > { %3663 = vmatpush3.bf16.msra.mxu1 %v3662_v45 }
0x126c   : > { %3581 = vmatprep.subr.mxu1 %v3787_v6 }
0x126d   : > { %v3772_v47 = vpop.eup %3771 }
0x126e   : > { %v2809_v48 = vmul.f32 %v3772_v47, %v3770_v34 }
0x1270   : > { %3579 = vmatmul.mubr.msk.f32.vlgmr.msra.gmra.mrb[26].mxu1 %vm2054_vm4, %v2809_v48  ;;  %v3326_v48 = vld [vmem:[%s4307_s16] ss:$0 sm:$0xff] }
0x1271   : > { %3583 = vmatprep.mubr.msk.f32.mxu1 %vm3786_vm0, %v3787_v6  ;;  %3582 = vmatpush3.msra.mxu1 %v2889_v49 }
0x1272   : > { %3670 = vmatprep.subr.bf16.mxu1 %v3785_v3 }
0x133c   : > { %v2711_v50 = vpop.f32.mrb[24].mxu1 }
0x133d   : > { %v2715_v51 = vadd.f32 %v2711_v50, %v2467_v40  ;;  %v3566_v52 = vpop.f32.mrb[25].mxu1  ;;  %v3327_v50 = vld [vmem:[%s4308_s17] ss:$0 sm:$0xff] }
0x1343   : > { %v2885_v53 = vpop.f32.mrb[26].mxu1 }
0x1344   : > { %v3580_v54 = vpop.f32.mrb[27].mxu1  ;;  %3584 = vmatmul.mubr.msk.f32.vlgmr.msra.gmra.mrb[28].mxu1 %vm798_vm2, %v2885_v53 }
0x1345   : > { %3613 = vmatprep.mubr.msk.f32.mxu1 %vm3786_vm0, %v3787_v6  ;;  %v2995_v6 = vld [vmem:[%s4309_s18 + $0x8] sm:$0xff]  ;;  %3672 = vmatpush3.bf16.msra.mxu1 %v3671_v14 }
0x1346   : > { %v3665_v4 = vpack.c.bf16 %v2995_v6, %v2994_v2  ;;  %3673 = vmatprep.subr.bf16.mxu1 %v3785_v3 }
0x1348   : > { %3666 = vmatpush3.bf16.msra.mxu0 %v3665_v4 }
0x1349   : > { %3667 = vmatprep.subr.bf16.mxu0 %v3785_v3  ;;  %3675 = vmatpush3.bf16.msra.mxu1 %v3674_v16 }
0x134a   : > { %3676 = vmatprep.subr.bf16.mxu1 %v3785_v3 }
0x134d   : > { %3678 = vmatpush3.bf16.msra.mxu1 %v3677_v19 }
0x134e   : > { %3679 = vmatprep.subr.bf16.mxu1 %v3785_v3  ;;  %v3085_v3 = vld [vmem:[%s4311_s20 + $0x30] sm:$0xff] }
0x134f   : > { %v3680_v30 = vpack.c.bf16 %v3086_v29, %v3085_v3 }
0x1351   : > { %3681 = vmatpush3.bf16.msra.mxu1 %v3680_v30 }
0x1417   : > { %v2959_v55 = vpop.f32.mrb[28].mxu1 }
0x1418   : > { %v2963_v56 = vadd.f32 %v2959_v55, %v2715_v51  ;;  %v3585_v57 = vpop.f32.mrb[29].mxu1 }
0x141a   : > { %v2964_v58 = vadd.f32 %v2963_v56, %v4096_v0  ;;  %v2996_v0 = vld [vmem:[%s4309_s18 + $0x10] sm:$0xff] }
0x141b   : > { %v3668_v7 = vpack.c.bf16 %v2997_v5, %v2996_v0 }
0x141c   : > { %v2965_v59 = vsel %vm713_vm1, %v2964_v58, 0.0 }
0x141d   : > { %2966 = vadd.xlane.f32.xlu1 %v2965_v59  ;;  %3669 = vmatpush3.bf16.msra.mxu0 %v3668_v7 }
0x14aa   : > { %v2967_v60 = vpop.xlane.xlu1 %2966 }
0x14ab   : > { %v2968_v61 = vmul.f32 0.03125, %v2967_v60 }
0x14ad   : > { %v2969_v62 = vsub.f32 %v2964_v58, %v2968_v61 }
0x14af   : > { %v2970_v63 = vmul.f32 %v2969_v62, %v2969_v62 }
0x14b1   : > { %v2971_v1 = vsel %vm713_vm1, %v2970_v63, 0.0 }
0x14b2   : > { %2972 = vadd.xlane.f32.xlu0 %v2971_v1 }
0x153f   : > { %v2973_v20 = vpop.xlane.xlu0 %2972 }
0x1540   : > { %v2974_v21 = vmul.f32 0.03125, %v2973_v20 }
0x1542   : > { %v2975_v22 = vadd.f32 1e-05, %v2974_v21 }
0x1544   : > { %3773 = vrsqrt.f32 %v2975_v22 }
0x154e   : > { %v3774_v23 = vpop.eup %3773 }
0x154f   : > { %v2977_v25 = vmul.f32 %v3774_v23, %v2969_v62 }
0x1551   : > { %v2985_v27 = vmul.f32 %v3320_v24, %v2977_v25 }
0x1553   : > { %v2993_v28 = vadd.f32 %v3321_v26, %v2985_v27 }
0x1555   : > { %3595 = vmatmul.mubr.msk.f32.vlgmr.msra.gmra.mrb[24].mxu0 %vm713_vm1, %v2993_v28 }
0x1628   : > { %v3074_v11 = vpop.f32.mrb[24].mxu0 }
0x1629   : > { %v3075_v32 = vadd.f32 %v3322_v31, %v3074_v11  ;;  %v3596_v33 = vpop.f32.mrb[25].mxu0 }
0x162b   : > { %v3078_v34 = vmax.f32 %v3075_v32, 0.0 }
0x162d   : > { %3614 = vmatmul.mubr.msk.f32.vlgmr.msra.gmra.mrb[30].mxu1 %vm3094_vm5, %v3078_v34 }
0x1700   : > { %v3164_v36 = vpop.f32.mrb[30].mxu1 }
0x1701   : > { %v3165_v37 = vadd.f32 %v3324_v35, %v3164_v36  ;;  %v3615_v38 = vpop.f32.mrb[31].mxu1 }
0x1703   : > { %v3168_v39 = vadd.f32 %v3165_v37, %v2993_v28 }
0x1705   : > { %v3169_v40 = vsel %vm713_vm1, %v3168_v39, 0.0 }
0x1706   : > { %3170 = vadd.xlane.f32.xlu0 %v3169_v40 }
0x1793   : > { %v3171_v41 = vpop.xlane.xlu0 %3170 }
0x1794   : > { %v3172_v42 = vmul.f32 0.03125, %v3171_v41 }
0x1796   : > { %v3173_v43 = vsub.f32 %v3168_v39, %v3172_v42 }
0x1798   : > { %v3174_v44 = vmul.f32 %v3173_v43, %v3173_v43 }
0x179a   : > { %v3175_v10 = vsel %vm713_vm1, %v3174_v44, 0.0 }
0x179b   : > { %3176 = vadd.xlane.f32.xlu0 %v3175_v10 }
0x1828   : > { %v3177_v8 = vpop.xlane.xlu0 %3176 }
0x1829   : > { %v3178_v45 = vmul.f32 0.03125, %v3177_v8 }
0x182b   : > { %v3179_v46 = vadd.f32 1e-05, %v3178_v45 }
0x182d   : > { %3775 = vrsqrt.f32 %v3179_v46 }
0x1837   : > { %v3776_v47 = vpop.eup %3775 }
0x1838   : > { %v3181_v49 = vmul.f32 %v3776_v47, %v3173_v43 }
0x183a   : > { %v3189_v51 = vmul.f32 %v3326_v48, %v3181_v49 }
0x183c   : > { %v3197_v52 = vadd.f32 %v3327_v50, %v3189_v51 }
0x183e   : > { %3198 = vst.msk [vmem:[%s698_s27] sm:$0xff] %vm713_vm1, %v3197_v52 }
0x183f PF: > { %s32_s3 = sadd.s32 1, %s3783_s3  }
0x1840   : > { %p29_p4 = scmp.ge.s32.totalorder %s32_s3, 4  }
0x1842   :  { %31 = sbr.rel (!%p29_p4) target bundleno = 8 (0x8), region = 141 }

// kernel: wave_transformer8_forward.9
= control target key start
LH: loop header
LB: loop body
LE: loop exit
PB: predicated region body
PF: predicated region fallthrough
CT: control target
= control target key end

     0   :  { %s4482_s0 = inlined_call_operand.vmem [shape: f32[2,8,32], index: 0, kind: input, shape index: {}]   ;;  %s4483_s1 = inlined_call_operand.vmem [shape: f32[2,16,32], index: 1, kind: input, shape index: {}]   ;;  %s4484_s2 = inlined_call_operand.vmem [shape: f32[32,96], index: 2, kind: input, shape index: {}]   ;;  %s4485_s3 = inlined_call_operand.vmem [shape: f32[1,96], index: 3, kind: input, shape index: {}]   ;;  %s4486_s4 = inlined_call_operand.vmem [shape: f32[32,32], index: 4, kind: input, shape index: {}]   ;;  %s4487_s5 = inlined_call_operand.vmem [shape: f32[1,32], index: 5, kind: input, shape index: {}]   ;;  %s4488_s6 = inlined_call_operand.vmem [shape: f32[32,32], index: 6, kind: input, shape index: {}]   ;;  %s4489_s7 = inlined_call_operand.vmem [shape: f32[1,32], index: 7, kind: input, shape index: {}]   ;;  %s4490_s8 = inlined_call_operand.vmem [shape: f32[32,64], index: 8, kind: input, shape index: {}]   ;;  %s4491_s9 = inlined_call_operand.vmem [shape: f32[1,64], index: 9, kind: input, shape index: {}]   ;;  %s4492_s10 = inlined_call_operand.vmem [shape: f32[32,32], index: 10, kind: input, shape index: {}]   ;;  %s4493_s11 = inlined_call_operand.vmem [shape: f32[1,32], index: 11, kind: input, shape index: {}]   ;;  %s4494_s12 = inlined_call_operand.vmem [shape: f32[1,32], index: 12, kind: input, shape index: {}]   ;;  %s4495_s13 = inlined_call_operand.vmem [shape: f32[1,32], index: 13, kind: input, shape index: {}]   ;;  %s4496_s14 = inlined_call_operand.vmem [shape: f32[1,32], index: 14, kind: input, shape index: {}]   ;;  %s4497_s15 = inlined_call_operand.vmem [shape: f32[1,32], index: 15, kind: input, shape index: {}]   ;;  %s4498_s16 = inlined_call_operand.vmem [shape: f32[1,32], index: 16, kind: input, shape index: {}]   ;;  %s4499_s17 = inlined_call_operand.vmem [shape: f32[1,32], index: 17, kind: input, shape index: {}]   ;;  %s4500_s18 = inlined_call_operand.vmem [shape: f32[32,64], index: 18, kind: input, shape index: {}]   ;;  %s4501_s19 = inlined_call_operand.vmem [shape: f32[1,64], index: 19, kind: input, shape index: {}]   ;;  %s4502_s20 = inlined_call_operand.vmem [shape: f32[64,32], index: 20, kind: input, shape index: {}]   ;;  %s4503_s21 = inlined_call_operand.vmem [shape: f32[1,32], index: 21, kind: input, shape index: {}]   ;;  %s4504_s22 = inlined_call_operand.vmem [shape: f32[32,128], index: 22, kind: input, shape index: {}]   ;;  %s4505_s23 = inlined_call_operand.vmem [shape: f32[1,128], index: 23, kind: input, shape index: {}]   ;;  %s4506_s24 = inlined_call_operand.vmem [shape: f32[2,8,128], index: 24, kind: output, shape index: {}]  }
   0x1   :  { %4523 = sst [smem:[#allocation2_spill]] %s4482_s0 }
   0x2   :  { %4524 = sst [smem:[#allocation3_spill]] %s4483_s1 }
   0x3   :  { %4525 = sst [smem:[#allocation4_spill]] %s4484_s2 }
   0x4   :  { %4526 = sst [smem:[#allocation5_spill]] %s4485_s3 }
   0x5   :  { %4527 = sst [smem:[#allocation6_spill]] %s4486_s4 }
   0x6   :  { %4528 = sst [smem:[#allocation7_spill]] %s4487_s5  ;;  %s4086_s5 = smov 0  }
   0x7   :  { %4529 = sst [smem:[#allocation8_spill]] %s4488_s6 }
   0x8   :  { %4530 = sst [smem:[#allocation9_spill]] %s4489_s7 }
   0x9   :  { %4531 = sst [smem:[#allocation10_spill]] %s4490_s8 }
   0xa LB: > { %s3402_s26 = sadd.s32 4294967295, %s3945_s5   ;;  %p3406_p0 = scmp.ge.s32.totalorder %s3945_s5, 1  ;;  %s3945_s5 = sphi %s4086_s5, %s34_s5  }
   0xb   : > { %p671_p1 = scmp.lt.s32.totalorder %s3945_s5, 3 }
   0xd   : > { %p672_p2 = pnand %p3406_p0, %p671_p1 }
   0xe   : > { %s4532_s6 = sld [smem:[#allocation4_spill]] (!%p672_p2)  ;;  %v3947_v3 = vmov (!%p672_p2), 0.0|0.0   ;;  %vm3948_vm0 = vmmov (!%p672_p2), 0   ;;  %v3949_v6 = vmov (!%p672_p2), 0.0   ;;  %p740_p3 = scmp.lt.s32.totalorder (!%p672_p2), %s3402_s26, 1  ;;  %vm767_vm1 = vcmask (!%p672_p2), 261120  }
   0xf   : > { %675 = sbr.rel (%p672_p2) target bundleno = 6423 (0x1917), region = 116  ;;  %3772 = vmatprep.subr.bf16.mxu0 (!%p672_p2), %v3947_v3  ;;  %3570 = vmatprep.mubr.msk.f32.mxu0 (!%p672_p2), %vm3948_vm0, %v3949_v6  ;;  %s4533_s1 = sld [smem:[#allocation2_spill]] (!%p672_p2)  ;;  %vm852_vm2 = vcmask (!%p672_p2), 64512   ;;  %vm2108_vm4 = vcmask (!%p672_p2), 130048   ;;  %vm3148_vm5 = vcmask (!%p672_p2), 523264  }
  0x10   : > { %3573 = vmatprep.subr.mxu1 (!%p672_p2), %v3949_v6  ;;  %3575 = vmatprep.mubr.msk.f32.mxu1 (!%p672_p2), %vm3948_vm0, %v3949_v6  ;;  %s4534_s29 = sld [smem:[#allocation5_spill]] (!%p672_p2)  ;;  %s3950_s0 = smov (!%p672_p2), 64   ;;  %vm4279_vm3 = vmpackc.low (!%p672_p2), %vm852_vm2, %vm852_vm2 }
  0x11   : > { %s4519_s7 = smov (!%p672_p2), 96   ;;  %s4516_s30 = smov (!%p672_p2), 88  }
  0x12   : > { %s3953_s3 = smov (!%p672_p2), 56   ;;  %s4513_s8 = smov (!%p672_p2), 80  }
  0x13   : > { %s4520_s4 = smov (!%p672_p2), 120   ;;  %s4535_s28 = sld [smem:[#allocation6_spill]] (!%p672_p2) }
  0x14   : > { %v756_v0 = vld [vmem:[%s4532_s6] sm:$0xff] (!%p672_p2)  ;;  %v757_v1 = vld [vmem:[%s4532_s6 + $0x8] sm:$0xff] (!%p672_p2)  ;;  %v758_v2 = vld [vmem:[%s4532_s6 + $0x10] sm:$0xff] (!%p672_p2)  ;;  %s4517_s2 = smov (!%p672_p2), 112  }
  0x15   : > { %v3773_v4 = vpack.c.bf16 (!%p672_p2), %v757_v1, %v756_v0  ;;  %v759_v5 = vld [vmem:[%s4532_s6 + $0x18] sm:$0xff] (!%p672_p2) }
  0x16   : > { %v3776_v7 = vpack.c.bf16 %v759_v5, %v758_v2  ;;  %s4552_s26 = smov (!%p740_p3, %s3402_s26), 1  ;;  %v3411_v9 = vld [vmem:[%s4534_s29] ss:$0 sm:$0xff] }
  0x17   : > { %3774 = vmatpush3.bf16.msra.mxu0 %v3773_v4  ;;  %s4511_s25 = sshll.u32 %s4552_s26, 3 }
  0x18   : > { %3775 = vmatprep.subr.bf16.mxu0 %v3947_v3  ;;  %s743_s27 = scalar_lea.vmem %s4533_s1, %s4511_s25  ;;  %s4512_s1 = smov 72  }
  0x19   : > { %v4121_v8 = vld [vmem:[%s743_s27] sm:$0xff]  ;;  %v1256_v49 = vld [vmem:[%s4535_s28 + $0x8] sm:$0xff]  ;;  %s4514_s27 = smov 104   ;;  %s3470_s25 = sshll.u32 %s4552_s26, 4 }
  0x1a   : > { %v1015_v24 = vld [vmem:[%s4535_s28] sm:$0xff] }
  0x1b   : > { %3777 = vmatpush3.bf16.msra.mxu0 %v3776_v7 }
  0x1c   : > { %3583 = vmatprep.subr.mxu0 %v3949_v6 }
  0x1e   : > { %3571 = vmatmul.mubr.msk.f32.vlgmr.msra.gmra.mrb[0].mxu0 %vm767_vm1, %v4121_v8 }
  0x1f   : > { %3585 = vmatprep.mubr.msk.f32.mxu0 %vm3948_vm0, %v3949_v6  ;;  %3584 = vmatpush3.msra.mxu0 %v1015_v24  ;;  %v1738_v24 = vld [vmem:[%s4535_s28 + $0x18] sm:$0xff] }
  0x20   : > { %3593 = vmatprep.subr.mxu0 %v3949_v6 }
  0xf1   : > { %v837_v10 = vpop.f32.mrb[0].mxu0 }
  0xf2   : > { %v4131_v11 = vadd.f32 %v3411_v9, %v837_v10  ;;  %v3572_v12 = vpop.f32.mrb[1].mxu0 }
  0xf3   : > { %v1497_v12 = vld [vmem:[%s4535_s28 + $0x10] sm:$0xff] }
  0xf4   : > { %939 = vrot.lane.b32.xlu1 %v4131_v11, %s3950_s0  ;;  %850 = vrot.lane.b32.xlu0 %v4131_v11, %s4519_s7  ;;  %s4537_s0 = sld [smem:[#allocation10_spill]] }
  0xf8   : > { %1092 = vrot.lane.b32.xlu1 %v4131_v11, %s4516_s30 }
 0x166   : > { %v851_v13 = vpop.permute.xlu0 %850  ;;  %v940_v14 = vpop.permute.xlu1 %939 }
 0x167   : > { %3574 = vmatpush3.xpose.msk.msra.mxu1 %vm852_vm2, %v851_v13 }
 0x168   : > { %3578 = vmatprep.subr.mxu1 %v3949_v6 }
 0x16a   : > { %3576 = vmatmul.mubr.msk.f32.vlgmr.msra.gmra.mrb[0].mxu1 %vm852_vm2, %v4131_v11  ;;  %v1093_v25 = vpop.permute.xlu1 %1092 }
 0x16b   : > { %3579 = vmatpush3.msra.mxu1 %v940_v14  ;;  %3580 = vmatprep.mubr.msk.f32.mxu1 %vm3948_vm0, %v3949_v6 }
 0x16c   : > { %3588 = vmatprep.subr.mxu1 %v3949_v6 }
 0x23d   : > { %v923_v15 = vpop.f32.mrb[0].mxu1 }
 0x23e   : > { %v927_v16 = vmul.f32 0.35355338, %v923_v15  ;;  %v3577_v17 = vpop.f32.mrb[1].mxu1 }
 0x240   : > { %v928_v18 = vsel %vm852_vm2, %v927_v16, -inf }
 0x241   : > { %929 = vmax.xlane.f32.xlu0 %v928_v18 }
 0x257   : > { %1180 = vrot.lane.b32.xlu0 %v4131_v11, %s3953_s3  ;;  %s3957_s3 = smov 48  }
 0x25b   : > { %1333 = vrot.lane.b32.xlu0 %v4131_v11, %s4513_s8  ;;  %s4545_s8 = smov 112  }
 0x2ce   : > { %v930_v19 = vpop.xlane.xlu0 %929 }
 0x2cf   : > { %v931_v20 = vsub.f32 %v927_v16, %v930_v19 }
 0x2d1   : > { %v932_v21 = vmul.f32 1.442695, %v931_v20 }
 0x2d2   : > { %v1181_v31 = vpop.permute.xlu0 %1180 }
 0x2d3   : > { %3901 = vpow2.f32 %v932_v21 }
 0x2d6   : > { %v1334_v44 = vpop.permute.xlu0 %1333 }
 0x2dd   : > { %v3902_v22 = vpop.eup %3901 }
 0x2de   : > { %v934_v23 = vsel %vm852_vm2, %v3902_v22, 0.0 }
 0x2df   : > { %935 = vadd.xlane.f32.xlu1 %v934_v23 }
 0x2f0   : > { %1090 = vrot.lane.b32.xlu1 %v4131_v11, %s4520_s4  ;;  %s4543_s4 = sld [smem:[#allocation9_spill]] }
 0x36c   : > { %v936_v26 = vpop.xlane.xlu1 %935 }
 0x36d   : > { %3903 = vrcp.f32 %v936_v26 }
 0x370   : > { %v1091_v29 = vpop.permute.xlu1 %1090 }
 0x377   : > { %v3904_v27 = vpop.eup %3903 }
 0x378   : > { %v938_v28 = vmul.f32 %v3904_v27, %v3902_v22 }
 0x37a   : > { %3581 = vmatmul.mubr.msk.f32.vlgmr.msra.gmra.mrb[2].mxu1 %vm852_vm2, %v938_v28 }
 0x37b   : > { %3589 = vmatpush3.xpose.msk.msra.mxu1 %vm852_vm2, %v1093_v25  ;;  %3590 = vmatprep.mubr.msk.f32.mxu1 %vm3948_vm0, %v3949_v6 }
 0x37c   : > { %3598 = vmatprep.subr.mxu1 %v3949_v6 }
 0x37e   : > { %3591 = vmatmul.mubr.msk.f32.vlgmr.msra.gmra.mrb[4].mxu1 %vm852_vm2, %v1091_v29 }
 0x37f   : > { %3600 = vmatprep.mubr.msk.f32.mxu1 %vm3948_vm0, %v3949_v6  ;;  %3599 = vmatpush3.msra.mxu1 %v1256_v49 }
 0x380   : > { %3608 = vmatprep.subr.mxu1 %v3949_v6 }
 0x44d   : > { %v1011_v30 = vpop.f32.mrb[2].mxu1 }
 0x44e   : > { %v3582_v32 = vpop.f32.mrb[3].mxu1  ;;  %3586 = vmatmul.mubr.msk.f32.vlgmr.msra.gmra.mrb[2].mxu0 %vm852_vm2, %v1011_v30 }
 0x44f   : > { %3594 = vmatpush3.msra.mxu0 %v1181_v31  ;;  %3595 = vmatprep.mubr.msk.f32.mxu0 %vm3948_vm0, %v3949_v6 }
 0x450   : > { %3603 = vmatprep.subr.mxu0 %v3949_v6 }
 0x451   : > { %v1164_v33 = vpop.f32.mrb[4].mxu1 }
 0x452   : > { %v1168_v34 = vmul.f32 0.35355338, %v1164_v33  ;;  %v3592_v35 = vpop.f32.mrb[5].mxu1 }
 0x454   : > { %v1169_v36 = vsel %vm852_vm2, %v1168_v34, -inf }
 0x455   : > { %1170 = vmax.xlane.f32.xlu1 %v1169_v36 }
 0x4e2   : > { %v1171_v37 = vpop.xlane.xlu1 %1170 }
 0x4e3   : > { %v1172_v38 = vsub.f32 %v1168_v34, %v1171_v37 }
 0x4e5   : > { %v1173_v39 = vmul.f32 1.442695, %v1172_v38  ;;  %v1928_v38 = vld [vmem:[%s4537_s0] sm:$0xff] }
 0x4e7   : > { %3905 = vpow2.f32 %v1173_v39  ;;  %v1929_v39 = vld [vmem:[%s4537_s0 + $0x8] sm:$0xff] }
 0x4f1   : > { %v3906_v40 = vpop.eup %3905 }
 0x4f2   : > { %v1175_v41 = vsel %vm852_vm2, %v3906_v40, 0.0 }
 0x4f3   : > { %1176 = vadd.xlane.f32.xlu0 %v1175_v41 }
 0x509   : > { %1331 = vrot.lane.b32.xlu0 %v4131_v11, %s4517_s2  ;;  %s4538_s2 = sld [smem:[#allocation3_spill]] }
 0x50f   : > { %s748_s7 = scalar_lea.vmem %s4538_s2, %s3470_s25  ;;  %s4542_s2 = smov 120  }
 0x510   : > { %v755_v49 = vld [vmem:[%s748_s7 + $0x8] sm:$0xff] }
 0x521   : > { %v1085_v42 = vpop.f32.mrb[2].mxu0 }
 0x522   : > { %v3587_v43 = vpop.f32.mrb[3].mxu0 }
 0x580   : > { %v1177_v45 = vpop.xlane.xlu0 %1176 }
 0x581   : > { %3907 = vrcp.f32 %v1177_v45  ;;  %v1930_v45 = vld [vmem:[%s4537_s0 + $0x10] sm:$0xff] }
 0x584   : > { %v1332_v48 = vpop.permute.xlu0 %1331 }
 0x58b   : > { %v3908_v46 = vpop.eup %3907 }
 0x58c   : > { %v1179_v47 = vmul.f32 %v3908_v46, %v3906_v40  ;;  %v3784_v40 = vpack.c.bf16 %v1929_v39, %v1928_v38  ;;  %v1931_v46 = vld [vmem:[%s4537_s0 + $0x18] sm:$0xff] }
 0x58e   : > { %3596 = vmatmul.mubr.msk.f32.vlgmr.msra.gmra.mrb[4].mxu0 %vm852_vm2, %v1179_v47  ;;  %v3788_v47 = vpack.c.bf16 %v1931_v46, %v1930_v45 }
 0x58f   : > { %3604 = vmatpush3.xpose.msk.msra.mxu0 %vm852_vm2, %v1334_v44  ;;  %3605 = vmatprep.mubr.msk.f32.mxu0 %vm3948_vm0, %v3949_v6 }
 0x590   : > { %3613 = vmatprep.subr.mxu0 %v3949_v6 }
 0x592   : > { %3606 = vmatmul.mubr.msk.f32.vlgmr.msra.gmra.mrb[6].mxu0 %vm852_vm2, %v1332_v48  ;;  %v754_v48 = vld [vmem:[%s748_s7] sm:$0xff] }
 0x593   : > { %3615 = vmatprep.mubr.msk.f32.mxu0 %vm3948_vm0, %v3949_v6  ;;  %3614 = vmatpush3.msra.mxu0 %v1497_v12 }
 0x594   : > { %3623 = vmatprep.subr.mxu0 %v3949_v6 }
 0x661   : > { %v1252_v50 = vpop.f32.mrb[4].mxu0 }
 0x662   : > { %v3597_v51 = vpop.f32.mrb[5].mxu0  ;;  %3601 = vmatmul.mubr.msk.f32.vlgmr.msra.gmra.mrb[6].mxu1 %vm852_vm2, %v1252_v50 }
 0x663   : > { %3610 = vmatprep.mubr.msk.f32.mxu1 %vm3948_vm0, %v3949_v6 }
 0x665   : > { %v1405_v52 = vpop.f32.mrb[6].mxu0 }
 0x666   : > { %v1409_v53 = vmul.f32 0.35355338, %v1405_v52  ;;  %v3607_v54 = vpop.f32.mrb[7].mxu0 }
 0x668   : > { %v1410_v55 = vsel %vm852_vm2, %v1409_v53, -inf }
 0x669   : > { %1411 = vmax.xlane.f32.xlu1 %v1410_v55 }
 0x67a   : > { %1421 = vrot.lane.b32.xlu1 %v4131_v11, %s3957_s3  ;;  %s4536_s3 = sld [smem:[#allocation7_spill]] }
 0x67e   : > { %1574 = vrot.lane.b32.xlu1 %v4131_v11, %s4512_s1  ;;  %s4544_s1 = smov 96  }
 0x680   : > { %v3413_v62 = vld [vmem:[%s4536_s3] ss:$0 sm:$0xff]  ;;  %s3960_s3 = smov 40  }
 0x681   : > { %v1089_v63 = vadd.f32 %v3413_v62, %v1085_v42  ;;  %v3431_v62 = vld [vmem:[%s4495_s13] ss:$0 sm:$0xff] }
 0x682   : > { %1572 = vrot.lane.b32.xlu1 %v4131_v11, %s4514_s27  ;;  %s4546_s27 = smov 88  }
 0x6f6   : > { %v1412_v56 = vpop.xlane.xlu1 %1411 }
 0x6f7   : > { %v1413_v57 = vsub.f32 %v1409_v53, %v1412_v56 }
 0x6f9   : > { %v1414_v58 = vmul.f32 1.442695, %v1413_v57 }
 0x6fa   : > { %v1422_v59 = vpop.permute.xlu1 %1421 }
 0x6fb   : > { %3909 = vpow2.f32 %v1414_v58  ;;  %3609 = vmatpush3.msra.mxu1 %v1422_v59 }
 0x6fc   : > { %3618 = vmatprep.subr.mxu1 %v3949_v6 }
 0x6fe   : > { %v1575_v7 = vpop.permute.xlu1 %1574 }
 0x702   : > { %v1573_v10 = vpop.permute.xlu1 %1572 }
 0x705   : > { %v3910_v60 = vpop.eup %3909 }
 0x706   : > { %v1416_v61 = vsel %vm852_vm2, %v3910_v60, 0.0 }
 0x707   : > { %1417 = vadd.xlane.f32.xlu0 %v1416_v61 }
 0x735   : > { %v1326_v0 = vpop.f32.mrb[6].mxu1 }
 0x736   : > { %v1330_v1 = vadd.f32 %v1326_v0, %v1089_v63  ;;  %v3602_v2 = vpop.f32.mrb[7].mxu1 }
 0x794   : > { %v1418_v4 = vpop.xlane.xlu0 %1417 }
 0x795   : > { %3911 = vrcp.f32 %v1418_v4 }
 0x79f   : > { %v3912_v5 = vpop.eup %3911 }
 0x7a0   : > { %v1420_v9 = vmul.f32 %v3912_v5, %v3910_v60  ;;  %v3430_v60 = vld [vmem:[%s4494_s12] ss:$0 sm:$0xff] }
 0x7a2   : > { %3611 = vmatmul.mubr.msk.f32.vlgmr.msra.gmra.mrb[8].mxu1 %vm852_vm2, %v1420_v9  ;;  %v2447_v9 = vld [vmem:[%s4492_s10 + $0x8] sm:$0xff] }
 0x7a3   : > { %3619 = vmatpush3.xpose.msk.msra.mxu1 %vm852_vm2, %v1575_v7  ;;  %3620 = vmatprep.mubr.msk.f32.mxu1 %vm3948_vm0, %v3949_v6 }
 0x7a4   : > { %3628 = vmatprep.subr.mxu1 %v3949_v6 }
 0x7a6   : > { %3621 = vmatmul.mubr.msk.f32.vlgmr.msra.gmra.mrb[10].mxu1 %vm852_vm2, %v1573_v10 }
 0x7a7   : > { %3630 = vmatprep.mubr.msk.f32.mxu1 %vm3948_vm0, %v3949_v6  ;;  %3629 = vmatpush3.msra.mxu1 %v1738_v24 }
 0x7a8   : > { %3785 = vmatprep.subr.bf16.mxu1 %v3784_v40 }
 0x875   : > { %v1493_v13 = vpop.f32.mrb[8].mxu1 }
 0x876   : > { %v3612_v14 = vpop.f32.mrb[9].mxu1  ;;  %3616 = vmatmul.mubr.msk.f32.vlgmr.msra.gmra.mrb[8].mxu0 %vm852_vm2, %v1493_v13 }
 0x877   : > { %3625 = vmatprep.mubr.msk.f32.mxu0 %vm3948_vm0, %v3949_v6 }
 0x879   : > { %v1646_v15 = vpop.f32.mrb[10].mxu1 }
 0x87a   : > { %v1650_v16 = vmul.f32 0.35355338, %v1646_v15  ;;  %v3622_v17 = vpop.f32.mrb[11].mxu1 }
 0x87c   : > { %v1651_v18 = vsel %vm852_vm2, %v1650_v16, -inf }
 0x87d   : > { %1652 = vmax.xlane.f32.xlu1 %v1651_v18 }
 0x90a   : > { %v1653_v19 = vpop.xlane.xlu1 %1652 }
 0x90b   : > { %v1654_v20 = vsub.f32 %v1650_v16, %v1653_v19  ;;  %v3432_v16 = vld [vmem:[%s4543_s4] ss:$0 sm:$0xff]  ;;  %s4548_s4 = smov 80  }
 0x90d   : > { %v1655_v21 = vmul.f32 1.442695, %v1654_v20 }
 0x90f   : > { %3913 = vpow2.f32 %v1655_v21 }
 0x919   : > { %v3914_v22 = vpop.eup %3913 }
 0x91a   : > { %v1657_v23 = vsel %vm852_vm2, %v3914_v22, 0.0 }
 0x91b   : > { %1658 = vadd.xlane.f32.xlu0 %v1657_v23 }
 0x931   : > { %1662 = vrot.lane.b32.xlu0 %v4131_v11, %s3960_s3  ;;  %s4539_s3 = sld [smem:[#allocation8_spill]] }
 0x937   : > { %v1844_v50 = vld [vmem:[%s4539_s3] sm:$0xff]  ;;  %v1845_v51 = vld [vmem:[%s4539_s3 + $0x8] sm:$0xff]  ;;  %v1846_v53 = vld [vmem:[%s4539_s3 + $0x10] sm:$0xff] }
 0x938   : > { %v3779_v52 = vpack.c.bf16 %v1845_v51, %v1844_v50  ;;  %v1847_v54 = vld [vmem:[%s4539_s3 + $0x18] sm:$0xff]  ;;  %v2199_v50 = vld [vmem:[%s4492_s10] sm:$0xff] }
 0x939   : > { %v3782_v55 = vpack.c.bf16 %v1847_v54, %v1846_v53 }
 0x949   : > { %v1567_v25 = vpop.f32.mrb[8].mxu0 }
 0x94a   : > { %v1571_v26 = vadd.f32 %v1567_v25, %v1330_v1  ;;  %v3617_v27 = vpop.f32.mrb[9].mxu0  ;;  %v3434_v1 = vld [vmem:[%s4491_s9] ss:$0 sm:$0xff] }
 0x9a8   : > { %v1659_v28 = vpop.xlane.xlu0 %1658 }
 0x9a9   : > { %3915 = vrcp.f32 %v1659_v28 }
 0x9ac   : > { %v1663_v29 = vpop.permute.xlu0 %1662 }
 0x9ad   : > { %3624 = vmatpush3.msra.mxu0 %v1663_v29 }
 0x9ae   : > { %3778 = vmatprep.subr.bf16.mxu0 %v3947_v3 }
 0x9b3   : > { %v3916_v30 = vpop.eup %3915 }
 0x9b4   : > { %v1661_v31 = vmul.f32 %v3916_v30, %v3914_v22 }
 0x9b6   : > { %3626 = vmatmul.mubr.msk.f32.vlgmr.msra.gmra.mrb[10].mxu0 %vm852_vm2, %v1661_v31 }
 0x9b7   : > { %3641 = vmatprep.mubr.msk.f32.mxu0 %vm3948_vm0, %v3949_v6  ;;  %3780 = vmatpush3.bf16.msra.mxu0 %v3779_v52 }
 0x9b8   : > { %3781 = vmatprep.subr.bf16.mxu0 %v3947_v3 }
 0x9bb   : > { %3783 = vmatpush3.bf16.msra.mxu0 %v3782_v55 }
 0x9bc   : > { %3792 = vmatprep.subr.bf16.mxu0 %v3947_v3 }
 0xa89   : > { %v1734_v11 = vpop.f32.mrb[10].mxu0 }
 0xa8a   : > { %v3627_v32 = vpop.f32.mrb[11].mxu0  ;;  %3631 = vmatmul.mubr.msk.f32.vlgmr.msra.gmra.mrb[12].mxu1 %vm852_vm2, %v1734_v11 }
 0xa8b   : > { %3787 = vmatpush3.bf16.msra.mxu1 %v3784_v40  ;;  %3652 = vmatprep.mubr.msk.f32.mxu1 %vm767_vm1, %v754_v48 }
 0xa8c   : > { %3789 = vmatprep.subr.bf16.mxu1 %v3788_v47 }
 0xa8f   : > { %3791 = vmatpush3.bf16.msra.mxu1 %v3788_v47 }
 0xa90   : > { %3796 = vmatprep.subr.bf16.mxu1 %v3947_v3 }
 0xa92   : > { %3653 = vmatmul.mubr.msk.f32.vlgmr.msra.gmra.mrb[14].mxu1 %vm767_vm1, %v755_v49 }
 0xa93   : > { %3666 = vmatprep.mubr.msk.f32.mxu1 %vm3948_vm0, %v3949_v6 }
 0xb5d   : > { %v1808_v33 = vpop.f32.mrb[12].mxu1 }
 0xb5e   : > { %v1812_v34 = vadd.f32 %v1808_v33, %v1571_v26  ;;  %v3632_v35 = vpop.f32.mrb[13].mxu1 }
 0xb60   : > { %v1813_v36 = vadd.f32 %v1812_v34, %v4121_v8 }
 0xb62   : > { %v1814_v37 = vsel %vm767_vm1, %v1813_v36, 0.0 }
 0xb63   : > { %1815 = vadd.xlane.f32.xlu0 %v1814_v37 }
 0xb65   : > { %v3654_v2 = vpop.f32.mrb[14].mxu1 }
 0xb66   : > { %v2017_v4 = vadd.f32 %v3654_v2, %v3434_v1  ;;  %v2011_v5 = vpop.f32.mrb[15].mxu1 }
 0xb67   : > { %v2012_v7 = vadd.f32 %v3434_v1, %v2011_v5 }
 0xb69   : > { %v4283_v10 = vpack.i.bf16 %v2017_v4, %v2012_v7  ;;  %v3793_v12 = vpack.c.bf16 %v2017_v4, %v2012_v7 }
 0xbf0   : > { %v1816_v41 = vpop.xlane.xlu0 %1815 }
 0xbf1   : > { %v1818_v42 = vmul.f32 0.03125, %v1816_v41 }
 0xbf3   : > { %v1819_v43 = vsub.f32 %v1813_v36, %v1818_v42 }
 0xbf5   : > { %v1820_v44 = vmul.f32 %v1819_v43, %v1819_v43 }
 0xbf7   : > { %v1821_v8 = vsel %vm767_vm1, %v1820_v44, 0.0 }
 0xbf8   : > { %1822 = vadd.xlane.f32.xlu1 %v1821_v8 }
 0xc09   : > { %3867 = vrot.lane.b32.xlu1 %v4283_v10, %s4542_s2 }
 0xc85   : > { %v1823_v56 = vpop.xlane.xlu1 %1822 }
 0xc86   : > { %v1824_v57 = vmul.f32 0.03125, %v1823_v56 }
 0xc88   : > { %v1825_v58 = vadd.f32 1e-05, %v1824_v57 }
 0xc89   : > { %v3868_v13 = vpop.permute.xlu1 %3867 }
 0xc8a   : > { %3917 = vrsqrt.f32 %v1825_v58  ;;  %v3870_v14 = vunpack.i.h.bf16 %v3868_v13  ;;  %v3869_v15 = vunpack.i.l.bf16 %v3868_v13 }
 0xc8c   : > { %v3800_v18 = vpack.c.bf16 %v3870_v14, %v3869_v15 }
 0xc94   : > { %v3918_v59 = vpop.eup %3917 }
 0xc95   : > { %v1827_v61 = vmul.f32 %v3918_v59, %v1819_v43 }
 0xc97   : > { %v1835_v63 = vmul.f32 %v3430_v60, %v1827_v61 }
 0xc99   : > { %v4268_v0 = vadd.f32 %v3431_v62, %v1835_v63 }
 0xc9b   : > { %3642 = vmatmul.mubr.msk.f32.vlgmr.msra.gmra.mrb[12].mxu0 %vm767_vm1, %v4268_v0 }
 0xc9c   : > { %3659 = vmatprep.mubr.msk.f32.mxu0 %vm3948_vm0, %v3949_v6  ;;  %3795 = vmatpush3.bf16.xpose.msk.msra.mxu0 %vm4279_vm3, %v3793_v12 }
 0xc9d   : > { %3799 = vmatprep.subr.bf16.mxu0 %v3947_v3 }
 0xd6e   : > { %v1924_v17 = vpop.f32.mrb[12].mxu0 }
 0xd6f   : > { %v4293_v19 = vadd.f32 %v3432_v16, %v1924_v17  ;;  %v3643_v20 = vpop.f32.mrb[13].mxu0 }
 0xd71   : > { %2274 = vrot.lane.b32.xlu1 %v4293_v19, %s4542_s2  ;;  %3660 = vmatmul.mubr.msk.f32.vlgmr.msra.gmra.mrb[14].mxu0 %vm852_vm2, %v4293_v19  ;;  %s4547_s2 = smov 104  }
 0xd72   : > { %3802 = vmatpush3.bf16.xpose.msk.msra.mxu0 %vm4279_vm3, %v3800_v18  ;;  %3678 = vmatprep.mubr.msk.f32.mxu0 %vm3948_vm0, %v3949_v6 }
 0xd73   : > { %3806 = vmatprep.subr.bf16.mxu0 %v3947_v3 }
 0xde3   : > { %v2275_v21 = vpop.permute.xlu1 %2274 }
 0xde4   : > { %3679 = vmatmul.mubr.msk.f32.vlgmr.msra.gmra.mrb[16].mxu0 %vm852_vm2, %v2275_v21 }
 0xde5   : > { %3697 = vmatprep.mubr.msk.f32.mxu0 %vm3948_vm0, %v3949_v6 }
 0xe44   : > { %v2103_v22 = vpop.f32.mrb[14].mxu0 }
 0xe45   : > { %v2107_v23 = vmul.f32 0.35355338, %v2103_v22  ;;  %v3661_v24 = vpop.f32.mrb[15].mxu0 }
 0xe47   : > { %v2109_v25 = vsel %vm2108_vm4, %v2107_v23, -inf }
 0xe48   : > { %2110 = vmax.xlane.f32.xlu1 %v2109_v25 }
 0xeb7   : > { %v2352_v26 = vpop.f32.mrb[16].mxu0 }
 0xeb8   : > { %v3680_v27 = vpop.f32.mrb[17].mxu0  ;;  %v2356_v32 = vmul.f32 0.35355338, %v2352_v26 }
 0xeba   : > { %v2357_v33 = vsel %vm2108_vm4, %v2356_v32, -inf }
 0xed5   : > { %v2111_v28 = vpop.xlane.xlu1 %2110 }
 0xed6   : > { %v2112_v29 = vsub.f32 %v2107_v23, %v2111_v28 }
 0xed8   : > { %v2113_v30 = vmul.f32 1.442695, %v2112_v29 }
 0xeda   : > { %3919 = vpow2.f32 %v2113_v30 }
 0xee4   : > { %v3920_v31 = vpop.eup %3919 }
 0xee5   : > { %v2115_v11 = vsel %vm2108_vm4, %v3920_v31, 0.0 }
 0xee6   : > { %2116 = vadd.xlane.f32.xlu0 %v2115_v11 }
 0xefc   : > { %3872 = vrot.lane.b32.xlu0 %v4283_v10, %s4544_s1  ;;  %s4549_s1 = smov 72  }
 0xf00   : > { %3877 = vrot.lane.b32.xlu0 %v4283_v10, %s4545_s8 }
 0xf04   : > { %2522 = vrot.lane.b32.xlu0 %v4293_v19, %s4545_s8 }
 0xf23   : > { %2358 = vmax.xlane.f32.xlu0 %v2357_v33 }
 0xf73   : > { %v2117_v34 = vpop.xlane.xlu0 %2116 }
 0xf74   : > { %3921 = vrcp.f32 %v2117_v34 }
 0xf77   : > { %v3873_v35 = vpop.permute.xlu0 %3872 }
 0xf78   : > { %v3875_v36 = vunpack.i.h.bf16 %v3873_v35  ;;  %v3874_v37 = vunpack.i.l.bf16 %v3873_v35 }
 0xf7a   : > { %v3797_v38 = vpack.c.bf16 %v3875_v36, %v3874_v37  ;;  %v2695_v36 = vld [vmem:[%s4492_s10 + $0x10] sm:$0xff]  ;;  %v3437_v37 = vld [vmem:[%s4493_s11] ss:$0 sm:$0xff] }
 0xf7b   : > { %v3878_v39 = vpop.permute.xlu0 %3877 }
 0xf7c   : > { %v3880_v40 = vunpack.i.h.bf16 %v3878_v39  ;;  %v3879_v41 = vunpack.i.l.bf16 %v3878_v39  ;;  %3798 = vmatpush3.bf16.msra.mxu1 %v3797_v38 }
 0xf7d   : > { %3669 = vmatprep.subr.mxu1 %v3949_v6 }
 0xf7e   : > { %v3922_v42 = vpop.eup %3921  ;;  %v3807_v43 = vpack.c.bf16 %v3880_v40, %v3879_v41 }
 0xf7f   : > { %v2119_v44 = vmul.f32 %v3922_v42, %v3920_v31  ;;  %v2523_v8 = vpop.permute.xlu0 %2522 }
 0xf80   : > { %3809 = vmatpush3.bf16.xpose.msk.msra.mxu0 %vm4279_vm3, %v3807_v43 }
 0xf81   : > { %3667 = vmatmul.mubr.msk.f32.vlgmr.msra.gmra.mrb[16].mxu1 %vm2108_vm4, %v2119_v44  ;;  %3813 = vmatprep.subr.bf16.mxu0 %v3947_v3 }
 0xf82   : > { %3671 = vmatprep.mubr.msk.f32.mxu1 %vm3948_vm0, %v3949_v6  ;;  %3670 = vmatpush3.msra.mxu1 %v2199_v50 }
 0xf83   : > { %3803 = vmatprep.subr.bf16.mxu1 %v3947_v3 }
 0xf87   : > { %3698 = vmatmul.mubr.msk.f32.vlgmr.msra.gmra.mrb[18].mxu0 %vm852_vm2, %v2523_v8 }
 0xf88   : > { %3716 = vmatprep.mubr.msk.f32.mxu0 %vm3948_vm0, %v3949_v6 }
 0xfb0   : > { %v2359_v45 = vpop.xlane.xlu0 %2358 }
 0xfb1   : > { %v2360_v46 = vsub.f32 %v2356_v32, %v2359_v45 }
 0xfb3   : > { %v2361_v47 = vmul.f32 1.442695, %v2360_v46 }
 0xfb5   : > { %3923 = vpow2.f32 %v2361_v47 }
 0xfbf   : > { %v3924_v48 = vpop.eup %3923 }
 0xfc0   : > { %v2363_v49 = vsel %vm2108_vm4, %v3924_v48, 0.0 }
 0xfc1   : > { %2364 = vadd.xlane.f32.xlu1 %v2363_v49  ;;  %v2943_v49 = vld [vmem:[%s4492_s10 + $0x18] sm:$0xff] }
 0xfd2   : > { %3882 = vrot.lane.b32.xlu1 %v4283_v10, %s4546_s27 }
 0xfd6   : > { %3887 = vrot.lane.b32.xlu1 %v4283_v10, %s4547_s2 }
 0xfda   : > { %2770 = vrot.lane.b32.xlu1 %v4293_v19, %s4547_s2 }
0x104e   : > { %v2365_v51 = vpop.xlane.xlu1 %2364 }
0x104f   : > { %3925 = vrcp.f32 %v2365_v51 }
0x1052   : > { %v3883_v52 = vpop.permute.xlu1 %3882 }
0x1053   : > { %v3885_v53 = vunpack.i.h.bf16 %v3883_v52  ;;  %v3884_v54 = vunpack.i.l.bf16 %v3883_v52 }
0x1054   : > { %v2195_v55 = vpop.f32.mrb[16].mxu1 }
0x1055   : > { %v3804_v56 = vpack.c.bf16 %v3885_v53, %v3884_v54  ;;  %v3668_v57 = vpop.f32.mrb[17].mxu1  ;;  %3672 = vmatmul.mubr.msk.f32.vlgmr.msra.gmra.mrb[18].mxu1 %vm852_vm2, %v2195_v55 }
0x1056   : > { %v3888_v58 = vpop.permute.xlu1 %3887  ;;  %3685 = vmatprep.mubr.msk.f32.mxu1 %vm3948_vm0, %v3949_v6 }
0x1057   : > { %v3890_v59 = vunpack.i.h.bf16 %v3888_v58  ;;  %v3889_v60 = vunpack.i.l.bf16 %v3888_v58  ;;  %3805 = vmatpush3.bf16.msra.mxu1 %v3804_v56 }
0x1058   : > { %3688 = vmatprep.subr.mxu1 %v3949_v6 }
0x1059   : > { %v3926_v61 = vpop.eup %3925  ;;  %v3814_v62 = vpack.c.bf16 %v3890_v59, %v3889_v60 }
0x105a   : > { %v2367_v63 = vmul.f32 %v3926_v61, %v3924_v48  ;;  %v2600_v1 = vpop.f32.mrb[18].mxu0  ;;  %v2771_v7 = vpop.permute.xlu1 %2770 }
0x105b   : > { %v2604_v2 = vmul.f32 0.35355338, %v2600_v1  ;;  %v3699_v4 = vpop.f32.mrb[19].mxu0  ;;  %3816 = vmatpush3.bf16.xpose.msk.msra.mxu0 %vm4279_vm3, %v3814_v62 }
0x105c   : > { %3686 = vmatmul.mubr.msk.f32.vlgmr.msra.gmra.mrb[20].mxu1 %vm2108_vm4, %v2367_v63  ;;  %3820 = vmatprep.subr.bf16.mxu0 %v3947_v3  ;;  %v3049_v4 = vld [vmem:[%s4500_s18 + $0x8] sm:$0xff] }
0x105d   : > { %v2605_v5 = vsel %vm2108_vm4, %v2604_v2, -inf  ;;  %3690 = vmatprep.mubr.msk.f32.mxu1 %vm3948_vm0, %v3949_v6  ;;  %3689 = vmatpush3.msra.mxu1 %v2447_v9 }
0x105e   : > { %2606 = vmax.xlane.f32.xlu1 %v2605_v5  ;;  %3810 = vmatprep.subr.bf16.mxu1 %v3947_v3 }
0x1062   : > { %3717 = vmatmul.mubr.msk.f32.vlgmr.msra.gmra.mrb[20].mxu0 %vm852_vm2, %v2771_v7  ;;  %v3051_v7 = vld [vmem:[%s4500_s18 + $0x18] sm:$0xff] }
0x1063   : > { %3739 = vmatprep.mubr.msk.f32.mxu0 %vm3948_vm0, %v3949_v6 }
0x10eb   : > { %v2607_v12 = vpop.xlane.xlu1 %2606 }
0x10ec   : > { %v2608_v13 = vsub.f32 %v2604_v2, %v2607_v12  ;;  %v3048_v2 = vld [vmem:[%s4500_s18] sm:$0xff] }
0x10ed   : > { %v3821_v5 = vpack.c.bf16 %v3049_v4, %v3048_v2  ;;  %v3133_v12 = vld [vmem:[%s4502_s20] sm:$0xff] }
0x10ee   : > { %v2609_v14 = vmul.f32 1.442695, %v2608_v13  ;;  %v3134_v13 = vld [vmem:[%s4502_s20 + $0x8] sm:$0xff] }
0x10ef   : > { %3822 = vmatpush3.bf16.msra.mxu0 %v3821_v5 }
0x10f0   : > { %3927 = vpow2.f32 %v2609_v14  ;;  %3823 = vmatprep.subr.bf16.mxu0 %v3947_v3  ;;  %v3135_v14 = vld [vmem:[%s4502_s20 + $0x10] sm:$0xff] }
0x10fa   : > { %v3928_v15 = vpop.eup %3927 }
0x10fb   : > { %v2611_v16 = vsel %vm2108_vm4, %v3928_v15, 0.0 }
0x10fc   : > { %2612 = vadd.xlane.f32.xlu0 %v2611_v16  ;;  %v3136_v16 = vld [vmem:[%s4502_s20 + $0x18] sm:$0xff] }
0x1112   : > { %3892 = vrot.lane.b32.xlu0 %v4283_v10, %s4548_s4  ;;  %s4550_s4 = sshll.u32 %s4552_s26, 3 }
0x1113   : > { %s752_s0 = scalar_lea.vmem %s4506_s24, %s4550_s4 }
0x1128   : > { %v2269_v17 = vpop.f32.mrb[18].mxu1 }
0x1129   : > { %v3673_v18 = vpop.f32.mrb[19].mxu1  ;;  %v2273_v38 = vadd.f32 %v3437_v37, %v2269_v17  ;;  %v3830_v17 = vpack.c.bf16 %v3136_v16, %v3135_v14 }
0x112a   : > { %v3137_v18 = vld [vmem:[%s4502_s20 + $0x20] sm:$0xff] }
0x112f   : > { %v2443_v19 = vpop.f32.mrb[20].mxu1 }
0x1130   : > { %v3687_v20 = vpop.f32.mrb[21].mxu1  ;;  %3691 = vmatmul.mubr.msk.f32.vlgmr.msra.gmra.mrb[22].mxu1 %vm852_vm2, %v2443_v19  ;;  %v3138_v19 = vld [vmem:[%s4502_s20 + $0x28] sm:$0xff] }
0x1131   : > { %3704 = vmatprep.mubr.msk.f32.mxu1 %vm3948_vm0, %v3949_v6  ;;  %v3833_v20 = vpack.c.bf16 %v3138_v19, %v3137_v18 }
0x1135   : > { %v2848_v21 = vpop.f32.mrb[20].mxu0 }
0x1136   : > { %v2852_v22 = vmul.f32 0.35355338, %v2848_v21  ;;  %v3718_v23 = vpop.f32.mrb[21].mxu0 }
0x1138   : > { %v2853_v24 = vsel %vm2108_vm4, %v2852_v22, -inf }
0x1139   : > { %2854 = vmax.xlane.f32.xlu0 %v2853_v24 }
0x1189   : > { %v2613_v25 = vpop.xlane.xlu0 %2612 }
0x118a   : > { %3929 = vrcp.f32 %v2613_v25  ;;  %v3458_v25 = vld [vmem:[%s4496_s14] ss:$0 sm:$0xff] }
0x118d   : > { %v3893_v26 = vpop.permute.xlu0 %3892 }
0x118e   : > { %v3895_v27 = vunpack.i.h.bf16 %v3893_v26  ;;  %v3894_v28 = vunpack.i.l.bf16 %v3893_v26 }
0x1190   : > { %v3811_v29 = vpack.c.bf16 %v3895_v27, %v3894_v28  ;;  %v3459_v27 = vld [vmem:[%s4497_s15] ss:$0 sm:$0xff] }
0x1192   : > { %3812 = vmatpush3.bf16.msra.mxu1 %v3811_v29 }
0x1193   : > { %3707 = vmatprep.subr.mxu1 %v3949_v6 }
0x1194   : > { %v3930_v30 = vpop.eup %3929 }
0x1195   : > { %v2615_v31 = vmul.f32 %v3930_v30, %v3928_v15  ;;  %v3827_v15 = vpack.c.bf16 %v3134_v13, %v3133_v12  ;;  %v3139_v30 = vld [vmem:[%s4502_s20 + $0x30] sm:$0xff] }
0x1197   : > { %3705 = vmatmul.mubr.msk.f32.vlgmr.msra.gmra.mrb[24].mxu1 %vm2108_vm4, %v2615_v31  ;;  %v3140_v31 = vld [vmem:[%s4502_s20 + $0x38] sm:$0xff] }
0x1198   : > { %3709 = vmatprep.mubr.msk.f32.mxu1 %vm3948_vm0, %v3949_v6  ;;  %3708 = vmatpush3.msra.mxu1 %v2695_v36 }
0x1199   : > { %3817 = vmatprep.subr.bf16.mxu1 %v3947_v3 }
0x11c6   : > { %v2855_v11 = vpop.xlane.xlu0 %2854 }
0x11c7   : > { %v2856_v32 = vsub.f32 %v2852_v22, %v2855_v11  ;;  %v3836_v11 = vpack.c.bf16 %v3140_v31, %v3139_v30 }
0x11c9   : > { %v2857_v33 = vmul.f32 1.442695, %v2856_v32  ;;  %v3460_v32 = vld [vmem:[%s4501_s19] ss:$0 sm:$0xff] }
0x11cb   : > { %3931 = vpow2.f32 %v2857_v33 }
0x11d5   : > { %v3932_v34 = vpop.eup %3931 }
0x11d6   : > { %v2859_v35 = vsel %vm2108_vm4, %v3932_v34, 0.0 }
0x11d7   : > { %2860 = vadd.xlane.f32.xlu1 %v2859_v35 }
0x11e8   : > { %3897 = vrot.lane.b32.xlu1 %v4283_v10, %s4549_s1 }
0x1203   : > { %v2517_v39 = vpop.f32.mrb[22].mxu1 }
0x1204   : > { %v2521_v40 = vadd.f32 %v2517_v39, %v2273_v38  ;;  %v3692_v41 = vpop.f32.mrb[23].mxu1 }
0x1264   : > { %v2861_v42 = vpop.xlane.xlu1 %2860 }
0x1265   : > { %3933 = vrcp.f32 %v2861_v42 }
0x1268   : > { %v3898_v43 = vpop.permute.xlu1 %3897 }
0x1269   : > { %v3900_v44 = vunpack.i.h.bf16 %v3898_v43  ;;  %v3899_v10 = vunpack.i.l.bf16 %v3898_v43 }
0x126a   : > { %v2691_v8 = vpop.f32.mrb[24].mxu1 }
0x126b   : > { %v3818_v45 = vpack.c.bf16 %v3900_v44, %v3899_v10  ;;  %v3706_v46 = vpop.f32.mrb[25].mxu1  ;;  %3710 = vmatmul.mubr.msk.f32.vlgmr.msra.gmra.mrb[26].mxu1 %vm852_vm2, %v2691_v8 }
0x126c   : > { %3723 = vmatprep.mubr.msk.f32.mxu1 %vm3948_vm0, %v3949_v6  ;;  %v3253_v46 = vld [vmem:[%s4504_s22 + $0x8] sm:$0xff] }
0x126d   : > { %3819 = vmatpush3.bf16.msra.mxu1 %v3818_v45  ;;  %v3252_v45 = vld [vmem:[%s4504_s22] sm:$0xff] }
0x126e   : > { %3726 = vmatprep.subr.mxu1 %v3949_v6 }
0x126f   : > { %v3934_v47 = vpop.eup %3933 }
0x1270   : > { %v2863_v48 = vmul.f32 %v3934_v47, %v3932_v34  ;;  %v3839_v47 = vpack.c.bf16 %v3253_v46, %v3252_v45 }
0x1272   : > { %3724 = vmatmul.mubr.msk.f32.vlgmr.msra.gmra.mrb[28].mxu1 %vm2108_vm4, %v2863_v48  ;;  %v3254_v48 = vld [vmem:[%s4504_s22 + $0x10] sm:$0xff] }
0x1273   : > { %3728 = vmatprep.mubr.msk.f32.mxu1 %vm3948_vm0, %v3949_v6  ;;  %3727 = vmatpush3.msra.mxu1 %v2943_v49  ;;  %v3255_v49 = vld [vmem:[%s4504_s22 + $0x18] sm:$0xff] }
0x1274   : > { %3826 = vmatprep.subr.bf16.mxu1 %v3947_v3 }
0x133e   : > { %v2765_v50 = vpop.f32.mrb[26].mxu1 }
0x133f   : > { %v2769_v51 = vadd.f32 %v2765_v50, %v2521_v40  ;;  %v3711_v52 = vpop.f32.mrb[27].mxu1  ;;  %v3842_v50 = vpack.c.bf16 %v3255_v49, %v3254_v48 }
0x1345   : > { %v2939_v53 = vpop.f32.mrb[28].mxu1 }
0x1346   : > { %v3725_v54 = vpop.f32.mrb[29].mxu1  ;;  %3729 = vmatmul.mubr.msk.f32.vlgmr.msra.gmra.mrb[30].mxu1 %vm852_vm2, %v2939_v53 }
0x1347   : > { %3758 = vmatprep.mubr.msk.f32.mxu1 %vm3948_vm0, %v3949_v6  ;;  %3828 = vmatpush3.bf16.msra.mxu1 %v3827_v15 }
0x1348   : > { %3829 = vmatprep.subr.bf16.mxu1 %v3947_v3 }
0x134b   : > { %3831 = vmatpush3.bf16.msra.mxu1 %v3830_v17 }
0x134c   : > { %3832 = vmatprep.subr.bf16.mxu1 %v3947_v3 }
0x134f   : > { %3834 = vmatpush3.bf16.msra.mxu1 %v3833_v20 }
0x1350   : > { %3835 = vmatprep.subr.bf16.mxu1 %v3947_v3 }
0x1353   : > { %3837 = vmatpush3.bf16.msra.mxu1 %v3836_v11 }
0x1419   : > { %v3013_v55 = vpop.f32.mrb[30].mxu1 }
0x141a   : > { %v3017_v56 = vadd.f32 %v3013_v55, %v2769_v51  ;;  %v3730_v57 = vpop.f32.mrb[31].mxu1 }
0x141c   : > { %v3018_v58 = vadd.f32 %v3017_v56, %v4268_v0  ;;  %v3050_v0 = vld [vmem:[%s4500_s18 + $0x10] sm:$0xff]  ;;  %v3465_v56 = vld [vmem:[%s4499_s17] ss:$0 sm:$0xff] }
0x141d   : > { %v3824_v9 = vpack.c.bf16 %v3051_v7, %v3050_v0 }
0x141e   : > { %v3019_v59 = vsel %vm767_vm1, %v3018_v58, 0.0 }
0x141f   : > { %3020 = vadd.xlane.f32.xlu1 %v3019_v59  ;;  %3825 = vmatpush3.bf16.msra.mxu0 %v3824_v9  ;;  %v3466_v59 = vld [vmem:[%s4505_s23] ss:$0 sm:$0xff] }
0x1420   : > { %3838 = vmatprep.subr.bf16.mxu0 %v3947_v3 }
0x14ac   : > { %v3021_v60 = vpop.xlane.xlu1 %3020 }
0x14ad   : > { %v3022_v61 = vmul.f32 0.03125, %v3021_v60 }
0x14af   : > { %v3023_v62 = vsub.f32 %v3018_v58, %v3022_v61 }
0x14b1   : > { %v3024_v63 = vmul.f32 %v3023_v62, %v3023_v62 }
0x14b3   : > { %v3025_v1 = vsel %vm767_vm1, %v3024_v63, 0.0 }
0x14b4   : > { %3026 = vadd.xlane.f32.xlu0 %v3025_v1 }
0x1541   : > { %v3027_v21 = vpop.xlane.xlu0 %3026 }
0x1542   : > { %v3028_v22 = vmul.f32 0.03125, %v3027_v21 }
0x1544   : > { %v3029_v23 = vadd.f32 1e-05, %v3028_v22 }
0x1546   : > { %3935 = vrsqrt.f32 %v3029_v23 }
0x1550   : > { %v3936_v24 = vpop.eup %3935 }
0x1551   : > { %v3031_v26 = vmul.f32 %v3936_v24, %v3023_v62 }
0x1553   : > { %v3039_v28 = vmul.f32 %v3458_v25, %v3031_v26 }
0x1555   : > { %v3047_v29 = vadd.f32 %v3459_v27, %v3039_v28 }
0x1557   : > { %3740 = vmatmul.mubr.msk.f32.vlgmr.msra.gmra.mrb[22].mxu0 %vm767_vm1, %v3047_v29 }
0x1558   : > { %3769 = vmatprep.mubr.msk.f32.mxu0 %vm3948_vm0, %v3949_v6  ;;  %v3462_v6 = vld [vmem:[%s4503_s21] ss:$0 sm:$0xff]  ;;  %3840 = vmatpush3.bf16.msra.mxu0 %v3839_v47 }
0x1559   : > { %3841 = vmatprep.subr.bf16.mxu0 %v3947_v3  ;;  %v3464_v3 = vld [vmem:[%s4498_s16] ss:$0 sm:$0xff] }
0x155c   : > { %3843 = vmatpush3.bf16.msra.mxu0 %v3842_v50 }
0x162a   : > { %v3128_v33 = vpop.f32.mrb[22].mxu0 }
0x162b   : > { %v3129_v34 = vadd.f32 %v3460_v32, %v3128_v33  ;;  %v3741_v35 = vpop.f32.mrb[23].mxu0 }
0x162d   : > { %v3132_v36 = vmax.f32 %v3129_v34, 0.0 }
0x162f   : > { %3759 = vmatmul.mubr.msk.f32.vlgmr.msra.gmra.mrb[32].mxu1 %vm3148_vm5, %v3132_v36 }
0x1702   : > { %v3218_v37 = vpop.f32.mrb[32].mxu1 }
0x1703   : > { %v3219_v38 = vadd.f32 %v3462_v6, %v3218_v37  ;;  %v3760_v39 = vpop.f32.mrb[33].mxu1 }
0x1705   : > { %v3222_v40 = vadd.f32 %v3219_v38, %v3047_v29 }
0x1707   : > { %v3223_v41 = vsel %vm767_vm1, %v3222_v40, 0.0 }
0x1708   : > { %3224 = vadd.xlane.f32.xlu0 %v3223_v41 }
0x1795   : > { %v3225_v42 = vpop.xlane.xlu0 %3224 }
0x1796   : > { %v3226_v43 = vmul.f32 0.03125, %v3225_v42 }
0x1798   : > { %v3227_v44 = vsub.f32 %v3222_v40, %v3226_v43 }
0x179a   : > { %v3228_v10 = vmul.f32 %v3227_v44, %v3227_v44 }
0x179c   : > { %v3229_v8 = vsel %vm767_vm1, %v3228_v10, 0.0 }
0x179d   : > { %3230 = vadd.xlane.f32.xlu0 %v3229_v8 }
0x182a   : > { %v3231_v51 = vpop.xlane.xlu0 %3230 }
0x182b   : > { %v3232_v52 = vmul.f32 0.03125, %v3231_v51 }
0x182d   : > { %v3233_v53 = vadd.f32 1e-05, %v3232_v52 }
0x182f   : > { %3937 = vrsqrt.f32 %v3233_v53 }
0x1839   : > { %v3938_v54 = vpop.eup %3937 }
0x183a   : > { %v3235_v55 = vmul.f32 %v3938_v54, %v3227_v44 }
0x183c   : > { %v3243_v57 = vmul.f32 %v3464_v3, %v3235_v55 }
0x183e   : > { %v3251_v58 = vadd.f32 %v3465_v56, %v3243_v57 }
0x1840   : > { %3770 = vmatmul.mubr.msk.f32.vlgmr.msra.gmra.mrb[24].mxu0 %vm767_vm1, %v3251_v58 }
0x1913   : > { %v3332_v60 = vpop.f32.mrb[24].mxu0 }
0x1914   : > { %v3333_v61 = vadd.f32 %v3466_v59, %v3332_v60  ;;  %v3771_v62 = vpop.f32.mrb[25].mxu0 }
0x1916   : > { %3336 = vst [vmem:[%s752_s0] sm:$0xff] %v3333_v61 }
0x1917 PF: > { %s34_s5 = sadd.s32 1, %s3945_s5  }
0x1918   : > { %p31_p4 = scmp.ge.s32.totalorder %s34_s5, 4  }
0x191a   :  { %33 = sbr.rel (!%p31_p4) target bundleno = 10 (0xa), region = 149 }

</bundles_post_ra>
